<compile_context>
chip_gen: v7x
topology: tpu7x:2x2x1
jax: 0.10.0
libtpu: 0.0.40
codegen_flags: <defaults>
</compile_context>

<pallas_src>
import jax
import jax.numpy as jnp
from jax.experimental import pallas as pl
from jax.experimental.pallas import tpu as pltpu

_BN_EPS = 1e-5


# ----------------------------- in-kernel helpers ----------------------------

def _pad_into(pad_ref, interior, H, W):
    """Write `interior` (H, W, C) into the centre of the (H+2, W+2, C) VMEM
    scratch and zero only the 1-pixel halo frame (not the whole buffer)."""
    C = pad_ref.shape[-1]
    zrow = jnp.zeros((1, W + 2, C), pad_ref.dtype)
    zcol = jnp.zeros((H, 1, C), pad_ref.dtype)
    pad_ref[0:1, :, :] = zrow
    pad_ref[H + 1:H + 2, :, :] = zrow
    pad_ref[1:H + 1, 0:1, :] = zcol
    pad_ref[1:H + 1, W + 1:W + 2, :] = zcol
    pad_ref[1:H + 1, 1:W + 1, :] = interior


def _conv3x3_taps(pad_ref, w_ref, H, W, Cin, Cout):
    """3x3 / stride-1 conv of the padded tile: 9 shifted taps, each a
    (H*W, Cin) x (Cin, Cout) bf16 MXU dot, accumulated in f32."""
    acc = jnp.zeros((H * W, Cout), jnp.float32)
    for dy in range(3):
        for dx in range(3):
            tap = pad_ref[dy:dy + H, dx:dx + W, :].reshape(H * W, Cin)
            acc = acc + jnp.dot(tap, w_ref[dy * 3 + dx],
                                preferred_element_type=jnp.float32)
    return acc


# -------------------------------- kernels -----------------------------------

def _conv_stats_kernel(x_ref, w_ref, raw_ref, sum_ref, sq_ref, xpad_ref):
    """conv1 (3x3 / s1 / p1 / no bias) + per-image channel sum / sum-of-sq."""
    _, H, W, C = x_ref.shape
    P = w_ref.shape[-1]
    _pad_into(xpad_ref, x_ref[0], H, W)
    acc = _conv3x3_taps(xpad_ref, w_ref, H, W, C, P)
    # BN statistics from the f32 accumulator, *before* the bf16 downcast.
    sum_ref[...] = jnp.sum(acc, axis=0).reshape(1, 1, P)
    sq_ref[...] = jnp.sum(acc * acc, axis=0).reshape(1, 1, P)
    raw_ref[...] = acc.reshape(1, H, W, P).astype(jnp.bfloat16)


def _bn_relu_conv_stats_kernel(raw1_ref, s_ref, b_ref, w_ref,
                               raw2_ref, sum_ref, sq_ref, hpad_ref):
    """bn1-apply + ReLU fused into conv2's padded-tile write, + conv2 stats."""
    _, H, W, P = raw1_ref.shape
    Pout = w_ref.shape[-1]
    # Single elementwise chain (f32 scale/shift, ReLU, bf16 cast) streamed
    # straight into the interior store of the padded scratch.
    h_bf = jnp.maximum(
        raw1_ref[0].astype(jnp.float32) * s_ref[...] + b_ref[...],
        0.0).astype(jnp.bfloat16)
    _pad_into(hpad_ref, h_bf, H, W)
    acc = _conv3x3_taps(hpad_ref, w_ref, H, W, P, Pout)
    sum_ref[...] = jnp.sum(acc, axis=0).reshape(1, 1, Pout)
    sq_ref[...] = jnp.sum(acc * acc, axis=0).reshape(1, 1, Pout)
    raw2_ref[...] = acc.reshape(1, H, W, Pout).astype(jnp.bfloat16)


def _bn_add_relu_kernel(raw2_ref, s_ref, b_ref, res_ref, out_ref):
    """bn2-apply + identity residual add + ReLU."""
    _, H, W, P = raw2_ref.shape
    y = (raw2_ref[0].astype(jnp.float32) * s_ref[...] + b_ref[...]
         + res_ref[0].astype(jnp.float32))
    out_ref[...] = jnp.maximum(y, 0.0).reshape(1, H, W, P)


# ------------------------------ pallas_call glue ----------------------------

def _vmem_limit_bytes():
    # ~75% of physical VMEM: ~96 MiB on v5e/v6e (128 MiB), ~48 MiB on v7x (64).
    try:
        cap = int(getattr(pltpu.get_tpu_info(), "vmem_capacity_bytes",
                          128 * 1024 * 1024))
    except Exception:
        cap = 128 * 1024 * 1024
    return max(32 * 1024 * 1024, min((cap * 3) // 4, 100 * 1024 * 1024))


def _compiler_params():
    return pltpu.CompilerParams(
        dimension_semantics=("parallel",),      # batch axis -> megacore / 2 TCs
        vmem_limit_bytes=_vmem_limit_bytes())


def _conv1_stats(x_bf, w_k):
    N, H, W, C = x_bf.shape
    P = w_k.shape[-1]
    return pl.pallas_call(
        _conv_stats_kernel,
        grid=(N,),
        in_specs=[
            pl.BlockSpec((1, H, W, C), lambda n: (n, 0, 0, 0)),
            pl.BlockSpec((9, C, P), lambda n: (0, 0, 0)),
        ],
        out_specs=[
            pl.BlockSpec((1, H, W, P), lambda n: (n, 0, 0, 0)),
            pl.BlockSpec((1, 1, P), lambda n: (n, 0, 0)),
            pl.BlockSpec((1, 1, P), lambda n: (n, 0, 0)),
        ],
        out_shape=[
            jax.ShapeDtypeStruct((N, H, W, P), jnp.bfloat16),   # raw1 (bf16)
            jax.ShapeDtypeStruct((N, 1, P), jnp.float32),       # channel sum
            jax.ShapeDtypeStruct((N, 1, P), jnp.float32),       # channel sumsq
        ],
        scratch_shapes=[pltpu.VMEM((H + 2, W + 2, C), jnp.bfloat16)],
        compiler_params=_compiler_params(),
    )(x_bf, w_k)


def _bn_relu_conv2_stats(raw1, scale1, shift1, w_k):
    N, H, W, P = raw1.shape
    Pout = w_k.shape[-1]
    return pl.pallas_call(
        _bn_relu_conv_stats_kernel,
        grid=(N,),
        in_specs=[
            pl.BlockSpec((1, H, W, P), lambda n: (n, 0, 0, 0)),
            pl.BlockSpec((1, P), lambda n: (0, 0)),
            pl.BlockSpec((1, P), lambda n: (0, 0)),
            pl.BlockSpec((9, P, Pout), lambda n: (0, 0, 0)),
        ],
        out_specs=[
            pl.BlockSpec((1, H, W, Pout), lambda n: (n, 0, 0, 0)),
            pl.BlockSpec((1, 1, Pout), lambda n: (n, 0, 0)),
            pl.BlockSpec((1, 1, Pout), lambda n: (n, 0, 0)),
        ],
        out_shape=[
            jax.ShapeDtypeStruct((N, H, W, Pout), jnp.bfloat16),  # raw2 (bf16)
            jax.ShapeDtypeStruct((N, 1, Pout), jnp.float32),
            jax.ShapeDtypeStruct((N, 1, Pout), jnp.float32),
        ],
        scratch_shapes=[pltpu.VMEM((H + 2, W + 2, P), jnp.bfloat16)],
        compiler_params=_compiler_params(),
    )(raw1, scale1, shift1, w_k)


def _bn2_add_relu(raw2, scale2, shift2, residual_bf):
    N, H, W, P = raw2.shape
    return pl.pallas_call(
        _bn_add_relu_kernel,
        grid=(N,),
        in_specs=[
            pl.BlockSpec((1, H, W, P), lambda n: (n, 0, 0, 0)),
            pl.BlockSpec((1, P), lambda n: (0, 0)),
            pl.BlockSpec((1, P), lambda n: (0, 0)),
            pl.BlockSpec((1, H, W, P), lambda n: (n, 0, 0, 0)),
        ],
        out_specs=pl.BlockSpec((1, H, W, P), lambda n: (n, 0, 0, 0)),
        out_shape=jax.ShapeDtypeStruct((N, H, W, P), jnp.float32),
        compiler_params=_compiler_params(),
    )(raw2, scale2, shift2, residual_bf)


def _bn_fold(sum_p, sq_p, gamma, beta, count):
    """Fold global batch stats into per-channel (scale, shift).  Tiny O(C)
    wrapper op between kernels, so the batch grid axis stays 'parallel' while
    BN statistics remain global (correct under batch tiling)."""
    s = jnp.sum(sum_p[:, 0, :], axis=0)
    ss = jnp.sum(sq_p[:, 0, :], axis=0)
    mean = s / count
    var = ss / count - mean * mean                 # biased variance (training)
    inv = jax.lax.rsqrt(var + _BN_EPS)
    scale = gamma.reshape(-1).astype(jnp.float32) * inv
    shift = beta.reshape(-1).astype(jnp.float32) - mean * scale
    return scale.reshape(1, -1), shift.reshape(1, -1)


@jax.jit
def basic_block_forward(x_nchw, params):
    """BasicBlock forward (stride=1, identity shortcut, training-mode BN)."""
    w1, g1, b1, w2, g2, b2 = params                    # conv weights in HWIO
    N, C, H, W = x_nchw.shape
    P = w1.shape[-1]
    assert C == P, "identity shortcut needs inplanes == planes"

    # Boundary pass: NCHW -> NHWC + bf16 cast (conv operands).
    # TODO(synk): an NHWC-native model would delete this and the exit transpose.
    x_bf = jnp.transpose(x_nchw, (0, 2, 3, 1)).astype(jnp.bfloat16)
    w1_k = w1.reshape(9, C, P).astype(jnp.bfloat16)    # tap-major (dy*3+dx,...)
    w2_k = w2.reshape(9, P, P).astype(jnp.bfloat16)

    count = N * H * W
    raw1, s1, q1 = _conv1_stats(x_bf, w1_k)
    scale1, shift1 = _bn_fold(s1, q1, g1, b1, count)
    raw2, s2, q2 = _bn_relu_conv2_stats(raw1, scale1, shift1, w2_k)
    scale2, shift2 = _bn_fold(s2, q2, g2, b2, count)
    out = _bn2_add_relu(raw2, scale2, shift2, x_bf)    # (N, H, W, P) f32
    return jnp.transpose(out, (0, 3, 1, 2))            # NHWC -> NCHW


# ------------------------------ pure-JAX reference ---------------------------

def _reference_forward(x_nchw, w1_hwio, w2_hwio, g1, b1, g2, b2):
    """Reference mirroring the kernel's mixed-precision policy: bf16 conv
    operands and bf16 inter-stage tensors, f32 accumulation and f32 BN."""
    def q(t):
        return t.astype(jnp.bfloat16).astype(jnp.float32)

    x = jnp.transpose(x_nchw, (0, 2, 3, 1)).astype(jnp.float32)
    count = x.shape[0] * x.shape[1] * x.shape[2]

    def conv(inp, w):
        return jax.lax.conv_general_dilated(
            inp, w, window_strides=(1, 1), padding=((1, 1), (1, 1)),
            dimension_numbers=("NHWC", "HWIO", "NHWC"),
            precision=jax.lax.Precision.HIGHEST)

    def fold(y, g, b):
        s = jnp.sum(y, axis=(0, 1, 2))
        ss = jnp.sum(y * y, axis=(0, 1, 2))
        mean = s / count
        var = ss / count - mean * mean
        scale = g.astype(jnp.float32) * jax.lax.rsqrt(var + _BN_EPS)
        shift = b.astype(jnp.float32) - mean * scale
        return scale.reshape(1, 1, 1, -1), shift.reshape(1, 1, 1, -1)

    r1 = conv(q(x), q(w1_hwio))
    sc1, sh1 = fold(r1, g1, b1)
    h = jnp.maximum(q(r1) * sc1 + sh1, 0.0)
    r2 = conv(q(h), q(w2_hwio))
    sc2, sh2 = fold(r2, g2, b2)
    out = jnp.maximum(q(r2) * sc2 + sh2 + q(x), 0.0)
    return jnp.transpose(out, (0, 3, 1, 2))


# ---------------------------------- main -------------------------------------

def _check(N, C, H, W):
    planes = C                      # identity shortcut needs inplanes == planes
    key = jax.random.PRNGKey(0)
    kx, kw1, kw2, kg1, kb1, kg2, kb2 = jax.random.split(key, 7)

    x = jax.random.normal(kx, (N, C, H, W), jnp.float32)
    w1_oihw = jax.random.normal(kw1, (planes, C, 3, 3), jnp.float32) \
        * (2.0 / (C * 9)) ** 0.5
    w2_oihw = jax.random.normal(kw2, (planes, planes, 3, 3), jnp.float32) \
        * (2.0 / (planes * 9)) ** 0.5
    g1 = 1.0 + 0.1 * jax.random.normal(kg1, (planes,), jnp.float32)
    b1 = 0.1 * jax.random.normal(kb1, (planes,), jnp.float32)
    g2 = 1.0 + 0.1 * jax.random.normal(kg2, (planes,), jnp.float32)
    b2 = 0.1 * jax.random.normal(kb2, (planes,), jnp.float32)

    w1_hwio = jnp.transpose(w1_oihw, (2, 3, 1, 0))
    w2_hwio = jnp.transpose(w2_oihw, (2, 3, 1, 0))
    params = (w1_hwio, g1, b1, w2_hwio, g2, b2)

    out = jax.block_until_ready(basic_block_forward(x, params))
    ref = _reference_forward(x, w1_hwio, w2_hwio, g1, b1, g2, b2)

    assert out.shape == (N, planes, H, W)
    max_err = float(jnp.max(jnp.abs(out - ref)))
    # 2e-2 tolerance: quantization points match the reference, but the bf16
    # rounding of raw1/raw2 can flip by one ulp on rounding-boundary elements
    # (f32 accumulation order differs between the 9-tap MXU dots and lax.conv).
    assert jnp.allclose(out, ref, atol=2e-2, rtol=2e-2), \
        f"shape {(N, C, H, W)} max_err={max_err}"


if __name__ == "__main__":
    _check(2, 4, 16, 16)    # small spec-consistent shape
    _check(2, 64, 8, 8)     # lane-aligned channel width
    print("KERNEL_OK")
</pallas_src>

<mosaic_0001>
module attributes {stable_mosaic.version = 11 : i64} {
  func.func @_conv_stats_kernel(%arg0: i32, %arg1: memref<1x16x16x4xbf16, #tpu.memory_space<vmem>>, %arg2: memref<9x4x4xbf16, #tpu.memory_space<vmem>>, %arg3: memref<1x16x16x4xbf16, #tpu.memory_space<vmem>>, %arg4: memref<1x1x4xf32, #tpu.memory_space<vmem>>, %arg5: memref<1x1x4xf32, #tpu.memory_space<vmem>>, %arg6: memref<18x18x4xbf16, #tpu.memory_space<vmem>>) attributes {dimension_semantics = [#tpu.dimension_semantics<parallel>], iteration_bounds = array<i64: 2>, scalar_prefetch = 0 : i64, scratch_operands = 1 : i64, tpu.core_type = #tpu.core_type<tc>, window_params = [{transform_indices = @transform_0, window_bounds = array<i64: 1, 16, 16, 4>}, {pipeline_mode = #tpu.pipeline_mode<synchronous>, transform_indices = @transform_1, window_bounds = array<i64: 9, 4, 4>}, {transform_indices = @transform_2, window_bounds = array<i64: 1, 16, 16, 4>}, {transform_indices = @transform_3, window_bounds = array<i64: 1, 1, 4>}, {transform_indices = @transform_4, window_bounds = array<i64: 1, 1, 4>}]} {
    %c0 = arith.constant 0 : index
    %c0_0 = arith.constant 0 : index
    %c0_1 = arith.constant 0 : index
    %c0_2 = arith.constant 0 : index
    %0 = vector.load %arg1[%c0, %c0_0, %c0_1, %c0_2] : memref<1x16x16x4xbf16, #tpu.memory_space<vmem>>, vector<1x16x16x4xbf16>
    %1 = vector.shape_cast %0 : vector<1x16x16x4xbf16> to vector<16x16x4xbf16>
    %cst = arith.constant 0.000000e+00 : bf16
    %2 = vector.broadcast %cst : bf16 to vector<1x18x4xbf16>
    %cst_3 = arith.constant 0.000000e+00 : bf16
    %3 = vector.broadcast %cst_3 : bf16 to vector<16x1x4xbf16>
    %c0_4 = arith.constant 0 : index
    %c0_5 = arith.constant 0 : index
    %c0_6 = arith.constant 0 : index
    %4 = vector.load %arg6[%c0_4, %c0_5, %c0_6] : memref<18x18x4xbf16, #tpu.memory_space<vmem>>, vector<1x18x4xbf16>
    tpu.vector_store %arg6[%c0_4, %c0_5, %c0_6], %2 {strides = array<i32>} : memref<18x18x4xbf16, #tpu.memory_space<vmem>>, vector<1x18x4xbf16>,
    %c17 = arith.constant 17 : index
    %c0_7 = arith.constant 0 : index
    %c0_8 = arith.constant 0 : index
    %5 = vector.load %arg6[%c17, %c0_7, %c0_8] : memref<18x18x4xbf16, #tpu.memory_space<vmem>>, vector<1x18x4xbf16>
    tpu.vector_store %arg6[%c17, %c0_7, %c0_8], %2 {strides = array<i32>} : memref<18x18x4xbf16, #tpu.memory_space<vmem>>, vector<1x18x4xbf16>,
    %c1 = arith.constant 1 : index
    %c0_9 = arith.constant 0 : index
    %c0_10 = arith.constant 0 : index
    %6 = vector.load %arg6[%c1, %c0_9, %c0_10] : memref<18x18x4xbf16, #tpu.memory_space<vmem>>, vector<16x1x4xbf16>
    tpu.vector_store %arg6[%c1, %c0_9, %c0_10], %3 {strides = array<i32>} : memref<18x18x4xbf16, #tpu.memory_space<vmem>>, vector<16x1x4xbf16>,
    %c1_11 = arith.constant 1 : index
    %c17_12 = arith.constant 17 : index
    %c0_13 = arith.constant 0 : index
    %7 = vector.load %arg6[%c1_11, %c17_12, %c0_13] : memref<18x18x4xbf16, #tpu.memory_space<vmem>>, vector<16x1x4xbf16>
    tpu.vector_store %arg6[%c1_11, %c17_12, %c0_13], %3 {strides = array<i32>} : memref<18x18x4xbf16, #tpu.memory_space<vmem>>, vector<16x1x4xbf16>,
    %c1_14 = arith.constant 1 : index
    %c1_15 = arith.constant 1 : index
    %c0_16 = arith.constant 0 : index
    %8 = vector.load %arg6[%c1_14, %c1_15, %c0_16] : memref<18x18x4xbf16, #tpu.memory_space<vmem>>, vector<16x16x4xbf16>
    tpu.vector_store %arg6[%c1_14, %c1_15, %c0_16], %1 {strides = array<i32>} : memref<18x18x4xbf16, #tpu.memory_space<vmem>>, vector<16x16x4xbf16>,
    %cst_17 = arith.constant 0.000000e+00 : f32
    %9 = vector.broadcast %cst_17 : f32 to vector<256x4xf32>
    %c0_18 = arith.constant 0 : index
    %c0_19 = arith.constant 0 : index
    %c0_20 = arith.constant 0 : index
    %10 = vector.load %arg6[%c0_18, %c0_19, %c0_20] : memref<18x18x4xbf16, #tpu.memory_space<vmem>>, vector<16x16x4xbf16>
    %11 = vector.shape_cast %10 : vector<16x16x4xbf16> to vector<256x4xbf16>
    %c0_21 = arith.constant 0 : index
    %c0_22 = arith.constant 0 : index
    %c0_23 = arith.constant 0 : index
    %12 = vector.load %arg2[%c0_21, %c0_22, %c0_23] : memref<9x4x4xbf16, #tpu.memory_space<vmem>>, vector<1x4x4xbf16>
    %13 = vector.shape_cast %12 : vector<1x4x4xbf16> to vector<4x4xbf16>
    %cst_24 = arith.constant dense<0.000000e+00> : vector<256x4xf32>
    %14 = tpu.matmul %11, %13, %cst_24 {dimension_numbers = #tpu.dot_dimension_numbers<[1], [0], [0], [1], [0, 0, 1, 1], [], []>} : vector<256x4xbf16>, vector<4x4xbf16>, vector<256x4xf32> -> vector<256x4xf32>
    %15 = arith.addf %9, %14 : vector<256x4xf32>
    %c0_25 = arith.constant 0 : index
    %c1_26 = arith.constant 1 : index
    %c0_27 = arith.constant 0 : index
    %16 = vector.load %arg6[%c0_25, %c1_26, %c0_27] : memref<18x18x4xbf16, #tpu.memory_space<vmem>>, vector<16x16x4xbf16>
    %17 = vector.shape_cast %16 : vector<16x16x4xbf16> to vector<256x4xbf16>
    %c1_28 = arith.constant 1 : index
    %c0_29 = arith.constant 0 : index
    %c0_30 = arith.constant 0 : index
    %18 = vector.load %arg2[%c1_28, %c0_29, %c0_30] : memref<9x4x4xbf16, #tpu.memory_space<vmem>>, vector<1x4x4xbf16>
    %19 = vector.shape_cast %18 : vector<1x4x4xbf16> to vector<4x4xbf16>
    %cst_31 = arith.constant dense<0.000000e+00> : vector<256x4xf32>
    %20 = tpu.matmul %17, %19, %cst_31 {dimension_numbers = #tpu.dot_dimension_numbers<[1], [0], [0], [1], [0, 0, 1, 1], [], []>} : vector<256x4xbf16>, vector<4x4xbf16>, vector<256x4xf32> -> vector<256x4xf32>
    %21 = arith.addf %15, %20 : vector<256x4xf32>
    %c0_32 = arith.constant 0 : index
    %c2 = arith.constant 2 : index
    %c0_33 = arith.constant 0 : index
    %22 = vector.load %arg6[%c0_32, %c2, %c0_33] : memref<18x18x4xbf16, #tpu.memory_space<vmem>>, vector<16x16x4xbf16>
    %23 = vector.shape_cast %22 : vector<16x16x4xbf16> to vector<256x4xbf16>
    %c2_34 = arith.constant 2 : index
    %c0_35 = arith.constant 0 : index
    %c0_36 = arith.constant 0 : index
    %24 = vector.load %arg2[%c2_34, %c0_35, %c0_36] : memref<9x4x4xbf16, #tpu.memory_space<vmem>>, vector<1x4x4xbf16>
    %25 = vector.shape_cast %24 : vector<1x4x4xbf16> to vector<4x4xbf16>
    %cst_37 = arith.constant dense<0.000000e+00> : vector<256x4xf32>
    %26 = tpu.matmul %23, %25, %cst_37 {dimension_numbers = #tpu.dot_dimension_numbers<[1], [0], [0], [1], [0, 0, 1, 1], [], []>} : vector<256x4xbf16>, vector<4x4xbf16>, vector<256x4xf32> -> vector<256x4xf32>
    %27 = arith.addf %21, %26 : vector<256x4xf32>
    %c1_38 = arith.constant 1 : index
    %c0_39 = arith.constant 0 : index
    %c0_40 = arith.constant 0 : index
    %28 = vector.load %arg6[%c1_38, %c0_39, %c0_40] : memref<18x18x4xbf16, #tpu.memory_space<vmem>>, vector<16x16x4xbf16>
    %29 = vector.shape_cast %28 : vector<16x16x4xbf16> to vector<256x4xbf16>
    %c3 = arith.constant 3 : index
    %c0_41 = arith.constant 0 : index
    %c0_42 = arith.constant 0 : index
    %30 = vector.load %arg2[%c3, %c0_41, %c0_42] : memref<9x4x4xbf16, #tpu.memory_space<vmem>>, vector<1x4x4xbf16>
    %31 = vector.shape_cast %30 : vector<1x4x4xbf16> to vector<4x4xbf16>
    %cst_43 = arith.constant dense<0.000000e+00> : vector<256x4xf32>
    %32 = tpu.matmul %29, %31, %cst_43 {dimension_numbers = #tpu.dot_dimension_numbers<[1], [0], [0], [1], [0, 0, 1, 1], [], []>} : vector<256x4xbf16>, vector<4x4xbf16>, vector<256x4xf32> -> vector<256x4xf32>
    %33 = arith.addf %27, %32 : vector<256x4xf32>
    %c1_44 = arith.constant 1 : index
    %c1_45 = arith.constant 1 : index
    %c0_46 = arith.constant 0 : index
    %34 = vector.load %arg6[%c1_44, %c1_45, %c0_46] : memref<18x18x4xbf16, #tpu.memory_space<vmem>>, vector<16x16x4xbf16>
    %35 = vector.shape_cast %34 : vector<16x16x4xbf16> to vector<256x4xbf16>
    %c4 = arith.constant 4 : index
    %c0_47 = arith.constant 0 : index
    %c0_48 = arith.constant 0 : index
    %36 = vector.load %arg2[%c4, %c0_47, %c0_48] : memref<9x4x4xbf16, #tpu.memory_space<vmem>>, vector<1x4x4xbf16>
    %37 = vector.shape_cast %36 : vector<1x4x4xbf16> to vector<4x4xbf16>
    %cst_49 = arith.constant dense<0.000000e+00> : vector<256x4xf32>
    %38 = tpu.matmul %35, %37, %cst_49 {dimension_numbers = #tpu.dot_dimension_numbers<[1], [0], [0], [1], [0, 0, 1, 1], [], []>} : vector<256x4xbf16>, vector<4x4xbf16>, vector<256x4xf32> -> vector<256x4xf32>
    %39 = arith.addf %33, %38 : vector<256x4xf32>
    %c1_50 = arith.constant 1 : index
    %c2_51 = arith.constant 2 : index
    %c0_52 = arith.constant 0 : index
    %40 = vector.load %arg6[%c1_50, %c2_51, %c0_52] : memref<18x18x4xbf16, #tpu.memory_space<vmem>>, vector<16x16x4xbf16>
    %41 = vector.shape_cast %40 : vector<16x16x4xbf16> to vector<256x4xbf16>
    %c5 = arith.constant 5 : index
    %c0_53 = arith.constant 0 : index
    %c0_54 = arith.constant 0 : index
    %42 = vector.load %arg2[%c5, %c0_53, %c0_54] : memref<9x4x4xbf16, #tpu.memory_space<vmem>>, vector<1x4x4xbf16>
    %43 = vector.shape_cast %42 : vector<1x4x4xbf16> to vector<4x4xbf16>
    %cst_55 = arith.constant dense<0.000000e+00> : vector<256x4xf32>
    %44 = tpu.matmul %41, %43, %cst_55 {dimension_numbers = #tpu.dot_dimension_numbers<[1], [0], [0], [1], [0, 0, 1, 1], [], []>} : vector<256x4xbf16>, vector<4x4xbf16>, vector<256x4xf32> -> vector<256x4xf32>
    %45 = arith.addf %39, %44 : vector<256x4xf32>
    %c2_56 = arith.constant 2 : index
    %c0_57 = arith.constant 0 : index
    %c0_58 = arith.constant 0 : index
    %46 = vector.load %arg6[%c2_56, %c0_57, %c0_58] : memref<18x18x4xbf16, #tpu.memory_space<vmem>>, vector<16x16x4xbf16>
    %47 = vector.shape_cast %46 : vector<16x16x4xbf16> to vector<256x4xbf16>
    %c6 = arith.constant 6 : index
    %c0_59 = arith.constant 0 : index
    %c0_60 = arith.constant 0 : index
    %48 = vector.load %arg2[%c6, %c0_59, %c0_60] : memref<9x4x4xbf16, #tpu.memory_space<vmem>>, vector<1x4x4xbf16>
    %49 = vector.shape_cast %48 : vector<1x4x4xbf16> to vector<4x4xbf16>
    %cst_61 = arith.constant dense<0.000000e+00> : vector<256x4xf32>
    %50 = tpu.matmul %47, %49, %cst_61 {dimension_numbers = #tpu.dot_dimension_numbers<[1], [0], [0], [1], [0, 0, 1, 1], [], []>} : vector<256x4xbf16>, vector<4x4xbf16>, vector<256x4xf32> -> vector<256x4xf32>
    %51 = arith.addf %45, %50 : vector<256x4xf32>
    %c2_62 = arith.constant 2 : index
    %c1_63 = arith.constant 1 : index
    %c0_64 = arith.constant 0 : index
    %52 = vector.load %arg6[%c2_62, %c1_63, %c0_64] : memref<18x18x4xbf16, #tpu.memory_space<vmem>>, vector<16x16x4xbf16>
    %53 = vector.shape_cast %52 : vector<16x16x4xbf16> to vector<256x4xbf16>
    %c7 = arith.constant 7 : index
    %c0_65 = arith.constant 0 : index
    %c0_66 = arith.constant 0 : index
    %54 = vector.load %arg2[%c7, %c0_65, %c0_66] : memref<9x4x4xbf16, #tpu.memory_space<vmem>>, vector<1x4x4xbf16>
    %55 = vector.shape_cast %54 : vector<1x4x4xbf16> to vector<4x4xbf16>
    %cst_67 = arith.constant dense<0.000000e+00> : vector<256x4xf32>
    %56 = tpu.matmul %53, %55, %cst_67 {dimension_numbers = #tpu.dot_dimension_numbers<[1], [0], [0], [1], [0, 0, 1, 1], [], []>} : vector<256x4xbf16>, vector<4x4xbf16>, vector<256x4xf32> -> vector<256x4xf32>
    %57 = arith.addf %51, %56 : vector<256x4xf32>
    %c2_68 = arith.constant 2 : index
    %c2_69 = arith.constant 2 : index
    %c0_70 = arith.constant 0 : index
    %58 = vector.load %arg6[%c2_68, %c2_69, %c0_70] : memref<18x18x4xbf16, #tpu.memory_space<vmem>>, vector<16x16x4xbf16>
    %59 = vector.shape_cast %58 : vector<16x16x4xbf16> to vector<256x4xbf16>
    %c8 = arith.constant 8 : index
    %c0_71 = arith.constant 0 : index
    %c0_72 = arith.constant 0 : index
    %60 = vector.load %arg2[%c8, %c0_71, %c0_72] : memref<9x4x4xbf16, #tpu.memory_space<vmem>>, vector<1x4x4xbf16>
    %61 = vector.shape_cast %60 : vector<1x4x4xbf16> to vector<4x4xbf16>
    %cst_73 = arith.constant dense<0.000000e+00> : vector<256x4xf32>
    %62 = tpu.matmul %59, %61, %cst_73 {dimension_numbers = #tpu.dot_dimension_numbers<[1], [0], [0], [1], [0, 0, 1, 1], [], []>} : vector<256x4xbf16>, vector<4x4xbf16>, vector<256x4xf32> -> vector<256x4xf32>
    %63 = arith.addf %57, %62 : vector<256x4xf32>
    %cst_74 = arith.constant dense<0.000000e+00> : vector<4xf32>
    %64 = vector.multi_reduction <add>, %63, %cst_74 [0] : vector<256x4xf32> to vector<4xf32>
    %65 = vector.shape_cast %64 : vector<4xf32> to vector<1x1x4xf32>
    %c0_75 = arith.constant 0 : index
    %c0_76 = arith.constant 0 : index
    %c0_77 = arith.constant 0 : index
    %66 = vector.load %arg4[%c0_75, %c0_76, %c0_77] : memref<1x1x4xf32, #tpu.memory_space<vmem>>, vector<1x1x4xf32>
    tpu.vector_store %arg4[%c0_75, %c0_76, %c0_77], %65 {strides = array<i32>} : memref<1x1x4xf32, #tpu.memory_space<vmem>>, vector<1x1x4xf32>,
    %67 = arith.mulf %63, %63 : vector<256x4xf32>
    %cst_78 = arith.constant dense<0.000000e+00> : vector<4xf32>
    %68 = vector.multi_reduction <add>, %67, %cst_78 [0] : vector<256x4xf32> to vector<4xf32>
    %69 = vector.shape_cast %68 : vector<4xf32> to vector<1x1x4xf32>
    %c0_79 = arith.constant 0 : index
    %c0_80 = arith.constant 0 : index
    %c0_81 = arith.constant 0 : index
    %70 = vector.load %arg5[%c0_79, %c0_80, %c0_81] : memref<1x1x4xf32, #tpu.memory_space<vmem>>, vector<1x1x4xf32>
    tpu.vector_store %arg5[%c0_79, %c0_80, %c0_81], %69 {strides = array<i32>} : memref<1x1x4xf32, #tpu.memory_space<vmem>>, vector<1x1x4xf32>,
    %71 = vector.shape_cast %63 : vector<256x4xf32> to vector<1x16x16x4xf32>
    %72 = arith.truncf %71 : vector<1x16x16x4xf32> to vector<1x16x16x4xbf16>
    %c0_82 = arith.constant 0 : index
    %c0_83 = arith.constant 0 : index
    %c0_84 = arith.constant 0 : index
    %c0_85 = arith.constant 0 : index
    %73 = vector.load %arg3[%c0_82, %c0_83, %c0_84, %c0_85] : memref<1x16x16x4xbf16, #tpu.memory_space<vmem>>, vector<1x16x16x4xbf16>
    tpu.vector_store %arg3[%c0_82, %c0_83, %c0_84, %c0_85], %72 {strides = array<i32>} : memref<1x16x16x4xbf16, #tpu.memory_space<vmem>>, vector<1x16x16x4xbf16>,
    return
  }
  func.func @transform_0(%arg0: i32) -> (i32, i32, i32, i32) {
    %c0_i32 = arith.constant 0 : i32
    %c0_i32_0 = arith.constant 0 : i32
    %c0_i32_1 = arith.constant 0 : i32
    %c0_i32_2 = arith.constant 0 : i32
    return %arg0, %c0_i32, %c0_i32_0, %c0_i32_1 : i32, i32, i32, i32
  }
  func.func @transform_1(%arg0: i32) -> (i32, i32, i32) {
    %c0_i32 = arith.constant 0 : i32
    %c0_i32_0 = arith.constant 0 : i32
    %c0_i32_1 = arith.constant 0 : i32
    %c0_i32_2 = arith.constant 0 : i32
    return %c0_i32, %c0_i32_0, %c0_i32_1 : i32, i32, i32
  }
  func.func @transform_2(%arg0: i32) -> (i32, i32, i32, i32) {
    %c0_i32 = arith.constant 0 : i32
    %c0_i32_0 = arith.constant 0 : i32
    %c0_i32_1 = arith.constant 0 : i32
    %c0_i32_2 = arith.constant 0 : i32
    return %arg0, %c0_i32, %c0_i32_0, %c0_i32_1 : i32, i32, i32, i32
  }
  func.func @transform_3(%arg0: i32) -> (i32, i32, i32) {
    %c0_i32 = arith.constant 0 : i32
    %c0_i32_0 = arith.constant 0 : i32
    %c0_i32_1 = arith.constant 0 : i32
    return %arg0, %c0_i32, %c0_i32_0 : i32, i32, i32
  }
  func.func @transform_4(%arg0: i32) -> (i32, i32, i32) {
    %c0_i32 = arith.constant 0 : i32
    %c0_i32_0 = arith.constant 0 : i32
    %c0_i32_1 = arith.constant 0 : i32
    return %arg0, %c0_i32, %c0_i32_0 : i32, i32, i32
  }
}

module attributes {stable_mosaic.version = 11 : i64} {
  func.func @_bn_add_relu_kernel(%arg0: i32, %arg1: memref<1x16x16x4xbf16, #tpu.memory_space<vmem>>, %arg2: memref<1x4xf32, #tpu.memory_space<vmem>>, %arg3: memref<1x4xf32, #tpu.memory_space<vmem>>, %arg4: memref<1x16x16x4xbf16, #tpu.memory_space<vmem>>, %arg5: memref<1x16x16x4xf32, #tpu.memory_space<vmem>>) attributes {dimension_semantics = [#tpu.dimension_semantics<parallel>], iteration_bounds = array<i64: 2>, scalar_prefetch = 0 : i64, scratch_operands = 0 : i64, tpu.core_type = #tpu.core_type<tc>, window_params = [{transform_indices = @transform_0, window_bounds = array<i64: 1, 16, 16, 4>}, {pipeline_mode = #tpu.pipeline_mode<synchronous>, transform_indices = @transform_1, window_bounds = array<i64: 1, 4>}, {pipeline_mode = #tpu.pipeline_mode<synchronous>, transform_indices = @transform_2, window_bounds = array<i64: 1, 4>}, {transform_indices = @transform_3, window_bounds = array<i64: 1, 16, 16, 4>}, {transform_indices = @transform_4, window_bounds = array<i64: 1, 16, 16, 4>}]} {
    %c0 = arith.constant 0 : index
    %c0_0 = arith.constant 0 : index
    %c0_1 = arith.constant 0 : index
    %c0_2 = arith.constant 0 : index
    %0 = vector.load %arg1[%c0, %c0_0, %c0_1, %c0_2] : memref<1x16x16x4xbf16, #tpu.memory_space<vmem>>, vector<1x16x16x4xbf16>
    %1 = vector.shape_cast %0 : vector<1x16x16x4xbf16> to vector<16x16x4xbf16>
    %2 = arith.extf %1 : vector<16x16x4xbf16> to vector<16x16x4xf32>
    %c0_3 = arith.constant 0 : index
    %c0_4 = arith.constant 0 : index
    %3 = vector.load %arg2[%c0_3, %c0_4] : memref<1x4xf32, #tpu.memory_space<vmem>>, vector<1x4xf32>
    %4 = vector.shape_cast %3 : vector<1x4xf32> to vector<1x1x4xf32>
    %5 = vector.broadcast %4 : vector<1x1x4xf32> to vector<16x16x4xf32>
    %6 = arith.mulf %2, %5 : vector<16x16x4xf32>
    %c0_5 = arith.constant 0 : index
    %c0_6 = arith.constant 0 : index
    %7 = vector.load %arg3[%c0_5, %c0_6] : memref<1x4xf32, #tpu.memory_space<vmem>>, vector<1x4xf32>
    %8 = vector.shape_cast %7 : vector<1x4xf32> to vector<1x1x4xf32>
    %9 = vector.broadcast %8 : vector<1x1x4xf32> to vector<16x16x4xf32>
    %10 = arith.addf %6, %9 : vector<16x16x4xf32>
    %c0_7 = arith.constant 0 : index
    %c0_8 = arith.constant 0 : index
    %c0_9 = arith.constant 0 : index
    %c0_10 = arith.constant 0 : index
    %11 = vector.load %arg4[%c0_7, %c0_8, %c0_9, %c0_10] : memref<1x16x16x4xbf16, #tpu.memory_space<vmem>>, vector<1x16x16x4xbf16>
    %12 = vector.shape_cast %11 : vector<1x16x16x4xbf16> to vector<16x16x4xbf16>
    %13 = arith.extf %12 : vector<16x16x4xbf16> to vector<16x16x4xf32>
    %14 = arith.addf %10, %13 : vector<16x16x4xf32>
    %cst = arith.constant 0.000000e+00 : f32
    %15 = vector.broadcast %cst : f32 to vector<16x16x4xf32>
    %16 = arith.maximumf %14, %15 : vector<16x16x4xf32>
    %17 = vector.shape_cast %16 : vector<16x16x4xf32> to vector<1x16x16x4xf32>
    %c0_11 = arith.constant 0 : index
    %c0_12 = arith.constant 0 : index
    %c0_13 = arith.constant 0 : index
    %c0_14 = arith.constant 0 : index
    %18 = vector.load %arg5[%c0_11, %c0_12, %c0_13, %c0_14] : memref<1x16x16x4xf32, #tpu.memory_space<vmem>>, vector<1x16x16x4xf32>
    tpu.vector_store %arg5[%c0_11, %c0_12, %c0_13, %c0_14], %17 {strides = array<i32>} : memref<1x16x16x4xf32, #tpu.memory_space<vmem>>, vector<1x16x16x4xf32>,
    return
  }
  func.func @transform_0(%arg0: i32) -> (i32, i32, i32, i32) {
    %c0_i32 = arith.constant 0 : i32
    %c0_i32_0 = arith.constant 0 : i32
    %c0_i32_1 = arith.constant 0 : i32
    %c0_i32_2 = arith.constant 0 : i32
    return %arg0, %c0_i32, %c0_i32_0, %c0_i32_1 : i32, i32, i32, i32
  }
  func.func @transform_1(%arg0: i32) -> (i32, i32) {
    %c0_i32 = arith.constant 0 : i32
    %c0_i32_0 = arith.constant 0 : i32
    %c0_i32_1 = arith.constant 0 : i32
    return %c0_i32, %c0_i32_0 : i32, i32
  }
  func.func @transform_2(%arg0: i32) -> (i32, i32) {
    %c0_i32 = arith.constant 0 : i32
    %c0_i32_0 = arith.constant 0 : i32
    %c0_i32_1 = arith.constant 0 : i32
    return %c0_i32, %c0_i32_0 : i32, i32
  }
  func.func @transform_3(%arg0: i32) -> (i32, i32, i32, i32) {
    %c0_i32 = arith.constant 0 : i32
    %c0_i32_0 = arith.constant 0 : i32
    %c0_i32_1 = arith.constant 0 : i32
    %c0_i32_2 = arith.constant 0 : i32
    return %arg0, %c0_i32, %c0_i32_0, %c0_i32_1 : i32, i32, i32, i32
  }
  func.func @transform_4(%arg0: i32) -> (i32, i32, i32, i32) {
    %c0_i32 = arith.constant 0 : i32
    %c0_i32_0 = arith.constant 0 : i32
    %c0_i32_1 = arith.constant 0 : i32
    %c0_i32_2 = arith.constant 0 : i32
    return %arg0, %c0_i32, %c0_i32_0, %c0_i32_1 : i32, i32, i32, i32
  }
}

module attributes {stable_mosaic.version = 11 : i64} {
  func.func @_bn_relu_conv_stats_kernel(%arg0: i32, %arg1: memref<1x16x16x4xbf16, #tpu.memory_space<vmem>>, %arg2: memref<1x4xf32, #tpu.memory_space<vmem>>, %arg3: memref<1x4xf32, #tpu.memory_space<vmem>>, %arg4: memref<9x4x4xbf16, #tpu.memory_space<vmem>>, %arg5: memref<1x16x16x4xbf16, #tpu.memory_space<vmem>>, %arg6: memref<1x1x4xf32, #tpu.memory_space<vmem>>, %arg7: memref<1x1x4xf32, #tpu.memory_space<vmem>>, %arg8: memref<18x18x4xbf16, #tpu.memory_space<vmem>>) attributes {dimension_semantics = [#tpu.dimension_semantics<parallel>], iteration_bounds = array<i64: 2>, scalar_prefetch = 0 : i64, scratch_operands = 1 : i64, tpu.core_type = #tpu.core_type<tc>, window_params = [{transform_indices = @transform_0, window_bounds = array<i64: 1, 16, 16, 4>}, {pipeline_mode = #tpu.pipeline_mode<synchronous>, transform_indices = @transform_1, window_bounds = array<i64: 1, 4>}, {pipeline_mode = #tpu.pipeline_mode<synchronous>, transform_indices = @transform_2, window_bounds = array<i64: 1, 4>}, {pipeline_mode = #tpu.pipeline_mode<synchronous>, transform_indices = @transform_3, window_bounds = array<i64: 9, 4, 4>}, {transform_indices = @transform_4, window_bounds = array<i64: 1, 16, 16, 4>}, {transform_indices = @transform_5, window_bounds = array<i64: 1, 1, 4>}, {transform_indices = @transform_6, window_bounds = array<i64: 1, 1, 4>}]} {
    %c0 = arith.constant 0 : index
    %c0_0 = arith.constant 0 : index
    %c0_1 = arith.constant 0 : index
    %c0_2 = arith.constant 0 : index
    %0 = vector.load %arg1[%c0, %c0_0, %c0_1, %c0_2] : memref<1x16x16x4xbf16, #tpu.memory_space<vmem>>, vector<1x16x16x4xbf16>
    %1 = vector.shape_cast %0 : vector<1x16x16x4xbf16> to vector<16x16x4xbf16>
    %2 = arith.extf %1 : vector<16x16x4xbf16> to vector<16x16x4xf32>
    %c0_3 = arith.constant 0 : index
    %c0_4 = arith.constant 0 : index
    %3 = vector.load %arg2[%c0_3, %c0_4] : memref<1x4xf32, #tpu.memory_space<vmem>>, vector<1x4xf32>
    %4 = vector.shape_cast %3 : vector<1x4xf32> to vector<1x1x4xf32>
    %5 = vector.broadcast %4 : vector<1x1x4xf32> to vector<16x16x4xf32>
    %6 = arith.mulf %2, %5 : vector<16x16x4xf32>
    %c0_5 = arith.constant 0 : index
    %c0_6 = arith.constant 0 : index
    %7 = vector.load %arg3[%c0_5, %c0_6] : memref<1x4xf32, #tpu.memory_space<vmem>>, vector<1x4xf32>
    %8 = vector.shape_cast %7 : vector<1x4xf32> to vector<1x1x4xf32>
    %9 = vector.broadcast %8 : vector<1x1x4xf32> to vector<16x16x4xf32>
    %10 = arith.addf %6, %9 : vector<16x16x4xf32>
    %cst = arith.constant 0.000000e+00 : f32
    %11 = vector.broadcast %cst : f32 to vector<16x16x4xf32>
    %12 = arith.maximumf %10, %11 : vector<16x16x4xf32>
    %13 = arith.truncf %12 : vector<16x16x4xf32> to vector<16x16x4xbf16>
    %cst_7 = arith.constant 0.000000e+00 : bf16
    %14 = vector.broadcast %cst_7 : bf16 to vector<1x18x4xbf16>
    %cst_8 = arith.constant 0.000000e+00 : bf16
    %15 = vector.broadcast %cst_8 : bf16 to vector<16x1x4xbf16>
    %c0_9 = arith.constant 0 : index
    %c0_10 = arith.constant 0 : index
    %c0_11 = arith.constant 0 : index
    %16 = vector.load %arg8[%c0_9, %c0_10, %c0_11] : memref<18x18x4xbf16, #tpu.memory_space<vmem>>, vector<1x18x4xbf16>
    tpu.vector_store %arg8[%c0_9, %c0_10, %c0_11], %14 {strides = array<i32>} : memref<18x18x4xbf16, #tpu.memory_space<vmem>>, vector<1x18x4xbf16>,
    %c17 = arith.constant 17 : index
    %c0_12 = arith.constant 0 : index
    %c0_13 = arith.constant 0 : index
    %17 = vector.load %arg8[%c17, %c0_12, %c0_13] : memref<18x18x4xbf16, #tpu.memory_space<vmem>>, vector<1x18x4xbf16>
    tpu.vector_store %arg8[%c17, %c0_12, %c0_13], %14 {strides = array<i32>} : memref<18x18x4xbf16, #tpu.memory_space<vmem>>, vector<1x18x4xbf16>,
    %c1 = arith.constant 1 : index
    %c0_14 = arith.constant 0 : index
    %c0_15 = arith.constant 0 : index
    %18 = vector.load %arg8[%c1, %c0_14, %c0_15] : memref<18x18x4xbf16, #tpu.memory_space<vmem>>, vector<16x1x4xbf16>
    tpu.vector_store %arg8[%c1, %c0_14, %c0_15], %15 {strides = array<i32>} : memref<18x18x4xbf16, #tpu.memory_space<vmem>>, vector<16x1x4xbf16>,
    %c1_16 = arith.constant 1 : index
    %c17_17 = arith.constant 17 : index
    %c0_18 = arith.constant 0 : index
    %19 = vector.load %arg8[%c1_16, %c17_17, %c0_18] : memref<18x18x4xbf16, #tpu.memory_space<vmem>>, vector<16x1x4xbf16>
    tpu.vector_store %arg8[%c1_16, %c17_17, %c0_18], %15 {strides = array<i32>} : memref<18x18x4xbf16, #tpu.memory_space<vmem>>, vector<16x1x4xbf16>,
    %c1_19 = arith.constant 1 : index
    %c1_20 = arith.constant 1 : index
    %c0_21 = arith.constant 0 : index
    %20 = vector.load %arg8[%c1_19, %c1_20, %c0_21] : memref<18x18x4xbf16, #tpu.memory_space<vmem>>, vector<16x16x4xbf16>
    tpu.vector_store %arg8[%c1_19, %c1_20, %c0_21], %13 {strides = array<i32>} : memref<18x18x4xbf16, #tpu.memory_space<vmem>>, vector<16x16x4xbf16>,
    %cst_22 = arith.constant 0.000000e+00 : f32
    %21 = vector.broadcast %cst_22 : f32 to vector<256x4xf32>
    %c0_23 = arith.constant 0 : index
    %c0_24 = arith.constant 0 : index
    %c0_25 = arith.constant 0 : index
    %22 = vector.load %arg8[%c0_23, %c0_24, %c0_25] : memref<18x18x4xbf16, #tpu.memory_space<vmem>>, vector<16x16x4xbf16>
    %23 = vector.shape_cast %22 : vector<16x16x4xbf16> to vector<256x4xbf16>
    %c0_26 = arith.constant 0 : index
    %c0_27 = arith.constant 0 : index
    %c0_28 = arith.constant 0 : index
    %24 = vector.load %arg4[%c0_26, %c0_27, %c0_28] : memref<9x4x4xbf16, #tpu.memory_space<vmem>>, vector<1x4x4xbf16>
    %25 = vector.shape_cast %24 : vector<1x4x4xbf16> to vector<4x4xbf16>
    %cst_29 = arith.constant dense<0.000000e+00> : vector<256x4xf32>
    %26 = tpu.matmul %23, %25, %cst_29 {dimension_numbers = #tpu.dot_dimension_numbers<[1], [0], [0], [1], [0, 0, 1, 1], [], []>} : vector<256x4xbf16>, vector<4x4xbf16>, vector<256x4xf32> -> vector<256x4xf32>
    %27 = arith.addf %21, %26 : vector<256x4xf32>
    %c0_30 = arith.constant 0 : index
    %c1_31 = arith.constant 1 : index
    %c0_32 = arith.constant 0 : index
    %28 = vector.load %arg8[%c0_30, %c1_31, %c0_32] : memref<18x18x4xbf16, #tpu.memory_space<vmem>>, vector<16x16x4xbf16>
    %29 = vector.shape_cast %28 : vector<16x16x4xbf16> to vector<256x4xbf16>
    %c1_33 = arith.constant 1 : index
    %c0_34 = arith.constant 0 : index
    %c0_35 = arith.constant 0 : index
    %30 = vector.load %arg4[%c1_33, %c0_34, %c0_35] : memref<9x4x4xbf16, #tpu.memory_space<vmem>>, vector<1x4x4xbf16>
    %31 = vector.shape_cast %30 : vector<1x4x4xbf16> to vector<4x4xbf16>
    %cst_36 = arith.constant dense<0.000000e+00> : vector<256x4xf32>
    %32 = tpu.matmul %29, %31, %cst_36 {dimension_numbers = #tpu.dot_dimension_numbers<[1], [0], [0], [1], [0, 0, 1, 1], [], []>} : vector<256x4xbf16>, vector<4x4xbf16>, vector<256x4xf32> -> vector<256x4xf32>
    %33 = arith.addf %27, %32 : vector<256x4xf32>
    %c0_37 = arith.constant 0 : index
    %c2 = arith.constant 2 : index
    %c0_38 = arith.constant 0 : index
    %34 = vector.load %arg8[%c0_37, %c2, %c0_38] : memref<18x18x4xbf16, #tpu.memory_space<vmem>>, vector<16x16x4xbf16>
    %35 = vector.shape_cast %34 : vector<16x16x4xbf16> to vector<256x4xbf16>
    %c2_39 = arith.constant 2 : index
    %c0_40 = arith.constant 0 : index
    %c0_41 = arith.constant 0 : index
    %36 = vector.load %arg4[%c2_39, %c0_40, %c0_41] : memref<9x4x4xbf16, #tpu.memory_space<vmem>>, vector<1x4x4xbf16>
    %37 = vector.shape_cast %36 : vector<1x4x4xbf16> to vector<4x4xbf16>
    %cst_42 = arith.constant dense<0.000000e+00> : vector<256x4xf32>
    %38 = tpu.matmul %35, %37, %cst_42 {dimension_numbers = #tpu.dot_dimension_numbers<[1], [0], [0], [1], [0, 0, 1, 1], [], []>} : vector<256x4xbf16>, vector<4x4xbf16>, vector<256x4xf32> -> vector<256x4xf32>
    %39 = arith.addf %33, %38 : vector<256x4xf32>
    %c1_43 = arith.constant 1 : index
    %c0_44 = arith.constant 0 : index
    %c0_45 = arith.constant 0 : index
    %40 = vector.load %arg8[%c1_43, %c0_44, %c0_45] : memref<18x18x4xbf16, #tpu.memory_space<vmem>>, vector<16x16x4xbf16>
    %41 = vector.shape_cast %40 : vector<16x16x4xbf16> to vector<256x4xbf16>
    %c3 = arith.constant 3 : index
    %c0_46 = arith.constant 0 : index
    %c0_47 = arith.constant 0 : index
    %42 = vector.load %arg4[%c3, %c0_46, %c0_47] : memref<9x4x4xbf16, #tpu.memory_space<vmem>>, vector<1x4x4xbf16>
    %43 = vector.shape_cast %42 : vector<1x4x4xbf16> to vector<4x4xbf16>
    %cst_48 = arith.constant dense<0.000000e+00> : vector<256x4xf32>
    %44 = tpu.matmul %41, %43, %cst_48 {dimension_numbers = #tpu.dot_dimension_numbers<[1], [0], [0], [1], [0, 0, 1, 1], [], []>} : vector<256x4xbf16>, vector<4x4xbf16>, vector<256x4xf32> -> vector<256x4xf32>
    %45 = arith.addf %39, %44 : vector<256x4xf32>
    %c1_49 = arith.constant 1 : index
    %c1_50 = arith.constant 1 : index
    %c0_51 = arith.constant 0 : index
    %46 = vector.load %arg8[%c1_49, %c1_50, %c0_51] : memref<18x18x4xbf16, #tpu.memory_space<vmem>>, vector<16x16x4xbf16>
    %47 = vector.shape_cast %46 : vector<16x16x4xbf16> to vector<256x4xbf16>
    %c4 = arith.constant 4 : index
    %c0_52 = arith.constant 0 : index
    %c0_53 = arith.constant 0 : index
    %48 = vector.load %arg4[%c4, %c0_52, %c0_53] : memref<9x4x4xbf16, #tpu.memory_space<vmem>>, vector<1x4x4xbf16>
    %49 = vector.shape_cast %48 : vector<1x4x4xbf16> to vector<4x4xbf16>
    %cst_54 = arith.constant dense<0.000000e+00> : vector<256x4xf32>
    %50 = tpu.matmul %47, %49, %cst_54 {dimension_numbers = #tpu.dot_dimension_numbers<[1], [0], [0], [1], [0, 0, 1, 1], [], []>} : vector<256x4xbf16>, vector<4x4xbf16>, vector<256x4xf32> -> vector<256x4xf32>
    %51 = arith.addf %45, %50 : vector<256x4xf32>
    %c1_55 = arith.constant 1 : index
    %c2_56 = arith.constant 2 : index
    %c0_57 = arith.constant 0 : index
    %52 = vector.load %arg8[%c1_55, %c2_56, %c0_57] : memref<18x18x4xbf16, #tpu.memory_space<vmem>>, vector<16x16x4xbf16>
    %53 = vector.shape_cast %52 : vector<16x16x4xbf16> to vector<256x4xbf16>
    %c5 = arith.constant 5 : index
    %c0_58 = arith.constant 0 : index
    %c0_59 = arith.constant 0 : index
    %54 = vector.load %arg4[%c5, %c0_58, %c0_59] : memref<9x4x4xbf16, #tpu.memory_space<vmem>>, vector<1x4x4xbf16>
    %55 = vector.shape_cast %54 : vector<1x4x4xbf16> to vector<4x4xbf16>
    %cst_60 = arith.constant dense<0.000000e+00> : vector<256x4xf32>
    %56 = tpu.matmul %53, %55, %cst_60 {dimension_numbers = #tpu.dot_dimension_numbers<[1], [0], [0], [1], [0, 0, 1, 1], [], []>} : vector<256x4xbf16>, vector<4x4xbf16>, vector<256x4xf32> -> vector<256x4xf32>
    %57 = arith.addf %51, %56 : vector<256x4xf32>
    %c2_61 = arith.constant 2 : index
    %c0_62 = arith.constant 0 : index
    %c0_63 = arith.constant 0 : index
    %58 = vector.load %arg8[%c2_61, %c0_62, %c0_63] : memref<18x18x4xbf16, #tpu.memory_space<vmem>>, vector<16x16x4xbf16>
    %59 = vector.shape_cast %58 : vector<16x16x4xbf16> to vector<256x4xbf16>
    %c6 = arith.constant 6 : index
    %c0_64 = arith.constant 0 : index
    %c0_65 = arith.constant 0 : index
    %60 = vector.load %arg4[%c6, %c0_64, %c0_65] : memref<9x4x4xbf16, #tpu.memory_space<vmem>>, vector<1x4x4xbf16>
    %61 = vector.shape_cast %60 : vector<1x4x4xbf16> to vector<4x4xbf16>
    %cst_66 = arith.constant dense<0.000000e+00> : vector<256x4xf32>
    %62 = tpu.matmul %59, %61, %cst_66 {dimension_numbers = #tpu.dot_dimension_numbers<[1], [0], [0], [1], [0, 0, 1, 1], [], []>} : vector<256x4xbf16>, vector<4x4xbf16>, vector<256x4xf32> -> vector<256x4xf32>
    %63 = arith.addf %57, %62 : vector<256x4xf32>
    %c2_67 = arith.constant 2 : index
    %c1_68 = arith.constant 1 : index
    %c0_69 = arith.constant 0 : index
    %64 = vector.load %arg8[%c2_67, %c1_68, %c0_69] : memref<18x18x4xbf16, #tpu.memory_space<vmem>>, vector<16x16x4xbf16>
    %65 = vector.shape_cast %64 : vector<16x16x4xbf16> to vector<256x4xbf16>
    %c7 = arith.constant 7 : index
    %c0_70 = arith.constant 0 : index
    %c0_71 = arith.constant 0 : index
    %66 = vector.load %arg4[%c7, %c0_70, %c0_71] : memref<9x4x4xbf16, #tpu.memory_space<vmem>>, vector<1x4x4xbf16>
    %67 = vector.shape_cast %66 : vector<1x4x4xbf16> to vector<4x4xbf16>
    %cst_72 = arith.constant dense<0.000000e+00> : vector<256x4xf32>
    %68 = tpu.matmul %65, %67, %cst_72 {dimension_numbers = #tpu.dot_dimension_numbers<[1], [0], [0], [1], [0, 0, 1, 1], [], []>} : vector<256x4xbf16>, vector<4x4xbf16>, vector<256x4xf32> -> vector<256x4xf32>
    %69 = arith.addf %63, %68 : vector<256x4xf32>
    %c2_73 = arith.constant 2 : index
    %c2_74 = arith.constant 2 : index
    %c0_75 = arith.constant 0 : index
    %70 = vector.load %arg8[%c2_73, %c2_74, %c0_75] : memref<18x18x4xbf16, #tpu.memory_space<vmem>>, vector<16x16x4xbf16>
    %71 = vector.shape_cast %70 : vector<16x16x4xbf16> to vector<256x4xbf16>
    %c8 = arith.constant 8 : index
    %c0_76 = arith.constant 0 : index
    %c0_77 = arith.constant 0 : index
    %72 = vector.load %arg4[%c8, %c0_76, %c0_77] : memref<9x4x4xbf16, #tpu.memory_space<vmem>>, vector<1x4x4xbf16>
    %73 = vector.shape_cast %72 : vector<1x4x4xbf16> to vector<4x4xbf16>
    %cst_78 = arith.constant dense<0.000000e+00> : vector<256x4xf32>
    %74 = tpu.matmul %71, %73, %cst_78 {dimension_numbers = #tpu.dot_dimension_numbers<[1], [0], [0], [1], [0, 0, 1, 1], [], []>} : vector<256x4xbf16>, vector<4x4xbf16>, vector<256x4xf32> -> vector<256x4xf32>
    %75 = arith.addf %69, %74 : vector<256x4xf32>
    %cst_79 = arith.constant dense<0.000000e+00> : vector<4xf32>
    %76 = vector.multi_reduction <add>, %75, %cst_79 [0] : vector<256x4xf32> to vector<4xf32>
    %77 = vector.shape_cast %76 : vector<4xf32> to vector<1x1x4xf32>
    %c0_80 = arith.constant 0 : index
    %c0_81 = arith.constant 0 : index
    %c0_82 = arith.constant 0 : index
    %78 = vector.load %arg6[%c0_80, %c0_81, %c0_82] : memref<1x1x4xf32, #tpu.memory_space<vmem>>, vector<1x1x4xf32>
    tpu.vector_store %arg6[%c0_80, %c0_81, %c0_82], %77 {strides = array<i32>} : memref<1x1x4xf32, #tpu.memory_space<vmem>>, vector<1x1x4xf32>,
    %79 = arith.mulf %75, %75 : vector<256x4xf32>
    %cst_83 = arith.constant dense<0.000000e+00> : vector<4xf32>
    %80 = vector.multi_reduction <add>, %79, %cst_83 [0] : vector<256x4xf32> to vector<4xf32>
    %81 = vector.shape_cast %80 : vector<4xf32> to vector<1x1x4xf32>
    %c0_84 = arith.constant 0 : index
    %c0_85 = arith.constant 0 : index
    %c0_86 = arith.constant 0 : index
    %82 = vector.load %arg7[%c0_84, %c0_85, %c0_86] : memref<1x1x4xf32, #tpu.memory_space<vmem>>, vector<1x1x4xf32>
    tpu.vector_store %arg7[%c0_84, %c0_85, %c0_86], %81 {strides = array<i32>} : memref<1x1x4xf32, #tpu.memory_space<vmem>>, vector<1x1x4xf32>,
    %83 = vector.shape_cast %75 : vector<256x4xf32> to vector<1x16x16x4xf32>
    %84 = arith.truncf %83 : vector<1x16x16x4xf32> to vector<1x16x16x4xbf16>
    %c0_87 = arith.constant 0 : index
    %c0_88 = arith.constant 0 : index
    %c0_89 = arith.constant 0 : index
    %c0_90 = arith.constant 0 : index
    %85 = vector.load %arg5[%c0_87, %c0_88, %c0_89, %c0_90] : memref<1x16x16x4xbf16, #tpu.memory_space<vmem>>, vector<1x16x16x4xbf16>
    tpu.vector_store %arg5[%c0_87, %c0_88, %c0_89, %c0_90], %84 {strides = array<i32>} : memref<1x16x16x4xbf16, #tpu.memory_space<vmem>>, vector<1x16x16x4xbf16>,
    return
  }
  func.func @transform_0(%arg0: i32) -> (i32, i32, i32, i32) {
    %c0_i32 = arith.constant 0 : i32
    %c0_i32_0 = arith.constant 0 : i32
    %c0_i32_1 = arith.constant 0 : i32
    %c0_i32_2 = arith.constant 0 : i32
    return %arg0, %c0_i32, %c0_i32_0, %c0_i32_1 : i32, i32, i32, i32
  }
  func.func @transform_1(%arg0: i32) -> (i32, i32) {
    %c0_i32 = arith.constant 0 : i32
    %c0_i32_0 = arith.constant 0 : i32
    %c0_i32_1 = arith.constant 0 : i32
    return %c0_i32, %c0_i32_0 : i32, i32
  }
  func.func @transform_2(%arg0: i32) -> (i32, i32) {
    %c0_i32 = arith.constant 0 : i32
    %c0_i32_0 = arith.constant 0 : i32
    %c0_i32_1 = arith.constant 0 : i32
    return %c0_i32, %c0_i32_0 : i32, i32
  }
  func.func @transform_3(%arg0: i32) -> (i32, i32, i32) {
    %c0_i32 = arith.constant 0 : i32
    %c0_i32_0 = arith.constant 0 : i32
    %c0_i32_1 = arith.constant 0 : i32
    %c0_i32_2 = arith.constant 0 : i32
    return %c0_i32, %c0_i32_0, %c0_i32_1 : i32, i32, i32
  }
  func.func @transform_4(%arg0: i32) -> (i32, i32, i32, i32) {
    %c0_i32 = arith.constant 0 : i32
    %c0_i32_0 = arith.constant 0 : i32
    %c0_i32_1 = arith.constant 0 : i32
    %c0_i32_2 = arith.constant 0 : i32
    return %arg0, %c0_i32, %c0_i32_0, %c0_i32_1 : i32, i32, i32, i32
  }
  func.func @transform_5(%arg0: i32) -> (i32, i32, i32) {
    %c0_i32 = arith.constant 0 : i32
    %c0_i32_0 = arith.constant 0 : i32
    %c0_i32_1 = arith.constant 0 : i32
    return %arg0, %c0_i32, %c0_i32_0 : i32, i32, i32
  }
  func.func @transform_6(%arg0: i32) -> (i32, i32, i32) {
    %c0_i32 = arith.constant 0 : i32
    %c0_i32_0 = arith.constant 0 : i32
    %c0_i32_1 = arith.constant 0 : i32
    return %arg0, %c0_i32, %c0_i32_0 : i32, i32, i32
  }
}

</mosaic_0001>

<bundles_post_ra>
// kernel: basic_block_forward.5
= control target key start
LH: loop header
LB: loop body
LE: loop exit
PB: predicated region body
PF: predicated region fallthrough
CT: control target
= control target key end

     0   :  { %s1659_s0 = inlined_call_operand.hbm [shape: bf16[2,16,16,4], index: 0, kind: input, shape index: {}]   ;;  %s1660_s1 = inlined_call_operand.hbm [shape: f32[1,4], index: 1, kind: input, shape index: {}]   ;;  %s1661_s2 = inlined_call_operand.hbm [shape: f32[1,4], index: 2, kind: input, shape index: {}]   ;;  %s1662_s3 = inlined_call_operand.hbm [shape: bf16[2,16,16,4], index: 3, kind: input, shape index: {}]   ;;  %s1663_s4 = inlined_call_operand.hbm [shape: f32[2,16,16,4], index: 4, kind: output, shape index: {}]  }
   0x1   :  { %1669 = sst [smem:[#allocation15_spill]] %s1659_s0 }
   0x2   :  { %9 = vsyncpa [#allocation3], 0 }
   0x3   :  { %11 = vsyncpa [#allocation3 + $0x1], 0 }
   0x4   :  { %12 = vsyncpa [#allocation6], 0 }
   0x5   :  { %13 = vsyncpa [#allocation9], 0 }
   0x6   :  { %15 = vsyncpa [#allocation9 + $0x1], 0 }
   0x7   :  { %16 = vsyncpa [#allocation4], 0 }
   0x8   :  { %18 = vsyncpa [#allocation4 + $0x1], 0  ;;  %s1200_s15 = smov 0   ;;  %s1202_s16 = smov 0  }
   0x9   :  { %s1204_s17 = smov 0   ;;  %s1206_s18 = smov 0  }
   0xa LB: > { %s1221_s19 = sadd.s32 4294967295, %s1164_s18   ;;  %s713_s20 = sadd.s32 4294967294, %s1164_s18   ;;  %s1164_s18 = sphi %s1206_s18, %s1690_s18   ;;  %s1160_s17 = sphi %s1204_s17, %s1689_s17   ;;  %s1156_s16 = sphi %s1202_s16, %s1688_s16   ;;  %s1152_s15 = sphi %s1200_s15, %s1687_s15  }
   0xb   : > { %s1225_s21 = sadd.s32 1, %s1164_s18   ;;  %s31_s22 = sadd.s32 1, %s1160_s17 }
   0xc   : > { %s28_s23 = ssub.s32 %s1164_s18, %s1225_s21  ;;  %p38_p0 = scmp.ne.s32.totalorder %s1160_s17, %s1156_s16 }
   0xd   : > { %p29_p1 = scmp.eq.s32.totalorder %s28_s23, 0  ;;  %p39_p2 = scmp.eq.s32.totalorder %s1164_s18, 0 }
   0xe   : > { %p44_p3 = scmp.ne.s32.totalorder %s1156_s16, %s1152_s15  ;;  %p1664_p4 = scmp.eq.s32.totalorder %s1221_s19, 0 }
   0xf   : > { %s1237_s24 = scalar_select %p29_p1, %s1160_s17, %s31_s22  }
  0x10   : > { %p1239_p5 = por %p39_p2, %p38_p0  ;;  %p1245_p6 = por %p1664_p4, %p44_p3 }
  0x11   : > { %p136_p7 = scmp.eq.s32.totalorder %s1221_s19, 1  ;;  %p142_p8 = scmp.eq.s32.totalorder %s713_s20, 1 }
  0x12   : > { %s1671_s26 = scalar_select %p1245_p6, 1, 0 }
  0x13   : > { %p714_p9 = scmp.ge.s32.totalorder %s1164_s18, 1  ;;  %p149_p10 = scmp.lt.s32.totalorder %s1164_s18, 3 }
  0x14   : > { %p1252_p11 = por %p136_p7, %p38_p0  ;;  %p1256_p12 = por %p142_p8, %p44_p3 }
  0x15   : > { %p1260_p13 = pnand %p714_p9, %p149_p10  ;;  %s1166_s30 = smov [#allocation5]  }
  0x16   : > { %s1672_s27 = scalar_select %p1252_p11, 1, 0 }
  0x17   : > { %s1673_s28 = scalar_select %p1256_p12, 1, 0 }
  0x18   : > { %s1674_s29 = scalar_select %p1260_p13, 1, 0 }
  0x19   : > { %p912_p2 = pneg %p1260_p13  ;;  %s162_s5 = sshll.u32 %s1166_s30, 4  ;;  %s163_s5 = int_to_ptr.vmem [resolvable:$true] %s162_s5 }
  0x1a   : > { %p932_p4 = scmp.lt.s32.totalorder %s1164_s18, 2  ;;  %p1675_p0 = scmp.eq.s32.totalorder %s1221_s19, 0 }
  0x1b   : > { %s1167_s8 = smov [#allocation7]   ;;  %s974_s12 = scalar_lea.hbm %s1660_s1, 16 }
  0x1c   : > { %p1270_p7 = pnand %p912_p2, %p1675_p0  ;;  %p1276_p3 = pnand %p932_p4, %p1239_p5 }
  0x1d   : > { %s173_s9 = sshll.u32 %s1167_s8, 4  ;;  %p975_p8 = scmp.ne.s32.totalorder %s1660_s1, %s974_s12  ;;  %s1280_s9 = int_to_ptr.vmem [resolvable:$true] %s173_s9 }
  0x1e   : > { %s1677_s7 = scalar_select %p1276_p3, 1, 0 }
  0x1f   : > { %p976_p9 = pneg %p1270_p7  ;;  %p981_p10 = scmp.lt.u32.totalorder %s974_s12, %s1660_s1 }
  0x21   : > { %p977_p4 = pnand %p976_p9, %p975_p8 }
  0x23   : > { %p978_p5 = pneg %p977_p4 }
  0x25   : > { %p983_p2 = pnand %p981_p10, %p978_p5 }
  0x27   : > { %986 = shalt.err (!%p983_p2)
}
  0x28   : > { %s987_s23 = scalar_lea.vmem %s163_s5, 16  ;;  %s994_s25 = scalar_lea.vmem %s163_s5, 32 }
  0x29   : > { %p988_p0 = scmp.ne.s32.totalorder %s163_s5, %s987_s23  ;;  %p995_p11 = scmp.lt.s32.totalorder %s163_s5, %s163_s5 }
  0x2a   : > { %p996_p6 = scmp.lt.s32.totalorder %s994_s25, %s987_s23 }
  0x2b   : > { %p990_p1 = pnand %p988_p0, %p976_p9 }
  0x2c   : > { %p997_p13 = por %p996_p6, %p995_p11 }
  0x2d   : > { %p991_p12 = pneg %p990_p1 }
  0x2f   : > { %p998_p3 = pnand %p997_p13, %p991_p12 }
  0x31   : > { %1001 = shalt.err (!%p998_p3)
}
  0x32   : > { %915 = dma.hbm_to_vmem [thread:$0]  (!%p1270_p7), %s1660_s1, 16, %s163_s5, [#allocation6]  }
  0x33   : > { %s1305_s10 = sand.u32 1, %s1160_s17   ;;  %s1002_s13 = scalar_lea.hbm %s1661_s2, 16 }
  0x34   : > { %p1003_p6 = scmp.ne.s32.totalorder %s1661_s2, %s1002_s13  ;;  %p1009_p13 = scmp.lt.u32.totalorder %s1002_s13, %s1661_s2 }
  0x36   : > { %p1005_p11 = pnand %p1003_p6, %p976_p9 }
  0x38   : > { %p1006_p12 = pneg %p1005_p11 }
  0x3a   : > { %p1011_p1 = pnand %p1009_p13, %p1006_p12 }
  0x3c   : > { %1014 = shalt.err (!%p1011_p1)
}
  0x3d   : > { %s1015_s5 = scalar_lea.vmem %s1280_s9, 16  ;;  %s1022_s25 = scalar_lea.vmem %s1280_s9, 32 }
  0x3e   : > { %p1016_p3 = scmp.ne.s32.totalorder %s1280_s9, %s1015_s5  ;;  %p1023_p5 = scmp.lt.s32.totalorder %s1280_s9, %s1280_s9 }
  0x3f   : > { %p1024_p10 = scmp.lt.s32.totalorder %s1022_s25, %s1015_s5 }
  0x40   : > { %p1018_p8 = pnand %p1016_p3, %p976_p9 }
  0x41   : > { %p1025_p2 = por %p1024_p10, %p1023_p5 }
  0x42   : > { %p1019_p4 = pneg %p1018_p8 }
  0x44   : > { %p1026_p0 = pnand %p1025_p2, %p1019_p4 }
  0x46   : > { %1029 = shalt.err (!%p1026_p0)
}
  0x47   : > { %918 = dma.hbm_to_vmem [thread:$0]  (!%p1270_p7), %s1661_s2, 16, %s1280_s9, [#allocation6]  }
  0x48   : > { %s718_s11 = sshll.u32 %s1305_s10, 7  ;;  %s737_s12 = sshll.u32 %s1164_s18, 11 }
  0x49   : > { %s1678_s0 = sld [smem:[#allocation15_spill]]  ;;  %s188_s6 = scalar_lea.vmem [#allocation2], %s718_s11 }
  0x4a   : > { %s195_s22 = sshll.u32 %s188_s6, 4  ;;  %s185_s23 = scalar_lea.sflag [#allocation3], %s1305_s10  ;;  %s1344_s22 = int_to_ptr.vmem [resolvable:$true] %s195_s22 }
  0x4b   : > { %p1679_p9 = scmp.ne.s32.totalorder %s1677_s7, 0 }
  0x4d   : > { %p1032_p6 = pneg %p1679_p9 }
  0x4f   : > { %s1340_s20 = scalar_lea.hbm %s1678_s0, %s737_s12  ;;  %s1035_s30 = scalar_lea.hbm %s1678_s0, 4096 }
  0x50   : > { %s1030_s5 = scalar_lea.hbm %s1340_s20, 2048  ;;  %p1036_p13 = scmp.lt.u32.totalorder %s1340_s20, %s1678_s0 }
  0x51   : > { %p1031_p7 = scmp.ne.s32.totalorder %s1340_s20, %s1030_s5  ;;  %p1037_p1 = scmp.lt.u32.totalorder %s1035_s30, %s1030_s5 }
  0x52   : > { %p1039_p8 = scmp.lt.u32.totalorder %s1030_s5, %s1340_s20 }
  0x53   : > { %p1033_p11 = pnand %p1032_p6, %p1031_p7  ;;  %p1038_p3 = por %p1037_p1, %p1036_p13 }
  0x55   : > { %p1034_p12 = pneg %p1033_p11  ;;  %p1040_p4 = por %p1039_p8, %p1038_p3 }
  0x57   : > { %p1041_p5 = pnand %p1040_p4, %p1034_p12 }
  0x59   : > { %1044 = shalt.err (!%p1041_p5)
}
  0x5a   : > { %s1045_s14 = scalar_lea.vmem %s1344_s22, 2048  ;;  %s1168_s6 = smov [#allocation2]  }
  0x5b   : > { %p1046_p10 = scmp.ne.s32.totalorder %s1344_s22, %s1045_s14  ;;  %s1050_s9 = sshll.u32 %s1168_s6, 4  ;;  %s1051_s9 = int_to_ptr.vmem [resolvable:$false] %s1050_s9 }
  0x5c   : > { %s1052_s25 = scalar_lea.vmem %s1051_s9, 4096  ;;  %p1053_p7 = scmp.lt.s32.totalorder %s1344_s22, %s1051_s9 }
  0x5d   : > { %p1048_p2 = pnand %p1046_p10, %p1032_p6  ;;  %p1054_p11 = scmp.lt.s32.totalorder %s1052_s25, %s1045_s14 }
  0x5f   : > { %p1049_p0 = pneg %p1048_p2  ;;  %p1055_p13 = por %p1054_p11, %p1053_p7 }
  0x61   : > { %p1056_p1 = pnand %p1055_p13, %p1049_p0 }
  0x63   : > { %1059 = shalt.err (!%p1056_p1)
}
  0x64   : > { %s1169_s5 = smov 64   ;;  %s1170_s30 = smov 4  }
  0x65   : > { %922 = dma.hbm_to_vmem [thread:$0]  (!%p1679_p9), %s1340_s20, 2048, %s1344_s22, %s185_s23, %s1169_s5, %s1169_s5, %s1170_s30  }
  0x66   : > { %s1382_s14 = scalar_lea.hbm %s1662_s3, %s737_s12  ;;  %s209_s6 = scalar_lea.vmem [#allocation8], %s718_s11 }
  0x67   : > { %s216_s9 = sshll.u32 %s209_s6, 4  ;;  %s206_s25 = scalar_lea.sflag [#allocation9], %s1305_s10  ;;  %s1386_s9 = int_to_ptr.vmem [resolvable:$true] %s216_s9 }
  0x68   : > { %s1060_s0 = scalar_lea.hbm %s1382_s14, 2048  ;;  %s1065_s12 = scalar_lea.hbm %s1662_s3, 4096 }
  0x69   : > { %p1061_p12 = scmp.ne.s32.totalorder %s1382_s14, %s1060_s0  ;;  %p1066_p4 = scmp.lt.u32.totalorder %s1382_s14, %s1662_s3 }
  0x6a   : > { %p1067_p5 = scmp.lt.u32.totalorder %s1065_s12, %s1060_s0  ;;  %p1069_p2 = scmp.lt.u32.totalorder %s1060_s0, %s1382_s14 }
  0x6b   : > { %p1063_p3 = pnand %p1061_p12, %p1032_p6 }
  0x6c   : > { %p1068_p10 = por %p1067_p5, %p1066_p4 }
  0x6d   : > { %p1064_p8 = pneg %p1063_p3 }
  0x6e   : > { %p1070_p0 = por %p1069_p2, %p1068_p10 }
  0x70   : > { %p1071_p7 = pnand %p1070_p0, %p1064_p8 }
  0x72   : > { %1074 = shalt.err (!%p1071_p7)
}
  0x73   : > { %s1075_s11 = scalar_lea.vmem %s1386_s9, 2048  ;;  %s1171_s13 = smov [#allocation8]  }
  0x74   : > { %p1076_p11 = scmp.ne.s32.totalorder %s1386_s9, %s1075_s11  ;;  %s1080_s6 = sshll.u32 %s1171_s13, 4  ;;  %s1081_s6 = int_to_ptr.vmem [resolvable:$false] %s1080_s6 }
  0x75   : > { %s1082_s20 = scalar_lea.vmem %s1081_s6, 4096  ;;  %p1083_p12 = scmp.lt.s32.totalorder %s1386_s9, %s1081_s6 }
  0x76   : > { %p1078_p13 = pnand %p1076_p11, %p1032_p6  ;;  %p1084_p3 = scmp.lt.s32.totalorder %s1082_s20, %s1075_s11 }
  0x78   : > { %p1079_p1 = pneg %p1078_p13  ;;  %p1085_p4 = por %p1084_p3, %p1083_p12 }
  0x7a   : > { %p1086_p5 = pnand %p1085_p4, %p1079_p1 }
  0x7c   : > { %1089 = shalt.err (!%p1086_p5)
}
  0x7d   : > { %925 = dma.hbm_to_vmem [thread:$0]  (!%p1679_p9), %s1382_s14, 2048, %s1386_s9, %s206_s25, %s1169_s5, %s1169_s5, %s1170_s30  }
  0x7e   : > { %p1680_p6 = scmp.ne.s32.totalorder %s1674_s29, 0 }
  0x7f   : > { %s1420_s0 = sand.u32 (!%p1680_p6), 1, %s1156_s16   ;;  %p1681_p8 = scmp.ne.s32.totalorder (!%p1680_p6), %s1671_s26, 0 }
  0x80   : > { %228 = sbr.rel (%p1680_p6) target bundleno = 211 (0xd3), region = 36  ;;  %s725_s22 = sshll.u32 (!%p1680_p6), %s1420_s0, 7 }
  0x81   : > { %s231_s12 = scalar_lea.sflag (!%p1680_p6), [#allocation3], %s1420_s0  ;;  %s1424_s7 = scalar_lea.vmem (!%p1680_p6), [#allocation2], %s725_s22 }
  0x87   : > { %1135 = dma.done.wait (%p1681_p8), %s231_s12, 2048  }
  0x88   : > { %1137 = vsyncadd (%p1681_p8), %s231_s12, 4294965248  ;;  %p1682_p9 = scmp.eq.s32.totalorder %s1221_s19, 0 }
  0x8a   : > { %1139 = dma.done.wait (%p1682_p9), [#allocation6], 32   ;;  %p1683_p10 = pmov %p1682_p9 }
  0x8b   : > { %s248_s29 = scalar_lea.sflag [#allocation9], %s1420_s0  ;;  %s1435_s10 = scalar_lea.vmem [#allocation8], %s725_s22 }
  0x8c   : > { %1141 = vsyncadd (%p1683_p10), [#allocation6], 4294967264 }
  0x8d   : > { %1143 = dma.done.wait (%p1681_p8), %s248_s29, 2048  }
  0x8e   : > { %1145 = vsyncadd (%p1681_p8), %s248_s29, 4294965248  ;;  %v741_v0 = vld [vmem:[%s1424_s7] sm:$0xff]   ;;  %vm551_vm0 = vcmask 31744   ;;  %v868_v5 = vld [vmem:[%s1424_s7 + $0x8] sm:$0xff]   ;;  %s729_s26 = sshll.u32 %s1420_s0, 8  ;;  %s739_s30 = sshll.u32 %s1221_s19, 12 }
  0x8f   : > { %v1442_v1 = vld [vmem:[#allocation5] ss:$0 sm:$0xff]  ;;  %v742_v2 = vunpack.c.l.bf16 %v741_v0  ;;  %v805_v3 = vld [vmem:[%s1435_s10] sm:$0xff]   ;;  %v743_v4 = vunpack.c.h.bf16 %v741_v0  ;;  %v883_v6 = vld [vmem:[%s1435_s10 + $0x8] sm:$0xff]   ;;  %v746_v10 = vunpack.c.l.bf16 %v868_v5  ;;  %v747_v16 = vunpack.c.h.bf16 %v868_v5  ;;  %s1470_s5 = scalar_lea.vmem [#allocation10], %s729_s26  ;;  %s1609_s23 = scalar_lea.hbm %s1663_s4, %s739_s30 }
  0x90   : > { %v1447_v7 = vld [vmem:[#allocation7] ss:$0 sm:$0xff]  ;;  %v806_v8 = vunpack.c.l.bf16 %v805_v3  ;;  %v807_v9 = vunpack.c.h.bf16 %v805_v3  ;;  %v810_v11 = vunpack.c.l.bf16 %v883_v6  ;;  %v869_v12 = vld [vmem:[%s1424_s7 + $0x10] sm:$0xff]   ;;  %v811_v17 = vunpack.c.h.bf16 %v883_v6  ;;  %v870_v18 = vld [vmem:[%s1424_s7 + $0x18] sm:$0xff]   ;;  %s598_s14 = sshll.u32 %s1470_s5, 4  ;;  %s585_s19 = scalar_lea.sflag [#allocation4], %s1420_s0  ;;  %s1611_s14 = int_to_ptr.vmem [resolvable:$true] %s598_s14 }
  0x91   : > { %v884_v13 = vld [vmem:[%s1435_s10 + $0x10] sm:$0xff]   ;;  %v352_v14 = vmul.f32 %v742_v2, %v1442_v1  ;;  %v353_v15 = vmul.f32 %v743_v4, %v1442_v1  ;;  %v354_v19 = vmul.f32 %v746_v10, %v1442_v1  ;;  %v750_v20 = vunpack.c.l.bf16 %v869_v12  ;;  %v885_v23 = vld [vmem:[%s1435_s10 + $0x18] sm:$0xff]   ;;  %v886_v45 = vld [vmem:[%s1435_s10 + $0x20] sm:$0xff]   ;;  %s1090_s8 = scalar_lea.vmem %s1611_s14, 4096  ;;  %p1684_p0 = scmp.ne.s32.totalorder %s1672_s27, 0 }
  0x92   : > { %v814_v21 = vunpack.c.l.bf16 %v884_v13  ;;  %v751_v22 = vunpack.c.h.bf16 %v869_v12  ;;  %v355_v26 = vmul.f32 %v747_v16, %v1442_v1  ;;  %v815_v27 = vunpack.c.h.bf16 %v884_v13  ;;  %v871_v40 = vld [vmem:[%s1424_s7 + $0x20] sm:$0xff]   ;;  %v872_v54 = vld [vmem:[%s1424_s7 + $0x28] sm:$0xff]   ;;  %v873_v0 = vld [vmem:[%s1424_s7 + $0x30] sm:$0xff]   ;;  %p1091_p2 = scmp.ne.s32.totalorder %s1611_s14, %s1090_s8  ;;  %s1172_s11 = smov [#allocation10]  }
  0x93   : > { %v391_v24 = vadd.f32 %v1447_v7, %v352_v14  ;;  %v392_v25 = vadd.f32 %v1447_v7, %v353_v15  ;;  %v393_v28 = vadd.f32 %v1447_v7, %v354_v19  ;;  %v356_v29 = vmul.f32 %v750_v20, %v1442_v1  ;;  %v887_v55 = vld [vmem:[%s1435_s10 + $0x28] sm:$0xff]   ;;  %v888_v2 = vld [vmem:[%s1435_s10 + $0x30] sm:$0xff]   ;;  %s1094_s13 = sshll.u32 %s1172_s11, 4  ;;  %s1095_s13 = int_to_ptr.vmem [resolvable:$false] %s1094_s13 }
  0x94   : > { %v357_v30 = vmul.f32 %v751_v22, %v1442_v1  ;;  %v754_v31 = vunpack.c.l.bf16 %v870_v18  ;;  %v394_v34 = vadd.f32 %v1447_v7, %v355_v26  ;;  %v818_v35 = vunpack.c.l.bf16 %v885_v23  ;;  %v874_v16 = vld [vmem:[%s1424_s7 + $0x38] sm:$0xff]   ;;  %p1092_p7 = pnand %p1091_p2, %p1684_p0  ;;  %s1096_s6 = scalar_lea.vmem %s1095_s13, 8192 }
  0x95   : > { %v487_v32 = vadd.f32 %v806_v8, %v391_v24  ;;  %v488_v33 = vadd.f32 %v807_v9, %v392_v25  ;;  %v489_v36 = vadd.f32 %v810_v11, %v393_v28  ;;  %v395_v37 = vadd.f32 %v1447_v7, %v356_v29  ;;  %p1097_p13 = scmp.lt.s32.totalorder %s1611_s14, %s1095_s13  ;;  %p1098_p1 = scmp.lt.s32.totalorder %s1096_s6, %s1090_s8 }
  0x96   : > { %v396_v38 = vadd.f32 %v1447_v7, %v357_v30  ;;  %v358_v39 = vmul.f32 %v754_v31, %v1442_v1  ;;  %v490_v43 = vadd.f32 %v811_v17, %v394_v34  ;;  %v755_v44 = vunpack.c.h.bf16 %v870_v18  ;;  %v875_v34 = vld [vmem:[%s1424_s7 + $0x40] sm:$0xff]   ;;  %p1093_p11 = pneg %p1092_p7 }
  0x97   : > { %v519_v41 = vmax.f32 %v487_v32, 0.0  ;;  %v520_v42 = vmax.f32 %v488_v33, 0.0  ;;  %v521_v46 = vmax.f32 %v489_v36, 0.0  ;;  %v491_v47 = vadd.f32 %v814_v21, %v395_v37  ;;  %v889_v21 = vld [vmem:[%s1435_s10 + $0x38] sm:$0xff]   ;;  %p1099_p12 = por %p1098_p1, %p1097_p13 }
  0x98   : > { %v492_v48 = vadd.f32 %v815_v27, %v396_v38  ;;  %v397_v49 = vadd.f32 %v1447_v7, %v358_v39  ;;  %v522_v50 = vmax.f32 %v490_v43, 0.0  ;;  %v359_v51 = vmul.f32 %v755_v44, %v1442_v1  ;;  %v890_v39 = vld [vmem:[%s1435_s10 + $0x40] sm:$0xff]  }
  0x99   : > { %552 = vst.msk [vmem:[%s1470_s5] sm:$0xff] %vm551_vm0, %v519_v41  ;;  %553 = vst.msk [vmem:[%s1470_s5 + $0x8] sm:$0xff] %vm551_vm0, %v520_v42  ;;  %v819_v52 = vunpack.c.h.bf16 %v885_v23  ;;  %v758_v53 = vunpack.c.l.bf16 %v871_v40  ;;  %v523_v56 = vmax.f32 %v491_v47, 0.0  ;;  %v822_v59 = vunpack.c.l.bf16 %v886_v45  ;;  %p1100_p3 = pnand %p1099_p12, %p1093_p11 }
  0x9a   : > { %554 = vst.msk [vmem:[%s1470_s5 + $0x10] sm:$0xff] %vm551_vm0, %v521_v46  ;;  %v524_v57 = vmax.f32 %v492_v48, 0.0  ;;  %v493_v58 = vadd.f32 %v818_v35, %v397_v49  ;;  %555 = vst.msk [vmem:[%s1470_s5 + $0x18] sm:$0xff] %vm551_vm0, %v522_v50  ;;  %v398_v60 = vadd.f32 %v1447_v7, %v359_v51  ;;  %v759_v62 = vunpack.c.h.bf16 %v871_v40  ;;  %v876_v48 = vld [vmem:[%s1424_s7 + $0x48] sm:$0xff]  }
  0x9b   : > { %v360_v61 = vmul.f32 %v758_v53, %v1442_v1  ;;  %v823_v63 = vunpack.c.h.bf16 %v886_v45  ;;  %556 = vst.msk [vmem:[%s1470_s5 + $0x20] sm:$0xff] %vm551_vm0, %v523_v56  ;;  %v762_v4 = vunpack.c.l.bf16 %v872_v54  ;;  %v826_v5 = vunpack.c.l.bf16 %v887_v55  ;;  %v891_v49 = vld [vmem:[%s1435_s10 + $0x48] sm:$0xff]  }
  0x9c   : > { %557 = vst.msk [vmem:[%s1470_s5 + $0x28] sm:$0xff] %vm551_vm0, %v524_v57  ;;  %v525_v3 = vmax.f32 %v493_v58, 0.0  ;;  %v763_v6 = vunpack.c.h.bf16 %v872_v54  ;;  %v494_v8 = vadd.f32 %v819_v52, %v398_v60  ;;  %v361_v10 = vmul.f32 %v759_v62, %v1442_v1  ;;  %v877_v58 = vld [vmem:[%s1424_s7 + $0x50] sm:$0xff]  }
  0x9d   : > { %v399_v9 = vadd.f32 %v1447_v7, %v360_v61  ;;  %v827_v11 = vunpack.c.h.bf16 %v887_v55  ;;  %v362_v12 = vmul.f32 %v762_v4, %v1442_v1  ;;  %v766_v14 = vunpack.c.l.bf16 %v873_v0 }
  0x9e   : > { %558 = vst.msk [vmem:[%s1470_s5 + $0x30] sm:$0xff] %vm551_vm0, %v525_v3  ;;  %v363_v13 = vmul.f32 %v763_v6, %v1442_v1  ;;  %v830_v15 = vunpack.c.l.bf16 %v888_v2  ;;  %v526_v17 = vmax.f32 %v494_v8, 0.0  ;;  %v400_v19 = vadd.f32 %v1447_v7, %v361_v10  ;;  %v878_v10 = vld [vmem:[%s1424_s7 + $0x58] sm:$0xff]  }
  0x9f   : > { %v495_v18 = vadd.f32 %v822_v59, %v399_v9  ;;  %v767_v20 = vunpack.c.h.bf16 %v873_v0  ;;  %v401_v22 = vadd.f32 %v1447_v7, %v362_v12  ;;  %v364_v24 = vmul.f32 %v766_v14, %v1442_v1 }
  0xa0   : > { %v402_v23 = vadd.f32 %v1447_v7, %v363_v13  ;;  %v831_v25 = vunpack.c.h.bf16 %v888_v2  ;;  %559 = vst.msk [vmem:[%s1470_s5 + $0x38] sm:$0xff] %vm551_vm0, %v526_v17  ;;  %v496_v27 = vadd.f32 %v823_v63, %v400_v19  ;;  %v770_v29 = vunpack.c.l.bf16 %v874_v16  ;;  %v892_v63 = vld [vmem:[%s1435_s10 + $0x50] sm:$0xff]   ;;  %v893_v19 = vld [vmem:[%s1435_s10 + $0x58] sm:$0xff]  }
  0xa1   : > { %v527_v26 = vmax.f32 %v495_v18, 0.0  ;;  %v365_v28 = vmul.f32 %v767_v20, %v1442_v1  ;;  %v497_v30 = vadd.f32 %v826_v5, %v401_v22  ;;  %v403_v32 = vadd.f32 %v1447_v7, %v364_v24 }
  0xa2   : > { %v498_v31 = vadd.f32 %v827_v11, %v402_v23  ;;  %v834_v33 = vunpack.c.l.bf16 %v889_v21  ;;  %v528_v35 = vmax.f32 %v496_v27, 0.0  ;;  %v366_v37 = vmul.f32 %v770_v29, %v1442_v1 }
  0xa3   : > { %560 = vst.msk [vmem:[%s1470_s5 + $0x40] sm:$0xff] %vm551_vm0, %v527_v26  ;;  %v404_v36 = vadd.f32 %v1447_v7, %v365_v28  ;;  %v771_v38 = vunpack.c.h.bf16 %v874_v16  ;;  %v529_v40 = vmax.f32 %v497_v30, 0.0  ;;  %v499_v42 = vadd.f32 %v830_v15, %v403_v32  ;;  %v879_v28 = vld [vmem:[%s1424_s7 + $0x60] sm:$0xff]  }
  0xa4   : > { %v530_v41 = vmax.f32 %v498_v31, 0.0  ;;  %v835_v43 = vunpack.c.h.bf16 %v889_v21  ;;  %561 = vst.msk [vmem:[%s1470_s5 + $0x48] sm:$0xff] %vm551_vm0, %v528_v35  ;;  %v405_v45 = vadd.f32 %v1447_v7, %v366_v37  ;;  %v774_v47 = vunpack.c.l.bf16 %v875_v34 }
  0xa5   : > { %v500_v44 = vadd.f32 %v831_v25, %v404_v36  ;;  %v367_v46 = vmul.f32 %v771_v38, %v1442_v1  ;;  %562 = vst.msk [vmem:[%s1470_s5 + $0x50] sm:$0xff] %vm551_vm0, %v529_v40  ;;  %v531_v50 = vmax.f32 %v499_v42, 0.0  ;;  %v838_v51 = vunpack.c.l.bf16 %v890_v39  ;;  %v880_v42 = vld [vmem:[%s1424_s7 + $0x68] sm:$0xff]  }
  0xa6   : > { %563 = vst.msk [vmem:[%s1470_s5 + $0x58] sm:$0xff] %vm551_vm0, %v530_v41  ;;  %v775_v52 = vunpack.c.h.bf16 %v875_v34  ;;  %v839_v53 = vunpack.c.h.bf16 %v890_v39  ;;  %v501_v55 = vadd.f32 %v834_v33, %v405_v45  ;;  %v368_v57 = vmul.f32 %v774_v47, %v1442_v1  ;;  %v894_v33 = vld [vmem:[%s1435_s10 + $0x60] sm:$0xff]  }
  0xa7   : > { %v532_v54 = vmax.f32 %v500_v44, 0.0  ;;  %v406_v56 = vadd.f32 %v1447_v7, %v367_v46  ;;  %564 = vst.msk [vmem:[%s1470_s5 + $0x60] sm:$0xff] %vm551_vm0, %v531_v50  ;;  %v778_v60 = vunpack.c.l.bf16 %v876_v48  ;;  %v842_v61 = vunpack.c.l.bf16 %v891_v49 }
  0xa8   : > { %v369_v59 = vmul.f32 %v775_v52, %v1442_v1  ;;  %v779_v62 = vunpack.c.h.bf16 %v876_v48  ;;  %v533_v0 = vmax.f32 %v501_v55, 0.0  ;;  %v407_v3 = vadd.f32 %v1447_v7, %v368_v57  ;;  %v881_v52 = vld [vmem:[%s1424_s7 + $0x70] sm:$0xff]  }
  0xa9   : > { %565 = vst.msk [vmem:[%s1470_s5 + $0x68] sm:$0xff] %vm551_vm0, %v532_v54  ;;  %v502_v2 = vadd.f32 %v835_v43, %v406_v56  ;;  %v843_v4 = vunpack.c.h.bf16 %v891_v49  ;;  %v370_v6 = vmul.f32 %v778_v60, %v1442_v1  ;;  %v782_v9 = vunpack.c.l.bf16 %v877_v58  ;;  %v895_v43 = vld [vmem:[%s1435_s10 + $0x68] sm:$0xff]   ;;  %v896_v57 = vld [vmem:[%s1435_s10 + $0x70] sm:$0xff]  }
  0xaa   : > { %v408_v5 = vadd.f32 %v1447_v7, %v369_v59  ;;  %v371_v8 = vmul.f32 %v779_v62, %v1442_v1  ;;  %566 = vst.msk [vmem:[%s1470_s5 + $0x70] sm:$0xff] %vm551_vm0, %v533_v0  ;;  %v503_v12 = vadd.f32 %v838_v51, %v407_v3  ;;  %v846_v13 = vunpack.c.l.bf16 %v892_v63  ;;  %v882_v3 = vld [vmem:[%s1424_s7 + $0x78] sm:$0xff]  }
  0xab   : > { %v534_v11 = vmax.f32 %v502_v2, 0.0  ;;  %v783_v14 = vunpack.c.h.bf16 %v877_v58  ;;  %v409_v16 = vadd.f32 %v1447_v7, %v370_v6  ;;  %v372_v18 = vmul.f32 %v782_v9, %v1442_v1 }
  0xac   : > { %v504_v15 = vadd.f32 %v839_v53, %v408_v5  ;;  %v410_v17 = vadd.f32 %v1447_v7, %v371_v8  ;;  %v535_v20 = vmax.f32 %v503_v12, 0.0  ;;  %v847_v22 = vunpack.c.h.bf16 %v892_v63 }
  0xad   : > { %567 = vst.msk [vmem:[%s1470_s5 + $0x78] sm:$0xff] %vm551_vm0, %v534_v11  ;;  %v373_v21 = vmul.f32 %v783_v14, %v1442_v1  ;;  %v786_v23 = vunpack.c.l.bf16 %v878_v10  ;;  %v505_v25 = vadd.f32 %v842_v61, %v409_v16  ;;  %v411_v27 = vadd.f32 %v1447_v7, %v372_v18 }
  0xae   : > { %v536_v24 = vmax.f32 %v504_v15, 0.0  ;;  %v506_v26 = vadd.f32 %v843_v4, %v410_v17  ;;  %568 = vst.msk [vmem:[%s1470_s5 + $0x80] sm:$0xff] %vm551_vm0, %v535_v20  ;;  %v850_v31 = vunpack.c.l.bf16 %v893_v19  ;;  %v787_v32 = vunpack.c.h.bf16 %v878_v10 }
  0xaf   : > { %v412_v29 = vadd.f32 %v1447_v7, %v373_v21  ;;  %v374_v30 = vmul.f32 %v786_v23, %v1442_v1  ;;  %v537_v34 = vmax.f32 %v505_v25, 0.0  ;;  %v507_v36 = vadd.f32 %v846_v13, %v411_v27  ;;  %v897_v13 = vld [vmem:[%s1435_s10 + $0x78] sm:$0xff]  }
  0xb0   : > { %569 = vst.msk [vmem:[%s1470_s5 + $0x88] sm:$0xff] %vm551_vm0, %v536_v24  ;;  %v538_v35 = vmax.f32 %v506_v26, 0.0  ;;  %v851_v37 = vunpack.c.h.bf16 %v893_v19  ;;  %v375_v40 = vmul.f32 %v787_v32, %v1442_v1  ;;  %v790_v41 = vunpack.c.l.bf16 %v879_v28 }
  0xb1   : > { %v508_v38 = vadd.f32 %v847_v22, %v412_v29  ;;  %v413_v39 = vadd.f32 %v1447_v7, %v374_v30  ;;  %570 = vst.msk [vmem:[%s1470_s5 + $0x90] sm:$0xff] %vm551_vm0, %v537_v34  ;;  %v539_v44 = vmax.f32 %v507_v36, 0.0  ;;  %v854_v45 = vunpack.c.l.bf16 %v894_v33 }
  0xb2   : > { %571 = vst.msk [vmem:[%s1470_s5 + $0x98] sm:$0xff] %vm551_vm0, %v538_v35  ;;  %v791_v46 = vunpack.c.h.bf16 %v879_v28  ;;  %v855_v47 = vunpack.c.h.bf16 %v894_v33  ;;  %v414_v50 = vadd.f32 %v1447_v7, %v375_v40  ;;  %v376_v51 = vmul.f32 %v790_v41, %v1442_v1 }
  0xb3   : > { %v540_v48 = vmax.f32 %v508_v38, 0.0  ;;  %v509_v49 = vadd.f32 %v850_v31, %v413_v39  ;;  %572 = vst.msk [vmem:[%s1470_s5 + $0xa0] sm:$0xff] %vm551_vm0, %v539_v44  ;;  %v794_v54 = vunpack.c.l.bf16 %v880_v42  ;;  %v858_v55 = vunpack.c.l.bf16 %v895_v43 }
  0xb4   : > { %v377_v53 = vmul.f32 %v791_v46, %v1442_v1  ;;  %v795_v56 = vunpack.c.h.bf16 %v880_v42  ;;  %v510_v59 = vadd.f32 %v851_v37, %v414_v50  ;;  %v415_v60 = vadd.f32 %v1447_v7, %v376_v51 }
  0xb5   : > { %573 = vst.msk [vmem:[%s1470_s5 + $0xa8] sm:$0xff] %vm551_vm0, %v540_v48  ;;  %v541_v58 = vmax.f32 %v509_v49, 0.0  ;;  %v859_v61 = vunpack.c.h.bf16 %v895_v43  ;;  %v378_v63 = vmul.f32 %v794_v54, %v1442_v1  ;;  %v798_v2 = vunpack.c.l.bf16 %v881_v52 }
  0xb6   : > { %v416_v62 = vadd.f32 %v1447_v7, %v377_v53  ;;  %v379_v0 = vmul.f32 %v795_v56, %v1442_v1  ;;  %v542_v4 = vmax.f32 %v510_v59, 0.0  ;;  %v511_v5 = vadd.f32 %v854_v45, %v415_v60 }
  0xb7   : > { %574 = vst.msk [vmem:[%s1470_s5 + $0xb0] sm:$0xff] %vm551_vm0, %v541_v58  ;;  %v862_v6 = vunpack.c.l.bf16 %v896_v57  ;;  %v799_v8 = vunpack.c.h.bf16 %v881_v52  ;;  %v417_v10 = vadd.f32 %v1447_v7, %v378_v63  ;;  %v380_v12 = vmul.f32 %v798_v2, %v1442_v1 }
  0xb8   : > { %v512_v9 = vadd.f32 %v855_v47, %v416_v62  ;;  %v418_v11 = vadd.f32 %v1447_v7, %v379_v0  ;;  %575 = vst.msk [vmem:[%s1470_s5 + $0xb8] sm:$0xff] %vm551_vm0, %v542_v4  ;;  %v543_v14 = vmax.f32 %v511_v5, 0.0  ;;  %v863_v16 = vunpack.c.h.bf16 %v896_v57 }
  0xb9   : > { %v381_v15 = vmul.f32 %v799_v8, %v1442_v1  ;;  %v802_v17 = vunpack.c.l.bf16 %v882_v3  ;;  %v513_v19 = vadd.f32 %v858_v55, %v417_v10  ;;  %v419_v21 = vadd.f32 %v1447_v7, %v380_v12 }
  0xba   : > { %v544_v18 = vmax.f32 %v512_v9, 0.0  ;;  %v514_v20 = vadd.f32 %v859_v61, %v418_v11  ;;  %576 = vst.msk [vmem:[%s1470_s5 + $0xc0] sm:$0xff] %vm551_vm0, %v543_v14  ;;  %v866_v24 = vunpack.c.l.bf16 %v897_v13  ;;  %v803_v25 = vunpack.c.h.bf16 %v882_v3 }
  0xbb   : > { %v420_v22 = vadd.f32 %v1447_v7, %v381_v15  ;;  %v382_v23 = vmul.f32 %v802_v17, %v1442_v1  ;;  %v545_v26 = vmax.f32 %v513_v19, 0.0  ;;  %v515_v28 = vadd.f32 %v862_v6, %v419_v21 }
  0xbc   : > { %577 = vst.msk [vmem:[%s1470_s5 + $0xc8] sm:$0xff] %vm551_vm0, %v544_v18  ;;  %v546_v27 = vmax.f32 %v514_v20, 0.0  ;;  %v383_v31 = vmul.f32 %v803_v25, %v1442_v1  ;;  %v867_v32 = vunpack.c.h.bf16 %v897_v13 }
  0xbd   : > { %v516_v29 = vadd.f32 %v863_v16, %v420_v22  ;;  %v421_v30 = vadd.f32 %v1447_v7, %v382_v23  ;;  %578 = vst.msk [vmem:[%s1470_s5 + $0xd0] sm:$0xff] %vm551_vm0, %v545_v26  ;;  %v547_v33 = vmax.f32 %v515_v28, 0.0 }
  0xbe   : > { %579 = vst.msk [vmem:[%s1470_s5 + $0xd8] sm:$0xff] %vm551_vm0, %v546_v27  ;;  %v422_v36 = vadd.f32 %v1447_v7, %v383_v31 }
  0xbf   : > { %v548_v34 = vmax.f32 %v516_v29, 0.0  ;;  %v517_v35 = vadd.f32 %v866_v24, %v421_v30  ;;  %580 = vst.msk [vmem:[%s1470_s5 + $0xe0] sm:$0xff] %vm551_vm0, %v547_v33 }
  0xc0   : > { %v518_v37 = vadd.f32 %v867_v32, %v422_v36 }
  0xc1   : > { %581 = vst.msk [vmem:[%s1470_s5 + $0xe8] sm:$0xff] %vm551_vm0, %v548_v34  ;;  %v549_v1 = vmax.f32 %v517_v35, 0.0 }
  0xc2   : > { %v550_v7 = vmax.f32 %v518_v37, 0.0 }
  0xc3   : > { %582 = vst.msk [vmem:[%s1470_s5 + $0xf0] sm:$0xff] %vm551_vm0, %v549_v1 }
  0xc4   : > { %583 = vst.msk [vmem:[%s1470_s5 + $0xf8] sm:$0xff] %vm551_vm0, %v550_v7 }
  0xc5   : > { %1103 = shalt.err (!%p1100_p3)
}
  0xc6   : > { %s1104_s20 = scalar_lea.hbm %s1609_s23, 4096  ;;  %s1108_s7 = scalar_lea.hbm %s1663_s4, 8192 }
  0xc7   : > { %p1105_p4 = scmp.ne.s32.totalorder %s1609_s23, %s1104_s20  ;;  %p1109_p8 = scmp.lt.u32.totalorder %s1609_s23, %s1663_s4 }
  0xc8   : > { %p1110_p9 = scmp.lt.u32.totalorder %s1108_s7, %s1104_s20  ;;  %p1112_p2 = scmp.lt.u32.totalorder %s1104_s20, %s1609_s23 }
  0xc9   : > { %p1106_p5 = pnand %p1105_p4, %p1684_p0 }
  0xca   : > { %p1111_p10 = por %p1110_p9, %p1109_p8 }
  0xcb   : > { %p1107_p6 = pneg %p1106_p5 }
  0xcc   : > { %p1113_p7 = por %p1112_p2, %p1111_p10 }
  0xce   : > { %p1114_p11 = pnand %p1113_p7, %p1107_p6 }
  0xd0   : > { %1117 = shalt.err (!%p1114_p11)
}
  0xd1   : > { %s1173_s26 = smov 128   ;;  %s1174_s5 = smov 8  }
  0xd2   : > { %910 = dma.vmem_to_hbm [thread:$0]  (%p1684_p0), %s1611_s14, 4096, %s1609_s23, %s585_s19, %s1173_s26, %s1173_s26, %s1174_s5  }
  0xd3 PF: > { %s613_s30 = sand.u32 1, %s1152_s15   ;;  %p1685_p13 = scmp.ne.s32.totalorder %s1673_s28, 0 }
  0xd4   : > { %p1686_p1 = scmp.ge.s32.totalorder %s1164_s18, 2  ;;  %s614_s9 = scalar_lea.sflag [#allocation4], %s613_s30 }
  0xd6   : > { %p927_p12 = pnand %p1686_p1, %p1685_p13 }
  0xd8   : > { %1147 = dma.done.wait (!%p927_p12), %s614_s9, 4096  }
  0xd9   : > { %1149 = vsyncadd (!%p927_p12), %s614_s9, 4294963200  ;;  %p21_p3 = scmp.ge.s32.totalorder %s1225_s21, 4   ;;  %s1687_s15 = smov %s1156_s16 }
  0xda   : > { %s1688_s16 = smov %s1160_s17  ;;  %s1689_s17 = smov %s1237_s24 }
  0xdb   : > { %s1690_s18 = smov %s1225_s21  ;;  %23 = sbr.rel (!%p21_p3) target bundleno = 10 (0xa), region = 102 }
  0xe2   :  { %619 = vsyncpa [#allocation3], 1 }
  0xe3   :  { %621 = vsyncpa [#allocation3 + $0x1], 1 }
  0xe4   :  { %622 = vsyncpa [#allocation6], 1 }
  0xe5   :  { %623 = vsyncpa [#allocation9], 1 }
  0xe6   :  { %625 = vsyncpa [#allocation9 + $0x1], 1 }
  0xe7   :  { %626 = vsyncpa [#allocation4], 1 }
  0xe8   :  { %628 = vsyncpa [#allocation4 + $0x1], 1 }

// kernel: basic_block_forward.3
= control target key start
LH: loop header
LB: loop body
LE: loop exit
PB: predicated region body
PF: predicated region fallthrough
CT: control target
= control target key end

     0   :  { %10 = vsyncpa [#allocation4], 0  ;;  %s9563_s0 = inlined_call_operand.hbm [shape: bf16[2,16,16,4], index: 0, kind: input, shape index: {}]   ;;  %s9564_s1 = inlined_call_operand.hbm [shape: bf16[9,4,4], index: 1, kind: input, shape index: {}]   ;;  %s9565_s2 = inlined_call_operand.hbm [shape: bf16[2,16,16,4], index: 2, kind: output, shape index: {0}]   ;;  %s9566_s3 = inlined_call_operand.hbm [shape: f32[2,1,4], index: 3, kind: output, shape index: {1}]   ;;  %s9567_s4 = inlined_call_operand.hbm [shape: f32[2,1,4], index: 4, kind: output, shape index: {2}]  }
   0x1   :  { %12 = vsyncpa [#allocation4 + $0x1], 0 }
   0x2   :  { %13 = vsyncpa [#allocation7], 0 }
   0x3   :  { %14 = vsyncpa [#allocation5], 0 }
   0x4   :  { %16 = vsyncpa [#allocation5 + $0x1], 0 }
   0x5   :  { %17 = vsyncpa [#allocation10], 0 }
   0x6   :  { %19 = vsyncpa [#allocation10 + $0x1], 0  ;;  %s7437_s15 = smov 0   ;;  %s7439_s16 = smov 0  }
   0x7   :  { %s7441_s17 = smov 0   ;;  %s7443_s18 = smov 0  }
   0x8 LB: > { %s7458_s19 = sadd.s32 4294967295, %s7398_s18   ;;  %s5901_s20 = sadd.s32 4294967294, %s7398_s18   ;;  %s7398_s18 = sphi %s7443_s18, %s9689_s18   ;;  %s7394_s17 = sphi %s7441_s17, %s9688_s17   ;;  %s7390_s16 = sphi %s7439_s16, %s9687_s16   ;;  %s7386_s15 = sphi %s7437_s15, %s9686_s15  }
   0x9   : > { %p45_p0 = scmp.ne.s32.totalorder %s7390_s16, %s7386_s15  ;;  %p9568_p1 = scmp.eq.s32.totalorder %s7458_s19, 0 }
   0xa   : > { %p96_p3 = scmp.eq.s32.totalorder %s5901_s20, 1  ;;  %p5902_p5 = scmp.ge.s32.totalorder %s7398_s18, 1 }
   0xb   : > { %p7469_p4 = por %p9568_p1, %p45_p0  ;;  %p155_p7 = scmp.lt.s32.totalorder %s7398_s18, 3 }
   0xc   : > { %p7474_p6 = por %p96_p3, %p45_p0  ;;  %s7400_s24 = smov [#allocation6]  }
   0xd   : > { %s9592_s21 = scalar_select %p7469_p4, 1, 0 }
   0xe   : > { %s9593_s22 = scalar_select %p7474_p6, 1, 0 }
   0xf   : > { %p7479_p8 = pnand %p5902_p5, %p155_p7  ;;  %s167_s25 = sshll.u32 %s7400_s24, 4  ;;  %s7483_s25 = int_to_ptr.vmem [resolvable:$true] %s167_s25 }
  0x10   : > { %s7495_s27 = sadd.s32 1, %s7398_s18   ;;  %s32_s28 = sadd.s32 1, %s7394_s17 }
  0x11   : > { %s9594_s23 = scalar_select %p7479_p8, 1, 0 }
  0x12   : > { %p7060_p9 = pneg %p7479_p8  ;;  %s29_s29 = ssub.s32 %s7398_s18, %s7495_s27 }
  0x13   : > { %s7210_s6 = scalar_lea.hbm %s9564_s1, 288 }
  0x14   : > { %p7490_p11 = pnand %p7060_p9, %p9568_p1  ;;  %p7211_p12 = scmp.ne.s32.totalorder %s9564_s1, %s7210_s6 }
  0x15   : > { %p7217_p5 = scmp.lt.u32.totalorder %s7210_s6, %s9564_s1 }
  0x16   : > { %p7212_p13 = pneg %p7490_p11 }
  0x18   : > { %p7213_p0 = pnand %p7212_p13, %p7211_p12 }
  0x1a   : > { %p7214_p3 = pneg %p7213_p0 }
  0x1c   : > { %p7219_p7 = pnand %p7217_p5, %p7214_p3 }
  0x1e   : > { %7222 = shalt.err (!%p7219_p7)
}
  0x1f   : > { %s7223_s11 = scalar_lea.vmem %s7483_s25, 288  ;;  %p7231_p2 = scmp.lt.s32.totalorder %s7483_s25, %s7483_s25 }
  0x20   : > { %p7224_p9 = scmp.ne.s32.totalorder %s7483_s25, %s7223_s11  ;;  %p7232_p6 = scmp.lt.s32.totalorder %s7223_s11, %s7223_s11 }
  0x22   : > { %p7226_p10 = pnand %p7224_p9, %p7212_p13  ;;  %p7233_p4 = por %p7232_p6, %p7231_p2 }
  0x24   : > { %p7227_p1 = pneg %p7226_p10 }
  0x26   : > { %p7234_p8 = pnand %p7233_p4, %p7227_p1 }
  0x28   : > { %7237 = shalt.err (!%p7234_p8)
}
  0x29   : > { %s7401_s12 = smov 32   ;;  %s7402_s13 = smov 2  }
  0x2a   : > { %7063 = dma.hbm_to_vmem [thread:$0]  (!%p7490_p11), %s9564_s1, 288, %s7483_s25, [#allocation7], %s7401_s12, %s7401_s12, %s7402_s13  }
  0x2b   : > { %p30_p2 = scmp.eq.s32.totalorder %s29_s29, 0  ;;  %p39_p1 = scmp.ne.s32.totalorder %s7394_s17, %s7390_s16 }
  0x2c   : > { %p40_p4 = scmp.eq.s32.totalorder %s7398_s18, 0  ;;  %p7079_p6 = scmp.lt.s32.totalorder %s7398_s18, 2 }
  0x2d   : > { %s7526_s30 = scalar_select %p30_p2, %s7394_s17, %s32_s28  }
  0x2e   : > { %p41_p8 = por %p40_p4, %p39_p1  ;;  %p9596_p10 = scmp.eq.s32.totalorder %s7458_s19, 1 }
  0x2f   : > { %s181_s6 = sand.u32 1, %s7394_s17   ;;  %s6287_s7 = sshll.u32 %s7398_s18, 11 }
  0x30   : > { %p7530_p12 = por %p9596_p10, %p39_p1  ;;  %s5905_s8 = sshll.u32 %s181_s6, 7 }
  0x31   : > { %s7539_s10 = scalar_lea.hbm %s9563_s0, %s6287_s7  ;;  %s185_s25 = scalar_lea.vmem [#allocation3], %s5905_s8 }
  0x32   : > { %s192_s28 = sshll.u32 %s185_s25, 4  ;;  %p7541_p11 = pnand %p7079_p6, %p41_p8  ;;  %s7545_s28 = int_to_ptr.vmem [resolvable:$true] %s192_s28 }
  0x33   : > { %s7547_s11 = scalar_lea.sflag [#allocation4], %s181_s6  ;;  %s7238_s12 = scalar_lea.hbm %s7539_s10, 2048 }
  0x34   : > { %p7239_p13 = scmp.ne.s32.totalorder %s7539_s10, %s7238_s12  ;;  %p7240_p0 = pneg %p7541_p11 }
  0x35   : > { %s7243_s24 = scalar_lea.hbm %s9563_s0, 4096  ;;  %p7244_p7 = scmp.lt.u32.totalorder %s7539_s10, %s9563_s0 }
  0x36   : > { %p7241_p3 = pnand %p7240_p0, %p7239_p13  ;;  %p7245_p9 = scmp.lt.u32.totalorder %s7243_s24, %s7238_s12 }
  0x37   : > { %p7247_p1 = scmp.lt.u32.totalorder %s7238_s12, %s7539_s10 }
  0x38   : > { %p7242_p5 = pneg %p7241_p3  ;;  %p7246_p2 = por %p7245_p9, %p7244_p7 }
  0x3a   : > { %p7248_p4 = por %p7247_p1, %p7246_p2 }
  0x3c   : > { %p7249_p6 = pnand %p7248_p4, %p7242_p5 }
  0x3e   : > { %7252 = shalt.err (!%p7249_p6)
}
  0x3f   : > { %s7253_s6 = scalar_lea.vmem %s7545_s28, 2048  ;;  %s7403_s26 = smov [#allocation3]  }
  0x40   : > { %p7254_p8 = scmp.ne.s32.totalorder %s7545_s28, %s7253_s6  ;;  %s7258_s9 = sshll.u32 %s7403_s26, 4  ;;  %s7259_s9 = int_to_ptr.vmem [resolvable:$false] %s7258_s9 }
  0x41   : > { %s7260_s25 = scalar_lea.vmem %s7259_s9, 4096  ;;  %p7261_p3 = scmp.lt.s32.totalorder %s7545_s28, %s7259_s9 }
  0x42   : > { %p7256_p10 = pnand %p7254_p8, %p7240_p0  ;;  %p7262_p7 = scmp.lt.s32.totalorder %s7260_s25, %s7253_s6 }
  0x44   : > { %p7257_p13 = pneg %p7256_p10  ;;  %p7263_p9 = por %p7262_p7, %p7261_p3 }
  0x46   : > { %p7264_p2 = pnand %p7263_p9, %p7257_p13 }
  0x48   : > { %7267 = shalt.err (!%p7264_p2)
}
  0x49   : > { %s7404_s12 = smov 64   ;;  %s7405_s13 = smov 4  }
  0x4a   : > { %7067 = dma.hbm_to_vmem [thread:$0]  (!%p7541_p11), %s7539_s10, 2048, %s7545_s28, %s7547_s11, %s7404_s12, %s7404_s12, %s7405_s13  }
  0x4b   : > { %p9599_p0 = scmp.ne.s32.totalorder %s9594_s23, 0 }
  0x4d   : > { %204 = sbr.rel (%p9599_p0) target bundleno = 803 (0x323), region = 28 }
  0x54   : > { %s7578_s14 = sand.u32 1, %s7390_s16   ;;  %p9600_p5 = scmp.ne.s32.totalorder %s9592_s21, 0 }
  0x55   : > { %s5909_s24 = sshll.u32 %s7578_s14, 7  ;;  %s207_s7 = scalar_lea.sflag [#allocation4], %s7578_s14 }
  0x56   : > { %s7584_s8 = scalar_lea.vmem [#allocation3], %s5909_s24 }
  0x57   : > { %7369 = dma.done.wait (%p9600_p5), %s207_s7, 2048  }
  0x58   : > { %7371 = vsyncadd (%p9600_p5), %s207_s7, 4294965248  ;;  %p9601_p11 = scmp.eq.s32.totalorder %s7458_s19, 0 }
  0x5a   : > { %7373 = dma.done.wait (%p9601_p11), [#allocation7], 288   ;;  %p9602_p1 = pmov %p9601_p11 }
  0x5b   : > { %vm280_vm0 = vcmask 27648   ;;  %vm283_vm1 = vcmask 24576   ;;  %v7406_v0 = vmov 0   ;;  %vm1362_vm2 = vcmask 1041408   ;;  %v1264_v1 = vld [vmem:[#allocation6 + $0x2] sm:$0x3] }
  0x5c   : > { %7375 = vsyncadd (%p9602_p1), [#allocation7], 4294967008  ;;  %281 = vst.msk [vmem:[#allocation2] sm:$0xf] %vm280_vm0, %v7406_v0  ;;  %vm291_vm3 = vsmask.f32 256  ;;  %7038 = vmatprep.subr.msk.bf16.mxu1 %vm1362_vm2, %v1264_v1 }
  0x5d   : > { %282 = vst.msk [vmem:[#allocation2 + $0x4] sm:$0xf] %vm280_vm0, %v7406_v0  ;;  %286 = vst.msk [vmem:[#allocation2 + $0xcc] sm:$0xf] %vm280_vm0, %v7406_v0  ;;  %vm341_vm4 = vsmask.f32 7938 }
  0x5e   : > { %284 = vst.msk [vmem:[#allocation2 + $0x8] sm:$0x1] %vm283_vm1, %v7406_v0  ;;  %288 = vst.msk [vmem:[#allocation2 + $0xd4] sm:$0x1] %vm283_vm1, %v7406_v0  ;;  %vm876_vm5 = vsmask.f32 3328 }
  0x5f   : > { %287 = vst.msk [vmem:[#allocation2 + $0xd0] sm:$0xf] %vm280_vm0, %v7406_v0  ;;  %vm877_vm6 = vsmask.f32 7440  ;;  %vm391_vm7 = vsmask.f32 4368  ;;  %vm7609_vm8 = vmand %vm283_vm1, %vm291_vm3 }
  0x60   : > { %v3067_v2 = vld [vmem:[#allocation6 + $0x8] sm:$0x3]  ;;  %v248_v3 = vld [vmem:[%s7584_s8] sm:$0xf]  ;;  %v1364_v4 = vsel %vm1362_vm2, %v1264_v1, 0  ;;  %vm7616_vm9 = vmand %vm283_vm1, %vm341_vm4  ;;  %vm1313_vm11 = vcmask 31744  }
  0x61   : > { %7042 = vmatprep.subr.msk.bf16.mxu0 %vm1362_vm2, %v3067_v2  ;;  %v7605_v5 = vsel %vm1362_vm2, %v3067_v2, 0  ;;  %6475 = vmatpush3.bf16.msra.mxu1 %v1364_v4  ;;  %v249_v16 = vld [vmem:[%s7584_s8 + $0x4] sm:$0xf]  ;;  %v293_v17 = vld [vmem:[#allocation2 + $0xc] sm:$0x1]  ;;  %v394_v26 = vshrl.u32 %v248_v3, 16  ;;  %vm7631_vm10 = vmor %vm876_vm5, %vm877_vm6 }
  0x62   : > { %9603 = vst [vmem:[#allocation16_spill] sm:$0xff] %v7605_v5  ;;  %6611 = vmatpush3.bf16.msra.mxu0 %v7605_v5  ;;  %v343_v22 = vld [vmem:[#allocation2 + $0x14] sm:$0x1]  ;;  %v294_v24 = vsel %vm7609_vm8, 0, %v293_v17  ;;  %v859_v27 = vld [vmem:[#allocation6] sm:$0x3]  ;;  %vm7640_vm12 = vmor %vm291_vm3, %vm391_vm7 }
  0x63   : > { %v827_v7 = vld [vmem:[#allocation2] sm:$0xf]  ;;  %v344_v25 = vsel %vm7616_vm9, 0, %v343_v22  ;;  %295 = vst [vmem:[#allocation2 + $0xc] sm:$0x1] %v294_v24  ;;  %v397_v30 = vshll.u32 %v248_v3, 16  ;;  %7039 = vmatprep.subr.msk.bf16.mxu1 %vm1362_vm2, %v859_v27  ;;  %vm7654_vm13 = vmand %vm280_vm0, %vm341_vm4 }
  0x64   : > { %v828_v8 = vld [vmem:[#allocation2 + $0x4] sm:$0xf]  ;;  %v880_v11 = vshrl.u32 %v827_v7, 16  ;;  %v883_v12 = vshll.u32 %v827_v7, 16  ;;  %345 = vst [vmem:[#allocation2 + $0x14] sm:$0x1] %v344_v25 }
  0x65   : > { %v860_v10 = vld [vmem:[#allocation2 + $0x8] sm:$0x1]  ;;  %v889_v13 = vshll.u32 %v828_v8, 16  ;;  %v893_v14 = vshrl.u32 %v828_v8, 16  ;;  %v402_v31 = vshrl.u32 %v249_v16, 16  ;;  %v396_v35 = vrot.slane %v394_v26, 7 }
  0x66   : > { %v899_v15 = vshll.u32 %v860_v10, 16  ;;  %v882_v18 = vrot.slane %v880_v11, 4  ;;  %v885_v19 = vrot.slane %v883_v12, 5  ;;  %v7626_v32 = vld [vmem:[#allocation6 + $0xa] sm:$0x3]  ;;  %v405_v36 = vshll.u32 %v249_v16, 16 }
  0x67   : > { %v891_v20 = vrot.slane %v889_v13, 5  ;;  %v895_v21 = vrot.slane %v893_v14, 4  ;;  %v250_v33 = vld [vmem:[%s7584_s8 + $0x8] sm:$0xf]  ;;  %7044 = vmatprep.subr.msk.bf16.mxu0 %vm1362_vm2, %v7626_v32  ;;  %v251_v37 = vld [vmem:[%s7584_s8 + $0xc] sm:$0xf]  ;;  %v399_v45 = vor.u32 %v397_v30, %v396_v35 }
  0x68   : > { %v901_v23 = vrot.slane %v899_v15, 5  ;;  %v886_v28 = vor.u32 %v885_v19, %v882_v18  ;;  %v411_v38 = vshrl.u32 %v250_v33, 16  ;;  %v404_v41 = vrot.slane %v402_v31, 7  ;;  %v296_v42 = vld [vmem:[#allocation2 + $0x18] sm:$0x1]  ;;  %s9302_s21 = scalar_lea.vmem [#allocation8], %s5909_s24 }
  0x69   : > { %v896_v29 = vor.u32 %v895_v21, %v891_v20  ;;  %v414_v43 = vshll.u32 %v250_v33, 16  ;;  %v400_v46 = vrot.slane %v396_v35, 4  ;;  %v297_v47 = vsel %vm7609_vm8, 0, %v296_v42  ;;  %v346_v48 = vld [vmem:[#allocation2 + $0x20] sm:$0x1]  ;;  %s6320_s23 = sshll.u32 %s7458_s19, 11 }
  0x6a   : > { %v887_v39 = vrot.slane %v886_v28, 4  ;;  %v413_v49 = vrot.slane %v411_v38, 7  ;;  %v407_v52 = vor.u32 %v405_v36, %v404_v41  ;;  %v409_v53 = vrot.slane %v404_v41, 4  ;;  %298 = vst [vmem:[#allocation2 + $0x18] sm:$0x1] %v297_v47  ;;  %s5739_s10 = sshll.u32 %s9302_s21, 4  ;;  %s9435_s11 = scalar_lea.hbm %s9565_s2, %s6320_s23  ;;  %s9437_s10 = int_to_ptr.vmem [resolvable:$true] %s5739_s10 }
  0x6b   : > { %v897_v40 = vrot.slane %v896_v29, 4  ;;  %v252_v54 = vld [vmem:[%s7584_s8 + $0x10] sm:$0xf]  ;;  %v253_v55 = vld [vmem:[%s7584_s8 + $0x14] sm:$0xf]  ;;  %v7659_v58 = vsel %vm1362_vm2, %v859_v27, 0 }
  0x6c   : > { %v892_v50 = vsel %vm7631_vm10, %v887_v39, %v891_v20  ;;  %v347_v59 = vsel %vm7616_vm9, 0, %v346_v48  ;;  %v299_v60 = vld [vmem:[#allocation2 + $0x24] sm:$0x1]  ;;  %v349_v61 = vld [vmem:[#allocation2 + $0x2c] sm:$0x1]  ;;  %v408_v62 = vsel %vm7640_vm12, %v400_v46, %v407_v52  ;;  %v417_v63 = vrot.slane %v413_v49, 4 }
  0x6d   : > { %v902_v51 = vsel %vm7631_vm10, %v897_v40, %v901_v23  ;;  %348 = vst [vmem:[#allocation2 + $0x20] sm:$0x1] %v347_v59  ;;  %v419_v0 = vshrl.u32 %v251_v37, 16  ;;  %v422_v1 = vshll.u32 %v251_v37, 16  ;;  %v7666_v2 = vld [vmem:[%s7584_s8 + $0x18] sm:$0xf]  ;;  %v416_v7 = vor.u32 %v414_v43, %v413_v49 }
  0x6e   : > { %v5912_v57 = vcombine.low %v892_v50, %v902_v51  ;;  %v715_v3 = vld [vmem:[#allocation2 + $0xc] sm:$0xf]  ;;  %718 = vst.msk [vmem:[#allocation2 + $0x10] sm:$0xf] %vm280_vm0, %v408_v62  ;;  %v719_v4 = vld [vmem:[#allocation2 + $0x14] sm:$0x1] }
  0x6f   : > { %v300_v8 = vsel %vm7609_vm8, 0, %v299_v60  ;;  %v350_v10 = vsel %vm7616_vm9, 0, %v349_v61  ;;  %v716_v11 = vsel %vm7654_vm13, %v399_v45, %v715_v3  ;;  %v720_v12 = vsel %vm7609_vm8, %v409_v53, %v719_v4  ;;  %v255_v15 = vld [vmem:[%s7584_s8 + $0x1c] sm:$0xf]  ;;  %v302_v16 = vld [vmem:[#allocation2 + $0x30] sm:$0x1] }
  0x70   : > { %6476 = vmatprep.mubr.msk.bf16.mxu1 %vm1313_vm11, %v5912_v57  ;;  %v421_v13 = vrot.slane %v419_v0, 7  ;;  %301 = vst [vmem:[#allocation2 + $0x24] sm:$0x1] %v300_v8  ;;  %351 = vst [vmem:[#allocation2 + $0x2c] sm:$0x1] %v350_v10  ;;  %v428_v14 = vshrl.u32 %v252_v54, 16 }
  0x71   : > { %717 = vst [vmem:[#allocation2 + $0xc] sm:$0xf] %v716_v11  ;;  %721 = vst [vmem:[#allocation2 + $0x14] sm:$0x1] %v720_v12  ;;  %v431_v17 = vshll.u32 %v252_v54, 16  ;;  %v436_v18 = vshrl.u32 %v253_v55, 16 }
  0x72   : > { %v439_v19 = vshll.u32 %v253_v55, 16  ;;  %v303_v20 = vsel %vm7609_vm8, 0, %v302_v16  ;;  %v352_v21 = vld [vmem:[#allocation2 + $0x38] sm:$0x1]  ;;  %v424_v22 = vor.u32 %v422_v1, %v421_v13  ;;  %v426_v23 = vrot.slane %v421_v13, 4  ;;  %s5718_s6 = scalar_lea.sflag [#allocation5], %s7578_s14 }
  0x73   : > { %v430_v24 = vrot.slane %v428_v14, 7  ;;  %304 = vst [vmem:[#allocation2 + $0x30] sm:$0x1] %v303_v20  ;;  %v353_v25 = vsel %vm7616_vm9, 0, %v352_v21  ;;  %v722_v26 = vld [vmem:[#allocation2 + $0x18] sm:$0xf] }
  0x74   : > { %v7683_v27 = vrot.slane %v436_v18, 7  ;;  %354 = vst [vmem:[#allocation2 + $0x38] sm:$0x1] %v353_v25  ;;  %v445_v28 = vshrl.u32 %v7666_v2, 16  ;;  %v448_v29 = vshll.u32 %v7666_v2, 16  ;;  %v453_v30 = vshrl.u32 %v255_v15, 16 }
  0x75   : > { %v425_v31 = vsel %vm7640_vm12, %v417_v63, %v424_v22  ;;  %v723_v33 = vsel %vm7654_vm13, %v416_v7, %v722_v26  ;;  %v433_v35 = vor.u32 %v431_v17, %v430_v24  ;;  %v434_v36 = vrot.slane %v430_v24, 4  ;;  %v305_v37 = vld [vmem:[#allocation2 + $0x3c] sm:$0x1]  ;;  %v726_v38 = vld [vmem:[#allocation2 + $0x20] sm:$0x1]  ;;  %s7268_s26 = scalar_lea.vmem %s9437_s10, 2048 }
  0x76   : > { %724 = vst [vmem:[#allocation2 + $0x18] sm:$0xf] %v723_v33  ;;  %725 = vst.msk [vmem:[#allocation2 + $0x1c] sm:$0xf] %vm280_vm0, %v425_v31  ;;  %v7694_v39 = vsel %vm1362_vm2, %v7626_v32, 0  ;;  %v441_v40 = vor.u32 %v439_v19, %v7683_v27  ;;  %v7697_v41 = vrot.slane %v445_v28, 7  ;;  %v727_v46 = vsel %vm7609_vm8, %v426_v23, %v726_v38  ;;  %p7269_p4 = scmp.ne.s32.totalorder %s9437_s10, %s7268_s26 }
  0x77   : > { %v7699_v42 = vrot.slane %v453_v30, 7  ;;  %v7701_v43 = vld [vmem:[#allocation2 + $0x10] sm:$0xf]  ;;  %v456_v47 = vshll.u32 %v255_v15, 16  ;;  %v306_v48 = vsel %vm7609_vm8, 0, %v305_v37  ;;  %v443_v51 = vrot.slane %v7683_v27, 4 }
  0x78   : > { %v7703_v45 = vld [vmem:[#allocation2 + $0x10] sm:$0xf]  ;;  %v913_v32 = vshll.u32 %v7701_v43, 16  ;;  %v917_v49 = vshrl.u32 %v7701_v43, 16  ;;  %728 = vst [vmem:[#allocation2 + $0x20] sm:$0x1] %v727_v46  ;;  %v442_v57 = vsel %vm7640_vm12, %v434_v36, %v441_v40  ;;  %v7720_v60 = vor.u32 %v448_v29, %v7697_v41  ;;  %p7270_p6 = pnand %p7269_p4, %p7530_p12 }
  0x79   : > { %v2692_v50 = vshll.u32 %v7703_v45, 16  ;;  %v729_v52 = vld [vmem:[#allocation2 + $0x24] sm:$0xf]  ;;  %307 = vst [vmem:[#allocation2 + $0x3c] sm:$0x1] %v306_v48  ;;  %v7728_v7 = vor.u32 %v456_v47, %v7699_v42  ;;  %v2696_v16 = vshrl.u32 %v7703_v45, 16 }
  0x7a   : > { %v7713_v53 = vld [vmem:[#allocation2 + $0xc] sm:$0xf]  ;;  %v861_v54 = vld [vmem:[#allocation2 + $0x14] sm:$0x1]  ;;  %v730_v59 = vsel %vm7654_vm13, %v433_v35, %v729_v52  ;;  %v915_v63 = vrot.slane %v913_v32, 5  ;;  %v919_v0 = vrot.slane %v917_v49, 4  ;;  %p7271_p8 = pneg %p7270_p6 }
  0x7b   : > { %v2634_v55 = vld [vmem:[#allocation2 + $0xc] sm:$0xf]  ;;  %v904_v61 = vshrl.u32 %v7713_v53, 16  ;;  %v907_v62 = vshll.u32 %v7713_v53, 16  ;;  %731 = vst [vmem:[#allocation2 + $0x24] sm:$0xf] %v730_v59 }
  0x7c   : > { %732 = vst.msk [vmem:[#allocation2 + $0x28] sm:$0xf] %vm280_vm0, %v442_v57  ;;  %v923_v1 = vshll.u32 %v861_v54, 16  ;;  %v7725_v2 = vld [vmem:[#allocation2 + $0x14] sm:$0x1]  ;;  %v2683_v3 = vshrl.u32 %v2634_v55, 16  ;;  %v920_v11 = vor.u32 %v919_v0, %v915_v63 }
  0x7d   : > { %v2686_v4 = vshll.u32 %v2634_v55, 16  ;;  %v906_v8 = vrot.slane %v904_v61, 4  ;;  %v909_v10 = vrot.slane %v907_v62, 5  ;;  %v2694_v12 = vrot.slane %v2692_v50, 5  ;;  %v2637_v17 = vld [vmem:[#allocation2 + $0x18] sm:$0xf] }
  0x7e   : > { %v925_v13 = vrot.slane %v923_v1, 5  ;;  %v2685_v14 = vrot.slane %v2683_v3, 4  ;;  %v921_v19 = vrot.slane %v920_v11, 4  ;;  %v2702_v20 = vshll.u32 %v7725_v2, 16  ;;  %v7733_v22 = vld [vmem:[#allocation2 + $0x1c] sm:$0xf] }
  0x7f   : > { %v2688_v15 = vrot.slane %v2686_v4, 5  ;;  %v910_v18 = vor.u32 %v909_v10, %v906_v8  ;;  %v3426_v21 = vrot.slane %v7703_v45, 5  ;;  %v2698_v24 = vrot.slane %v2696_v16, 4  ;;  %v7736_v26 = vld [vmem:[#allocation2 + $0x20] sm:$0x1]  ;;  %s7407_s9 = smov [#allocation8]  }
  0x80   : > { %v3429_v25 = vrot.slane %v7725_v2, 5  ;;  %v2707_v28 = vshrl.u32 %v2637_v17, 16  ;;  %v926_v30 = vsel %vm7631_vm10, %v921_v19, %v925_v13  ;;  %v2704_v31 = vrot.slane %v2702_v20, 5  ;;  %v831_v32 = vld [vmem:[#allocation2 + $0x18] sm:$0xf]  ;;  %s7272_s25 = sshll.u32 %s7407_s9, 4  ;;  %s7273_s25 = int_to_ptr.vmem [resolvable:$false] %s7272_s25 }
  0x81   : > { %v2689_v23 = vor.u32 %v2688_v15, %v2685_v14  ;;  %v911_v29 = vrot.slane %v910_v18, 4  ;;  %v2710_v33 = vshll.u32 %v2637_v17, 16  ;;  %v2699_v36 = vor.u32 %v2698_v24, %v2694_v12  ;;  %v733_v55 = vld [vmem:[#allocation2 + $0x2c] sm:$0x1]  ;;  %v832_v0 = vld [vmem:[#allocation2 + $0x1c] sm:$0xf]  ;;  %p7275_p10 = scmp.lt.s32.totalorder %s9437_s10, %s7273_s25 }
  0x82   : > { %v2709_v37 = vrot.slane %v2707_v28, 4  ;;  %v2716_v38 = vshll.u32 %v7733_v22, 16  ;;  %v2720_v47 = vshrl.u32 %v7733_v22, 16  ;;  %v2726_v48 = vshll.u32 %v7736_v26, 16  ;;  %v862_v3 = vld [vmem:[#allocation2 + $0x20] sm:$0x1] }
  0x83   : > { %v2690_v35 = vrot.slane %v2689_v23, 4  ;;  %v916_v40 = vsel %vm7631_vm10, %v911_v29, %v915_v63  ;;  %v2712_v46 = vrot.slane %v2710_v33, 5  ;;  %v2700_v52 = vrot.slane %v2699_v36, 4  ;;  %v833_v14 = vld [vmem:[#allocation2 + $0x24] sm:$0xf]  ;;  %s7274_s12 = scalar_lea.vmem %s7273_s25, 4096 }
  0x84   : > { %v5913_v49 = vcombine.low %v916_v40, %v926_v30  ;;  %v2718_v54 = vrot.slane %v2716_v38, 5  ;;  %v2722_v59 = vrot.slane %v2720_v47, 4  ;;  %v2728_v61 = vrot.slane %v2726_v48, 5  ;;  %v834_v19 = vld [vmem:[#allocation2 + $0x28] sm:$0xf]  ;;  %p7276_p13 = scmp.lt.s32.totalorder %s7274_s12, %s7268_s26 }
  0x85   : > { %v2695_v50 = vsel %vm7631_vm10, %v2690_v35, %v2694_v12  ;;  %v2713_v57 = vor.u32 %v2712_v46, %v2709_v37  ;;  %v3433_v62 = vrot.slane %v7733_v22, 5  ;;  %v2705_v63 = vsel %vm7631_vm10, %v2700_v52, %v2704_v31  ;;  %v2640_v33 = vld [vmem:[#allocation2 + $0x24] sm:$0xf]  ;;  %v7766_v40 = vld [vmem:[#allocation2 + $0x28] sm:$0xf] }
  0x86   : > { %6477 = vmatmul.mubr.msk.bf16.vlgmr.msra.gmra.mrb[0].mxu1 %vm1313_vm11, %v5913_v49  ;;  %v3436_v1 = vrot.slane %v7736_v26, 5  ;;  %v928_v4 = vshrl.u32 %v831_v32, 16  ;;  %v931_v8 = vshll.u32 %v831_v32, 16  ;;  %v6056_v10 = vcombine.low %v2695_v50, %v2705_v63  ;;  %p7277_p3 = por %p7276_p13, %p7275_p10 }
  0x87   : > { %6509 = vmatpush3.bf16.msra.mxu1 %v7659_v58  ;;  %v2714_v11 = vrot.slane %v2713_v57, 4  ;;  %v2723_v12 = vor.u32 %v2722_v59, %v2718_v54  ;;  %v7755_v13 = vrot.slane %v3433_v62, 4  ;;  %v937_v17 = vshll.u32 %v832_v0, 16 }
  0x88   : > { %v930_v15 = vrot.slane %v928_v4, 4  ;;  %v933_v16 = vrot.slane %v931_v8, 5  ;;  %v941_v18 = vshrl.u32 %v832_v0, 16  ;;  %6612 = vmatprep.mubr.msk.bf16.mxu0 %vm1313_vm11, %v6056_v10  ;;  %v947_v24 = vshll.u32 %v862_v3, 16  ;;  %p7278_p7 = pnand %p7277_p3, %p7271_p8 }
  0x89   : > { %v2719_v20 = vsel %vm7631_vm10, %v2714_v11, %v2718_v54  ;;  %v2724_v23 = vrot.slane %v2723_v12, 4  ;;  %v734_v58 = vsel %vm7609_vm8, %v443_v51, %v733_v55  ;;  %v939_v29 = vrot.slane %v937_v17, 5  ;;  %v736_v11 = vld [vmem:[#allocation2 + $0x30] sm:$0xf]  ;;  %v256_v12 = vld [vmem:[%s7584_s8 + $0x20] sm:$0xf] }
  0x8a   : > { %v934_v28 = vor.u32 %v933_v16, %v930_v15  ;;  %v943_v30 = vrot.slane %v941_v18, 4  ;;  %735 = vst [vmem:[#allocation2 + $0x2c] sm:$0x1] %v734_v58  ;;  %v952_v31 = vshrl.u32 %v833_v14, 16  ;;  %v949_v36 = vrot.slane %v947_v24, 5 }
  0x8b   : > { %v2729_v35 = vsel %vm7631_vm10, %v2724_v23, %v2728_v61  ;;  %v955_v37 = vshll.u32 %v833_v14, 16  ;;  %v961_v38 = vshll.u32 %v834_v19, 16  ;;  %vm1867_vm14 = vcmask 1042432   ;;  %v740_v58 = vld [vmem:[#allocation2 + $0x38] sm:$0x1] }
  0x8c   : > { %v6057_v46 = vcombine.low %v2719_v20, %v2729_v35  ;;  %v935_v47 = vrot.slane %v934_v28, 4  ;;  %v944_v27 = vor.u32 %v943_v30, %v939_v29  ;;  %v954_v48 = vrot.slane %v952_v31, 4 }
  0x8d   : > { %vm1868_vm15 = vcmask 1046532   ;;  %v957_v51 = vrot.slane %v955_v37, 5  ;;  %v963_v32 = vrot.slane %v961_v38, 5  ;;  %v965_v49 = vshrl.u32 %v834_v19, 16  ;;  %v308_v38 = vld [vmem:[#allocation2 + $0x48] sm:$0x1] }
  0x8e   : > { %v2731_v50 = vshrl.u32 %v2640_v33, 16  ;;  %6613 = vmatmul.mubr.msk.bf16.vlgmr.msra.gmra.mrb[0].mxu0 %vm1313_vm11, %v6057_v46  ;;  %v940_v52 = vsel %vm7631_vm10, %v935_v47, %v939_v29  ;;  %v945_v54 = vrot.slane %v944_v27, 4  ;;  %v2734_v55 = vshll.u32 %v2640_v33, 16  ;;  %v257_v33 = vld [vmem:[%s7584_s8 + $0x24] sm:$0xf]  ;;  %vm7813_vm3 = vmor %vm1867_vm14, %vm1868_vm15 }
  0x8f   : > { %v2740_v57 = vshll.u32 %v7766_v40, 16  ;;  %6645 = vmatpush3.bf16.msra.mxu0 %v7694_v39  ;;  %v958_v59 = vor.u32 %v957_v51, %v954_v48  ;;  %v967_v61 = vrot.slane %v965_v49, 4  ;;  %v2744_v63 = vshrl.u32 %v7766_v40, 16  ;;  %v358_v48 = vld [vmem:[#allocation2 + $0x50] sm:$0x1] }
  0x90   : > { %v2733_v0 = vrot.slane %v2731_v50, 4  ;;  %v950_v3 = vsel %vm7631_vm10, %v945_v54, %v949_v36  ;;  %v2736_v4 = vrot.slane %v2734_v55, 5  ;;  %v451_v10 = vrot.slane %v7697_v41, 4  ;;  %v355_v41 = vld [vmem:[#allocation2 + $0x44] sm:$0x1] }
  0x91   : > { %v2742_v8 = vrot.slane %v2740_v57, 5  ;;  %v5914_v14 = vcombine.low %v940_v52, %v950_v3  ;;  %v863_v15 = vld [vmem:[#allocation2 + $0x2c] sm:$0x1]  ;;  %v959_v16 = vrot.slane %v958_v59, 4  ;;  %v968_v17 = vor.u32 %v967_v61, %v963_v32  ;;  %v7802_v50 = vld [vmem:[%s7584_s8 + $0x28] sm:$0xf] }
  0x92   : > { %v7778_v39 = vld [vmem:[#allocation2 + $0x2c] sm:$0x1]  ;;  %v2746_v18 = vrot.slane %v2744_v63, 4  ;;  %v971_v19 = vshll.u32 %v863_v15, 16  ;;  %v2737_v20 = vor.u32 %v2736_v4, %v2733_v0  ;;  %v459_v24 = vsel %vm7640_vm12, %v451_v10, %v7728_v7  ;;  %v7804_v52 = vld [vmem:[#allocation6 + $0xc] sm:$0x3] }
  0x93   : > { %v2750_v23 = vshll.u32 %v7778_v39, 16  ;;  %6480 = vmatprep.mubr.msk.bf16.mxu1 %vm1313_vm11, %v5914_v14  ;;  %v964_v28 = vsel %vm7631_vm10, %v959_v16, %v963_v32  ;;  %v969_v29 = vrot.slane %v968_v17, 4  ;;  %v460_v31 = vrot.slane %v7699_v42, 4  ;;  %739 = vst.msk [vmem:[#allocation2 + $0x34] sm:$0xf] %vm280_vm0, %v459_v24  ;;  %7045 = vmatprep.subr.msk.bf16.mxu0 %vm1362_vm2, %v7804_v52 }
  0x94   : > { %v2747_v30 = vor.u32 %v2746_v18, %v2742_v8  ;;  %v973_v35 = vrot.slane %v971_v19, 5  ;;  %v2738_v36 = vrot.slane %v2737_v20, 4  ;;  %v737_v7 = vsel %vm7654_vm13, %v7720_v60, %v736_v11  ;;  %v7809_v61 = vld [vmem:[%s7584_s8 + $0x2c] sm:$0xf] }
  0x95   : > { %v2752_v37 = vrot.slane %v2750_v23, 5  ;;  %738 = vst [vmem:[#allocation2 + $0x30] sm:$0xf] %v737_v7  ;;  %v741_v47 = vsel %vm7609_vm8, %v460_v31, %v740_v58  ;;  %v356_v42 = vsel %vm7616_vm9, 0, %v355_v41  ;;  %v462_v27 = vshrl.u32 %v256_v12, 16 }
  0x96   : > { %v2748_v46 = vrot.slane %v2747_v30, 4  ;;  %v974_v51 = vsel %vm7631_vm10, %v969_v29, %v973_v35  ;;  %v2743_v32 = vsel %vm7631_vm10, %v2738_v36, %v2742_v8  ;;  %742 = vst [vmem:[#allocation2 + $0x38] sm:$0x1] %v741_v47  ;;  %357 = vst [vmem:[#allocation2 + $0x44] sm:$0x1] %v356_v42  ;;  %v465_v60 = vshll.u32 %v256_v12, 16 }
  0x97   : > { %v470_v49 = vshrl.u32 %v257_v33, 16  ;;  %v5915_v54 = vcombine.low %v964_v28, %v974_v51  ;;  %v464_v57 = vrot.slane %v462_v27, 7  ;;  %v473_v59 = vshll.u32 %v257_v33, 16  ;;  %v743_v12 = vld [vmem:[#allocation2 + $0x3c] sm:$0xf] }
  0x98   : > { %v2753_v55 = vsel %vm7631_vm10, %v2748_v46, %v2752_v37  ;;  %v309_v4 = vsel %vm7609_vm8, 0, %v308_v38  ;;  %v359_v8 = vsel %vm7616_vm9, 0, %v358_v48  ;;  %v479_v14 = vshrl.u32 %v7802_v50, 16 }
  0x99   : > { %v6058_v63 = vcombine.low %v2743_v32, %v2753_v55  ;;  %v472_v3 = vrot.slane %v470_v49, 7  ;;  %6481 = vmatmul.mubr.msk.bf16.gmra.mrb[4].mxu1 %vm1313_vm11, %v5915_v54  ;;  %v467_v10 = vor.u32 %v465_v60, %v464_v57  ;;  %v468_v11 = vrot.slane %v464_v57, 4  ;;  %310 = vst [vmem:[#allocation2 + $0x48] sm:$0x1] %v309_v4  ;;  %360 = vst [vmem:[#allocation2 + $0x50] sm:$0x1] %v359_v8 }
  0x9a   : > { %v482_v15 = vshll.u32 %v7802_v50, 16  ;;  %v7827_v16 = vld [vmem:[#allocation2 + $0x34] sm:$0xf]  ;;  %v487_v20 = vshrl.u32 %v7809_v61, 16  ;;  %v7835_v23 = vsel %vm7813_vm3, %v7755_v13, %v3436_v1  ;;  %v7843_v26 = vrot.slane %v479_v14, 7 }
  0x9b   : > { %6616 = vmatprep.mubr.msk.bf16.mxu0 %vm1313_vm11, %v6058_v63  ;;  %v836_v17 = vld [vmem:[#allocation2 + $0x34] sm:$0xf]  ;;  %v475_v18 = vor.u32 %v473_v59, %v472_v3  ;;  %v477_v19 = vrot.slane %v472_v3, 4  ;;  %v2764_v24 = vshll.u32 %v7827_v16, 16  ;;  %v2768_v58 = vshrl.u32 %v7827_v16, 16 }
  0x9c   : > { %v985_v41 = vshll.u32 %v836_v17, 16  ;;  %v989_v28 = vshrl.u32 %v836_v17, 16  ;;  %v2643_v29 = vld [vmem:[#allocation2 + $0x30] sm:$0xf]  ;;  %v744_v33 = vsel %vm7654_vm13, %v467_v10, %v743_v12  ;;  %v7845_v35 = vrot.slane %v487_v20, 7 }
  0x9d   : > { %v835_v30 = vld [vmem:[#allocation2 + $0x30] sm:$0xf]  ;;  %v476_v31 = vsel %vm7640_vm12, %v468_v11, %v475_v18  ;;  %v7847_v1 = vld [vmem:[#allocation2 + $0x38] sm:$0x1]  ;;  %v2755_v13 = vshrl.u32 %v2643_v29, 16  ;;  %v2758_v36 = vshll.u32 %v2643_v29, 16  ;;  %v484_v12 = vor.u32 %v482_v15, %v7843_v26 }
  0x9e   : > { %v2766_v37 = vrot.slane %v2764_v24, 5  ;;  %v2770_v7 = vrot.slane %v2768_v58, 4  ;;  %745 = vst [vmem:[#allocation2 + $0x3c] sm:$0xf] %v744_v33  ;;  %746 = vst.msk [vmem:[#allocation2 + $0x40] sm:$0xf] %vm280_vm0, %v476_v31 }
  0x9f   : > { %v2774_v38 = vshll.u32 %v7847_v1, 16  ;;  %v864_v46 = vld [vmem:[#allocation2 + $0x38] sm:$0x1]  ;;  %v976_v47 = vshrl.u32 %v835_v30, 16  ;;  %v979_v42 = vshll.u32 %v835_v30, 16  ;;  %v987_v27 = vrot.slane %v985_v41, 5 }
  0xa0   : > { %v2757_v48 = vrot.slane %v2755_v13, 4  ;;  %v2760_v51 = vrot.slane %v2758_v36, 5  ;;  %v2771_v32 = vor.u32 %v2770_v7, %v2766_v37  ;;  %v991_v60 = vrot.slane %v989_v28, 4  ;;  %v747_v49 = vld [vmem:[#allocation2 + $0x44] sm:$0x1] }
  0xa1   : > { %v2776_v50 = vrot.slane %v2774_v38, 5  ;;  %v978_v54 = vrot.slane %v976_v47, 4  ;;  %v981_v55 = vrot.slane %v979_v42, 5  ;;  %v995_v57 = vshll.u32 %v864_v46, 16  ;;  %v750_v8 = vld [vmem:[#allocation2 + $0x48] sm:$0xf] }
  0xa2   : > { %v2761_v59 = vor.u32 %v2760_v51, %v2757_v48  ;;  %v2772_v63 = vrot.slane %v2771_v32, 4  ;;  %v992_v3 = vor.u32 %v991_v60, %v987_v27  ;;  %v748_v4 = vsel %vm7609_vm8, %v477_v19, %v747_v49  ;;  %v754_v49 = vld [vmem:[#allocation2 + $0x50] sm:$0x1]  ;;  %v8501_v5 = vld [vmem:[#allocation2 + $0x38] sm:$0x1] }
  0xa3   : > { %v982_v10 = vor.u32 %v981_v55, %v978_v54  ;;  %v997_v11 = vrot.slane %v995_v57, 5  ;;  %749 = vst [vmem:[#allocation2 + $0x44] sm:$0x1] %v748_v4  ;;  %v485_v14 = vrot.slane %v7843_v26, 4  ;;  %v490_v24 = vshll.u32 %v7809_v61, 16  ;;  %9623 = vst [vmem:[#allocation23_spill] sm:$0xff] %v8501_v5 }
  0xa4   : > { %v2762_v17 = vrot.slane %v2761_v59, 4  ;;  %v2777_v18 = vsel %vm7631_vm10, %v2772_v63, %v2776_v50  ;;  %v993_v20 = vrot.slane %v992_v3, 4  ;;  %v494_v19 = vrot.slane %v7845_v35, 4 }
  0xa5   : > { %v983_v58 = vrot.slane %v982_v10, 4  ;;  %v837_v41 = vld [vmem:[#allocation2 + $0x3c] sm:$0xf]  ;;  %v838_v28 = vld [vmem:[#allocation2 + $0x40] sm:$0xf]  ;;  %v751_v29 = vsel %vm7654_vm13, %v484_v12, %v750_v8  ;;  %v492_v59 = vor.u32 %v490_v24, %v7845_v35 }
  0xa6   : > { %v2767_v15 = vsel %vm7631_vm10, %v2762_v17, %v2766_v37  ;;  %v998_v30 = vsel %vm7631_vm10, %v993_v20, %v997_v11  ;;  %v1000_v31 = vshrl.u32 %v837_v41, 16  ;;  %v1003_v33 = vshll.u32 %v837_v41, 16  ;;  %v2646_v26 = vld [vmem:[#allocation2 + $0x3c] sm:$0xf]  ;;  %v7865_v13 = vld [vmem:[#allocation2 + $0x40] sm:$0xf] }
  0xa7   : > { %752 = vst [vmem:[#allocation2 + $0x48] sm:$0xf] %v751_v29  ;;  %v6059_v61 = vcombine.low %v2767_v15, %v2777_v18  ;;  %v988_v36 = vsel %vm7631_vm10, %v983_v58, %v987_v27  ;;  %v1009_v7 = vshll.u32 %v838_v28, 16  ;;  %v1013_v38 = vshrl.u32 %v838_v28, 16 }
  0xa8   : > { %v5916_v46 = vcombine.low %v988_v36, %v998_v30  ;;  %v1002_v47 = vrot.slane %v1000_v31, 4  ;;  %v1005_v42 = vrot.slane %v1003_v33, 5  ;;  %v2779_v48 = vshrl.u32 %v2646_v26, 16  ;;  %v260_v31 = vld [vmem:[%s7584_s8 + $0x30] sm:$0xf] }
  0xa9   : > { %6617 = vmatmul.mubr.msk.bf16.gmra.mrb[4].mxu0 %vm1313_vm11, %v6059_v61  ;;  %v1011_v37 = vrot.slane %v1009_v7, 5  ;;  %v1015_v51 = vrot.slane %v1013_v38, 4  ;;  %v2782_v32 = vshll.u32 %v2646_v26, 16  ;;  %v2788_v60 = vshll.u32 %v7865_v13, 16  ;;  %v361_v7 = vld [vmem:[#allocation2 + $0x5c] sm:$0x1] }
  0xaa   : > { %6484 = vmatprep.mubr.msk.bf16.mxu1 %vm1313_vm11, %v5916_v46  ;;  %v865_v50 = vld [vmem:[#allocation2 + $0x44] sm:$0x1]  ;;  %v1006_v54 = vor.u32 %v1005_v42, %v1002_v47  ;;  %v2781_v27 = vrot.slane %v2779_v48, 4  ;;  %v2792_v57 = vshrl.u32 %v7865_v13, 16  ;;  %v493_v17 = vsel %vm7640_vm12, %v485_v14, %v492_v59  ;;  %v311_v14 = vld [vmem:[#allocation2 + $0x54] sm:$0x1] }
  0xab   : > { %v7872_v55 = vld [vmem:[#allocation2 + $0x44] sm:$0x1]  ;;  %v1016_v63 = vor.u32 %v1015_v51, %v1011_v37  ;;  %v1019_v3 = vshll.u32 %v865_v50, 16  ;;  %v2784_v4 = vrot.slane %v2782_v32, 5  ;;  %v2790_v8 = vrot.slane %v2788_v60, 5 }
  0xac   : > { %v1007_v10 = vrot.slane %v1006_v54, 4  ;;  %v2794_v11 = vrot.slane %v2792_v57, 4  ;;  %v2798_v12 = vshll.u32 %v7872_v55, 16  ;;  %753 = vst.msk [vmem:[#allocation2 + $0x4c] sm:$0xf] %vm280_vm0, %v493_v17  ;;  %v755_v35 = vsel %vm7609_vm8, %v494_v19, %v754_v49 }
  0xad   : > { %v1017_v18 = vrot.slane %v1016_v63, 4  ;;  %v1021_v20 = vrot.slane %v1019_v3, 5  ;;  %v2785_v58 = vor.u32 %v2784_v4, %v2781_v27  ;;  %756 = vst [vmem:[#allocation2 + $0x50] sm:$0x1] %v755_v35  ;;  %v261_v42 = vld [vmem:[%s7584_s8 + $0x34] sm:$0xf] }
  0xae   : > { %v2649_v24 = vld [vmem:[#allocation2 + $0x48] sm:$0xf]  ;;  %v1012_v28 = vsel %vm7631_vm10, %v1007_v10, %v1011_v37  ;;  %v2795_v29 = vor.u32 %v2794_v11, %v2790_v8  ;;  %v2800_v15 = vrot.slane %v2798_v12, 5  ;;  %v312_v32 = vsel %vm7609_vm8, 0, %v311_v14 }
  0xaf   : > { %v839_v41 = vld [vmem:[#allocation2 + $0x48] sm:$0xf]  ;;  %v2803_v30 = vshrl.u32 %v2649_v24, 16  ;;  %v1022_v33 = vsel %vm7631_vm10, %v1017_v18, %v1021_v20  ;;  %v2786_v26 = vrot.slane %v2785_v58, 4  ;;  %v2806_v61 = vshll.u32 %v2649_v24, 16 }
  0xb0   : > { %v1024_v36 = vshrl.u32 %v839_v41, 16  ;;  %v5917_v19 = vcombine.low %v1012_v28, %v1022_v33  ;;  %v2796_v38 = vrot.slane %v2795_v29, 4  ;;  %v1027_v47 = vshll.u32 %v839_v41, 16  ;;  %313 = vst [vmem:[#allocation2 + $0x54] sm:$0x1] %v312_v32 }
  0xb1   : > { %v2805_v46 = vrot.slane %v2803_v30, 4  ;;  %v2791_v48 = vsel %vm7631_vm10, %v2786_v26, %v2790_v8  ;;  %v2808_v37 = vrot.slane %v2806_v61, 5  ;;  %v362_v50 = vsel %vm7616_vm9, 0, %v361_v7  ;;  %v262_v30 = vld [vmem:[%s7584_s8 + $0x38] sm:$0xf] }
  0xb2   : > { %v1026_v51 = vrot.slane %v1024_v36, 4  ;;  %6485 = vmatmul.mubr.msk.bf16.gmra.mrb[8].mxu1 %vm1313_vm11, %v5917_v19  ;;  %v2801_v60 = vsel %vm7631_vm10, %v2796_v38, %v2800_v15  ;;  %v1029_v49 = vrot.slane %v1027_v47, 5  ;;  %v496_v54 = vshrl.u32 %v260_v31, 16  ;;  %363 = vst [vmem:[#allocation2 + $0x5c] sm:$0x1] %v362_v50 }
  0xb3   : > { %v6060_v27 = vcombine.low %v2791_v48, %v2801_v60  ;;  %v2809_v57 = vor.u32 %v2808_v37, %v2805_v46  ;;  %v499_v59 = vshll.u32 %v260_v31, 16  ;;  %v504_v63 = vshrl.u32 %v261_v42, 16  ;;  %v7897_v3 = vld [vmem:[#allocation2 + $0x4c] sm:$0xf]  ;;  %v314_v61 = vld [vmem:[#allocation2 + $0x60] sm:$0x1] }
  0xb4   : > { %v840_v4 = vld [vmem:[#allocation2 + $0x4c] sm:$0xf]  ;;  %v1030_v8 = vor.u32 %v1029_v49, %v1026_v51  ;;  %v498_v10 = vrot.slane %v496_v54, 7  ;;  %v507_v11 = vshll.u32 %v261_v42, 16  ;;  %v5945_v12 = vcombine.low %v7713_v53, %v7701_v43  ;;  %v7902_v17 = vld [vmem:[#allocation2 + $0x50] sm:$0x1] }
  0xb5   : > { %6620 = vmatprep.mubr.msk.bf16.mxu0 %vm1313_vm11, %v6060_v27  ;;  %v2810_v18 = vrot.slane %v2809_v57, 4  ;;  %v2812_v20 = vshll.u32 %v7897_v3, 16  ;;  %v2816_v58 = vshrl.u32 %v7897_v3, 16  ;;  %v1033_v35 = vshll.u32 %v840_v4, 16  ;;  %v866_v41 = vld [vmem:[#allocation2 + $0x50] sm:$0x1] }
  0xb6   : > { %v2822_v24 = vshll.u32 %v7902_v17, 16  ;;  %v1031_v28 = vrot.slane %v1030_v8, 4  ;;  %v1037_v29 = vshrl.u32 %v840_v4, 16  ;;  %v501_v15 = vor.u32 %v499_v59, %v498_v10  ;;  %v364_v46 = vld [vmem:[#allocation2 + $0x68] sm:$0x1] }
  0xb7   : > { %v2814_v31 = vrot.slane %v2812_v20, 5  ;;  %v2818_v14 = vrot.slane %v2816_v58, 4  ;;  %v1035_v33 = vrot.slane %v1033_v35, 5  ;;  %v1043_v26 = vshll.u32 %v866_v41, 16  ;;  %v757_v51 = vld [vmem:[#allocation2 + $0x54] sm:$0xf] }
  0xb8   : > { %v2824_v36 = vrot.slane %v2822_v24, 5  ;;  %v1039_v7 = vrot.slane %v1037_v29, 4  ;;  %v502_v19 = vrot.slane %v498_v10, 4  ;;  %v506_v38 = vrot.slane %v504_v63, 7  ;;  %v263_v32 = vld [vmem:[%s7584_s8 + $0x3c] sm:$0xf] }
  0xb9   : > { %v2815_v47 = vsel %vm7631_vm10, %v2810_v18, %v2814_v31  ;;  %v2819_v42 = vor.u32 %v2818_v14, %v2814_v31  ;;  %v1036_v48 = vsel %vm7631_vm10, %v1031_v28, %v1035_v33  ;;  %v1045_v37 = vrot.slane %v1043_v26, 5  ;;  %v761_v27 = vld [vmem:[#allocation2 + $0x5c] sm:$0x1]  ;;  %v317_v57 = vld [vmem:[#allocation2 + $0x6c] sm:$0x1] }
  0xba   : > { %v1040_v60 = vor.u32 %v1039_v7, %v1035_v33  ;;  %v509_v49 = vor.u32 %v507_v11, %v506_v38  ;;  %v511_v50 = vrot.slane %v506_v38, 4  ;;  %v758_v54 = vsel %vm7654_vm13, %v501_v15, %v757_v51  ;;  %v367_v10 = vld [vmem:[#allocation2 + $0x74] sm:$0x1]  ;;  %v264_v35 = vld [vmem:[%s7584_s8 + $0x40] sm:$0xf] }
  0xbb   : > { %v2820_v59 = vrot.slane %v2819_v42, 4  ;;  %759 = vst [vmem:[#allocation2 + $0x54] sm:$0xf] %v758_v54  ;;  %v315_v63 = vsel %vm7609_vm8, 0, %v314_v61  ;;  %v365_v4 = vsel %vm7616_vm9, 0, %v364_v46  ;;  %v513_v8 = vshrl.u32 %v262_v30, 16 }
  0xbc   : > { %v1041_v18 = vrot.slane %v1040_v60, 4  ;;  %v510_v11 = vsel %vm7640_vm12, %v502_v19, %v509_v49  ;;  %v762_v20 = vsel %vm7609_vm8, %v511_v50, %v761_v27  ;;  %316 = vst [vmem:[#allocation2 + $0x60] sm:$0x1] %v315_v63  ;;  %366 = vst [vmem:[#allocation2 + $0x68] sm:$0x1] %v365_v4  ;;  %v516_v58 = vshll.u32 %v262_v30, 16 }
  0xbd   : > { %v1983_v24 = vld [vmem:[#allocation6 + $0x4] sm:$0x3]  ;;  %v2825_v41 = vsel %vm7631_vm10, %v2820_v59, %v2824_v36  ;;  %760 = vst.msk [vmem:[#allocation2 + $0x58] sm:$0xf] %vm280_vm0, %v510_v11  ;;  %763 = vst [vmem:[#allocation2 + $0x5c] sm:$0x1] %v762_v20 }
  0xbe   : > { %v515_v28 = vrot.slane %v513_v8, 7  ;;  %v521_v29 = vshrl.u32 %v263_v32, 16  ;;  %v524_v15 = vshll.u32 %v263_v32, 16  ;;  %v265_v31 = vld [vmem:[%s7584_s8 + $0x44] sm:$0xf]  ;;  %7040 = vmatprep.subr.msk.bf16.mxu1 %vm1362_vm2, %v1983_v24  ;;  %v6061_v14 = vcombine.low %v2815_v47, %v2825_v41 }
  0xbf   : > { %v1046_v33 = vsel %vm7631_vm10, %v1041_v18, %v1045_v37  ;;  %v318_v30 = vsel %vm7609_vm8, 0, %v317_v57  ;;  %v368_v26 = vsel %vm7616_vm9, 0, %v367_v10  ;;  %v7935_v61 = vld [vmem:[#allocation2 + $0xc] sm:$0xe]  ;;  %v530_v46 = vshrl.u32 %v264_v35, 16 }
  0xc0   : > { %v5918_v36 = vcombine.low %v1036_v48, %v1046_v33  ;;  %v518_v7 = vor.u32 %v516_v58, %v515_v28  ;;  %v519_v19 = vrot.slane %v515_v28, 4  ;;  %v523_v38 = vrot.slane %v521_v29, 7  ;;  %319 = vst [vmem:[#allocation2 + $0x6c] sm:$0x1] %v318_v30  ;;  %369 = vst [vmem:[#allocation2 + $0x74] sm:$0x1] %v368_v26  ;;  %6621 = vmatmul.mubr.msk.bf16.gmra.mrb[8].mxu0 %vm1313_vm11, %v6061_v14 }
  0xc1   : > { %v533_v47 = vshll.u32 %v264_v35, 16  ;;  %v538_v42 = vshrl.u32 %v265_v31, 16  ;;  %v541_v37 = vshll.u32 %v265_v31, 16  ;;  %v6088_v60 = vrot.slane %v7935_v61, 9 }
  0xc2   : > { %6488 = vmatprep.mubr.msk.bf16.mxu1 %vm1313_vm11, %v5918_v36  ;;  %v526_v51 = vor.u32 %v524_v15, %v523_v38  ;;  %v528_v32 = vrot.slane %v523_v38, 4  ;;  %v7942_v48 = vrot.slane %v3426_v21, 4  ;;  %v841_v49 = vld [vmem:[#allocation2 + $0x54] sm:$0xf]  ;;  %v532_v54 = vrot.slane %v530_v46, 7 }
  0xc3   : > { %v2652_v50 = vld [vmem:[#allocation2 + $0x54] sm:$0xf]  ;;  %v540_v27 = vrot.slane %v538_v42, 7  ;;  %v1048_v57 = vshrl.u32 %v841_v49, 16  ;;  %v1051_v59 = vshll.u32 %v841_v49, 16 }
  0xc4   : > { %v2827_v63 = vshrl.u32 %v2652_v50, 16  ;;  %v2830_v4 = vshll.u32 %v2652_v50, 16  ;;  %v764_v8 = vld [vmem:[#allocation2 + $0x60] sm:$0xf]  ;;  %v842_v10 = vld [vmem:[#allocation2 + $0x58] sm:$0xf]  ;;  %v527_v20 = vsel %vm7640_vm12, %v519_v19, %v526_v51  ;;  %v535_v35 = vor.u32 %v533_v47, %v532_v54 }
  0xc5   : > { %v867_v18 = vld [vmem:[#allocation2 + $0x5c] sm:$0x1]  ;;  %v7944_v11 = vld [vmem:[#allocation2 + $0x58] sm:$0xf]  ;;  %v765_v58 = vsel %vm7654_vm13, %v518_v7, %v764_v8  ;;  %v543_v24 = vor.u32 %v541_v37, %v540_v27  ;;  %v1050_v41 = vrot.slane %v1048_v57, 4  ;;  %v1053_v28 = vrot.slane %v1051_v59, 5 }
  0xc6   : > { %v1057_v29 = vshll.u32 %v842_v10, 16  ;;  %v1061_v15 = vshrl.u32 %v842_v10, 16  ;;  %v7950_v31 = vld [vmem:[#allocation2 + $0x5c] sm:$0x1]  ;;  %766 = vst [vmem:[#allocation2 + $0x60] sm:$0xf] %v765_v58 }
  0xc7   : > { %767 = vst.msk [vmem:[#allocation2 + $0x64] sm:$0xf] %vm280_vm0, %v527_v20  ;;  %v1067_v14 = vshll.u32 %v867_v18, 16  ;;  %v2829_v33 = vrot.slane %v2827_v63, 4  ;;  %v2832_v30 = vrot.slane %v2830_v4, 5  ;;  %v2836_v26 = vshll.u32 %v7944_v11, 16 }
  0xc8   : > { %v768_v61 = vld [vmem:[#allocation2 + $0x68] sm:$0x1]  ;;  %v1054_v36 = vor.u32 %v1053_v28, %v1050_v41  ;;  %v1059_v19 = vrot.slane %v1057_v29, 5  ;;  %v1063_v7 = vrot.slane %v1061_v15, 4  ;;  %v2840_v38 = vshrl.u32 %v7944_v11, 16 }
  0xc9   : > { %v1069_v46 = vrot.slane %v1067_v14, 5  ;;  %v2833_v47 = vor.u32 %v2832_v30, %v2829_v33  ;;  %v2838_v42 = vrot.slane %v2836_v26, 5  ;;  %v2846_v37 = vshll.u32 %v7950_v31, 16  ;;  %v771_v51 = vld [vmem:[#allocation2 + $0x6c] sm:$0xf] }
  0xca   : > { %v1055_v49 = vrot.slane %v1054_v36, 4  ;;  %v1064_v50 = vor.u32 %v1063_v7, %v1059_v19  ;;  %v2842_v57 = vrot.slane %v2840_v38, 4  ;;  %v769_v59 = vsel %vm7609_vm8, %v528_v32, %v768_v61  ;;  %v775_v63 = vld [vmem:[#allocation2 + $0x74] sm:$0x1] }
  0xcb   : > { %v2834_v4 = vrot.slane %v2833_v47, 4  ;;  %v2848_v8 = vrot.slane %v2846_v37, 5  ;;  %770 = vst [vmem:[#allocation2 + $0x68] sm:$0x1] %v769_v59  ;;  %v536_v10 = vrot.slane %v532_v54, 4  ;;  %v545_v18 = vrot.slane %v540_v27, 4 }
  0xcc   : > { %v1060_v20 = vsel %vm7631_vm10, %v1055_v49, %v1059_v19  ;;  %v1065_v58 = vrot.slane %v1064_v50, 4  ;;  %v2843_v41 = vor.u32 %v2842_v57, %v2838_v42  ;;  %v772_v28 = vsel %vm7654_vm13, %v535_v35, %v771_v51 }
  0xcd   : > { %v2839_v29 = vsel %vm7631_vm10, %v2834_v4, %v2838_v42  ;;  %v2655_v15 = vld [vmem:[#allocation2 + $0x60] sm:$0xf]  ;;  %v544_v33 = vsel %vm7640_vm12, %v536_v10, %v543_v24  ;;  %773 = vst [vmem:[#allocation2 + $0x6c] sm:$0xf] %v772_v28  ;;  %v776_v54 = vsel %vm7609_vm8, %v545_v18, %v775_v63  ;;  %v7974_v27 = vsel %vm7813_vm3, %v6088_v60, %v3426_v21 }
  0xce   : > { %v7964_v14 = vld [vmem:[#allocation2 + $0x64] sm:$0xf]  ;;  %v843_v32 = vld [vmem:[#allocation2 + $0x60] sm:$0xf]  ;;  %v1070_v35 = vsel %vm7631_vm10, %v1065_v58, %v1069_v46  ;;  %v2844_v30 = vrot.slane %v2843_v41, 4  ;;  %v2851_v26 = vshrl.u32 %v2655_v15, 16  ;;  %v3430_v4 = vsel %vm7813_vm3, %v7942_v48, %v3429_v25 }
  0xcf   : > { %v2854_v61 = vshll.u32 %v2655_v15, 16  ;;  %774 = vst.msk [vmem:[#allocation2 + $0x70] sm:$0xf] %vm280_vm0, %v544_v33  ;;  %777 = vst [vmem:[#allocation2 + $0x74] sm:$0x1] %v776_v54  ;;  %v5919_v24 = vcombine.low %v1060_v20, %v1070_v35  ;;  %v2860_v36 = vshll.u32 %v7964_v14, 16  ;;  %v6104_v15 = vcombine.low %v7974_v27, %v3430_v4 }
  0xd0   : > { %v2864_v19 = vshrl.u32 %v7964_v14, 16  ;;  %v844_v7 = vld [vmem:[#allocation2 + $0x64] sm:$0xf]  ;;  %v1072_v45 = vshrl.u32 %v843_v32, 16  ;;  %v2849_v21 = vsel %vm7631_vm10, %v2844_v30, %v2848_v8  ;;  %v2853_v60 = vrot.slane %v2851_v26, 4 }
  0xd1   : > { %v2856_v38 = vrot.slane %v2854_v61, 5  ;;  %v1075_v47 = vshll.u32 %v843_v32, 16  ;;  %6489 = vmatmul.mubr.msk.bf16.gmra.mrb[12].mxu1 %vm1313_vm11, %v5919_v24  ;;  %v6062_v46 = vcombine.low %v2839_v29, %v2849_v21  ;;  %v2862_v42 = vrot.slane %v2860_v36, 5  ;;  %v3361_v25 = vld [vmem:[#allocation2 + $0x18] sm:$0xe] }
  0xd2   : > { %v2866_v37 = vrot.slane %v2864_v19, 4  ;;  %v1074_v51 = vrot.slane %v1072_v45, 4  ;;  %v7984_v49 = vld [vmem:[#allocation2 + $0x68] sm:$0x1]  ;;  %v1081_v63 = vshll.u32 %v844_v7, 16  ;;  %v1085_v18 = vshrl.u32 %v844_v7, 16 }
  0xd3   : > { %v2857_v50 = vor.u32 %v2856_v38, %v2853_v60  ;;  %v868_v57 = vld [vmem:[#allocation2 + $0x68] sm:$0x1]  ;;  %v1077_v59 = vrot.slane %v1075_v47, 5  ;;  %6624 = vmatprep.mubr.msk.bf16.mxu0 %vm1313_vm11, %v6062_v46  ;;  %v2870_v10 = vshll.u32 %v7984_v49, 16  ;;  %v266_v45 = vld [vmem:[%s7584_s8 + $0x48] sm:$0xf] }
  0xd4   : > { %v2867_v8 = vor.u32 %v2866_v37, %v2862_v42  ;;  %v1091_v20 = vshll.u32 %v868_v57, 16  ;;  %v1083_v28 = vrot.slane %v1081_v63, 5  ;;  %v845_v29 = vld [vmem:[#allocation2 + $0x6c] sm:$0xf]  ;;  %v1087_v33 = vrot.slane %v1085_v18, 4 }
  0xd5   : > { %v2858_v58 = vrot.slane %v2857_v50, 4  ;;  %v1078_v41 = vor.u32 %v1077_v59, %v1074_v51  ;;  %v2872_v2 = vrot.slane %v2870_v10, 5  ;;  %v1096_v61 = vshrl.u32 %v845_v29, 16  ;;  %v320_v21 = vld [vmem:[#allocation2 + $0x78] sm:$0x1] }
  0xd6   : > { %v2868_v32 = vrot.slane %v2867_v8, 4  ;;  %v1093_v54 = vrot.slane %v1091_v20, 5  ;;  %v846_v35 = vld [vmem:[#allocation2 + $0x70] sm:$0xf]  ;;  %v869_v26 = vld [vmem:[#allocation2 + $0x74] sm:$0x1]  ;;  %v1088_v19 = vor.u32 %v1087_v33, %v1083_v28 }
  0xd7   : > { %v2863_v48 = vsel %vm7631_vm10, %v2858_v58, %v2862_v42  ;;  %v1079_v30 = vrot.slane %v1078_v41, 4  ;;  %v1099_v24 = vshll.u32 %v845_v29, 16  ;;  %v1105_v27 = vshll.u32 %v846_v35, 16  ;;  %v370_v60 = vld [vmem:[#allocation2 + $0x80] sm:$0x1] }
  0xd8   : > { %v2873_v36 = vsel %vm7631_vm10, %v2868_v32, %v2872_v2  ;;  %v1109_v7 = vshrl.u32 %v846_v35, 16  ;;  %v1098_v46 = vrot.slane %v1096_v61, 4  ;;  %v267_v37 = vld [vmem:[%s7584_s8 + $0x4c] sm:$0xf]  ;;  %v1089_v51 = vrot.slane %v1088_v19, 4 }
  0xd9   : > { %v6063_v38 = vcombine.low %v2863_v48, %v2873_v36  ;;  %v1084_v47 = vsel %vm7631_vm10, %v1079_v30, %v1083_v28  ;;  %v1101_v42 = vrot.slane %v1099_v24, 5  ;;  %v1107_v50 = vrot.slane %v1105_v27, 5  ;;  %v323_v63 = vld [vmem:[#allocation2 + $0x84] sm:$0x1]  ;;  %v268_v20 = vld [vmem:[%s7584_s8 + $0x50] sm:$0xf] }
  0xda   : > { %v1111_v57 = vrot.slane %v1109_v7, 4  ;;  %v1115_v59 = vshll.u32 %v869_v26, 16  ;;  %v6089_v8 = vrot.slane %v3361_v25, 9  ;;  %v3994_v10 = vsel %vm1362_vm2, %v7804_v52, 0  ;;  %v373_v32 = vld [vmem:[#allocation2 + $0x8c] sm:$0x1] }
  0xdb   : > { %6625 = vmatmul.mubr.msk.bf16.gmra.mrb[12].mxu0 %vm1313_vm11, %v6063_v38  ;;  %v1102_v4 = vor.u32 %v1101_v42, %v1098_v46  ;;  %v321_v18 = vsel %vm7609_vm8, 0, %v320_v21  ;;  %v1094_v58 = vsel %vm7631_vm10, %v1089_v51, %v1093_v54  ;;  %v371_v29 = vsel %vm7616_vm9, 0, %v370_v60  ;;  %v269_v25 = vld [vmem:[%s7584_s8 + $0x54] sm:$0xf]  ;;  %v3362_v26 = vld [vmem:[#allocation2 + $0x24] sm:$0xe] }
  0xdc   : > { %v1112_v41 = vor.u32 %v1111_v57, %v1107_v50  ;;  %v1117_v28 = vrot.slane %v1115_v59, 5  ;;  %6646 = vmatprep.mubr.msk.bf16.mxu0 %vm1313_vm11, %v6104_v15  ;;  %322 = vst [vmem:[#allocation2 + $0x78] sm:$0x1] %v321_v18  ;;  %v5920_v2 = vcombine.low %v1084_v47, %v1094_v58  ;;  %v3434_v52 = vsel %vm7813_vm3, %v6089_v8, %v3433_v62  ;;  %v4622_v7 = vld [vmem:[#allocation6 + $0xe] sm:$0x3] }
  0xdd   : > { %v1103_v33 = vrot.slane %v1102_v4, 4  ;;  %372 = vst [vmem:[#allocation2 + $0x80] sm:$0x1] %v371_v29  ;;  %v547_v35 = vshrl.u32 %v266_v45, 16  ;;  %v6105_v48 = vcombine.low %v3434_v52, %v7835_v23  ;;  %v550_v30 = vshll.u32 %v266_v45, 16 }
  0xde   : > { %v1113_v54 = vrot.slane %v1112_v41, 4  ;;  %v555_v15 = vshrl.u32 %v267_v37, 16  ;;  %6492 = vmatprep.mubr.msk.bf16.mxu1 %vm1313_vm11, %v5920_v2  ;;  %v558_v36 = vshll.u32 %v267_v37, 16  ;;  %v324_v22 = vsel %vm7609_vm8, 0, %v323_v63  ;;  %v3363_v47 = vld [vmem:[#allocation2 + $0x30] sm:$0xe] }
  0xdf   : > { %v1108_v61 = vsel %vm7631_vm10, %v1103_v33, %v1107_v50  ;;  %v549_v24 = vrot.slane %v547_v35, 7  ;;  %325 = vst [vmem:[#allocation2 + $0x84] sm:$0x1] %v324_v22  ;;  %v374_v23 = vsel %vm7616_vm9, 0, %v373_v32  ;;  %v564_v27 = vshrl.u32 %v268_v20, 16 }
  0xe0   : > { %v1118_v62 = vsel %vm7631_vm10, %v1113_v54, %v1117_v28  ;;  %v557_v19 = vrot.slane %v555_v15, 7  ;;  %375 = vst [vmem:[#allocation2 + $0x8c] sm:$0x1] %v374_v23  ;;  %v567_v38 = vshll.u32 %v268_v20, 16  ;;  %v326_v46 = vld [vmem:[#allocation2 + $0x90] sm:$0x1] }
  0xe1   : > { %v5921_v45 = vcombine.low %v1108_v61, %v1118_v62  ;;  %v552_v21 = vor.u32 %v550_v30, %v549_v24  ;;  %v553_v60 = vrot.slane %v549_v24, 4  ;;  %v566_v51 = vrot.slane %v564_v27, 7  ;;  %v270_v29 = vld [vmem:[%s7584_s8 + $0x58] sm:$0xf]  ;;  %v376_v32 = vld [vmem:[#allocation2 + $0x98] sm:$0x1] }
  0xe2   : > { %v560_v42 = vor.u32 %v558_v36, %v557_v19  ;;  %v562_v37 = vrot.slane %v557_v19, 4  ;;  %v572_v50 = vshrl.u32 %v269_v25, 16  ;;  %v575_v59 = vshll.u32 %v269_v25, 16  ;;  %v271_v33 = vld [vmem:[%s7584_s8 + $0x5c] sm:$0xf] }
  0xe3   : > { %6493 = vmatmul.mubr.msk.bf16.gmra.mrb[16].mxu1 %vm1313_vm11, %v5921_v45  ;;  %6647 = vmatmul.mubr.msk.bf16.vlgmr.msra.gmra.mrb[0].mxu0 %vm1313_vm11, %v6105_v48  ;;  %v778_v57 = vld [vmem:[#allocation2 + $0x78] sm:$0xf]  ;;  %v6090_v63 = vrot.slane %v3362_v26, 9  ;;  %v3440_v4 = vrot.slane %v7766_v40, 5  ;;  %v3443_v8 = vrot.slane %v7778_v39, 5  ;;  %v569_v41 = vor.u32 %v567_v38, %v566_v51 }
  0xe4   : > { %6679 = vmatpush3.bf16.msra.mxu0 %v3994_v10  ;;  %v561_v18 = vsel %vm7640_vm12, %v553_v60, %v560_v42  ;;  %v779_v20 = vsel %vm7654_vm13, %v552_v21, %v778_v57  ;;  %v782_v58 = vld [vmem:[#allocation2 + $0x80] sm:$0x1]  ;;  %v570_v28 = vrot.slane %v566_v51, 4  ;;  %v574_v39 = vrot.slane %v572_v50, 7  ;;  %v329_v52 = vld [vmem:[#allocation2 + $0x9c] sm:$0x1] }
  0xe5   : > { %780 = vst [vmem:[#allocation2 + $0x78] sm:$0xf] %v779_v20  ;;  %781 = vst.msk [vmem:[#allocation2 + $0x7c] sm:$0xf] %vm280_vm0, %v561_v18  ;;  %v783_v40 = vsel %vm7609_vm8, %v562_v37, %v782_v58  ;;  %v3441_v10 = vsel %vm7813_vm3, %v6090_v63, %v3440_v4  ;;  %v3442_v2 = vrot.slane %v3440_v4, 4  ;;  %7046 = vmatprep.subr.msk.bf16.mxu0 %vm1362_vm2, %v4622_v7  ;;  %v6091_v35 = vrot.slane %v3363_v47, 9 }
  0xe6   : > { %784 = vst [vmem:[#allocation2 + $0x80] sm:$0x1] %v783_v40  ;;  %v3447_v25 = vrot.slane %v7827_v16, 5  ;;  %v3450_v54 = vrot.slane %v7847_v1, 5  ;;  %v327_v48 = vsel %vm7609_vm8, 0, %v326_v46  ;;  %v577_v26 = vor.u32 %v575_v59, %v574_v39 }
  0xe7   : > { %v8049_v30 = vld [vmem:[%s7584_s8 + $0x60] sm:$0xf]  ;;  %v379_v15 = vld [vmem:[#allocation2 + $0xa4] sm:$0x1]  ;;  %v579_v61 = vrot.slane %v574_v39, 4  ;;  %v3444_v36 = vsel %vm7813_vm3, %v3442_v2, %v3443_v8  ;;  %v377_v22 = vsel %vm7616_vm9, 0, %v376_v32 }
  0xe8   : > { %v785_v24 = vld [vmem:[#allocation2 + $0x84] sm:$0xf]  ;;  %328 = vst [vmem:[#allocation2 + $0x90] sm:$0x1] %v327_v48  ;;  %v789_v1 = vld [vmem:[#allocation2 + $0x8c] sm:$0x1]  ;;  %v6106_v62 = vcombine.low %v3441_v10, %v3444_v36  ;;  %v3448_v19 = vsel %vm7813_vm3, %v6091_v35, %v3447_v25  ;;  %v578_v27 = vsel %vm7640_vm12, %v570_v28, %v577_v26 }
  0xe9   : > { %v786_v16 = vsel %vm7654_vm13, %v569_v41, %v785_v24  ;;  %v3449_v23 = vrot.slane %v3447_v25, 4  ;;  %378 = vst [vmem:[#allocation2 + $0x98] sm:$0x1] %v377_v22  ;;  %v790_v7 = vsel %vm7609_vm8, %v579_v61, %v789_v1  ;;  %v581_v45 = vshrl.u32 %v270_v29, 16  ;;  %788 = vst.msk [vmem:[#allocation2 + $0x88] sm:$0xf] %vm280_vm0, %v578_v27 }
  0xea   : > { %787 = vst [vmem:[#allocation2 + $0x84] sm:$0xf] %v786_v16  ;;  %v584_v21 = vshll.u32 %v270_v29, 16  ;;  %791 = vst [vmem:[#allocation2 + $0x8c] sm:$0x1] %v790_v7  ;;  %6650 = vmatprep.mubr.msk.bf16.mxu0 %vm1313_vm11, %v6106_v62  ;;  %v589_v38 = vshrl.u32 %v271_v33, 16 }
  0xeb   : > { %v3451_v60 = vsel %vm7813_vm3, %v3449_v23, %v3450_v54  ;;  %v592_v47 = vshll.u32 %v271_v33, 16  ;;  %v330_v46 = vsel %vm7609_vm8, 0, %v329_v52  ;;  %v583_v37 = vrot.slane %v581_v45, 7  ;;  %v273_v27 = vld [vmem:[%s7584_s8 + $0x64] sm:$0xf] }
  0xec   : > { %v6107_v42 = vcombine.low %v3448_v19, %v3451_v60  ;;  %331 = vst [vmem:[#allocation2 + $0x9c] sm:$0x1] %v330_v46  ;;  %v380_v51 = vsel %vm7616_vm9, 0, %v379_v15  ;;  %v598_v50 = vshrl.u32 %v8049_v30, 16  ;;  %v8072_v57 = vld [vmem:[#allocation2 + $0x78] sm:$0xf] }
  0xed   : > { %v8074_v59 = vld [vmem:[#allocation2 + $0x7c] sm:$0xf]  ;;  %v591_v63 = vrot.slane %v589_v38, 7  ;;  %381 = vst [vmem:[#allocation2 + $0xa4] sm:$0x1] %v380_v51  ;;  %v601_v4 = vshll.u32 %v8049_v30, 16  ;;  %v586_v29 = vor.u32 %v584_v21, %v583_v37 }
  0xee   : > { %v870_v8 = vld [vmem:[#allocation2 + $0x80] sm:$0x1]  ;;  %v1120_v18 = vshrl.u32 %v8072_v57, 16  ;;  %v1123_v20 = vshll.u32 %v8072_v57, 16  ;;  %v1129_v58 = vshll.u32 %v8074_v59, 16  ;;  %v1133_v41 = vshrl.u32 %v8074_v59, 16  ;;  %6651 = vmatmul.mubr.msk.bf16.gmra.mrb[4].mxu0 %vm1313_vm11, %v6107_v42 }
  0xef   : > { %v1139_v28 = vshll.u32 %v870_v8, 16  ;;  %v587_v32 = vrot.slane %v583_v37, 4  ;;  %v594_v40 = vor.u32 %v592_v47, %v591_v63  ;;  %v792_v39 = vld [vmem:[#allocation2 + $0x90] sm:$0xf]  ;;  %v596_v30 = vrot.slane %v591_v63, 4 }
  0xf0   : > { %v1122_v10 = vrot.slane %v1120_v18, 4  ;;  %v1125_v2 = vrot.slane %v1123_v20, 5  ;;  %v1131_v33 = vrot.slane %v1129_v58, 5  ;;  %v1135_v52 = vrot.slane %v1133_v41, 4  ;;  %v796_v35 = vld [vmem:[#allocation2 + $0x98] sm:$0x1] }
  0xf1   : > { %v1141_v25 = vrot.slane %v1139_v28, 5  ;;  %v8082_v54 = vld [vmem:[#allocation2 + $0x84] sm:$0xf]  ;;  %v595_v48 = vsel %vm7640_vm12, %v587_v32, %v594_v40  ;;  %v793_v15 = vsel %vm7654_vm13, %v586_v29, %v792_v39  ;;  %v8088_v24 = vld [vmem:[#allocation2 + $0x88] sm:$0xf]  ;;  %v797_v23 = vsel %vm7609_vm8, %v596_v30, %v796_v35 }
  0xf2   : > { %v1126_v26 = vor.u32 %v1125_v2, %v1122_v10  ;;  %v1136_v61 = vor.u32 %v1135_v52, %v1131_v33  ;;  %v871_v36 = vld [vmem:[#allocation2 + $0x8c] sm:$0x1]  ;;  %v1144_v22 = vshrl.u32 %v8082_v54, 16  ;;  %v1147_v16 = vshll.u32 %v8082_v54, 16  ;;  %794 = vst [vmem:[#allocation2 + $0x90] sm:$0xf] %v793_v15 }
  0xf3   : > { %795 = vst.msk [vmem:[#allocation2 + $0x94] sm:$0xf] %vm280_vm0, %v595_v48  ;;  %v1153_v1 = vshll.u32 %v8088_v24, 16  ;;  %v1157_v62 = vshrl.u32 %v8088_v24, 16  ;;  %v1163_v19 = vshll.u32 %v871_v36, 16  ;;  %v600_v42 = vrot.slane %v598_v50, 7 }
  0xf4   : > { %v1127_v7 = vrot.slane %v1126_v26, 4  ;;  %v1137_v45 = vrot.slane %v1136_v61, 4  ;;  %v1146_v21 = vrot.slane %v1144_v22, 4  ;;  %v1149_v60 = vrot.slane %v1147_v16, 5  ;;  %798 = vst [vmem:[#allocation2 + $0x98] sm:$0x1] %v797_v23 }
  0xf5   : > { %v1155_v38 = vrot.slane %v1153_v1, 5  ;;  %v1159_v47 = vrot.slane %v1157_v62, 4  ;;  %v1165_v46 = vrot.slane %v1163_v19, 5  ;;  %v3364_v37 = vld [vmem:[#allocation2 + $0x3c] sm:$0xe]  ;;  %v606_v18 = vshrl.u32 %v273_v27, 16 }
  0xf6   : > { %v1132_v51 = vsel %vm7631_vm10, %v1127_v7, %v1131_v33  ;;  %v1142_v63 = vsel %vm7631_vm10, %v1137_v45, %v1141_v25  ;;  %v1150_v8 = vor.u32 %v1149_v60, %v1146_v21  ;;  %v799_v20 = vld [vmem:[#allocation2 + $0x9c] sm:$0xf]  ;;  %v603_v28 = vor.u32 %v601_v4, %v600_v42  ;;  %v803_v15 = vld [vmem:[#allocation2 + $0xa4] sm:$0x1] }
  0xf7   : > { %v5922_v58 = vcombine.low %v1132_v51, %v1142_v63  ;;  %v1160_v41 = vor.u32 %v1159_v47, %v1155_v38  ;;  %v604_v29 = vrot.slane %v600_v42, 4  ;;  %v608_v40 = vrot.slane %v606_v18, 7 }
  0xf8   : > { %v1151_v32 = vrot.slane %v1150_v8, 4  ;;  %v609_v39 = vshll.u32 %v273_v27, 16  ;;  %v6092_v10 = vrot.slane %v3364_v37, 9  ;;  %v800_v52 = vsel %vm7654_vm13, %v603_v28, %v799_v20  ;;  %v332_v27 = vld [vmem:[#allocation2 + $0xa8] sm:$0x1] }
  0xf9   : > { %6496 = vmatprep.mubr.msk.bf16.mxu1 %vm1313_vm11, %v5922_v58  ;;  %v1161_v50 = vrot.slane %v1160_v41, 4  ;;  %v8103_v2 = vld [vmem:[#allocation2 + $0x90] sm:$0xf]  ;;  %v3454_v35 = vrot.slane %v7865_v13, 5  ;;  %801 = vst [vmem:[#allocation2 + $0x9c] sm:$0xf] %v800_v52 }
  0xfa   : > { %v8105_v33 = vld [vmem:[#allocation2 + $0x94] sm:$0xf]  ;;  %v1156_v4 = vsel %vm7631_vm10, %v1151_v32, %v1155_v38  ;;  %v1168_v25 = vshrl.u32 %v8103_v2, 16  ;;  %v1171_v48 = vshll.u32 %v8103_v2, 16  ;;  %v611_v22 = vor.u32 %v609_v39, %v608_v40  ;;  %v3365_v13 = vld [vmem:[#allocation2 + $0x48] sm:$0xe] }
  0xfb   : > { %v1177_v30 = vshll.u32 %v8105_v33, 16  ;;  %v1166_v26 = vsel %vm7631_vm10, %v1161_v50, %v1165_v46  ;;  %v872_v61 = vld [vmem:[#allocation2 + $0x98] sm:$0x1]  ;;  %v1181_v36 = vshrl.u32 %v8105_v33, 16  ;;  %v613_v16 = vrot.slane %v608_v40, 4 }
  0xfc   : > { %v5923_v1 = vcombine.low %v1156_v4, %v1166_v26  ;;  %v1170_v62 = vrot.slane %v1168_v25, 4  ;;  %v1173_v19 = vrot.slane %v1171_v48, 5  ;;  %v1187_v45 = vshll.u32 %v872_v61, 16  ;;  %v274_v37 = vld [vmem:[%s7584_s8 + $0x68] sm:$0xf] }
  0xfd   : > { %v1179_v23 = vrot.slane %v1177_v30, 5  ;;  %v1183_v7 = vrot.slane %v1181_v36, 4  ;;  %v612_v21 = vsel %vm7640_vm12, %v604_v29, %v611_v22  ;;  %v804_v60 = vsel %vm7609_vm8, %v613_v16, %v803_v15  ;;  %v382_v20 = vld [vmem:[#allocation2 + $0xb0] sm:$0x1]  ;;  %v275_v50 = vld [vmem:[%s7584_s8 + $0x6c] sm:$0xf] }
  0xfe   : > { %6497 = vmatmul.mubr.msk.bf16.gmra.mrb[20].mxu1 %vm1313_vm11, %v5923_v1  ;;  %v1174_v38 = vor.u32 %v1173_v19, %v1170_v62  ;;  %802 = vst.msk [vmem:[#allocation2 + $0xa0] sm:$0xf] %vm280_vm0, %v612_v21  ;;  %805 = vst [vmem:[#allocation2 + $0xa4] sm:$0x1] %v804_v60  ;;  %v3455_v47 = vsel %vm7813_vm3, %v6092_v10, %v3454_v35  ;;  %v3456_v46 = vrot.slane %v3454_v35, 4  ;;  %v3457_v42 = vrot.slane %v7872_v55, 5 }
  0xff   : > { %v1184_v51 = vor.u32 %v1183_v7, %v1179_v23  ;;  %v1189_v63 = vrot.slane %v1187_v45, 5  ;;  %v6093_v8 = vrot.slane %v3365_v13, 9  ;;  %v3461_v18 = vrot.slane %v7897_v3, 5  ;;  %v276_v62 = vld [vmem:[%s7584_s8 + $0x70] sm:$0xf] }
 0x100   : > { %v1175_v58 = vrot.slane %v1174_v38, 4  ;;  %v3458_v41 = vsel %vm7813_vm3, %v3456_v46, %v3457_v42  ;;  %v3464_v28 = vrot.slane %v7902_v17, 5  ;;  %v333_v29 = vsel %vm7609_vm8, 0, %v332_v27  ;;  %v8134_v40 = vld [vmem:[#allocation2 + $0x9c] sm:$0xf] }
 0x101   : > { %v1185_v32 = vrot.slane %v1184_v51, 4  ;;  %v6108_v55 = vcombine.low %v3455_v47, %v3458_v41  ;;  %v3462_v39 = vsel %vm7813_vm3, %v6093_v8, %v3461_v18  ;;  %v3463_v10 = vrot.slane %v3461_v18, 4  ;;  %334 = vst [vmem:[#allocation2 + $0xa8] sm:$0x1] %v333_v29  ;;  %v277_v45 = vld [vmem:[%s7584_s8 + $0x74] sm:$0xf] }
 0x102   : > { %v1180_v3 = vsel %vm7631_vm10, %v1175_v58, %v1179_v23  ;;  %v1192_v52 = vshrl.u32 %v8134_v40, 16  ;;  %v1195_v17 = vshll.u32 %v8134_v40, 16  ;;  %v383_v35 = vsel %vm7616_vm9, 0, %v382_v20  ;;  %v335_v21 = vld [vmem:[#allocation2 + $0xb4] sm:$0x1] }
 0x103   : > { %v1190_v4 = vsel %vm7631_vm10, %v1185_v32, %v1189_v63  ;;  %6654 = vmatprep.mubr.msk.bf16.mxu0 %vm1313_vm11, %v6108_v55  ;;  %v3465_v25 = vsel %vm7813_vm3, %v3463_v10, %v3464_v28  ;;  %384 = vst [vmem:[#allocation2 + $0xb0] sm:$0x1] %v383_v35  ;;  %v615_v48 = vshrl.u32 %v274_v37, 16  ;;  %v618_v30 = vshll.u32 %v274_v37, 16  ;;  %v385_v42 = vld [vmem:[#allocation2 + $0xbc] sm:$0x1] }
 0x104   : > { %v5924_v15 = vcombine.low %v1180_v3, %v1190_v4  ;;  %v1194_v26 = vrot.slane %v1192_v52, 4  ;;  %v1197_v61 = vrot.slane %v1195_v17, 5  ;;  %v6109_v36 = vcombine.low %v3462_v39, %v3465_v25  ;;  %v3366_v29 = vld [vmem:[#allocation2 + $0x54] sm:$0xe]  ;;  %v3367_v3 = vld [vmem:[#allocation2 + $0x60] sm:$0xe] }
 0x105   : > { %v8150_v22 = vld [vmem:[#allocation2 + $0xa0] sm:$0xf]  ;;  %v873_v16 = vld [vmem:[#allocation2 + $0xa4] sm:$0x1]  ;;  %v617_v13 = vrot.slane %v615_v48, 7  ;;  %v623_v1 = vshrl.u32 %v275_v50, 16 }
 0x106   : > { %6500 = vmatprep.mubr.msk.bf16.mxu1 %vm1313_vm11, %v5924_v15  ;;  %v1198_v19 = vor.u32 %v1197_v61, %v1194_v26  ;;  %v1201_v23 = vshll.u32 %v8150_v22, 16  ;;  %v1205_v27 = vshrl.u32 %v8150_v22, 16  ;;  %v1211_v7 = vshll.u32 %v873_v16, 16  ;;  %6655 = vmatmul.mubr.msk.bf16.gmra.mrb[8].mxu0 %vm1313_vm11, %v6109_v36 }
 0x107   : > { %v620_v60 = vor.u32 %v618_v30, %v617_v13  ;;  %v621_v38 = vrot.slane %v617_v13, 4  ;;  %v625_v47 = vrot.slane %v623_v1, 7  ;;  %v626_v46 = vshll.u32 %v275_v50, 16 }
 0x108   : > { %v1199_v37 = vrot.slane %v1198_v19, 4  ;;  %v1203_v51 = vrot.slane %v1201_v23, 5  ;;  %v1207_v63 = vrot.slane %v1205_v27, 4  ;;  %v1213_v8 = vrot.slane %v1211_v7, 5  ;;  %v806_v18 = vld [vmem:[#allocation2 + $0xa8] sm:$0xf] }
 0x109   : > { %v628_v20 = vor.u32 %v626_v46, %v625_v47  ;;  %v630_v58 = vrot.slane %v625_v47, 4  ;;  %v807_v41 = vsel %vm7654_vm13, %v620_v60, %v806_v18  ;;  %v336_v28 = vsel %vm7609_vm8, 0, %v335_v21  ;;  %v2659_v23 = vld [vmem:[#allocation2 + $0x70] sm:$0xf]  ;;  %v3368_v27 = vld [vmem:[#allocation2 + $0x6c] sm:$0xe] }
 0x10a   : > { %v1204_v32 = vsel %vm7631_vm10, %v1199_v37, %v1203_v51  ;;  %v1208_v55 = vor.u32 %v1207_v63, %v1203_v51  ;;  %808 = vst [vmem:[#allocation2 + $0xa8] sm:$0xf] %v807_v41  ;;  %v810_v39 = vld [vmem:[#allocation2 + $0xb0] sm:$0x1]  ;;  %337 = vst [vmem:[#allocation2 + $0xb4] sm:$0x1] %v336_v28 }
 0x10b   : > { %v386_v10 = vsel %vm7616_vm9, 0, %v385_v42  ;;  %v632_v50 = vshrl.u32 %v276_v62, 16  ;;  %v629_v52 = vsel %vm7640_vm12, %v621_v38, %v628_v20  ;;  %v811_v17 = vsel %vm7609_vm8, %v630_v58, %v810_v39  ;;  %v2660_v58 = vld [vmem:[#allocation2 + $0x74] sm:$0x1] }
 0x10c   : > { %387 = vst [vmem:[#allocation2 + $0xbc] sm:$0x1] %v386_v10  ;;  %v635_v35 = vshll.u32 %v276_v62, 16  ;;  %v640_v4 = vshrl.u32 %v277_v45, 16  ;;  %v1209_v25 = vrot.slane %v1208_v55, 4  ;;  %v643_v30 = vshll.u32 %v277_v45, 16 }
 0x10d   : > { %809 = vst.msk [vmem:[#allocation2 + $0xac] sm:$0xf] %vm280_vm0, %v629_v52  ;;  %812 = vst [vmem:[#allocation2 + $0xb0] sm:$0x1] %v811_v17  ;;  %v634_v48 = vrot.slane %v632_v50, 7  ;;  %v6094_v15 = vrot.slane %v3366_v29, 9 }
 0x10e   : > { %v642_v26 = vrot.slane %v640_v4, 7  ;;  %v3468_v61 = vrot.slane %v7944_v11, 5  ;;  %v3471_v36 = vrot.slane %v7950_v31, 5  ;;  %v6095_v16 = vrot.slane %v3367_v3, 9  ;;  %v8205_v17 = vld [vmem:[#allocation2 + $0x7c] sm:$0xf] }
 0x10f   : > { %v1214_v13 = vsel %vm7631_vm10, %v1209_v25, %v1213_v8  ;;  %v637_v1 = vor.u32 %v635_v35, %v634_v48  ;;  %v638_v19 = vrot.slane %v634_v48, 4  ;;  %v3475_v62 = vrot.slane %v7964_v14, 5 }
 0x110   : > { %v5925_v7 = vcombine.low %v1204_v32, %v1214_v13  ;;  %v645_v21 = vor.u32 %v643_v30, %v642_v26  ;;  %v647_v60 = vrot.slane %v642_v26, 4  ;;  %v3469_v45 = vsel %vm7813_vm3, %v6094_v15, %v3468_v61 }
 0x111   : > { %v3470_v38 = vrot.slane %v3468_v61, 4  ;;  %v3477_v11 = vrot.slane %v3475_v62, 4  ;;  %v3478_v31 = vrot.slane %v7984_v49, 5  ;;  %v8180_v47 = vld [vmem:[#allocation2 + $0xa8] sm:$0xf]  ;;  %v3476_v42 = vsel %vm7813_vm3, %v6095_v16, %v3475_v62 }
 0x112   : > { %6501 = vmatmul.mubr.msk.bf16.gmra.mrb[24].mxu1 %vm1313_vm11, %v5925_v7  ;;  %v646_v46 = vsel %vm7640_vm12, %v638_v19, %v645_v21  ;;  %v813_v14 = vld [vmem:[#allocation2 + $0xb4] sm:$0xf]  ;;  %v6096_v37 = vrot.slane %v3368_v27, 9  ;;  %v3482_v51 = vrot.slane %v2659_v23, 5  ;;  %v1216_v63 = vshrl.u32 %v8180_v47, 16 }
 0x113   : > { %v1219_v8 = vshll.u32 %v8180_v47, 16  ;;  %v814_v49 = vsel %vm7654_vm13, %v637_v1, %v813_v14  ;;  %816 = vst.msk [vmem:[#allocation2 + $0xb8] sm:$0xf] %vm280_vm0, %v646_v46  ;;  %v817_v18 = vld [vmem:[#allocation2 + $0xbc] sm:$0x1]  ;;  %v3472_v20 = vsel %vm7813_vm3, %v3470_v38, %v3471_v36  ;;  %v3479_v55 = vsel %vm7813_vm3, %v3477_v11, %v3478_v31 }
 0x114   : > { %v8193_v41 = vld [vmem:[#allocation2 + $0xac] sm:$0xf]  ;;  %v8195_v28 = vld [vmem:[#allocation2 + $0xb0] sm:$0x1]  ;;  %815 = vst [vmem:[#allocation2 + $0xb4] sm:$0xf] %v814_v49  ;;  %v818_v29 = vsel %vm7609_vm8, %v647_v60, %v817_v18  ;;  %v6110_v32 = vcombine.low %v3469_v45, %v3472_v20  ;;  %v3483_v39 = vsel %vm7813_vm3, %v6096_v37, %v3482_v51  ;;  %v6111_v4 = vcombine.low %v3476_v42, %v3479_v55 }
 0x115   : > { %v1218_v10 = vrot.slane %v1216_v63, 4  ;;  %v1221_v50 = vrot.slane %v1219_v8, 5  ;;  %v1225_v3 = vshll.u32 %v8193_v41, 16  ;;  %v1229_v52 = vshrl.u32 %v8193_v41, 16  ;;  %819 = vst [vmem:[#allocation2 + $0xbc] sm:$0x1] %v818_v29 }
 0x116   : > { %v1235_v35 = vshll.u32 %v8195_v28, 16  ;;  %6658 = vmatprep.mubr.msk.bf16.mxu0 %vm1313_vm11, %v6110_v32  ;;  %v3484_v25 = vrot.slane %v3482_v51, 4  ;;  %v3485_v48 = vrot.slane %v2660_v58, 5  ;;  %v3369_v61 = vld [vmem:[#allocation2 + $0x78] sm:$0xe]  ;;  %v3489_v27 = vrot.slane %v8205_v17, 5 }
 0x117   : > { %v1222_v30 = vor.u32 %v1221_v50, %v1218_v10  ;;  %v1227_v15 = vrot.slane %v1225_v3, 5  ;;  %v1231_v26 = vrot.slane %v1229_v52, 4  ;;  %6659 = vmatmul.mubr.msk.bf16.gmra.mrb[12].mxu0 %vm1313_vm11, %v6111_v4  ;;  %v6097_v23 = vrot.slane %v3369_v61, 9  ;;  %v8222_v11 = vld [vmem:[#allocation2 + $0x80] sm:$0x1] }
 0x118   : > { %v3486_v36 = vsel %vm7813_vm3, %v3484_v25, %v3485_v48  ;;  %v1237_v1 = vrot.slane %v1235_v35, 5  ;;  %v2665_v31 = vld [vmem:[#allocation2 + $0x88] sm:$0xf]  ;;  %v2666_v37 = vld [vmem:[#allocation2 + $0x8c] sm:$0x1]  ;;  %v3491_v4 = vrot.slane %v3489_v27, 4 }
 0x119   : > { %v1223_v16 = vrot.slane %v1222_v30, 4  ;;  %v1232_v13 = vor.u32 %v1231_v26, %v1227_v15  ;;  %v6112_v19 = vcombine.low %v3483_v39, %v3486_v36  ;;  %v3370_v18 = vld [vmem:[#allocation2 + $0x84] sm:$0xe]  ;;  %v7154_v32 = vld [vmem:[#allocation2] sm:$0xf]  ;;  %v3490_v35 = vsel %vm7813_vm3, %v6097_v23, %v3489_v27 }
 0x11a   : > { %v8212_v62 = vld [vmem:[#allocation2 + $0xb8] sm:$0xf]  ;;  %v8231_v55 = vld [vmem:[#allocation2 + $0x4] sm:$0xf]  ;;  %v2668_v10 = vld [vmem:[#allocation2 + $0x94] sm:$0xf] }
 0x11b   : > { %v1228_v7 = vsel %vm7631_vm10, %v1223_v16, %v1227_v15  ;;  %v1233_v21 = vrot.slane %v1232_v13, 4  ;;  %v8217_v60 = vld [vmem:[#allocation2 + $0xb4] sm:$0xf]  ;;  %v1249_v45 = vshll.u32 %v8212_v62, 16  ;;  %v1253_v38 = vshrl.u32 %v8212_v62, 16  ;;  %6662 = vmatprep.mubr.msk.bf16.mxu0 %vm1313_vm11, %v6112_v19 }
 0x11c   : > { %v8224_v46 = vld [vmem:[#allocation2 + $0xbc] sm:$0x1]  ;;  %v1240_v14 = vshrl.u32 %v8217_v60, 16  ;;  %v1243_v42 = vshll.u32 %v8217_v60, 16  ;;  %v5944_v39 = vcombine.low %v7154_v32, %v8231_v55  ;;  %v3371_v50 = vld [vmem:[#allocation2 + $0x90] sm:$0xe] }
 0x11d   : > { %v1238_v51 = vsel %vm7631_vm10, %v1233_v21, %v1237_v1  ;;  %v1251_v63 = vrot.slane %v1249_v45, 5  ;;  %v1255_v8 = vrot.slane %v1253_v38, 4  ;;  %v1259_v49 = vshll.u32 %v8224_v46, 16  ;;  %v2669_v25 = vld [vmem:[#allocation2 + $0x98] sm:$0x1] }
 0x11e   : > { %v5926_v20 = vcombine.low %v1228_v7, %v1238_v51  ;;  %v1242_v58 = vrot.slane %v1240_v14, 4  ;;  %v1245_v29 = vrot.slane %v1243_v42, 5  ;;  %v3492_v30 = vrot.slane %v8222_v11, 5  ;;  %v3372_v1 = vld [vmem:[#allocation2 + $0x9c] sm:$0xe] }
 0x11f   : > { %v1256_v3 = vor.u32 %v1255_v8, %v1251_v63  ;;  %v1261_v52 = vrot.slane %v1259_v49, 5  ;;  %v6098_v15 = vrot.slane %v3370_v18, 9  ;;  %v3496_v26 = vrot.slane %v2665_v31, 5  ;;  %v2671_v21 = vld [vmem:[#allocation2 + $0xa0] sm:$0xf] }
 0x120   : > { %6504 = vmatprep.mubr.msk.bf16.mxu1 %vm1313_vm11, %v5926_v20  ;;  %v1246_v48 = vor.u32 %v1245_v29, %v1242_v58  ;;  %v3499_v36 = vrot.slane %v2666_v37, 5  ;;  %v6099_v16 = vrot.slane %v3371_v50, 9  ;;  %v3503_v13 = vrot.slane %v2668_v10, 5  ;;  %v2672_v45 = vld [vmem:[#allocation2 + $0xa4] sm:$0x1] }
 0x121   : > { %v1257_v61 = vrot.slane %v1256_v3, 4  ;;  %v3493_v7 = vsel %vm7813_vm3, %v3491_v4, %v3492_v30  ;;  %v3497_v23 = vsel %vm7813_vm3, %v6098_v15, %v3496_v26  ;;  %v3498_v27 = vrot.slane %v3496_v26, 4  ;;  %v2674_v37 = vld [vmem:[#allocation2 + $0xac] sm:$0xf]  ;;  %v3373_v20 = vld [vmem:[#allocation2 + $0xa8] sm:$0xe] }
 0x122   : > { %v1247_v19 = vrot.slane %v1246_v48, 4  ;;  %v6113_v31 = vcombine.low %v3490_v35, %v3493_v7  ;;  %v3504_v14 = vsel %vm7813_vm3, %v6099_v16, %v3503_v13  ;;  %v3505_v42 = vrot.slane %v3503_v13, 4  ;;  %v278_v58 = vld [vmem:[%s7584_s8 + $0x78] sm:$0xf]  ;;  %v338_v4 = vld [vmem:[#allocation2 + $0xc0] sm:$0x1] }
 0x123   : > { %v1262_v38 = vsel %vm7631_vm10, %v1257_v61, %v1261_v52  ;;  %v3500_v8 = vsel %vm7813_vm3, %v3498_v27, %v3499_v36  ;;  %v3506_v49 = vrot.slane %v2669_v25, 5  ;;  %v6100_v18 = vrot.slane %v3372_v1, 9  ;;  %v2675_v3 = vld [vmem:[#allocation2 + $0xb0] sm:$0x1]  ;;  %v2677_v52 = vld [vmem:[#allocation2 + $0xb8] sm:$0xf] }
 0x124   : > { %v1252_v51 = vsel %vm7631_vm10, %v1247_v19, %v1251_v63  ;;  %6663 = vmatmul.mubr.msk.bf16.gmra.mrb[16].mxu0 %vm1313_vm11, %v6113_v31  ;;  %v6114_v32 = vcombine.low %v3497_v23, %v3500_v8  ;;  %v3510_v10 = vrot.slane %v2671_v21, 5  ;;  %v3513_v50 = vrot.slane %v2672_v45, 5  ;;  %v388_v48 = vld [vmem:[#allocation2 + $0xc8] sm:$0x1]  ;;  %v2678_v15 = vld [vmem:[#allocation2 + $0xbc] sm:$0x1] }
 0x125   : > { %v5927_v29 = vcombine.low %v1252_v51, %v1262_v38  ;;  %v3507_v35 = vsel %vm7813_vm3, %v3505_v42, %v3506_v49  ;;  %v3517_v63 = vrot.slane %v2674_v37, 5  ;;  %v3374_v26 = vld [vmem:[#allocation2 + $0xb4] sm:$0xe]  ;;  %v6101_v36 = vrot.slane %v3373_v20, 9  ;;  %v7156_v51 = vld [vmem:[#allocation2 + $0x10] sm:$0xf] }
 0x126   : > { %6666 = vmatprep.mubr.msk.bf16.mxu0 %vm1313_vm11, %v6114_v32  ;;  %v3511_v25 = vsel %vm7813_vm3, %v6100_v18, %v3510_v10  ;;  %v3512_v30 = vrot.slane %v3510_v10, 4  ;;  %v6115_v61 = vcombine.low %v3504_v14, %v3507_v35  ;;  %v3520_v16 = vrot.slane %v2675_v3, 5  ;;  %v279_v1 = vld [vmem:[%s7584_s8 + $0x7c] sm:$0xf]  ;;  %v7157_v49 = vld [vmem:[#allocation2 + $0x18] sm:$0xf] }
 0x127   : > { %6505 = vmatmul.mubr.msk.bf16.gmra.mrb[28].mxu1 %vm1313_vm11, %v5927_v29  ;;  %v3524_v13 = vrot.slane %v2677_v52, 5  ;;  %v339_v7 = vsel %vm7609_vm8, 0, %v338_v4  ;;  %v389_v23 = vsel %vm7616_vm9, 0, %v388_v48  ;;  %v649_v27 = vshrl.u32 %v278_v58, 16  ;;  %v8266_v18 = vld [vmem:[#allocation2 + $0x1c] sm:$0xf] }
 0x128   : > { %6510 = vmatprep.mubr.msk.bf16.mxu1 %vm1313_vm11, %v5944_v39  ;;  %v3514_v19 = vsel %vm7813_vm3, %v3512_v30, %v3513_v50  ;;  %v3519_v45 = vrot.slane %v3517_v63, 4  ;;  %v6102_v38 = vrot.slane %v3374_v26, 9  ;;  %v3527_v31 = vrot.slane %v2678_v15, 5  ;;  %340 = vst [vmem:[#allocation2 + $0xc0] sm:$0x1] %v339_v7 }
 0x129   : > { %v6116_v21 = vcombine.low %v3511_v25, %v3514_v19  ;;  %390 = vst [vmem:[#allocation2 + $0xc8] sm:$0x1] %v389_v23  ;;  %v3526_v39 = vrot.slane %v3524_v13, 4  ;;  %v651_v14 = vrot.slane %v649_v27, 7  ;;  %v652_v42 = vshll.u32 %v278_v58, 16 }
 0x12a   : > { %v657_v37 = vshrl.u32 %v279_v1, 16  ;;  %v1879_v8 = vrot.slane %v7156_v51, 5  ;;  %v5946_v20 = vcombine.low %v7157_v49, %v8266_v18  ;;  %v660_v9 = vshll.u32 %v279_v1, 16  ;;  %v7159_v29 = vld [vmem:[#allocation6 + $0x4] sm:$0x3] }
 0x12b   : > { %v2081_v32 = vsel %vm1362_vm2, %v7159_v29, 0  ;;  %v655_v10 = vrot.slane %v651_v14, 4  ;;  %v1820_v3 = vld [vmem:[#allocation2 + $0xc] sm:$0xe]  ;;  %v7160_v52 = vld [vmem:[#allocation2 + $0x14] sm:$0x1]  ;;  %v3518_v58 = vsel %vm7813_vm3, %v6101_v36, %v3517_v63  ;;  %v3521_v4 = vsel %vm7813_vm3, %v3519_v45, %v3520_v16 }
 0x12c   : > { %6667 = vmatmul.mubr.msk.bf16.gmra.mrb[20].mxu0 %vm1313_vm11, %v6115_v61  ;;  %v659_v50 = vrot.slane %v657_v37, 7  ;;  %v1882_v35 = vrot.slane %v7160_v52, 5  ;;  %v654_v48 = vor.u32 %v652_v42, %v651_v14  ;;  %v8276_v25 = vld [vmem:[#allocation6 + $0x6] sm:$0x3]  ;;  %v3525_v30 = vsel %vm7813_vm3, %v6102_v38, %v3524_v13  ;;  %v7161_v7 = vld [vmem:[#allocation2 + $0x24] sm:$0xf] }
 0x12d   : > { %6670 = vmatprep.mubr.msk.bf16.mxu0 %vm1313_vm11, %v6116_v21  ;;  %v3528_v15 = vsel %vm7813_vm3, %v3526_v39, %v3527_v31  ;;  %v5977_v63 = vrot.slane %v1820_v3, 9  ;;  %v1881_v36 = vrot.slane %v1879_v8, 4  ;;  %v6117_v16 = vcombine.low %v3518_v58, %v3521_v4  ;;  %v8296_v23 = vld [vmem:[#allocation2 + $0x28] sm:$0xf]  ;;  %v8307_v21 = vld [vmem:[#allocation2 + $0x34] sm:$0xf] }
 0x12e   : > { %v662_v26 = vor.u32 %v660_v9, %v659_v50  ;;  %v664_v61 = vrot.slane %v659_v50, 4  ;;  %v5947_v44 = vcombine.low %v7161_v7, %v8296_v23  ;;  %v7164_v45 = vld [vmem:[#allocation2 + $0x30] sm:$0xf]  ;;  %v2908_v31 = vshll.u32 %v8205_v17, 16  ;;  %v8318_v49 = vld [vmem:[#allocation2 + $0x40] sm:$0xf] }
 0x12f   : > { %6511 = vmatmul.mubr.msk.bf16.vlgmr.msra.gmra.mrb[0].mxu1 %vm1313_vm11, %v5945_v12  ;;  %v820_v43 = vld [vmem:[#allocation2 + $0xc0] sm:$0xf]  ;;  %v6118_v12 = vcombine.low %v3525_v30, %v3528_v15  ;;  %v8301_v27 = vsel %vm7813_vm3, %v5977_v63, %v1879_v8  ;;  %v8305_v56 = vsel %vm7813_vm3, %v1881_v36, %v1882_v35  ;;  %v5948_v6 = vcombine.low %v7164_v45, %v8307_v21  ;;  %v7165_v8 = vld [vmem:[#allocation2 + $0x3c] sm:$0xf]  ;;  %v7170_v63 = vld [vmem:[#allocation2 + $0x54] sm:$0xf] }
 0x130   : > { %6543 = vmatpush3.bf16.msra.mxu1 %v2081_v32  ;;  %6514 = vmatprep.mubr.msk.bf16.mxu1 %vm1313_vm11, %v5946_v20  ;;  %v663_v1 = vsel %vm7640_vm12, %v655_v10, %v662_v26  ;;  %v824_v53 = vld [vmem:[#allocation2 + $0xc8] sm:$0x1]  ;;  %v821_v13 = vsel %vm7654_vm13, %v654_v48, %v820_v43  ;;  %v2912_v14 = vshrl.u32 %v8205_v17, 16  ;;  %v5949_v20 = vcombine.low %v7165_v8, %v8318_v49  ;;  %v8321_v10 = vld [vmem:[#allocation2 + $0x4c] sm:$0xf]  ;;  %v7122_v4 = vld [vmem:[#allocation2 + $0x18] sm:$0xff]  }
 0x131   : > { %7041 = vmatprep.subr.msk.bf16.mxu1 %vm1362_vm2, %v8276_v25  ;;  %823 = vst.msk [vmem:[#allocation2 + $0xc4] sm:$0xf] %vm280_vm0, %v663_v1  ;;  %v825_v19 = vsel %vm7609_vm8, %v664_v61, %v824_v53  ;;  %822 = vst [vmem:[#allocation2 + $0xc0] sm:$0xf] %v821_v13  ;;  %v7167_v32 = vld [vmem:[#allocation2 + $0x48] sm:$0xf] }
 0x132   : > { %826 = vst [vmem:[#allocation2 + $0xc8] sm:$0x1] %v825_v19  ;;  %v5950_v50 = vcombine.low %v7167_v32, %v8321_v10  ;;  %v8326_v17 = vrot.slane %v2908_v31, 5  ;;  %v2914_v35 = vrot.slane %v2912_v14, 4  ;;  %v2918_v30 = vshll.u32 %v8222_v11, 16  ;;  %v7123_v1 = vld [vmem:[#allocation2 + $0x24] sm:$0xff]  }
 0x133   : > { %v7169_v26 = vld [vmem:[#allocation2 + $0x8] sm:$0x1]  ;;  %v8336_v36 = vld [vmem:[#allocation2 + $0x58] sm:$0xf]  ;;  %v1819_v43 = vld [vmem:[#allocation2] sm:$0xe]  ;;  %v5955_v32 = vcombine.low %v8082_v54, %v8088_v24 }
 0x134   : > { %6671 = vmatmul.mubr.msk.bf16.gmra.mrb[24].mxu0 %vm1313_vm11, %v6117_v16  ;;  %9616 = vst [vmem:[#allocation17_spill] sm:$0xff] %v8326_v17  ;;  %v2915_v15 = vor.u32 %v2914_v35, %v8326_v17  ;;  %v1875_v61 = vrot.slane %v7169_v26, 5  ;;  %v5951_v16 = vcombine.low %v7170_v63, %v8336_v36  ;;  %v7172_v53 = vld [vmem:[#allocation2 + $0x60] sm:$0xf]  ;;  %v7124_v13 = vld [vmem:[#allocation2 + $0x30] sm:$0xff]   ;;  %v1872_v19 = vrot.slane %v8231_v55, 5 }
 0x135   : > { %6674 = vmatprep.mubr.msk.bf16.mxu0 %vm1313_vm11, %v6118_v12  ;;  %v8339_v12 = vld [vmem:[#allocation2 + $0x64] sm:$0xf]  ;;  %v1821_v7 = vld [vmem:[#allocation2 + $0x18] sm:$0xe]  ;;  %v1893_v31 = vrot.slane %v8296_v23, 5  ;;  %v1900_v8 = vrot.slane %v8307_v21, 5 }
 0x136   : > { %v5952_v11 = vcombine.low %v7172_v53, %v8339_v12  ;;  %v1822_v45 = vld [vmem:[#allocation2 + $0x24] sm:$0xe]  ;;  %v8347_v14 = vrot.slane %v2915_v15, 4  ;;  %v5978_v23 = vrot.slane %v1821_v7, 9  ;;  %v1907_v21 = vrot.slane %v8318_v49, 5 }
 0x137   : > { %6515 = vmatmul.mubr.msk.bf16.gmra.mrb[4].mxu1 %vm1313_vm11, %v5947_v44  ;;  %v1886_v44 = vrot.slane %v8266_v18, 5  ;;  %v7176_v55 = vld [vmem:[#allocation6 + $0xe] sm:$0x3]  ;;  %v1902_v26 = vrot.slane %v1900_v8, 4  ;;  %v7179_v63 = vld [vmem:[#allocation2 + $0x38] sm:$0x1] }
 0x138   : > { %6518 = vmatprep.mubr.msk.bf16.mxu1 %vm1313_vm11, %v5948_v6  ;;  %v2680_v39 = vld [vmem:[#allocation2 + $0xc4] sm:$0xf]  ;;  %v3375_v37 = vld [vmem:[#allocation2 + $0xc0] sm:$0xe]  ;;  %v8344_v6 = vrot.slane %v2918_v30, 5  ;;  %9618 = vst [vmem:[#allocation19_spill] sm:$0xff] %v8347_v14 }
 0x139   : > { %v2681_v42 = vld [vmem:[#allocation2 + $0xc8] sm:$0x1]  ;;  %v3531_v51 = vrot.slane %v2680_v39, 5  ;;  %v6103_v9 = vrot.slane %v3375_v37, 9  ;;  %v1823_v39 = vld [vmem:[#allocation2 + $0x30] sm:$0xe]  ;;  %v8377_v53 = vsel %vm7813_vm3, %v5978_v23, %v1886_v44 }
 0x13a   : > { %v3534_v29 = vrot.slane %v2681_v42, 5  ;;  %9617 = vst [vmem:[#allocation18_spill] sm:$0xff] %v8344_v6  ;;  %v7174_v42 = vld [vmem:[#allocation2 + $0x6c] sm:$0xf]  ;;  %v8349_v37 = vld [vmem:[#allocation2 + $0x70] sm:$0xf] }
 0x13b   : > { %v3533_v3 = vrot.slane %v3531_v51, 4  ;;  %v3532_v52 = vsel %vm7813_vm3, %v6103_v9, %v3531_v51  ;;  %v5953_v51 = vcombine.low %v7174_v42, %v8349_v37  ;;  %v4720_v18 = vsel %vm1362_vm2, %v7176_v55, 0  ;;  %v1826_v55 = vld [vmem:[#allocation2 + $0x54] sm:$0xe]  ;;  %v1827_v23 = vld [vmem:[#allocation2 + $0x60] sm:$0xe] }
 0x13c   : > { %v5976_v9 = vrot.slane %v1819_v43, 9  ;;  %v5980_v15 = vrot.slane %v1823_v39, 9  ;;  %v7180_v39 = vld [vmem:[#allocation2 + $0x44] sm:$0x1]  ;;  %v4198_v17 = vld [vmem:[#allocation2 + $0x3c] sm:$0xf] }
 0x13d   : > { %v3535_v58 = vsel %vm7813_vm3, %v3533_v3, %v3534_v29  ;;  %v8357_v29 = vld [vmem:[#allocation6 + $0x10] sm:$0x3]  ;;  %v1888_v3 = vrot.slane %v1886_v44, 4  ;;  %v1910_v42 = vrot.slane %v7180_v39, 5  ;;  %v1828_v39 = vld [vmem:[#allocation2 + $0x6c] sm:$0xe] }
 0x13e   : > { %v6119_v48 = vcombine.low %v3532_v52, %v3535_v58  ;;  %v7177_v52 = vld [vmem:[#allocation2 + $0x20] sm:$0x1]  ;;  %v5979_v58 = vrot.slane %v1822_v45, 9  ;;  %v8373_v43 = vsel %vm7813_vm3, %v5976_v9, %v1872_v19  ;;  %v1909_v45 = vrot.slane %v1907_v21, 4  ;;  %v8594_v6 = vld [vmem:[#allocation2 + $0x50] sm:$0x1] }
 0x13f   : > { %6519 = vmatmul.mubr.msk.bf16.gmra.mrb[8].mxu1 %vm1313_vm11, %v5949_v20  ;;  %v5954_v20 = vcombine.low %v8072_v57, %v8074_v59  ;;  %v1889_v35 = vrot.slane %v7177_v52, 5  ;;  %v7178_v57 = vld [vmem:[#allocation2 + $0x2c] sm:$0x1]  ;;  %v7128_v30 = vld [vmem:[#allocation2 + $0x60] sm:$0xff]  }
 0x140   : > { %6522 = vmatprep.mubr.msk.bf16.mxu1 %vm1313_vm11, %v5950_v50  ;;  %6675 = vmatmul.mubr.msk.bf16.gmra.mrb[28].mxu0 %vm1313_vm11, %v6119_v48  ;;  %v1874_v50 = vrot.slane %v1872_v19, 4  ;;  %v1896_v59 = vrot.slane %v7178_v57, 5  ;;  %v1824_v48 = vld [vmem:[#allocation2 + $0x3c] sm:$0xe]  ;;  %v8391_v44 = vsel %vm7813_vm3, %v5979_v58, %v1893_v31  ;;  %v7126_v52 = vld [vmem:[#allocation2 + $0x48] sm:$0xff]   ;;  %v7127_v57 = vld [vmem:[#allocation2 + $0x54] sm:$0xff]  }
 0x141   : > { %6680 = vmatprep.mubr.msk.bf16.mxu0 %vm1313_vm11, %v7122_v4  ;;  %v1895_v4 = vrot.slane %v1893_v31, 4  ;;  %v5981_v7 = vrot.slane %v1824_v48, 9  ;;  %v8387_v19 = vsel %vm7813_vm3, %v1888_v3, %v1889_v35  ;;  %v8402_v3 = vsel %vm1362_vm2, %v8276_v25, 0 }
 0x142   : > { %v8406_v31 = vsel %vm7813_vm3, %v5980_v15, %v1900_v8  ;;  %v4190_v15 = vld [vmem:[#allocation2 + $0x1c] sm:$0xf] }
 0x143   : > { %v8395_v9 = vsel %vm7813_vm3, %v1895_v4, %v1896_v59  ;;  %v1921_v4 = vrot.slane %v8336_v36, 5  ;;  %v1928_v59 = vrot.slane %v8339_v12, 5  ;;  %v8424_v48 = vsel %vm7813_vm3, %v5981_v7, %v1907_v21 }
 0x144   : > { %v5984_v7 = vrot.slane %v1827_v23, 9  ;;  %v4251_v38 = vshrl.u32 %v4190_v15, 16 }
 0x145   : > { %v1923_v25 = vrot.slane %v1921_v4, 4 }
 0x146   : > { %v4253_v24 = vrot.slane %v4251_v38, 4 }
 0x147   : > { %6523 = vmatmul.mubr.msk.bf16.gmra.mrb[12].mxu1 %vm1313_vm11, %v5951_v16  ;;  %v1903_v16 = vrot.slane %v7179_v63, 5  ;;  %v5983_v63 = vrot.slane %v1826_v55, 9  ;;  %v4247_v55 = vshll.u32 %v4190_v15, 16 }
 0x148   : > { %6526 = vmatprep.mubr.msk.bf16.mxu1 %vm1313_vm11, %v5952_v11  ;;  %6681 = vmatmul.mubr.msk.bf16.vlgmr.msra.gmra.mrb[0].mxu0 %vm1313_vm11, %v7123_v1  ;;  %v1825_v11 = vld [vmem:[#allocation2 + $0x48] sm:$0xe]  ;;  %v1935_v1 = vrot.slane %v8349_v37, 5 }
 0x149   : > { %6713 = vmatpush3.bf16.msra.mxu0 %v4720_v18  ;;  %6684 = vmatprep.mubr.msk.bf16.mxu0 %vm1313_vm11, %v7124_v13  ;;  %v8383_v13 = vsel %vm7813_vm3, %v1874_v50, %v1875_v61  ;;  %v7125_v18 = vld [vmem:[#allocation2 + $0x3c] sm:$0xff]   ;;  %v1914_v61 = vrot.slane %v8321_v10, 5  ;;  %v4189_v50 = vld [vmem:[#allocation2 + $0x18] sm:$0xf]  ;;  %v8410_v35 = vsel %vm7813_vm3, %v1902_v26, %v1903_v16  ;;  %v5982_v58 = vrot.slane %v1825_v11, 9 }
 0x14a   : > { %7047 = vmatprep.subr.msk.bf16.mxu0 %vm1362_vm2, %v8357_v29  ;;  %v4192_v16 = vld [vmem:[#allocation2 + $0x24] sm:$0xf]  ;;  %v7182_v11 = vld [vmem:[#allocation2 + $0x5c] sm:$0x1]  ;;  %v4238_v8 = vshrl.u32 %v4189_v50, 16  ;;  %v8467_v54 = vrot.slane %v4247_v55, 5 }
 0x14b   : > { %v1916_v12 = vrot.slane %v1914_v61, 4  ;;  %v1924_v21 = vrot.slane %v7182_v11, 5  ;;  %v8438_v36 = vsel %vm7813_vm3, %v5982_v58, %v1914_v61  ;;  %v4262_v10 = vshrl.u32 %v4192_v16, 16  ;;  %v7183_v11 = vld [vmem:[#allocation2 + $0x68] sm:$0x1] }
 0x14c   : > { %v1931_v23 = vrot.slane %v7183_v11, 5  ;;  %v8447_v61 = vsel %vm7813_vm3, %v5983_v63, %v1921_v4  ;;  %v4240_v58 = vrot.slane %v4238_v8, 4  ;;  %v8461_v4 = vld [vmem:[#allocation2 + $0x20] sm:$0x1]  ;;  %v4195_v8 = vld [vmem:[#allocation2 + $0x30] sm:$0xf]  ;;  %v9620_v63 = vcombine.low %v8103_v2, %v8105_v33 }
 0x14d   : > { %v8455_v37 = vsel %vm7813_vm3, %v1923_v25, %v1924_v21  ;;  %9619 = vst [vmem:[#allocation20_spill] sm:$0xff] %v8461_v4  ;;  %v8469_v21 = vld [vmem:[#allocation2 + $0x34] sm:$0xf]  ;;  %v1829_v55 = vld [vmem:[#allocation2 + $0x78] sm:$0xe] }
 0x14e   : > { %9621 = vst [vmem:[#allocation21_spill] sm:$0xff] %v8469_v21  ;;  %v4295_v11 = vshll.u32 %v8469_v21, 16 }
 0x14f   : > { %6527 = vmatmul.mubr.msk.bf16.gmra.mrb[16].mxu1 %vm1313_vm11, %v5953_v51  ;;  %v8428_v51 = vsel %vm7813_vm3, %v1909_v45, %v1910_v42  ;;  %v4241_v45 = vshll.u32 %v4189_v50, 16  ;;  %v4193_v42 = vld [vmem:[#allocation2 + $0x28] sm:$0xf] }
 0x150   : > { %6530 = vmatprep.mubr.msk.bf16.mxu1 %vm1313_vm11, %v5954_v20  ;;  %6685 = vmatmul.mubr.msk.bf16.gmra.mrb[4].mxu0 %vm1313_vm11, %v7125_v18  ;;  %v7181_v20 = vld [vmem:[#allocation2 + $0x50] sm:$0x1]  ;;  %v4271_v50 = vshll.u32 %v4193_v42, 16  ;;  %v4275_v49 = vshrl.u32 %v4193_v42, 16 }
 0x151   : > { %v1917_v26 = vrot.slane %v7181_v20, 5  ;;  %6688 = vmatprep.mubr.msk.bf16.mxu0 %vm1313_vm11, %v7126_v52  ;;  %v1930_v20 = vrot.slane %v1928_v59, 4  ;;  %v4265_v52 = vshll.u32 %v4192_v16, 16  ;;  %v4243_v15 = vrot.slane %v4241_v45, 5 }
 0x152   : > { %v8459_v16 = vsel %vm7813_vm3, %v5984_v7, %v1928_v59  ;;  %v1937_v7 = vrot.slane %v1935_v1, 4  ;;  %v4277_v45 = vrot.slane %v4275_v49, 4  ;;  %v4299_v49 = vshrl.u32 %v8469_v21, 16 }
 0x153   : > { %v8443_v18 = vsel %vm7813_vm3, %v1916_v12, %v1917_v26  ;;  %v5985_v12 = vrot.slane %v1828_v39, 9  ;;  %v7184_v26 = vld [vmem:[#allocation2 + $0x74] sm:$0x1]  ;;  %v4267_v25 = vrot.slane %v4265_v52, 5  ;;  %v8474_v59 = vsel %vm7813_vm3, %v1930_v20, %v1931_v23 }
 0x154   : > { %v1938_v42 = vrot.slane %v7184_v26, 5  ;;  %v8476_v39 = vrot.slane %v4271_v50, 5  ;;  %v4244_v38 = vor.u32 %v4243_v15, %v4240_v58  ;;  %v4286_v20 = vshrl.u32 %v4195_v8, 16  ;;  %v7185_v26 = vld [vmem:[#allocation2 + $0x7c] sm:$0xf]  ;;  %v7129_v58 = vld [vmem:[#allocation2 + $0x6c] sm:$0xff]  }
 0x155   : > { %v4289_v52 = vshll.u32 %v4195_v8, 16  ;;  %v4254_v23 = vor.u32 %v4253_v24, %v8467_v54  ;;  %v7130_v15 = vld [vmem:[#allocation2 + $0x78] sm:$0xff]   ;;  %v8493_v33 = vsel %vm7813_vm3, %v5985_v12, %v1935_v1  ;;  %v9624_v1 = vcombine.low %v8134_v40, %v8150_v22 }
 0x156   : > { %v8497_v8 = vsel %vm7813_vm3, %v1937_v7, %v1938_v42  ;;  %v4278_v2 = vor.u32 %v4277_v45, %v8476_v39  ;;  %v4288_v12 = vrot.slane %v4286_v20, 4  ;;  %v8507_v7 = vrot.slane %v4295_v11, 5 }
 0x157   : > { %6531 = vmatmul.mubr.msk.bf16.gmra.mrb[20].mxu1 %vm1313_vm11, %v5955_v32  ;;  %v4264_v32 = vrot.slane %v4262_v10, 4  ;;  %v4257_v10 = vshll.u32 %v8461_v4, 16  ;;  %v4245_v4 = vrot.slane %v4244_v38, 4  ;;  %v4291_v42 = vrot.slane %v4289_v52, 5  ;;  %v7188_v52 = vld [vmem:[#allocation2 + $0x8c] sm:$0x1] }
 0x158   : > { %6534 = vmatprep.mubr.msk.bf16.mxu1 %vm1313_vm11, %v9620_v63  ;;  %6689 = vmatmul.mubr.msk.bf16.gmra.mrb[8].mxu0 %vm1313_vm11, %v7127_v57  ;;  %v8484_v57 = vld [vmem:[#allocation2 + $0x2c] sm:$0x1]  ;;  %v1942_v63 = vrot.slane %v7185_v26, 5  ;;  %v4301_v45 = vrot.slane %v4299_v49, 4  ;;  %v9625_v38 = vcombine.low %v8180_v47, %v8193_v41  ;;  %v4279_v40 = vrot.slane %v4278_v2, 4 }
 0x159   : > { %6692 = vmatprep.mubr.msk.bf16.mxu0 %vm1313_vm11, %v7128_v30  ;;  %9622 = vst [vmem:[#allocation22_spill] sm:$0xff] %v8484_v57  ;;  %v4268_v50 = vor.u32 %v4267_v25, %v4264_v32  ;;  %v4281_v21 = vshll.u32 %v8484_v57, 16  ;;  %v1830_v30 = vld [vmem:[#allocation2 + $0x84] sm:$0xe]  ;;  %v4259_v24 = vrot.slane %v4257_v10, 5  ;;  %v5986_v32 = vrot.slane %v1829_v55, 9 }
 0x15a   : > { %v7186_v25 = vld [vmem:[#allocation2 + $0x88] sm:$0xf]  ;;  %v4255_v10 = vrot.slane %v4254_v23, 4  ;;  %v7187_v57 = vld [vmem:[#allocation2 + $0x80] sm:$0x1]  ;;  %v5987_v20 = vrot.slane %v1830_v30, 9  ;;  %v4250_v2 = vsel %vm7631_vm10, %v4245_v4, %v8467_v54 }
 0x15b   : > { %v1949_v26 = vrot.slane %v7186_v25, 5  ;;  %v4269_v55 = vrot.slane %v4268_v50, 4  ;;  %v1944_v25 = vrot.slane %v1942_v63, 4  ;;  %v1945_v14 = vrot.slane %v7187_v57, 5  ;;  %v8516_v47 = vld [vmem:[#allocation2 + $0x40] sm:$0xf] }
 0x15c   : > { %v4283_v22 = vrot.slane %v4281_v21, 5  ;;  %v1952_v11 = vrot.slane %v7188_v52, 5  ;;  %9626 = vst [vmem:[#allocation24_spill] sm:$0xff] %v8516_v47  ;;  %v4313_v23 = vshll.u32 %v4198_v17, 16  ;;  %v4292_v21 = vor.u32 %v4291_v42, %v4288_v12  ;;  %v4201_v52 = vld [vmem:[#allocation2 + $0x48] sm:$0xf] }
 0x15d   : > { %v1951_v49 = vrot.slane %v1949_v26, 4  ;;  %v4302_v57 = vor.u32 %v4301_v45, %v8507_v7  ;;  %v4260_v30 = vsel %vm7631_vm10, %v4255_v10, %v4259_v24  ;;  %v7131_v4 = vld [vmem:[#allocation2 + $0x84] sm:$0xff]   ;;  %v8541_v24 = vsel %vm7813_vm3, %v5987_v20, %v1949_v26 }
 0x15e   : > { %v4284_v54 = vsel %vm7631_vm10, %v4279_v40, %v4283_v22  ;;  %v8543_v12 = vld [vmem:[#allocation2 + $0x44] sm:$0x1]  ;;  %v4315_v10 = vrot.slane %v4313_v23, 5  ;;  %v9628_v26 = vcombine.low %v8217_v60, %v8212_v62  ;;  %v1831_v22 = vld [vmem:[#allocation2 + $0x90] sm:$0xe]  ;;  %v4334_v20 = vshrl.u32 %v4201_v52, 16 }
 0x15f   : > { %6535 = vmatmul.mubr.msk.bf16.gmra.mrb[24].mxu1 %vm1313_vm11, %v9624_v1  ;;  %v4305_v1 = vshll.u32 %v8501_v5, 16  ;;  %9627 = vst [vmem:[#allocation25_spill] sm:$0xff] %v8543_v12  ;;  %v4303_v40 = vrot.slane %v4302_v57, 4  ;;  %v4337_v50 = vshll.u32 %v4201_v52, 16  ;;  %v4329_v57 = vshll.u32 %v8543_v12, 16 }
 0x160   : > { %6538 = vmatprep.mubr.msk.bf16.mxu1 %vm1313_vm11, %v9625_v38  ;;  %6693 = vmatmul.mubr.msk.bf16.gmra.mrb[12].mxu0 %vm1313_vm11, %v7129_v58  ;;  %v4310_v38 = vshrl.u32 %v4198_v17, 16  ;;  %v4274_v58 = vsel %vm7631_vm10, %v4269_v55, %v8476_v39  ;;  %v8531_v17 = vsel %vm7813_vm3, %v5986_v32, %v1942_v63  ;;  %v4319_v39 = vshll.u32 %v8516_v47, 16  ;;  %v7132_v32 = vld [vmem:[#allocation2 + $0x90] sm:$0xff]   ;;  %v8551_v55 = vld [vmem:[#allocation2 + $0x4c] sm:$0xf] }
 0x161   : > { %6696 = vmatprep.mubr.msk.bf16.mxu0 %vm1313_vm11, %v7130_v15  ;;  %v8535_v15 = vsel %vm7813_vm3, %v1944_v25, %v1945_v14  ;;  %v4323_v63 = vshrl.u32 %v8516_v47, 16  ;;  %v8549_v14 = vsel %vm7813_vm3, %v1951_v49, %v1952_v11  ;;  %v4307_v42 = vrot.slane %v4305_v1, 5  ;;  %v7189_v60 = vld [vmem:[#allocation2 + $0x94] sm:$0xf] }
 0x162   : > { %v4312_v45 = vrot.slane %v4310_v38, 4  ;;  %v4293_v25 = vrot.slane %v4292_v21, 4  ;;  %v9629_v47 = vcombine.low %v8373_v43, %v8383_v13  ;;  %v8561_v11 = vcombine.low %v4250_v2, %v4260_v30  ;;  %v4204_v38 = vld [vmem:[#allocation2 + $0x54] sm:$0xf] }
 0x163   : > { %v8563_v49 = vcombine.low %v4274_v58, %v4284_v54  ;;  %v8567_v1 = vsel %vm1362_vm2, %v8357_v29, 0  ;;  %v8572_v23 = vrot.slane %v4319_v39, 5  ;;  %v4325_v21 = vrot.slane %v4323_v63, 4 }
 0x164   : > { %v4343_v43 = vshll.u32 %v8551_v55, 16  ;;  %v4347_v13 = vshrl.u32 %v8551_v55, 16  ;;  %v4316_v2 = vor.u32 %v4315_v10, %v4312_v45  ;;  %v5988_v30 = vrot.slane %v1831_v22, 9  ;;  %v7133_v45 = vld [vmem:[#allocation2 + $0x9c] sm:$0xff]   ;;  %v7134_v10 = vld [vmem:[#allocation2 + $0xa8] sm:$0xff]  }
 0x165   : > { %v4298_v58 = vsel %vm7631_vm10, %v4293_v25, %v8507_v7  ;;  %v4308_v52 = vsel %vm7631_vm10, %v4303_v40, %v4307_v42  ;;  %v4336_v54 = vrot.slane %v4334_v20, 4  ;;  %v4339_v39 = vrot.slane %v4337_v50, 5  ;;  %v7190_v42 = vld [vmem:[#allocation2 + $0x98] sm:$0x1]  ;;  %v7191_v20 = vld [vmem:[#allocation2 + $0xa0] sm:$0xf] }
 0x166   : > { %v4358_v63 = vshrl.u32 %v4204_v38, 16  ;;  %v4326_v22 = vor.u32 %v4325_v21, %v8572_v23  ;;  %v1956_v12 = vrot.slane %v7189_v60, 5  ;;  %v8590_v5 = vrot.slane %v4343_v43, 5 }
 0x167   : > { %6539 = vmatmul.mubr.msk.bf16.gmra.mrb[28].mxu1 %vm1313_vm11, %v9628_v26  ;;  %v4361_v26 = vshll.u32 %v4204_v38, 16  ;;  %v4349_v7 = vrot.slane %v4347_v13, 4  ;;  %v8592_v25 = vrot.slane %v4329_v57, 5  ;;  %v1959_v40 = vrot.slane %v7190_v42, 5  ;;  %v8608_v57 = vld [vmem:[#allocation2 + $0x5c] sm:$0x1] }
 0x168   : > { %6544 = vmatprep.mubr.msk.bf16.mxu1 %vm1313_vm11, %v9629_v47  ;;  %6697 = vmatmul.mubr.msk.bf16.gmra.mrb[16].mxu0 %vm1313_vm11, %v7131_v4  ;;  %v8576_v47 = vld [vmem:[#allocation2 + $0x58] sm:$0xf]  ;;  %v1832_v4 = vld [vmem:[#allocation2 + $0x9c] sm:$0xe]  ;;  %v1963_v38 = vrot.slane %v7191_v20, 5  ;;  %v8600_v21 = vcombine.low %v4298_v58, %v4308_v52  ;;  %v8602_v60 = vrot.slane %v4316_v2, 4  ;;  %v8606_v43 = vsel %vm7813_vm3, %v5988_v30, %v1956_v12 }
 0x169   : > { %9630 = vst [vmem:[#allocation26_spill] sm:$0xff] %v8576_v47  ;;  %6700 = vmatprep.mubr.msk.bf16.mxu0 %vm1313_vm11, %v7132_v32  ;;  %v4367_v32 = vshll.u32 %v8576_v47, 16  ;;  %v4371_v29 = vshrl.u32 %v8576_v47, 16  ;;  %v5989_v50 = vrot.slane %v1832_v4, 9  ;;  %v9631_v47 = vcombine.low %v8301_v27, %v8305_v56  ;;  %9632 = vst [vmem:[#allocation27_spill] sm:$0xff] %v8608_v57 }
 0x16a   : > { %v4340_v13 = vor.u32 %v4339_v39, %v4336_v54  ;;  %v9633_v4 = vcombine.low %v8377_v53, %v8387_v19  ;;  %v4360_v27 = vrot.slane %v4358_v63, 4  ;;  %v4363_v56 = vrot.slane %v4361_v26, 5  ;;  %v4207_v58 = vld [vmem:[#allocation2 + $0x60] sm:$0xf] }
 0x16b   : > { %v4373_v2 = vrot.slane %v4371_v29, 4  ;;  %v4327_v30 = vrot.slane %v4326_v22, 4  ;;  %v1958_v52 = vrot.slane %v1956_v12, 4  ;;  %v4350_v54 = vor.u32 %v4349_v7, %v8590_v5  ;;  %v7192_v42 = vld [vmem:[#allocation6 + $0x8] sm:$0x3]  ;;  %v7135_v7 = vld [vmem:[#allocation2 + $0xb4] sm:$0xff]  }
 0x16c   : > { %v4353_v39 = vshll.u32 %v8594_v6, 16  ;;  %v8624_v53 = vsel %vm7813_vm3, %v5989_v50, %v1963_v38  ;;  %v1965_v19 = vrot.slane %v1963_v38, 4  ;;  %v7193_v29 = vld [vmem:[#allocation2 + $0xa4] sm:$0x1]  ;;  %v1970_v26 = vrot.slane %v8193_v41, 5 }
 0x16d   : > { %9634 = vst [vmem:[#allocation28_spill] sm:$0xff] %v8624_v53  ;;  %v1966_v63 = vrot.slane %v7193_v29, 5  ;;  %v4341_v12 = vrot.slane %v4340_v13, 4  ;;  %v4385_v22 = vshll.u32 %v4207_v58, 16  ;;  %v4364_v20 = vor.u32 %v4363_v56, %v4360_v27  ;;  %v8640_v29 = vld [vmem:[#allocation2 + $0x64] sm:$0xf] }
 0x16e   : > { %v4332_v38 = vsel %vm7631_vm10, %v4327_v30, %v8592_v25  ;;  %v8638_v41 = vsel %vm7813_vm3, %v1958_v52, %v1959_v40  ;;  %v4351_v13 = vrot.slane %v4350_v54, 4  ;;  %v1973_v27 = vrot.slane %v8195_v28, 5  ;;  %v8648_v25 = vld [vmem:[#allocation2 + $0x68] sm:$0x1] }
 0x16f   : > { %6545 = vmatmul.mubr.msk.bf16.vlgmr.msra.gmra.mrb[0].mxu1 %vm1313_vm11, %v9631_v47  ;;  %v8615_v47 = vrot.slane %v4367_v32, 5  ;;  %v4377_v32 = vshll.u32 %v8608_v57, 16  ;;  %v7136_v57 = vld [vmem:[#allocation2 + $0xc0] sm:$0xff]   ;;  %v1977_v56 = vrot.slane %v8212_v62, 5  ;;  %v9636_v40 = vcombine.low %v8391_v44, %v8395_v9 }
 0x170   : > { %6577 = vmatpush3.bf16.msra.mxu1 %v8402_v3  ;;  %6548 = vmatprep.mubr.msk.bf16.mxu1 %vm1313_vm11, %v9633_v4  ;;  %v1833_v3 = vld [vmem:[#allocation2 + $0xa8] sm:$0xe]  ;;  %v4387_v54 = vrot.slane %v4385_v22, 5  ;;  %v9637_v28 = vcombine.low %v8406_v31, %v8410_v35  ;;  %v8663_v62 = vrot.slane %v4364_v20, 4  ;;  %v1980_v31 = vrot.slane %v8224_v46, 5 }
 0x171   : > { %6701 = vmatmul.mubr.msk.bf16.gmra.mrb[20].mxu0 %vm1313_vm11, %v7133_v45  ;;  %7043 = vmatprep.subr.msk.bf16.mxu1 %vm1362_vm2, %v7192_v42  ;;  %v4382_v45 = vshrl.u32 %v4207_v58, 16  ;;  %v4374_v50 = vor.u32 %v4373_v2, %v8615_v47  ;;  %v5990_v4 = vrot.slane %v1833_v3, 9  ;;  %v4355_v58 = vrot.slane %v4353_v39, 5  ;;  %v1834_v42 = vld [vmem:[#allocation2 + $0xb4] sm:$0xe] }
 0x172   : > { %6704 = vmatprep.mubr.msk.bf16.mxu0 %vm1313_vm11, %v7134_v10  ;;  %v4322_v10 = vsel %vm7631_vm10, %v8602_v60, %v8572_v23  ;;  %v8644_v23 = vsel %vm7813_vm3, %v1965_v19, %v1966_v63  ;;  %v1972_v60 = vrot.slane %v1970_v26, 4  ;;  %v4346_v2 = vsel %vm7631_vm10, %v4341_v12, %v8590_v5  ;;  %v4210_v39 = vld [vmem:[#allocation2 + $0x6c] sm:$0xf]  ;;  %v8671_v5 = vld [vmem:[#allocation2 + $0x70] sm:$0xf] }
 0x173   : > { %9635 = vst [vmem:[#allocation29_spill] sm:$0xff] %v8644_v23  ;;  %v8657_v30 = vrot.slane %v4377_v32, 5  ;;  %v4384_v52 = vrot.slane %v4382_v45, 4  ;;  %v8665_v3 = vrot.slane %v4374_v50, 4  ;;  %v8669_v44 = vsel %vm7813_vm3, %v5990_v4, %v1970_v26  ;;  %9639 = vst [vmem:[#allocation31_spill] sm:$0xff] %v8671_v5  ;;  %v7137_v50 = vld [vmem:[#allocation2 + $0xcc] sm:$0xff]  }
 0x174   : > { %9638 = vst [vmem:[#allocation30_spill] sm:$0xff] %v8669_v44  ;;  %v5991_v9 = vrot.slane %v1834_v42, 9  ;;  %v4356_v19 = vsel %vm7631_vm10, %v4351_v13, %v4355_v58  ;;  %v4391_v35 = vshll.u32 %v8640_v29, 16  ;;  %v4395_v63 = vshrl.u32 %v8640_v29, 16  ;;  %v8698_v42 = vld [vmem:[#allocation2 + $0x74] sm:$0x1] }
 0x175   : > { %v8682_v26 = vsel %vm7813_vm3, %v1972_v60, %v1973_v27  ;;  %v1979_v12 = vrot.slane %v1977_v56, 4  ;;  %v4401_v32 = vshll.u32 %v8648_v25, 16  ;;  %v4406_v45 = vshrl.u32 %v4210_v39, 16  ;;  %9641 = vst [vmem:[#allocation33_spill] sm:$0xff] %v8698_v42 }
 0x176   : > { %9640 = vst [vmem:[#allocation32_spill] sm:$0xff] %v8682_v26  ;;  %v4409_v20 = vshll.u32 %v4210_v39, 16  ;;  %v4415_v46 = vshll.u32 %v8671_v5, 16  ;;  %v8688_v4 = vcombine.low %v4322_v10, %v4332_v38  ;;  %v8692_v13 = vcombine.low %v4346_v2, %v4356_v19  ;;  %v8708_v2 = vld [vmem:[#allocation2 + $0x7c] sm:$0xf] }
 0x177   : > { %6549 = vmatmul.mubr.msk.bf16.gmra.mrb[4].mxu1 %vm1313_vm11, %v9636_v40  ;;  %v8706_v38 = vrot.slane %v4391_v35, 5  ;;  %v4397_v27 = vrot.slane %v4395_v63, 4  ;;  %v4213_v40 = vld [vmem:[#allocation2 + $0x78] sm:$0xf]  ;;  %9642 = vst [vmem:[#allocation34_spill] sm:$0xff] %v8708_v2  ;;  %v8718_v39 = vrot.slane %v4401_v32, 5  ;;  %v9644_v35 = vcombine.low %v8424_v48, %v8428_v51 }
 0x178   : > { %6552 = vmatprep.mubr.msk.bf16.mxu1 %vm1313_vm11, %v9637_v28  ;;  %v4408_v28 = vrot.slane %v4406_v45, 4  ;;  %v4216_v19 = vld [vmem:[#allocation2 + $0x84] sm:$0xf]  ;;  %v4411_v10 = vrot.slane %v4409_v20, 5  ;;  %v4430_v32 = vshrl.u32 %v4213_v40, 16  ;;  %v4433_v45 = vshll.u32 %v4213_v40, 16 }
 0x179   : > { %6705 = vmatmul.mubr.msk.bf16.gmra.mrb[24].mxu0 %vm1313_vm11, %v7135_v7  ;;  %v4388_v7 = vor.u32 %v4387_v54, %v4384_v52  ;;  %v8712_v52 = vsel %vm7813_vm3, %v5991_v9, %v1977_v56  ;;  %v8716_v54 = vsel %vm7813_vm3, %v1979_v12, %v1980_v31  ;;  %v8728_v56 = vrot.slane %v4415_v46, 5  ;;  %v4219_v31 = vld [vmem:[#allocation2 + $0x90] sm:$0xf]  ;;  %v8737_v51 = vld [vmem:[#allocation2 + $0x94] sm:$0xf] }
 0x17a   : > { %6708 = vmatprep.mubr.msk.bf16.mxu0 %vm1313_vm11, %v7136_v57  ;;  %v8720_v57 = vld [vmem:[#allocation2 + $0x88] sm:$0xf]  ;;  %v4419_v9 = vshrl.u32 %v8671_v5, 16  ;;  %v9645_v12 = vcombine.low %v8438_v36, %v8443_v18  ;;  %v4439_v22 = vshll.u32 %v8708_v2, 16  ;;  %v4443_v48 = vshrl.u32 %v8708_v2, 16  ;;  %9646 = vst [vmem:[#allocation36_spill] sm:$0xff] %v8737_v51 }
 0x17b   : > { %9643 = vst [vmem:[#allocation35_spill] sm:$0xff] %v8720_v57  ;;  %v8726_v63 = vrot.slane %v4388_v7, 4  ;;  %v4398_v7 = vor.u32 %v4397_v27, %v8706_v38  ;;  %v4425_v20 = vshll.u32 %v8698_v42, 16  ;;  %v4454_v46 = vshrl.u32 %v4216_v19, 16  ;;  %v8746_v2 = vld [vmem:[#allocation2 + $0x80] sm:$0x1] }
 0x17c   : > { %v4463_v36 = vshll.u32 %v8720_v57, 16  ;;  %v4467_v18 = vshrl.u32 %v8720_v57, 16  ;;  %v4478_v40 = vshrl.u32 %v4219_v31, 16  ;;  %v4412_v58 = vor.u32 %v4411_v10, %v4408_v28  ;;  %v8758_v10 = vld [vmem:[#allocation2 + $0x8c] sm:$0x1] }
 0x17d   : > { %v4421_v60 = vrot.slane %v4419_v9, 4  ;;  %v4491_v27 = vshrl.u32 %v8737_v51, 16  ;;  %v4432_v26 = vrot.slane %v4430_v32, 4  ;;  %v4435_v44 = vrot.slane %v4433_v45, 5  ;;  %v8768_v42 = vld [vmem:[#allocation2 + $0x98] sm:$0x1] }
 0x17e   : > { %v4445_v23 = vrot.slane %v4443_v48, 4  ;;  %v4456_v28 = vrot.slane %v4454_v46, 4  ;;  %v8760_v53 = vrot.slane %v4463_v36, 5  ;;  %v4480_v32 = vrot.slane %v4478_v40, 4  ;;  %9649 = vst [vmem:[#allocation38_spill] sm:$0xff] %v8768_v42 }
 0x17f   : > { %6553 = vmatmul.mubr.msk.bf16.gmra.mrb[8].mxu1 %vm1313_vm11, %v9644_v35  ;;  %v4457_v35 = vshll.u32 %v4216_v19, 16  ;;  %v8750_v19 = vrot.slane %v4439_v22, 5  ;;  %v8762_v22 = vld [vmem:[#allocation2 + $0xa0] sm:$0xf]  ;;  %v9648_v48 = vcombine.low %v8447_v61, %v8455_v37  ;;  %v4493_v57 = vrot.slane %v4491_v27, 4 }
 0x180   : > { %6556 = vmatprep.mubr.msk.bf16.mxu1 %vm1313_vm11, %v9645_v12  ;;  %v4481_v12 = vshll.u32 %v4219_v31, 16  ;;  %v8756_v31 = vrot.slane %v4398_v7, 4  ;;  %9647 = vst [vmem:[#allocation37_spill] sm:$0xff] %v8762_v22  ;;  %v4422_v36 = vor.u32 %v4421_v60, %v8728_v56  ;;  %v4449_v61 = vshll.u32 %v8746_v2, 16 }
 0x181   : > { %6709 = vmatmul.mubr.msk.bf16.gmra.mrb[28].mxu0 %vm1313_vm11, %v7137_v50  ;;  %v4487_v50 = vshll.u32 %v8737_v51, 16  ;;  %v4459_v9 = vrot.slane %v4457_v35, 5  ;;  %v4469_v51 = vrot.slane %v4467_v18, 4  ;;  %v9650_v35 = vcombine.low %v8459_v16, %v8474_v59 }
 0x182   : > { %6714 = vmatprep.mubr.msk.bf16.mxu0 %vm1313_vm11, %v8561_v11  ;;  %v4222_v11 = vld [vmem:[#allocation2 + $0x9c] sm:$0xf]  ;;  %v4483_v45 = vrot.slane %v4481_v12, 5  ;;  %v4436_v18 = vor.u32 %v4435_v44, %v4432_v26  ;;  %v4446_v40 = vor.u32 %v4445_v23, %v8750_v19  ;;  %v4413_v37 = vrot.slane %v4412_v58, 4  ;;  %v4225_v26 = vld [vmem:[#allocation2 + $0xa8] sm:$0xf] }
 0x183   : > { %v8770_v7 = vrot.slane %v4487_v50, 5  ;;  %v4502_v5 = vshrl.u32 %v4222_v11, 16  ;;  %v4505_v46 = vshll.u32 %v4222_v11, 16  ;;  %v4427_v12 = vrot.slane %v4425_v20, 5 }
 0x184   : > { %v4511_v50 = vshll.u32 %v8762_v22, 16  ;;  %v4515_v27 = vshrl.u32 %v8762_v22, 16  ;;  %v4460_v16 = vor.u32 %v4459_v9, %v4456_v28  ;;  %v4470_v59 = vor.u32 %v4469_v51, %v8760_v53 }
 0x185   : > { %v4473_v23 = vshll.u32 %v8758_v10, 16  ;;  %v4497_v44 = vshll.u32 %v8768_v42, 16  ;;  %v4494_v58 = vor.u32 %v4493_v57, %v8770_v7  ;;  %v4504_v60 = vrot.slane %v4502_v5, 4  ;;  %v8796_v57 = vld [vmem:[#allocation2 + $0xa4] sm:$0x1] }
 0x186   : > { %v4507_v20 = vrot.slane %v4505_v46, 5  ;;  %v4423_v11 = vrot.slane %v4422_v36, 4  ;;  %v8790_v22 = vrot.slane %v4511_v50, 5  ;;  %v4526_v28 = vshrl.u32 %v4225_v26, 16 }
 0x187   : > { %6557 = vmatmul.mubr.msk.bf16.gmra.mrb[12].mxu1 %vm1313_vm11, %v9648_v48  ;;  %v4437_v48 = vrot.slane %v4436_v18, 4  ;;  %v4529_v9 = vshll.u32 %v4225_v26, 16  ;;  %v4404_v51 = vsel %vm7631_vm10, %v8756_v31, %v8718_v39  ;;  %v4461_v42 = vrot.slane %v4460_v16, 4 }
 0x188   : > { %6560 = vmatprep.mubr.msk.bf16.mxu1 %vm1313_vm11, %v9650_v35  ;;  %v4447_v35 = vrot.slane %v4446_v40, 4  ;;  %v9651_v5 = vcombine.low %v8493_v33, %v8497_v8  ;;  %v4495_v36 = vrot.slane %v4494_v58, 4  ;;  %v4499_v18 = vrot.slane %v4497_v44, 5  ;;  %v4919_v58 = vld [vmem:[#allocation2 + $0x48] sm:$0xe] }
 0x189   : > { %6715 = vmatmul.mubr.msk.bf16.vlgmr.msra.gmra.mrb[0].mxu0 %vm1313_vm11, %v8563_v49  ;;  %v4484_v49 = vor.u32 %v4483_v45, %v4480_v32  ;;  %v4471_v32 = vrot.slane %v4470_v59, 4  ;;  %v4475_v45 = vrot.slane %v4473_v23, 5  ;;  %v4508_v40 = vor.u32 %v4507_v20, %v4504_v60  ;;  %v8839_v59 = vld [vmem:[#allocation2 + $0xb0] sm:$0x1]  ;;  %v4228_v23 = vld [vmem:[#allocation2 + $0xb4] sm:$0xf] }
 0x18a   : > { %6747 = vmatpush3.bf16.msra.mxu0 %v8567_v1  ;;  %6718 = vmatprep.mubr.msk.bf16.mxu0 %vm1313_vm11, %v8600_v21  ;;  %v4451_v1 = vrot.slane %v4449_v61, 5  ;;  %v4517_v21 = vrot.slane %v4515_v27, 4  ;;  %v8802_v61 = vld [vmem:[#allocation2 + $0xac] sm:$0xf]  ;;  %v9652_v50 = vcombine.low %v8531_v17, %v8535_v15  ;;  %v4418_v39 = vsel %vm7631_vm10, %v4413_v37, %v8728_v56 }
 0x18b   : > { %v4485_v46 = vrot.slane %v4484_v49, 4  ;;  %v4428_v33 = vsel %vm7631_vm10, %v4423_v11, %v4427_v12  ;;  %v4442_v8 = vsel %vm7631_vm10, %v4437_v48, %v8750_v19  ;;  %v4521_v15 = vshll.u32 %v8796_v57, 16  ;;  %v8861_v49 = vld [vmem:[#allocation2 + $0xb8] sm:$0xf] }
 0x18c   : > { %v4452_v31 = vsel %vm7631_vm10, %v4447_v35, %v4451_v1  ;;  %v4518_v17 = vor.u32 %v4517_v21, %v8790_v22  ;;  %v4528_v27 = vrot.slane %v4526_v28, 4  ;;  %v4531_v16 = vrot.slane %v4529_v9, 5  ;;  %v4920_v35 = vld [vmem:[#allocation2 + $0x54] sm:$0xe] }
 0x18d   : > { %v9653_v56 = vsel %vm7631_vm10, %v8665_v3, %v8657_v30  ;;  %v9654_v19 = vsel %vm7631_vm10, %v8663_v62, %v8615_v47  ;;  %v4466_v37 = vsel %vm7631_vm10, %v4461_v42, %v8760_v53  ;;  %v4476_v12 = vsel %vm7631_vm10, %v4471_v32, %v4475_v45 }
 0x18e   : > { %v4490_v30 = vsel %vm7631_vm10, %v4485_v46, %v8770_v7  ;;  %v4500_v3 = vsel %vm7631_vm10, %v4495_v36, %v4499_v18  ;;  %v8847_v47 = vrot.slane %v4508_v40, 4  ;;  %v4539_v62 = vshrl.u32 %v8802_v61, 16 }
 0x18f   : > { %6561 = vmatmul.mubr.msk.bf16.gmra.mrb[16].mxu1 %vm1313_vm11, %v9651_v5  ;;  %v6007_v53 = vcombine.low %v8712_v52, %v8716_v54  ;;  %v9655_v42 = vsel %vm7631_vm10, %v8726_v63, %v8706_v38  ;;  %v8857_v26 = vcombine.low %v4418_v39, %v4428_v33  ;;  %v8859_v7 = vcombine.low %v4442_v8, %v4452_v31  ;;  %v4921_v5 = vld [vmem:[#allocation2 + $0x60] sm:$0xe]  ;;  %v4922_v33 = vld [vmem:[#allocation2 + $0x6c] sm:$0xe] }
 0x190   : > { %6564 = vmatprep.mubr.msk.bf16.mxu1 %vm1313_vm11, %v9652_v50  ;;  %v6174_v44 = vcombine.low %v9655_v42, %v4404_v51  ;;  %v8863_v60 = vrot.slane %v4518_v17, 4  ;;  %v8865_v20 = vrot.slane %v4521_v15, 5  ;;  %v4532_v11 = vor.u32 %v4531_v16, %v4528_v27  ;;  %v9659_v8 = vld [vmem:[#allocation27_spill] sm:$0xff] }
 0x191   : > { %6719 = vmatmul.mubr.msk.bf16.gmra.mrb[4].mxu0 %vm1313_vm11, %v8688_v4  ;;  %v6173_v4 = vcombine.low %v9654_v19, %v9653_v56  ;;  %v4545_v48 = vshll.u32 %v8839_v59, 16  ;;  %v8868_v1 = vcombine.low %v4466_v37, %v4476_v12  ;;  %v8870_v21 = vcombine.low %v4490_v30, %v4500_v3  ;;  %v8929_v42 = vld [vmem:[#allocation2 + $0xc4] sm:$0xf] }
 0x192   : > { %6722 = vmatprep.mubr.msk.bf16.mxu0 %vm1313_vm11, %v8692_v13  ;;  %v4535_v13 = vshll.u32 %v8802_v61, 16  ;;  %v4550_v63 = vshrl.u32 %v4228_v23, 16  ;;  %v9656_v28 = vcombine.low %v8541_v24, %v8549_v14  ;;  %v4514_v9 = vsel %vm7631_vm10, %v8847_v47, %v8790_v22  ;;  %v9673_v47 = vld [vmem:[#allocation36_spill] sm:$0xff] }
 0x193   : > { %v4541_v51 = vrot.slane %v4539_v62, 4  ;;  %v4553_v32 = vshll.u32 %v4228_v23, 16  ;;  %v6204_v45 = vrot.slane %v4919_v58, 9  ;;  %v9657_v46 = vcombine.low %v8606_v43, %v8638_v41  ;;  %v9658_v43 = vld [vmem:[#allocation26_spill] sm:$0xff] }
 0x194   : > { %v8872_v38 = vrot.slane %v4535_v13, 5  ;;  %v4559_v36 = vshll.u32 %v8861_v49, 16  ;;  %v5009_v24 = vrot.slane %v8551_v55, 5  ;;  %v5012_v14 = vrot.slane %v8594_v6, 5 }
 0x195   : > { %v6205_v18 = vrot.slane %v4920_v35, 9  ;;  %v4524_v40 = vsel %vm7631_vm10, %v8863_v60, %v8865_v20  ;;  %v8894_v50 = vrot.slane %v4532_v11, 4  ;;  %v8896_v39 = vrot.slane %v4545_v48, 5  ;;  %v9661_v11 = vld [vmem:[#allocation33_spill] sm:$0xff]  ;;  %v9662_v35 = vld [vmem:[#allocation28_spill] sm:$0xff] }
 0x196   : > { %v5016_v41 = vrot.slane %v9658_v43, 5  ;;  %v8902_v6 = vsel %vm7813_vm3, %v6204_v45, %v5009_v24  ;;  %v5011_v55 = vrot.slane %v5009_v24, 4  ;;  %v5019_v31 = vrot.slane %v9659_v8, 5  ;;  %v2661_v24 = vld [vmem:[#allocation2 + $0x78] sm:$0xf] }
 0x197   : > { %6565 = vmatmul.mubr.msk.bf16.gmra.mrb[20].mxu1 %vm1313_vm11, %v9656_v28  ;;  %v6206_v17 = vrot.slane %v4921_v5, 9  ;;  %v4542_v15 = vor.u32 %v4541_v51, %v8872_v38  ;;  %v5023_v56 = vrot.slane %v8640_v29, 5  ;;  %v4563_v19 = vshrl.u32 %v8861_v49, 16  ;;  %v9663_v28 = vld [vmem:[#allocation29_spill] sm:$0xff] }
 0x198   : > { %6568 = vmatprep.mubr.msk.bf16.mxu1 %vm1313_vm11, %v9657_v46  ;;  %v8908_v27 = vsel %vm7813_vm3, %v6205_v18, %v5016_v41  ;;  %v5018_v16 = vrot.slane %v5016_v41, 4  ;;  %v8914_v37 = vsel %vm7813_vm3, %v5011_v55, %v5012_v14  ;;  %v5026_v12 = vrot.slane %v8648_v25, 5  ;;  %v9665_v14 = vld [vmem:[#allocation30_spill] sm:$0xff]  ;;  %v9666_v18 = vld [vmem:[#allocation32_spill] sm:$0xff] }
 0x199   : > { %6723 = vmatmul.mubr.msk.bf16.gmra.mrb[8].mxu0 %vm1313_vm11, %v6173_v4  ;;  %v4231_v4 = vld [vmem:[#allocation2 + $0xc0] sm:$0xf]  ;;  %v6207_v13 = vrot.slane %v4922_v33, 9  ;;  %v6220_v30 = vcombine.low %v8902_v6, %v8914_v37  ;;  %v8925_v29 = vsel %vm7813_vm3, %v6206_v17, %v5023_v56  ;;  %v5025_v62 = vrot.slane %v5023_v56, 4  ;;  %v8968_v56 = vld [vmem:[#allocation2 + $0xbc] sm:$0x1] }
 0x19a   : > { %6726 = vmatprep.mubr.msk.bf16.mxu0 %vm1313_vm11, %v6174_v44  ;;  %v8921_v3 = vsel %vm7813_vm3, %v5018_v16, %v5019_v31  ;;  %v8927_v23 = vrot.slane %v4550_v63, 4  ;;  %v9660_v44 = vld [vmem:[#allocation31_spill] sm:$0xff]  ;;  %v5033_v48 = vrot.slane %v9661_v11, 5  ;;  %v9664_v51 = vcombine.low %v9662_v35, %v9663_v28  ;;  %v4923_v16 = vld [vmem:[#allocation2 + $0x78] sm:$0xe] }
 0x19b   : > { %v6221_v25 = vcombine.low %v8908_v27, %v8921_v3  ;;  %v5030_v58 = vrot.slane %v9660_v44, 5  ;;  %v8939_v45 = vrot.slane %v4553_v32, 5  ;;  %v4574_v5 = vshrl.u32 %v4231_v4, 16  ;;  %v7138_v35 = vld [vmem:[#allocation2 + $0xc] sm:$0xff]   ;;  %v7199_v3 = vld [vmem:[#allocation2 + $0x94] sm:$0xf] }
 0x19c   : > { %v4577_v46 = vshll.u32 %v4231_v4, 16  ;;  %v8943_v63 = vsel %vm7813_vm3, %v5025_v62, %v5026_v12  ;;  %v9667_v43 = vcombine.low %v9665_v14, %v9666_v18  ;;  %v8949_v41 = vrot.slane %v4559_v36, 5  ;;  %v9669_v62 = vld [vmem:[#allocation19_spill] sm:$0xff]  ;;  %v9670_v14 = vld [vmem:[#allocation34_spill] sm:$0xff]  ;;  %v2667_v37 = vld [vmem:[#allocation2 + $0x90] sm:$0xf] }
 0x19d   : > { %v6222_v33 = vcombine.low %v8925_v29, %v8943_v63  ;;  %v8955_v32 = vsel %vm7813_vm3, %v6207_v13, %v5030_v58  ;;  %v5032_v55 = vrot.slane %v5030_v58, 4  ;;  %v4538_v8 = vsel %vm7631_vm10, %v8894_v50, %v8872_v38  ;;  %v9668_v13 = vld [vmem:[#allocation18_spill] sm:$0xff]  ;;  %v7200_v63 = vld [vmem:[#allocation2 + $0x8c] sm:$0x1] }
 0x19e   : > { %v8963_v31 = vrot.slane %v4542_v15, 4  ;;  %v4565_v36 = vrot.slane %v4563_v19, 4  ;;  %v4583_v17 = vshll.u32 %v8929_v42, 16  ;;  %v2902_v12 = vshll.u32 %v2661_v24, 16  ;;  %v4924_v19 = vld [vmem:[#allocation2 + $0x84] sm:$0xe] }
 0x19f   : > { %6569 = vmatmul.mubr.msk.bf16.gmra.mrb[24].mxu1 %vm1313_vm11, %v9664_v51  ;;  %v8972_v4 = vsel %vm7813_vm3, %v5032_v55, %v5033_v48  ;;  %v2921_v15 = vsel %vm7631_vm10, %v9669_v62, %v9668_v13  ;;  %v4576_v44 = vrot.slane %v4574_v5, 4  ;;  %v4579_v58 = vrot.slane %v4577_v46, 5  ;;  %v4234_v46 = vld [vmem:[#allocation2 + $0xcc] sm:$0xf] }
 0x1a0   : > { %6572 = vmatprep.mubr.msk.bf16.mxu1 %vm1313_vm11, %v9667_v43  ;;  %v4587_v11 = vshrl.u32 %v8929_v42, 16  ;;  %v2904_v51 = vrot.slane %v2902_v12, 5  ;;  %v6208_v48 = vrot.slane %v4923_v16, 9  ;;  %v5037_v18 = vrot.slane %v9670_v14, 5  ;;  %v9001_v16 = vld [vmem:[#allocation2 + $0xd0] sm:$0xf] }
 0x1a1   : > { %6727 = vmatmul.mubr.msk.bf16.gmra.mrb[12].mxu0 %vm1313_vm11, %v8857_v26  ;;  %v2899_v26 = vshrl.u32 %v2661_v24, 16  ;;  %v4556_v24 = vor.u32 %v8939_v45, %v8927_v23  ;;  %v4569_v43 = vshll.u32 %v8968_v56, 16  ;;  %v5040_v55 = vrot.slane %v8746_v2, 5 }
 0x1a2   : > { %6730 = vmatprep.mubr.msk.bf16.mxu0 %vm1313_vm11, %v8859_v7  ;;  %v6209_v5 = vrot.slane %v4924_v19, 9  ;;  %v8988_v62 = vsel %vm7813_vm3, %v6208_v48, %v5037_v18  ;;  %v5039_v7 = vrot.slane %v5037_v18, 4  ;;  %v4548_v2 = vsel %vm7631_vm10, %v8963_v31, %v8896_v39 }
 0x1a3   : > { %v2901_v28 = vrot.slane %v2899_v26, 4  ;;  %v9671_v26 = vld [vmem:[#allocation35_spill] sm:$0xff]  ;;  %v8999_v23 = vrot.slane %v4583_v17, 5  ;;  %v4589_v45 = vrot.slane %v4587_v11, 4  ;;  %v5047_v19 = vrot.slane %v8758_v10, 5  ;;  %v9672_v11 = vld [vmem:[#allocation17_spill] sm:$0xff] }
 0x1a4   : > { %v5044_v12 = vrot.slane %v9671_v26, 5  ;;  %v4580_v52 = vor.u32 %v4579_v58, %v4576_v44  ;;  %v4598_v39 = vshrl.u32 %v4234_v46, 16  ;;  %v4601_v17 = vshll.u32 %v4234_v46, 16 }
 0x1a5   : > { %v2905_v13 = vor.u32 %v2904_v51, %v2901_v28  ;;  %v4566_v28 = vor.u32 %v4565_v36, %v8949_v41  ;;  %v9006_v51 = vld [vmem:[#allocation2 + $0xc8] sm:$0x1]  ;;  %v4607_v44 = vshll.u32 %v9001_v16, 16  ;;  %v4611_v58 = vshrl.u32 %v9001_v16, 16 }
 0x1a6   : > { %v9018_v10 = vsel %vm7813_vm3, %v6209_v5, %v5044_v12  ;;  %v5046_v36 = vrot.slane %v5044_v12, 4  ;;  %v4593_v48 = vshll.u32 %v9006_v51, 16  ;;  %v4557_v5 = vrot.slane %v4556_v24, 4 }
 0x1a7   : > { %6573 = vmatmul.mubr.msk.bf16.gmra.mrb[28].mxu1 %vm1313_vm11, %v6007_v53  ;;  %v2906_v54 = vrot.slane %v2905_v13, 4  ;;  %v9010_v53 = vsel %vm7813_vm3, %v5039_v7, %v5040_v55  ;;  %v7139_v7 = vld [vmem:[#allocation2 + $0x18] sm:$0xff]   ;;  %v7140_v55 = vld [vmem:[#allocation2 + $0x24] sm:$0xff]   ;;  %v4567_v46 = vrot.slane %v4566_v28, 4  ;;  %v4571_v13 = vrot.slane %v4569_v43, 5 }
 0x1a8   : > { %6578 = vmatprep.mubr.msk.bf16.mxu1 %vm1313_vm11, %v7138_v35  ;;  %v6224_v31 = vcombine.low %v8988_v62, %v9010_v53  ;;  %v4590_v35 = vor.u32 %v4589_v45, %v8999_v23  ;;  %v9033_v18 = vsel %vm7813_vm3, %v5046_v36, %v5047_v19  ;;  %v6180_v24 = vcombine.low %v4538_v8, %v4548_v2  ;;  %v9052_v45 = vld [vmem:[#allocation2 + $0xd4] sm:$0x1]  ;;  %v9675_v8 = vld [vmem:[#allocation38_spill] sm:$0xff]  ;;  %v7203_v62 = vld [vmem:[#allocation2 + $0xac] sm:$0xf] }
 0x1a9   : > { %6731 = vmatmul.mubr.msk.bf16.gmra.mrb[16].mxu0 %vm1313_vm11, %v8868_v1  ;;  %v2911_v1 = vsel %vm7631_vm10, %v2906_v54, %v9672_v11  ;;  %v6225_v26 = vcombine.low %v9018_v10, %v9033_v18  ;;  %v4581_v43 = vrot.slane %v4580_v52, 4  ;;  %v4600_v12 = vrot.slane %v4598_v39, 4  ;;  %v9674_v36 = vld [vmem:[#allocation16_spill] sm:$0xff] }
 0x1aa   : > { %6734 = vmatprep.mubr.msk.bf16.mxu0 %vm1313_vm11, %v8870_v21  ;;  %v9029_v14 = vcombine.low %v2911_v1, %v2921_v15  ;;  %v4925_v21 = vld [vmem:[#allocation2 + $0x90] sm:$0xe]  ;;  %v6179_v15 = vcombine.low %v4514_v9, %v4524_v40  ;;  %v4603_v19 = vrot.slane %v4601_v17, 5  ;;  %v9054_v28 = vrot.slane %v4607_v44, 5  ;;  %v4926_v40 = vld [vmem:[#allocation2 + $0x9c] sm:$0xe] }
 0x1ab   : > { %v4613_v60 = vrot.slane %v4611_v58, 4  ;;  %v6210_v20 = vrot.slane %v4925_v21, 9  ;;  %v4591_v54 = vrot.slane %v4590_v35, 4  ;;  %v4595_v22 = vrot.slane %v4593_v48, 5  ;;  %v9676_v1 = vld [vmem:[#allocation37_spill] sm:$0xff] }
 0x1ac   : > { %v5051_v9 = vrot.slane %v9673_v47, 5  ;;  %v4562_v38 = vsel %vm7631_vm10, %v4557_v5, %v8949_v41  ;;  %v4572_v50 = vsel %vm7631_vm10, %v4567_v46, %v4571_v13  ;;  %v5054_v2 = vrot.slane %v9675_v8, 5  ;;  %v7141_v35 = vld [vmem:[#allocation2 + $0x30] sm:$0xff]   ;;  %v7142_v46 = vld [vmem:[#allocation2 + $0x3c] sm:$0xff]   ;;  %v4915_v13 = vld [vmem:[#allocation2 + $0x18] sm:$0xe] }
 0x1ad   : > { %v4586_v52 = vsel %vm7631_vm10, %v4581_v43, %v8999_v23  ;;  %v4617_v39 = vshll.u32 %v9052_v45, 16  ;;  %v4604_v41 = vor.u32 %v4603_v19, %v4600_v12  ;;  %v4614_v58 = vor.u32 %v4613_v60, %v9054_v28  ;;  %v7194_v23 = vld [vmem:[#allocation2 + $0x1c] sm:$0xf]  ;;  %v4927_v8 = vld [vmem:[#allocation2 + $0xa8] sm:$0xe] }
 0x1ae   : > { %v9073_v17 = vsel %vm7813_vm3, %v6210_v20, %v5051_v9  ;;  %v5053_v44 = vrot.slane %v5051_v9, 4  ;;  %v6211_v11 = vrot.slane %v4926_v40, 9  ;;  %v4596_v48 = vsel %vm7631_vm10, %v4591_v54, %v4595_v22  ;;  %v9677_v9 = vld [vmem:[#allocation20_spill] sm:$0xff] }
 0x1af   : > { %6579 = vmatmul.mubr.msk.bf16.vlgmr.msra.gmra.mrb[0].mxu1 %vm1313_vm11, %v7139_v7  ;;  %v5058_v7 = vrot.slane %v9676_v1, 5  ;;  %v4981_v21 = vrot.slane %v7194_v23, 5  ;;  %v5061_v5 = vrot.slane %v8796_v57, 5  ;;  %v6181_v12 = vcombine.low %v4562_v38, %v4572_v50  ;;  %v4916_v38 = vld [vmem:[#allocation2 + $0x24] sm:$0xe] }
 0x1b0   : > { %6781 = vmatpush3.bf16.msra.mxu1 %v9674_v36  ;;  %6582 = vmatprep.mubr.msk.bf16.mxu1 %vm1313_vm11, %v7140_v55  ;;  %v9082_v55 = vsel %vm7813_vm3, %v5053_v44, %v5054_v2  ;;  %v4619_v19 = vrot.slane %v4617_v39, 5  ;;  %v6182_v60 = vcombine.low %v4586_v52, %v4596_v48  ;;  %v4605_v20 = vrot.slane %v4604_v41, 4  ;;  %v7195_v50 = vld [vmem:[#allocation2 + $0x28] sm:$0xf]  ;;  %v4928_v41 = vld [vmem:[#allocation2 + $0xb4] sm:$0xe] }
 0x1b1   : > { %6735 = vmatmul.mubr.msk.bf16.gmra.mrb[20].mxu0 %vm1313_vm11, %v6179_v15  ;;  %v6226_v15 = vcombine.low %v9073_v17, %v9082_v55  ;;  %v5060_v43 = vrot.slane %v5058_v7, 4  ;;  %v4615_v54 = vrot.slane %v4614_v58, 4  ;;  %v6200_v57 = vrot.slane %v4915_v13, 9  ;;  %v7143_v58 = vld [vmem:[#allocation2 + $0x48] sm:$0xff]   ;;  %v7144_v48 = vld [vmem:[#allocation2 + $0x54] sm:$0xff]  }
 0x1b2   : > { %6738 = vmatprep.mubr.msk.bf16.mxu0 %vm1313_vm11, %v6180_v24  ;;  %v9089_v24 = vsel %vm7813_vm3, %v6211_v11, %v5058_v7  ;;  %v4983_v47 = vrot.slane %v4981_v21, 4  ;;  %v4984_v40 = vrot.slane %v9677_v9, 5  ;;  %v4988_v2 = vrot.slane %v7195_v50, 5  ;;  %v9678_v7 = vld [vmem:[#allocation21_spill] sm:$0xff]  ;;  %v4929_v17 = vld [vmem:[#allocation2 + $0xc0] sm:$0xe] }
 0x1b3   : > { %v9093_v22 = vsel %vm7813_vm3, %v5060_v43, %v5061_v5  ;;  %v4610_v52 = vsel %vm7631_vm10, %v4605_v20, %v9054_v28  ;;  %v4620_v39 = vsel %vm7631_vm10, %v4615_v54, %v4619_v19  ;;  %v6212_v44 = vrot.slane %v4927_v8, 9  ;;  %v4917_v5 = vld [vmem:[#allocation2 + $0x30] sm:$0xe] }
 0x1b4   : > { %v6227_v36 = vcombine.low %v9089_v24, %v9093_v22  ;;  %v4982_v11 = vsel %vm7813_vm3, %v6200_v57, %v4981_v21  ;;  %v4985_v1 = vsel %vm7813_vm3, %v4983_v47, %v4984_v40  ;;  %v6201_v23 = vrot.slane %v4916_v38, 9 }
 0x1b5   : > { %v5068_v28 = vrot.slane %v8839_v59, 5  ;;  %v6183_v13 = vcombine.low %v4610_v52, %v4620_v39  ;;  %v4990_v43 = vrot.slane %v4988_v2, 4  ;;  %v6216_v20 = vcombine.low %v4982_v11, %v4985_v1  ;;  %v7145_v11 = vld [vmem:[#allocation2 + $0x60] sm:$0xff]  }
 0x1b6   : > { %v5072_v57 = vrot.slane %v8861_v49, 5  ;;  %v6202_v47 = vrot.slane %v4917_v5, 9  ;;  %v5075_v59 = vrot.slane %v8968_v56, 5  ;;  %v9681_v49 = vld [vmem:[#allocation24_spill] sm:$0xff]  ;;  %v4989_v56 = vsel %vm7813_vm3, %v6201_v23, %v4988_v2 }
 0x1b7   : > { %6583 = vmatmul.mubr.msk.bf16.gmra.mrb[4].mxu1 %vm1313_vm11, %v7141_v35  ;;  %v4995_v35 = vrot.slane %v9678_v7, 5  ;;  %v5002_v52 = vrot.slane %v9681_v49, 5  ;;  %v7146_v5 = vld [vmem:[#allocation2 + $0x6c] sm:$0xff]   ;;  %v2950_v27 = vshll.u32 %v2667_v37, 16  ;;  %v3004_v53 = vshll.u32 %v7203_v62, 16 }
 0x1b8   : > { %6586 = vmatprep.mubr.msk.bf16.mxu1 %vm1313_vm11, %v7142_v46  ;;  %v5065_v46 = vrot.slane %v8802_v61, 5  ;;  %v9680_v61 = vld [vmem:[#allocation23_spill] sm:$0xff]  ;;  %v5074_v50 = vrot.slane %v5072_v57, 4  ;;  %v5079_v10 = vrot.slane %v8929_v42, 5 }
 0x1b9   : > { %6739 = vmatmul.mubr.msk.bf16.gmra.mrb[24].mxu0 %vm1313_vm11, %v6181_v12  ;;  %v9679_v12 = vld [vmem:[#allocation22_spill] sm:$0xff]  ;;  %v4997_v9 = vrot.slane %v4995_v35, 4  ;;  %v4998_v40 = vrot.slane %v9680_v61, 5  ;;  %v4996_v1 = vsel %vm7813_vm3, %v6202_v47, %v4995_v35  ;;  %v5089_v47 = vrot.slane %v9052_v45, 5 }
 0x1ba   : > { %6742 = vmatprep.mubr.msk.bf16.mxu0 %vm1313_vm11, %v6182_v60  ;;  %v4991_v19 = vrot.slane %v9679_v12, 5  ;;  %v6213_v60 = vrot.slane %v4928_v41, 9  ;;  %v9117_v21 = vsel %vm7813_vm3, %v6212_v44, %v5065_v46  ;;  %v5067_v54 = vrot.slane %v5065_v46, 4  ;;  %v4918_v41 = vld [vmem:[#allocation2 + $0x3c] sm:$0xe] }
 0x1bb   : > { %v4999_v7 = vsel %vm7813_vm3, %v4997_v9, %v4998_v40  ;;  %v6203_v23 = vrot.slane %v4918_v41, 9  ;;  %v5004_v46 = vrot.slane %v5002_v52, 4  ;;  %v4930_v12 = vld [vmem:[#allocation2 + $0xcc] sm:$0xe]  ;;  %v7148_v9 = vld [vmem:[#allocation2 + $0x84] sm:$0xff]  }
 0x1bc   : > { %v9126_v8 = vsel %vm7813_vm3, %v5067_v54, %v5068_v28  ;;  %v9130_v38 = vsel %vm7813_vm3, %v6213_v60, %v5072_v57  ;;  %v4992_v44 = vsel %vm7813_vm3, %v4990_v43, %v4991_v19  ;;  %v9682_v28 = vld [vmem:[#allocation25_spill] sm:$0xff]  ;;  %v6218_v43 = vcombine.low %v4996_v1, %v4999_v7 }
 0x1bd   : > { %v6228_v39 = vcombine.low %v9117_v21, %v9126_v8  ;;  %v6217_v2 = vcombine.low %v4989_v56, %v4992_v44  ;;  %v5003_v35 = vsel %vm7813_vm3, %v6203_v23, %v5002_v52  ;;  %v6215_v60 = vrot.slane %v4930_v12, 9  ;;  %v7147_v57 = vld [vmem:[#allocation2 + $0x78] sm:$0xff]   ;;  %v7196_v52 = vld [vmem:[#allocation2 + $0x70] sm:$0xf]  ;;  %v2664_v23 = vld [vmem:[#allocation2 + $0x84] sm:$0xf] }
 0x1be   : > { %v5086_v54 = vrot.slane %v9001_v16, 5  ;;  %v2884_v56 = vshll.u32 %v7196_v52, 16  ;;  %v2888_v44 = vshrl.u32 %v7196_v52, 16  ;;  %v2923_v12 = vshrl.u32 %v2664_v23, 16 }
 0x1bf   : > { %6587 = vmatmul.mubr.msk.bf16.gmra.mrb[8].mxu1 %vm1313_vm11, %v7143_v58  ;;  %v9143_v58 = vsel %vm7813_vm3, %v5074_v50, %v5075_v59 }
 0x1c0   : > { %6590 = vmatprep.mubr.msk.bf16.mxu1 %vm1313_vm11, %v7144_v48  ;;  %v6229_v48 = vcombine.low %v9130_v38, %v9143_v58  ;;  %v9164_v50 = vsel %vm7813_vm3, %v6215_v60, %v5086_v54  ;;  %v5088_v49 = vrot.slane %v5086_v54, 4  ;;  %v2886_v1 = vrot.slane %v2884_v56, 5 }
 0x1c1   : > { %6743 = vmatmul.mubr.msk.bf16.gmra.mrb[28].mxu0 %vm1313_vm11, %v6183_v13  ;;  %v5005_v13 = vrot.slane %v9682_v28, 5  ;;  %v2890_v7 = vrot.slane %v2888_v44, 4  ;;  %v2960_v56 = vshrl.u32 %v7199_v3, 16 }
 0x1c2   : > { %6748 = vmatprep.mubr.msk.bf16.mxu0 %vm1313_vm11, %v6216_v20  ;;  %v2658_v20 = vld [vmem:[#allocation2 + $0x6c] sm:$0xf]  ;;  %v9169_v16 = vsel %vm7813_vm3, %v5088_v49, %v5089_v47  ;;  %v2925_v47 = vrot.slane %v2923_v12, 4  ;;  %v7152_v49 = vld [vmem:[#allocation2 + $0xb4] sm:$0xff]   ;;  %v9683_v12 = vcombine.low %v8955_v32, %v8972_v4 }
 0x1c3   : > { %v5006_v19 = vsel %vm7813_vm3, %v5004_v46, %v5005_v13  ;;  %v2875_v40 = vshrl.u32 %v2658_v20, 16  ;;  %v2878_v59 = vshll.u32 %v2658_v20, 16  ;;  %v6231_v45 = vcombine.low %v9164_v50, %v9169_v16  ;;  %v7197_v13 = vld [vmem:[#allocation2 + $0x74] sm:$0x1]  ;;  %v7151_v20 = vld [vmem:[#allocation2 + $0xa8] sm:$0xff]  }
 0x1c4   : > { %v6219_v61 = vcombine.low %v5003_v35, %v5006_v19  ;;  %v2891_v28 = vor.u32 %v2890_v7, %v2886_v1  ;;  %v2926_v35 = vshll.u32 %v2664_v23, 16  ;;  %v7198_v19 = vld [vmem:[#allocation2 + $0x88] sm:$0xf] }
 0x1c5   : > { %v2877_v41 = vrot.slane %v2875_v40, 4  ;;  %v2932_v60 = vshll.u32 %v7198_v19, 16  ;;  %v2936_v6 = vshrl.u32 %v7198_v19, 16  ;;  %v2947_v40 = vshrl.u32 %v2667_v37, 16 }
 0x1c6   : > { %v2892_v54 = vrot.slane %v2891_v28, 4 }
 0x1c7   : > { %6591 = vmatmul.mubr.msk.bf16.gmra.mrb[12].mxu1 %vm1313_vm11, %v7145_v11  ;;  %v2880_v11 = vrot.slane %v2878_v59, 5  ;;  %v2670_v59 = vld [vmem:[#allocation2 + $0x9c] sm:$0xf]  ;;  %v2938_v52 = vrot.slane %v2936_v6, 4 }
 0x1c8   : > { %6594 = vmatprep.mubr.msk.bf16.mxu1 %vm1313_vm11, %v7146_v5  ;;  %v7149_v5 = vld [vmem:[#allocation2 + $0x90] sm:$0xff]  }
 0x1c9   : > { %6749 = vmatmul.mubr.msk.bf16.vlgmr.msra.gmra.mrb[0].mxu0 %vm1313_vm11, %v6217_v2  ;;  %v7150_v2 = vld [vmem:[#allocation2 + $0x9c] sm:$0xff]   ;;  %v2881_v46 = vor.u32 %v2880_v11, %v2877_v41  ;;  %v2971_v41 = vshrl.u32 %v2670_v59, 16  ;;  %v2974_v11 = vshll.u32 %v2670_v59, 16 }
 0x1ca   : > { %6752 = vmatprep.mubr.msk.bf16.mxu0 %vm1313_vm11, %v6218_v43  ;;  %v2894_v43 = vshll.u32 %v7197_v13, 16  ;;  %v2952_v13 = vrot.slane %v2950_v27, 5  ;;  %v2676_v27 = vld [vmem:[#allocation2 + $0xb4] sm:$0xf] }
 0x1cb   : > { %v2973_v6 = vrot.slane %v2971_v41, 4  ;;  %v2976_v37 = vrot.slane %v2974_v11, 5 }
 0x1cf   : > { %6595 = vmatmul.mubr.msk.bf16.gmra.mrb[16].mxu1 %vm1313_vm11, %v7147_v57  ;;  %v2896_v57 = vrot.slane %v2894_v43, 5  ;;  %v2962_v43 = vrot.slane %v2960_v56, 4 }
 0x1d0   : > { %6598 = vmatprep.mubr.msk.bf16.mxu1 %vm1313_vm11, %v7148_v9  ;;  %v2928_v9 = vrot.slane %v2926_v35, 5  ;;  %v2673_v35 = vld [vmem:[#allocation2 + $0xa8] sm:$0xf] }
 0x1d1   : > { %6753 = vmatmul.mubr.msk.bf16.gmra.mrb[4].mxu0 %vm1313_vm11, %v6219_v61  ;;  %v9189_v61 = vrot.slane %v2932_v60, 5  ;;  %v2897_v29 = vsel %vm7631_vm10, %v2892_v54, %v2896_v57  ;;  %v7202_v54 = vld [vmem:[#allocation2 + $0x98] sm:$0x1]  ;;  %v2995_v59 = vshrl.u32 %v2673_v35, 16 }
 0x1d2   : > { %6756 = vmatprep.mubr.msk.bf16.mxu0 %vm1313_vm11, %v6220_v30  ;;  %v2882_v30 = vrot.slane %v2881_v46, 4  ;;  %v2929_v7 = vor.u32 %v2928_v9, %v2925_v47  ;;  %v2966_v57 = vshll.u32 %v7202_v54, 16  ;;  %v7206_v54 = vld [vmem:[#allocation2 + $0xb0] sm:$0x1] }
 0x1d3   : > { %v2939_v28 = vor.u32 %v2938_v52, %v9189_v61  ;;  %v2998_v52 = vshll.u32 %v2673_v35, 16  ;;  %v2997_v11 = vrot.slane %v2995_v59, 4 }
 0x1d4   : > { %v2887_v44 = vsel %vm7631_vm10, %v2882_v30, %v2886_v1  ;;  %v7153_v30 = vld [vmem:[#allocation2 + $0xc0] sm:$0xff]  }
 0x1d5   : > { %v6064_v19 = vcombine.low %v2887_v44, %v2897_v29  ;;  %v2940_v32 = vrot.slane %v2939_v28, 4  ;;  %v7204_v44 = vld [vmem:[#allocation2 + $0xa4] sm:$0x1]  ;;  %v3000_v28 = vrot.slane %v2998_v52, 5 }
 0x1d6   : > { %v2990_v29 = vshll.u32 %v7204_v44, 16 }
 0x1d7   : > { %6599 = vmatmul.mubr.msk.bf16.gmra.mrb[20].mxu1 %vm1313_vm11, %v7149_v5  ;;  %v2949_v5 = vrot.slane %v2947_v40, 4 }
 0x1d8   : > { %6602 = vmatprep.mubr.msk.bf16.mxu1 %vm1313_vm11, %v7150_v2  ;;  %v7201_v2 = vld [vmem:[#allocation2 + $0xa0] sm:$0xf]  ;;  %v2992_v35 = vrot.slane %v2990_v29, 5 }
 0x1d9   : > { %6757 = vmatmul.mubr.msk.bf16.gmra.mrb[8].mxu0 %vm1313_vm11, %v6221_v25  ;;  %v2956_v25 = vshll.u32 %v7199_v3, 16  ;;  %v2980_v23 = vshll.u32 %v7201_v2, 16  ;;  %v2984_v46 = vshrl.u32 %v7201_v2, 16  ;;  %v2953_v4 = vor.u32 %v2952_v13, %v2949_v5  ;;  %v7205_v5 = vld [vmem:[#allocation2 + $0xb8] sm:$0xf] }
 0x1da   : > { %6760 = vmatprep.mubr.msk.bf16.mxu0 %vm1313_vm11, %v6222_v33  ;;  %v2942_v33 = vshll.u32 %v7200_v63, 16  ;;  %v3028_v2 = vshll.u32 %v7205_v5, 16  ;;  %v9227_v13 = vrot.slane %v3004_v53, 5  ;;  %v7208_v53 = vld [vmem:[#allocation2 + $0xbc] sm:$0x1] }
 0x1db   : > { %v9198_v1 = vrot.slane %v2956_v25, 5  ;;  %v9208_v47 = vrot.slane %v2980_v23, 5  ;;  %v2986_v9 = vrot.slane %v2984_v46, 4  ;;  %v2968_v25 = vrot.slane %v2966_v57, 5 }
 0x1dc   : > { %v2944_v60 = vrot.slane %v2942_v33, 5  ;;  %v2954_v33 = vrot.slane %v2953_v4, 4  ;;  %v3032_v23 = vshrl.u32 %v7205_v5, 16  ;;  %v3014_v57 = vshll.u32 %v7206_v54, 16 }
 0x1dd   : > { %v2963_v40 = vor.u32 %v2962_v43, %v9198_v1  ;;  %v2987_v56 = vor.u32 %v2986_v9, %v9208_v47  ;;  %v6214_v9 = vrot.slane %v4929_v17, 9  ;;  %v5082_v4 = vrot.slane %v9006_v51, 5 }
 0x1de   : > { %v2945_v63 = vsel %vm7631_vm10, %v2940_v32, %v2944_v60  ;;  %v3030_v60 = vrot.slane %v3028_v2, 5  ;;  %v5081_v32 = vrot.slane %v5079_v10, 4 }
 0x1df   : > { %6603 = vmatmul.mubr.msk.bf16.gmra.mrb[24].mxu1 %vm1313_vm11, %v7151_v20  ;;  %v2930_v20 = vrot.slane %v2929_v7, 4  ;;  %v2964_v41 = vrot.slane %v2963_v40, 4  ;;  %v3019_v7 = vshrl.u32 %v2676_v27, 16  ;;  %v5080_v44 = vsel %vm7813_vm3, %v6214_v9, %v5079_v10 }
 0x1e0   : > { %6606 = vmatprep.mubr.msk.bf16.mxu1 %vm1313_vm11, %v7152_v49  ;;  %v2977_v49 = vor.u32 %v2976_v37, %v2973_v6  ;;  %v3034_v6 = vrot.slane %v3032_v23, 4  ;;  %v2679_v37 = vld [vmem:[#allocation2 + $0xc0] sm:$0xf]  ;;  %v5083_v24 = vsel %vm7813_vm3, %v5081_v32, %v5082_v4 }
 0x1e1   : > { %6761 = vmatmul.mubr.msk.bf16.gmra.mrb[12].mxu0 %vm1313_vm11, %v9683_v12  ;;  %v2935_v3 = vsel %vm7631_vm10, %v2930_v20, %v9189_v61  ;;  %v3022_v61 = vshll.u32 %v2676_v27, 16  ;;  %v2988_v12 = vrot.slane %v2987_v56, 4  ;;  %v3021_v55 = vrot.slane %v3019_v7, 4 }
 0x1e2   : > { %6764 = vmatprep.mubr.msk.bf16.mxu0 %vm1313_vm11, %v6224_v31  ;;  %v3008_v31 = vshrl.u32 %v7203_v62, 16  ;;  %v2978_v46 = vrot.slane %v2977_v49, 4  ;;  %v6066_v18 = vcombine.low %v2935_v3, %v2945_v63  ;;  %v3001_v20 = vor.u32 %v3000_v28, %v2997_v11 }
 0x1e3   : > { %v3043_v40 = vshrl.u32 %v2679_v37, 16  ;;  %v3046_v59 = vshll.u32 %v2679_v37, 16  ;;  %v3035_v62 = vor.u32 %v3034_v6, %v3030_v60  ;;  %v6230_v7 = vcombine.low %v5080_v44, %v5083_v24 }
 0x1e4   : > { %v3010_v43 = vrot.slane %v3008_v31, 4  ;;  %v3038_v31 = vshll.u32 %v7208_v53, 16  ;;  %v3002_v51 = vrot.slane %v3001_v20, 4 }
 0x1e5   : > { %v3045_v22 = vrot.slane %v3043_v40, 4 }
 0x1e6   : > { %v3011_v42 = vor.u32 %v3010_v43, %v9227_v13  ;;  %v3040_v11 = vrot.slane %v3038_v31, 5  ;;  %v3007_v21 = vsel %vm7631_vm10, %v3002_v51, %v9227_v13 }
 0x1e7   : > { %6607 = vmatmul.mubr.msk.bf16.gmra.mrb[28].mxu1 %vm1313_vm11, %v7153_v30  ;;  %v2983_v30 = vsel %vm7631_vm10, %v2978_v46, %v9208_v47  ;;  %v7207_v47 = vld [vmem:[#allocation2 + $0xc4] sm:$0xf] }
 0x1e8   : > { %6628 = vmatprep.mubr.msk.bf16.mxu1 %vm1313_vm11, %v6064_v19  ;;  %v2969_v19 = vsel %vm7631_vm10, %v2964_v41, %v2968_v25  ;;  %v3052_v49 = vshll.u32 %v7207_v47, 16  ;;  %v3056_v52 = vshrl.u32 %v7207_v47, 16  ;;  %v3016_v25 = vrot.slane %v3014_v57, 5 }
 0x1e9   : > { %6765 = vmatmul.mubr.msk.bf16.gmra.mrb[16].mxu0 %vm1313_vm11, %v6225_v26  ;;  %v2959_v26 = vsel %vm7631_vm10, %v2954_v33, %v9198_v1  ;;  %v2993_v1 = vsel %vm7631_vm10, %v2988_v12, %v2992_v35  ;;  %v3012_v56 = vrot.slane %v3011_v42, 4  ;;  %v3036_v41 = vrot.slane %v3035_v62, 4 }
 0x1ea   : > { %6768 = vmatprep.mubr.msk.bf16.mxu0 %vm1313_vm11, %v6226_v15  ;;  %v3024_v15 = vrot.slane %v3022_v61, 5  ;;  %v6067_v27 = vcombine.low %v2959_v26, %v2969_v19  ;;  %v6068_v3 = vcombine.low %v2983_v30, %v2993_v1  ;;  %v3054_v29 = vrot.slane %v3052_v49, 5  ;;  %v7209_v61 = vld [vmem:[#allocation2 + $0xc8] sm:$0x1] }
 0x1eb   : > { %v3058_v63 = vrot.slane %v3056_v52, 4  ;;  %v3017_v0 = vsel %vm7631_vm10, %v3012_v56, %v3016_v25  ;;  %v3062_v5 = vshll.u32 %v7209_v61, 16  ;;  %v3041_v23 = vsel %vm7631_vm10, %v3036_v41, %v3040_v11 }
 0x1ec   : > { %v6069_v46 = vcombine.low %v3007_v21, %v3017_v0 }
 0x1ed   : > { %v3064_v12 = vrot.slane %v3062_v5, 5 }
 0x1ef   : > { %6629 = vmatmul.mubr.msk.bf16.vlgmr.msra.gmra.mrb[16].mxu1 %vm1313_vm11, %v9029_v14  ;;  %v3025_v14 = vor.u32 %v3024_v15, %v3021_v55 }
 0x1f0   : > { %6632 = vmatprep.mubr.msk.bf16.mxu1 %vm1313_vm11, %v6066_v18 }
 0x1f1   : > { %6769 = vmatmul.mubr.msk.bf16.gmra.mrb[20].mxu0 %vm1313_vm11, %v6227_v36  ;;  %v3048_v36 = vrot.slane %v3046_v59, 5  ;;  %v3026_v33 = vrot.slane %v3025_v14, 4 }
 0x1f2   : > { %6772 = vmatprep.mubr.msk.bf16.mxu0 %vm1313_vm11, %v6228_v39  ;;  %v3059_v39 = vor.u32 %v3058_v63, %v3054_v29 }
 0x1f3   : > { %v3049_v8 = vor.u32 %v3048_v36, %v3045_v22  ;;  %v3031_v2 = vsel %vm7631_vm10, %v3026_v33, %v3030_v60 }
 0x1f4   : > { %v6070_v28 = vcombine.low %v3031_v2, %v3041_v23  ;;  %v3060_v43 = vrot.slane %v3059_v39, 4 }
 0x1f5   : > { %v3050_v13 = vrot.slane %v3049_v8, 4 }
 0x1f6   : > { %v3065_v58 = vsel %vm7631_vm10, %v3060_v43, %v3064_v12 }
 0x1f7   : > { %6633 = vmatmul.mubr.msk.bf16.gmra.mrb[20].mxu1 %vm1313_vm11, %v6067_v27  ;;  %v3055_v38 = vsel %vm7631_vm10, %v3050_v13, %v3054_v29 }
 0x1f8   : > { %6636 = vmatprep.mubr.msk.bf16.mxu1 %vm1313_vm11, %v6068_v3 }
 0x1f9   : > { %6773 = vmatmul.mubr.msk.bf16.gmra.mrb[24].mxu0 %vm1313_vm11, %v6229_v48  ;;  %v6071_v48 = vcombine.low %v3055_v38, %v3065_v58 }
 0x1fa   : > { %6776 = vmatprep.mubr.msk.bf16.mxu0 %vm1313_vm11, %v6230_v7 }
 0x1ff   : > { %6637 = vmatmul.mubr.msk.bf16.gmra.mrb[24].mxu1 %vm1313_vm11, %v6069_v46 }
 0x200   : > { %6640 = vmatprep.mubr.msk.bf16.mxu1 %vm1313_vm11, %v6070_v28 }
 0x201   : > { %6777 = vmatmul.mubr.msk.bf16.gmra.mrb[28].mxu0 %vm1313_vm11, %v6231_v45 }
 0x207   : > { %6641 = vmatmul.mubr.msk.bf16.gmra.mrb[28].mxu1 %vm1313_vm11, %v6071_v48 }
 0x282   : > { %v6580_v35 = vpop.f32.mrb[0].mxu1 }
 0x283   : > { %v2475_v10 = vpop.f32.mrb[1].mxu1 }
 0x284   : > { %v6581_v18 = vpop.f32.mrb[2].mxu1 }
 0x285   : > { %v2478_v26 = vpop.f32.mrb[3].mxu1 }
 0x28a   : > { %v6584_v19 = vpop.f32.mrb[4].mxu1 }
 0x28b   : > { %v2491_v17 = vpop.f32.mrb[5].mxu1 }
 0x28c   : > { %v6585_v55 = vpop.f32.mrb[6].mxu1 }
 0x28d   : > { %v2494_v15 = vpop.f32.mrb[7].mxu1 }
 0x292   : > { %v9284_v60 = vpop.f32.mrb[8].mxu1 }
 0x293   : > { %v9286_v34 = vpop.f32.mrb[9].mxu1 }
 0x294   : > { %v9288_v6 = vpop.f32.mrb[10].mxu1 }
 0x295   : > { %v9290_v50 = vpop.f32.mrb[11].mxu1 }
 0x29a   : > { %v9292_v16 = vpop.f32.mrb[12].mxu1 }
 0x29b   : > { %v9294_v45 = vpop.f32.mrb[13].mxu1 }
 0x29c   : > { %v9296_v37 = vpop.f32.mrb[14].mxu1  ;;  %v6750_v30 = vpop.f32.mrb[0].mxu0 }
 0x29d   : > { %v9298_v20 = vpop.f32.mrb[15].mxu1  ;;  %v6782_v42 = vadd.f32 %v6750_v30, %v6580_v35  ;;  %v5226_v54 = vpop.f32.mrb[1].mxu0 }
 0x29e   : > { %v6783_v57 = vadd.f32 %v5226_v54, %v2475_v10  ;;  %v6751_v1 = vpop.f32.mrb[2].mxu0 }
 0x29f   : > { %v6290_v9 = vpack.c.bf16 %v6782_v42, %v6782_v42  ;;  %v6784_v32 = vadd.f32 %v6751_v1, %v6581_v18  ;;  %v5229_v4 = vpop.f32.mrb[3].mxu0  ;;  %v5457_v49 = vmul.f32 %v6782_v42, %v6782_v42  ;;  %v5388_v25 = vsel %vm1313_vm11, %v6782_v42, 0.0 }
 0x2a0   : > { %v5455_v40 = vmul.f32 %v6783_v57, %v6783_v57  ;;  %v6288_v59 = vpack.c.bf16 %v6783_v57, %v6783_v57  ;;  %v6785_v47 = vadd.f32 %v5229_v4, %v2478_v26  ;;  %v5385_v14 = vsel %vm1313_vm11, %v6783_v57, 0.0 }
 0x2a1   : > { %5687 = vst.msk [vmem:[%s9302_s21 + $0x8] sm:$0xf] %vm280_vm0, %v6290_v9  ;;  %v6291_v52 = vpack.c.bf16 %v6784_v32, %v6784_v32  ;;  %v5458_v27 = vmul.f32 %v6784_v32, %v6784_v32  ;;  %v5490_v63 = vsel %vm1313_vm11, %v5457_v49, 0.0  ;;  %v5390_v11 = vsel %vm1313_vm11, %v6784_v32, 0.0 }
 0x2a2   : > { %5685 = vst.msk [vmem:[%s9302_s21] sm:$0xf] %vm280_vm0, %v6288_v59  ;;  %v5386_v62 = vsel %vm1313_vm11, %v6785_v47, 0.0  ;;  %v5456_v53 = vmul.f32 %v6785_v47, %v6785_v47  ;;  %v6289_v31 = vpack.c.bf16 %v6785_v47, %v6785_v47  ;;  %v5487_v51 = vsel %vm1313_vm11, %v5455_v40, 0.0 }
 0x2a3   : > { %5688 = vst.msk [vmem:[%s9302_s21 + $0xc] sm:$0xf] %vm280_vm0, %v6291_v52  ;;  %v5387_v3 = vadd.f32 %v5386_v62, %v5385_v14  ;;  %v5492_v7 = vsel %vm1313_vm11, %v5458_v27, 0.0 }
 0x2a4   : > { %v5488_v56 = vsel %vm1313_vm11, %v5456_v53, 0.0  ;;  %5686 = vst.msk [vmem:[%s9302_s21 + $0x4] sm:$0xf] %vm280_vm0, %v6289_v31  ;;  %v6754_v44 = vpop.f32.mrb[4].mxu0 }
 0x2a5   : > { %v5389_v24 = vadd.f32 %v5388_v25, %v5387_v3  ;;  %v5489_v22 = vadd.f32 %v5488_v56, %v5487_v51  ;;  %v6786_v36 = vadd.f32 %v6754_v44, %v6584_v19  ;;  %v5242_v29 = vpop.f32.mrb[5].mxu0 }
 0x2a6   : > { %v6787_v33 = vadd.f32 %v5242_v29, %v2491_v17  ;;  %v6755_v41 = vpop.f32.mrb[6].mxu0 }
 0x2a7   : > { %v5491_v21 = vadd.f32 %v5490_v63, %v5489_v22  ;;  %v6294_v0 = vpack.c.bf16 %v6786_v36, %v6786_v36  ;;  %v5245_v8 = vpop.f32.mrb[7].mxu0  ;;  %v5391_v39 = vadd.f32 %v5390_v11, %v5389_v24  ;;  %v6788_v46 = vadd.f32 %v6755_v41, %v6585_v55 }
 0x2a8   : > { %v5392_v61 = vsel %vm1313_vm11, %v6787_v33, 0.0  ;;  %v5459_v5 = vmul.f32 %v6787_v33, %v6787_v33  ;;  %v6292_v2 = vpack.c.bf16 %v6787_v33, %v6787_v33  ;;  %v6789_v28 = vadd.f32 %v5245_v8, %v2494_v15 }
 0x2a9   : > { %5691 = vst.msk [vmem:[%s9302_s21 + $0x18] sm:$0xf] %vm280_vm0, %v6294_v0  ;;  %v5493_v23 = vadd.f32 %v5492_v7, %v5491_v21  ;;  %v5393_v13 = vadd.f32 %v5392_v61, %v5391_v39  ;;  %v5461_v12 = vmul.f32 %v6786_v36, %v6786_v36  ;;  %v6295_v58 = vpack.c.bf16 %v6788_v46, %v6788_v46 }
 0x2aa   : > { %v5494_v43 = vsel %vm1313_vm11, %v5459_v5, 0.0  ;;  %5689 = vst.msk [vmem:[%s9302_s21 + $0x10] sm:$0xf] %vm280_vm0, %v6292_v2  ;;  %v5394_v48 = vsel %vm1313_vm11, %v6789_v28, 0.0  ;;  %v5460_v35 = vmul.f32 %v6789_v28, %v6789_v28  ;;  %v6293_v10 = vpack.c.bf16 %v6789_v28, %v6789_v28 }
 0x2ab   : > { %v5495_v38 = vadd.f32 %v5494_v43, %v5493_v23  ;;  %5692 = vst.msk [vmem:[%s9302_s21 + $0x1c] sm:$0xf] %vm280_vm0, %v6295_v58  ;;  %v5395_v26 = vadd.f32 %v5394_v48, %v5393_v13  ;;  %v5396_v55 = vsel %vm1313_vm11, %v6786_v36, 0.0  ;;  %v5462_v15 = vmul.f32 %v6788_v46, %v6788_v46 }
 0x2ac   : > { %v6758_v18 = vpop.f32.mrb[8].mxu0  ;;  %v5496_v30 = vsel %vm1313_vm11, %v5460_v35, 0.0  ;;  %5690 = vst.msk [vmem:[%s9302_s21 + $0x14] sm:$0xf] %vm280_vm0, %v6293_v10  ;;  %v5498_v57 = vsel %vm1313_vm11, %v5461_v12, 0.0  ;;  %v5398_v1 = vsel %vm1313_vm11, %v6788_v46, 0.0 }
 0x2ad   : > { %v6790_v19 = vadd.f32 %v6758_v18, %v9284_v60  ;;  %v5258_v17 = vpop.f32.mrb[9].mxu0  ;;  %v5397_v9 = vadd.f32 %v5396_v55, %v5395_v26  ;;  %v5497_v32 = vadd.f32 %v5496_v30, %v5495_v38 }
 0x2ae   : > { %v6791_v42 = vadd.f32 %v5258_v17, %v9286_v34  ;;  %v6759_v54 = vpop.f32.mrb[10].mxu0  ;;  %v5500_v34 = vsel %vm1313_vm11, %v5462_v15, 0.0 }
 0x2af   : > { %v5261_v60 = vpop.f32.mrb[11].mxu0  ;;  %v6298_v4 = vpack.c.bf16 %v6790_v19, %v6790_v19  ;;  %v5499_v49 = vadd.f32 %v5498_v57, %v5497_v32  ;;  %v5399_v52 = vadd.f32 %v5398_v1, %v5397_v9  ;;  %v6792_v14 = vadd.f32 %v6759_v54, %v9288_v6 }
 0x2b0   : > { %v5400_v40 = vsel %vm1313_vm11, %v6791_v42, 0.0  ;;  %v5463_v59 = vmul.f32 %v6791_v42, %v6791_v42  ;;  %v6296_v47 = vpack.c.bf16 %v6791_v42, %v6791_v42  ;;  %v6793_v53 = vadd.f32 %v5261_v60, %v9290_v50 }
 0x2b1   : > { %5695 = vst.msk [vmem:[%s9302_s21 + $0x28] sm:$0xf] %vm280_vm0, %v6298_v4  ;;  %v5465_v31 = vmul.f32 %v6790_v19, %v6790_v19  ;;  %v5401_v27 = vadd.f32 %v5400_v40, %v5399_v52  ;;  %v5501_v3 = vadd.f32 %v5500_v34, %v5499_v49  ;;  %v6299_v25 = vpack.c.bf16 %v6792_v14, %v6792_v14 }
 0x2b2   : > { %v5502_v62 = vsel %vm1313_vm11, %v5463_v59, 0.0  ;;  %5693 = vst.msk [vmem:[%s9302_s21 + $0x20] sm:$0xf] %vm280_vm0, %v6296_v47  ;;  %v5402_v51 = vsel %vm1313_vm11, %v6793_v53, 0.0  ;;  %v5464_v56 = vmul.f32 %v6793_v53, %v6793_v53  ;;  %v6297_v6 = vpack.c.bf16 %v6793_v53, %v6793_v53 }
 0x2b3   : > { %v5503_v24 = vadd.f32 %v5502_v62, %v5501_v3  ;;  %v5403_v22 = vadd.f32 %v5402_v51, %v5401_v27  ;;  %v5404_v63 = vsel %vm1313_vm11, %v6790_v19, 0.0  ;;  %v5466_v33 = vmul.f32 %v6792_v14, %v6792_v14  ;;  %5696 = vst.msk [vmem:[%s9302_s21 + $0x2c] sm:$0xf] %vm280_vm0, %v6299_v25 }
 0x2b4   : > { %v6762_v44 = vpop.f32.mrb[12].mxu0  ;;  %v5504_v50 = vsel %vm1313_vm11, %v5464_v56, 0.0  ;;  %5694 = vst.msk [vmem:[%s9302_s21 + $0x24] sm:$0xf] %vm280_vm0, %v6297_v6  ;;  %v5506_v7 = vsel %vm1313_vm11, %v5465_v31, 0.0  ;;  %v5406_v21 = vsel %vm1313_vm11, %v6792_v14, 0.0 }
 0x2b5   : > { %v6794_v36 = vadd.f32 %v6762_v44, %v9292_v16  ;;  %v5274_v29 = vpop.f32.mrb[13].mxu0  ;;  %v5405_v16 = vadd.f32 %v5404_v63, %v5403_v22  ;;  %v5505_v0 = vadd.f32 %v5504_v50, %v5503_v24 }
 0x2b6   : > { %v6795_v41 = vadd.f32 %v5274_v29, %v9294_v45  ;;  %v6763_v11 = vpop.f32.mrb[14].mxu0  ;;  %v5508_v45 = vsel %vm1313_vm11, %v5466_v33, 0.0 }
 0x2b7   : > { %v5277_v8 = vpop.f32.mrb[15].mxu0  ;;  %v6302_v39 = vpack.c.bf16 %v6794_v36, %v6794_v36  ;;  %v5507_v23 = vadd.f32 %v5506_v7, %v5505_v0  ;;  %v5407_v46 = vadd.f32 %v5406_v21, %v5405_v16  ;;  %v6796_v28 = vadd.f32 %v6763_v11, %v9296_v37 }
 0x2b8   : > { %v5408_v61 = vsel %vm1313_vm11, %v6795_v41, 0.0  ;;  %v5467_v5 = vmul.f32 %v6795_v41, %v6795_v41  ;;  %v6300_v2 = vpack.c.bf16 %v6795_v41, %v6795_v41  ;;  %v6797_v43 = vadd.f32 %v5277_v8, %v9298_v20 }
 0x2b9   : > { %5699 = vst.msk [vmem:[%s9302_s21 + $0x38] sm:$0xf] %vm280_vm0, %v6302_v39  ;;  %v5469_v12 = vmul.f32 %v6794_v36, %v6794_v36  ;;  %v5409_v38 = vadd.f32 %v5408_v61, %v5407_v46  ;;  %v5509_v58 = vadd.f32 %v5508_v45, %v5507_v23  ;;  %v6303_v48 = vpack.c.bf16 %v6796_v28, %v6796_v28 }
 0x2ba   : > { %v5510_v13 = vsel %vm1313_vm11, %v5467_v5, 0.0  ;;  %5697 = vst.msk [vmem:[%s9302_s21 + $0x30] sm:$0xf] %vm280_vm0, %v6300_v2  ;;  %v5410_v35 = vsel %vm1313_vm11, %v6797_v43, 0.0  ;;  %v5468_v10 = vmul.f32 %v6797_v43, %v6797_v43  ;;  %v6301_v37 = vpack.c.bf16 %v6797_v43, %v6797_v43 }
 0x2bb   : > { %v5511_v26 = vadd.f32 %v5510_v13, %v5509_v58  ;;  %v5411_v19 = vadd.f32 %v5410_v35, %v5409_v38  ;;  %v5412_v55 = vsel %vm1313_vm11, %v6794_v36, 0.0  ;;  %v5470_v15 = vmul.f32 %v6796_v28, %v6796_v28  ;;  %5700 = vst.msk [vmem:[%s9302_s21 + $0x3c] sm:$0xf] %vm280_vm0, %v6303_v48 }
 0x2bc   : > { %v6766_v18 = vpop.f32.mrb[16].mxu0  ;;  %v5512_v20 = vsel %vm1313_vm11, %v5468_v10, 0.0  ;;  %5698 = vst.msk [vmem:[%s9302_s21 + $0x34] sm:$0xf] %vm280_vm0, %v6301_v37  ;;  %v5514_v1 = vsel %vm1313_vm11, %v5469_v12, 0.0  ;;  %v5414_v9 = vsel %vm1313_vm11, %v6796_v28, 0.0 }
 0x2bd   : > { %v5290_v17 = vpop.f32.mrb[17].mxu0  ;;  %v5413_v42 = vadd.f32 %v5412_v55, %v5411_v19  ;;  %v5513_v54 = vadd.f32 %v5512_v20, %v5511_v26  ;;  %v5516_v4 = vsel %vm1313_vm11, %v5470_v15, 0.0 }
 0x2be   : > { %v6767_v30 = vpop.f32.mrb[18].mxu0 }
 0x2bf   : > { %v5293_v57 = vpop.f32.mrb[19].mxu0  ;;  %v5515_v32 = vadd.f32 %v5514_v1, %v5513_v54  ;;  %v5415_v60 = vadd.f32 %v5414_v9, %v5413_v42 }
 0x2c1   : > { %v5517_v49 = vadd.f32 %v5516_v4, %v5515_v32 }
 0x2c2   : > { %v6630_v40 = vpop.f32.mrb[16].mxu1 }
 0x2c3   : > { %v3265_v59 = vpop.f32.mrb[17].mxu1  ;;  %v6798_v47 = vadd.f32 %v6766_v18, %v6630_v40 }
 0x2c4   : > { %v6631_v52 = vpop.f32.mrb[18].mxu1  ;;  %v6799_v14 = vadd.f32 %v5290_v17, %v3265_v59  ;;  %v6770_v34 = vpop.f32.mrb[20].mxu0 }
 0x2c5   : > { %v6306_v62 = vpack.c.bf16 %v6798_v47, %v6798_v47  ;;  %v3268_v53 = vpop.f32.mrb[19].mxu1  ;;  %v6800_v31 = vadd.f32 %v6767_v30, %v6631_v52  ;;  %v5306_v27 = vpop.f32.mrb[21].mxu0  ;;  %v5473_v44 = vmul.f32 %v6798_v47, %v6798_v47  ;;  %v5420_v21 = vsel %vm1313_vm11, %v6798_v47, 0.0 }
 0x2c6   : > { %v5416_v3 = vsel %vm1313_vm11, %v6799_v14, 0.0  ;;  %v5471_v25 = vmul.f32 %v6799_v14, %v6799_v14  ;;  %v6304_v51 = vpack.c.bf16 %v6799_v14, %v6799_v14  ;;  %v6801_v56 = vadd.f32 %v5293_v57, %v3268_v53  ;;  %v6771_v6 = vpop.f32.mrb[22].mxu0 }
 0x2c7   : > { %5703 = vst.msk [vmem:[%s9302_s21 + $0x48] sm:$0xf] %vm280_vm0, %v6306_v62  ;;  %v5417_v24 = vadd.f32 %v5416_v3, %v5415_v60  ;;  %v5309_v22 = vpop.f32.mrb[23].mxu0  ;;  %v6307_v29 = vpack.c.bf16 %v6800_v31, %v6800_v31  ;;  %v5474_v41 = vmul.f32 %v6800_v31, %v6800_v31  ;;  %v5522_v2 = vsel %vm1313_vm11, %v5473_v44, 0.0 }
 0x2c8   : > { %v5518_v36 = vsel %vm1313_vm11, %v5471_v25, 0.0  ;;  %5701 = vst.msk [vmem:[%s9302_s21 + $0x40] sm:$0xf] %vm280_vm0, %v6304_v51  ;;  %v5418_v63 = vsel %vm1313_vm11, %v6801_v56, 0.0  ;;  %v5472_v33 = vmul.f32 %v6801_v56, %v6801_v56  ;;  %v6305_v7 = vpack.c.bf16 %v6801_v56, %v6801_v56 }
 0x2c9   : > { %v5519_v50 = vadd.f32 %v5518_v36, %v5517_v49  ;;  %v5419_v11 = vadd.f32 %v5418_v63, %v5417_v24  ;;  %5704 = vst.msk [vmem:[%s9302_s21 + $0x4c] sm:$0xf] %vm280_vm0, %v6307_v29  ;;  %v5422_v45 = vsel %vm1313_vm11, %v6800_v31, 0.0  ;;  %v5524_v13 = vsel %vm1313_vm11, %v5474_v41, 0.0 }
 0x2ca   : > { %v5520_v16 = vsel %vm1313_vm11, %v5472_v33, 0.0  ;;  %v6634_v0 = vpop.f32.mrb[20].mxu1  ;;  %5702 = vst.msk [vmem:[%s9302_s21 + $0x44] sm:$0xf] %vm280_vm0, %v6305_v7 }
 0x2cb   : > { %v5421_v8 = vadd.f32 %v5420_v21, %v5419_v11  ;;  %v5521_v39 = vadd.f32 %v5520_v16, %v5519_v50  ;;  %v3281_v61 = vpop.f32.mrb[21].mxu1  ;;  %v6802_v5 = vadd.f32 %v6770_v34, %v6634_v0 }
 0x2cc   : > { %v6635_v23 = vpop.f32.mrb[22].mxu1  ;;  %v6803_v46 = vadd.f32 %v5306_v27, %v3281_v61  ;;  %v6774_v28 = vpop.f32.mrb[24].mxu0 }
 0x2cd   : > { %v5523_v43 = vadd.f32 %v5522_v2, %v5521_v39  ;;  %v6310_v12 = vpack.c.bf16 %v6802_v5, %v6802_v5  ;;  %v3284_v38 = vpop.f32.mrb[23].mxu1  ;;  %v5322_v58 = vpop.f32.mrb[25].mxu0  ;;  %v5423_v48 = vadd.f32 %v5422_v45, %v5421_v8  ;;  %v6804_v19 = vadd.f32 %v6771_v6, %v6635_v23 }
 0x2ce   : > { %v5424_v35 = vsel %vm1313_vm11, %v6803_v46, 0.0  ;;  %v5475_v10 = vmul.f32 %v6803_v46, %v6803_v46  ;;  %v6308_v37 = vpack.c.bf16 %v6803_v46, %v6803_v46  ;;  %v6775_v18 = vpop.f32.mrb[26].mxu0  ;;  %v6805_v17 = vadd.f32 %v5309_v22, %v3284_v38 }
 0x2cf   : > { %5707 = vst.msk [vmem:[%s9302_s21 + $0x58] sm:$0xf] %vm280_vm0, %v6310_v12  ;;  %v5525_v26 = vadd.f32 %v5524_v13, %v5523_v43  ;;  %v5325_v55 = vpop.f32.mrb[27].mxu0  ;;  %v5425_v15 = vadd.f32 %v5424_v35, %v5423_v48  ;;  %v5477_v30 = vmul.f32 %v6802_v5, %v6802_v5  ;;  %v6311_v54 = vpack.c.bf16 %v6804_v19, %v6804_v19 }
 0x2d0   : > { %v5526_v20 = vsel %vm1313_vm11, %v5475_v10, 0.0  ;;  %5705 = vst.msk [vmem:[%s9302_s21 + $0x50] sm:$0xf] %vm280_vm0, %v6308_v37  ;;  %v5426_v57 = vsel %vm1313_vm11, %v6805_v17, 0.0  ;;  %v5476_v1 = vmul.f32 %v6805_v17, %v6805_v17  ;;  %v6309_v9 = vpack.c.bf16 %v6805_v17, %v6805_v17 }
 0x2d1   : > { %v5527_v42 = vadd.f32 %v5526_v20, %v5525_v26  ;;  %5708 = vst.msk [vmem:[%s9302_s21 + $0x5c] sm:$0xf] %vm280_vm0, %v6311_v54  ;;  %v5427_v60 = vadd.f32 %v5426_v57, %v5425_v15  ;;  %v5428_v59 = vsel %vm1313_vm11, %v6802_v5, 0.0  ;;  %v5478_v47 = vmul.f32 %v6804_v19, %v6804_v19 }
 0x2d2   : > { %v6638_v32 = vpop.f32.mrb[24].mxu1  ;;  %v5528_v49 = vsel %vm1313_vm11, %v5476_v1, 0.0  ;;  %5706 = vst.msk [vmem:[%s9302_s21 + $0x54] sm:$0xf] %vm280_vm0, %v6309_v9  ;;  %v5530_v62 = vsel %vm1313_vm11, %v5477_v30, 0.0  ;;  %v5430_v53 = vsel %vm1313_vm11, %v6804_v19, 0.0 }
 0x2d3   : > { %v3297_v4 = vpop.f32.mrb[25].mxu1  ;;  %v6806_v40 = vadd.f32 %v6774_v28, %v6638_v32  ;;  %v5429_v31 = vadd.f32 %v5428_v59, %v5427_v60  ;;  %v5529_v27 = vadd.f32 %v5528_v49, %v5527_v42  ;;  %v5532_v33 = vsel %vm1313_vm11, %v5478_v47, 0.0 }
 0x2d4   : > { %v6639_v52 = vpop.f32.mrb[26].mxu1  ;;  %v6807_v14 = vadd.f32 %v5322_v58, %v3297_v4  ;;  %v6778_v34 = vpop.f32.mrb[28].mxu0 }
 0x2d5   : > { %v3300_v3 = vpop.f32.mrb[27].mxu1  ;;  %v5338_v25 = vpop.f32.mrb[29].mxu0  ;;  %v6314_v51 = vpack.c.bf16 %v6806_v40, %v6806_v40  ;;  %v5531_v22 = vadd.f32 %v5530_v62, %v5529_v27  ;;  %v5431_v36 = vadd.f32 %v5430_v53, %v5429_v31  ;;  %v6808_v29 = vadd.f32 %v6775_v18, %v6639_v52 }
 0x2d6   : > { %v5432_v56 = vsel %vm1313_vm11, %v6807_v14, 0.0  ;;  %v5479_v6 = vmul.f32 %v6807_v14, %v6807_v14  ;;  %v6312_v44 = vpack.c.bf16 %v6807_v14, %v6807_v14  ;;  %v6779_v24 = vpop.f32.mrb[30].mxu0  ;;  %v6809_v41 = vadd.f32 %v5325_v55, %v3300_v3 }
 0x2d7   : > { %v5341_v63 = vpop.f32.mrb[31].mxu0  ;;  %5711 = vst.msk [vmem:[%s9302_s21 + $0x68] sm:$0xf] %vm280_vm0, %v6314_v51  ;;  %v5481_v11 = vmul.f32 %v6806_v40, %v6806_v40  ;;  %v5433_v7 = vadd.f32 %v5432_v56, %v5431_v36  ;;  %v5533_v21 = vadd.f32 %v5532_v33, %v5531_v22  ;;  %v6315_v16 = vpack.c.bf16 %v6808_v29, %v6808_v29 }
 0x2d8   : > { %v5534_v50 = vsel %vm1313_vm11, %v5479_v6, 0.0  ;;  %5709 = vst.msk [vmem:[%s9302_s21 + $0x60] sm:$0xf] %vm280_vm0, %v6312_v44  ;;  %v5434_v0 = vsel %vm1313_vm11, %v6809_v41, 0.0  ;;  %v5480_v8 = vmul.f32 %v6809_v41, %v6809_v41  ;;  %v6313_v39 = vpack.c.bf16 %v6809_v41, %v6809_v41 }
 0x2d9   : > { %v5535_v5 = vadd.f32 %v5534_v50, %v5533_v21  ;;  %v5435_v2 = vadd.f32 %v5434_v0, %v5433_v7  ;;  %v5436_v28 = vsel %vm1313_vm11, %v6806_v40, 0.0  ;;  %v5482_v45 = vmul.f32 %v6808_v29, %v6808_v29  ;;  %5712 = vst.msk [vmem:[%s9302_s21 + $0x6c] sm:$0xf] %vm280_vm0, %v6315_v16 }
 0x2da   : > { %v6642_v61 = vpop.f32.mrb[28].mxu1  ;;  %v5536_v13 = vsel %vm1313_vm11, %v5480_v8, 0.0  ;;  %5710 = vst.msk [vmem:[%s9302_s21 + $0x64] sm:$0xf] %vm280_vm0, %v6313_v39  ;;  %v5538_v38 = vsel %vm1313_vm11, %v5481_v11, 0.0  ;;  %v5438_v58 = vsel %vm1313_vm11, %v6808_v29, 0.0 }
 0x2db   : > { %v3313_v23 = vpop.f32.mrb[29].mxu1  ;;  %v6810_v46 = vadd.f32 %v6778_v34, %v6642_v61  ;;  %v5437_v48 = vadd.f32 %v5436_v28, %v5435_v2  ;;  %v5537_v35 = vadd.f32 %v5536_v13, %v5535_v5  ;;  %v5540_v20 = vsel %vm1313_vm11, %v5482_v45, 0.0 }
 0x2dc   : > { %v6643_v43 = vpop.f32.mrb[30].mxu1  ;;  %v6811_v12 = vadd.f32 %v5338_v25, %v3313_v23 }
 0x2dd   : > { %v3316_v10 = vpop.f32.mrb[31].mxu1  ;;  %v6318_v37 = vpack.c.bf16 %v6810_v46, %v6810_v46  ;;  %v5539_v17 = vadd.f32 %v5538_v38, %v5537_v35  ;;  %v5439_v55 = vadd.f32 %v5438_v58, %v5437_v48  ;;  %v6812_v15 = vadd.f32 %v6779_v24, %v6643_v43 }
 0x2de   : > { %v5440_v18 = vsel %vm1313_vm11, %v6811_v12, 0.0  ;;  %v5483_v26 = vmul.f32 %v6811_v12, %v6811_v12  ;;  %v6316_v19 = vpack.c.bf16 %v6811_v12, %v6811_v12  ;;  %v6813_v42 = vadd.f32 %v5341_v63, %v3316_v10 }
 0x2df   : > { %5715 = vst.msk [vmem:[%s9302_s21 + $0x78] sm:$0xf] %vm280_vm0, %v6318_v37  ;;  %v5485_v54 = vmul.f32 %v6810_v46, %v6810_v46  ;;  %v5441_v57 = vadd.f32 %v5440_v18, %v5439_v55  ;;  %v5541_v1 = vadd.f32 %v5540_v20, %v5539_v17  ;;  %v6319_v9 = vpack.c.bf16 %v6812_v15, %v6812_v15 }
 0x2e0   : > { %v5542_v30 = vsel %vm1313_vm11, %v5483_v26, 0.0  ;;  %5713 = vst.msk [vmem:[%s9302_s21 + $0x70] sm:$0xf] %vm280_vm0, %v6316_v19  ;;  %v5442_v32 = vsel %vm1313_vm11, %v6813_v42, 0.0  ;;  %v5484_v60 = vmul.f32 %v6813_v42, %v6813_v42  ;;  %v6317_v4 = vpack.c.bf16 %v6813_v42, %v6813_v42 }
 0x2e1   : > { %v5543_v40 = vadd.f32 %v5542_v30, %v5541_v1  ;;  %v5443_v59 = vadd.f32 %v5442_v32, %v5441_v57  ;;  %v5444_v47 = vsel %vm1313_vm11, %v6810_v46, 0.0  ;;  %v5486_v49 = vmul.f32 %v6812_v15, %v6812_v15  ;;  %5716 = vst.msk [vmem:[%s9302_s21 + $0x7c] sm:$0xf] %vm280_vm0, %v6319_v9 }
 0x2e2   : > { %v5544_v52 = vsel %vm1313_vm11, %v5484_v60, 0.0  ;;  %5714 = vst.msk [vmem:[%s9302_s21 + $0x74] sm:$0xf] %vm280_vm0, %v6317_v4 }
 0x2e3   : > { %v5445_v14 = vadd.f32 %v5444_v47, %v5443_v59  ;;  %v5545_v34 = vadd.f32 %v5544_v52, %v5543_v40 }
 0x2e4   : > { %7281 = shalt.err (!%p7278_p7)
}
 0x2e5   : > { %s7282_s13 = scalar_lea.hbm %s9435_s11, 2048  ;;  %s7286_s8 = scalar_lea.hbm %s9565_s2, 4096 }
 0x2e6   : > { %p7283_p9 = scmp.ne.s32.totalorder %s9435_s11, %s7282_s13  ;;  %p7287_p5 = scmp.lt.u32.totalorder %s9435_s11, %s9565_s2 }
 0x2e7   : > { %p7288_p11 = scmp.lt.u32.totalorder %s7286_s8, %s7282_s13  ;;  %p7290_p4 = scmp.lt.u32.totalorder %s7282_s13, %s9435_s11 }
 0x2e8   : > { %p7284_p2 = pnand %p7283_p9, %p7530_p12 }
 0x2e9   : > { %p7289_p1 = por %p7288_p11, %p7287_p5 }
 0x2ea   : > { %p7285_p0 = pneg %p7284_p2 }
 0x2eb   : > { %p7291_p6 = por %p7290_p4, %p7289_p1 }
 0x2ed   : > { %p7292_p8 = pnand %p7291_p6, %p7285_p0 }
 0x2ef   : > { %7295 = shalt.err (!%p7292_p8)
}
 0x2f0   : > { %s7408_s28 = smov 64   ;;  %s7409_s29 = smov 4   ;;  %v5546_v62 = vsel %vm1313_vm11, %v5485_v54, 0.0  ;;  %v5446_v53 = vsel %vm1313_vm11, %v6812_v15, 0.0  ;;  %v5548_v3 = vsel %vm1313_vm11, %v5486_v49, 0.0 }
 0x2f1   : > { %7054 = dma.vmem_to_hbm [thread:$0]  (%p7530_p12), %s9437_s10, 2048, %s9435_s11, %s5718_s6, %s7408_s28, %s7408_s28, %s7409_s29   ;;  %v5447_v31 = vadd.f32 %v5446_v53, %v5445_v14  ;;  %v5547_v27 = vadd.f32 %v5546_v62, %v5545_v34 }
 0x2f2   : > { %s5722_s10 = sand.u32 1, %s7458_s19   ;;  %s6283_s11 = sshll.u32 %s7458_s19, 4 }
 0x2f3   : > { %v5448_v25 = vrot.slane %v5447_v31, 4  ;;  %v5549_v51 = vadd.f32 %v5548_v3, %v5547_v27  ;;  %s240_s6 = scalar_lea.vmem [#allocation9], %s7578_s14  ;;  %s246_s9 = scalar_lea.vmem [#allocation11], %s7578_s14 }
 0x2f4   : > { %s5755_s26 = sshll.u32 %s240_s6, 4  ;;  %s5768_s25 = sshll.u32 %s246_s9, 4  ;;  %s9484_s26 = int_to_ptr.vmem [resolvable:$true] %s5755_s26  ;;  %s9492_s25 = int_to_ptr.vmem [resolvable:$true] %s5768_s25 }
 0x2f5   : > { %v5449_v56 = vadd.f32 %v5448_v25, %v5447_v31  ;;  %v5550_v6 = vrot.slane %v5549_v51, 4  ;;  %s9482_s24 = scalar_lea.hbm %s9566_s3, %s6283_s11  ;;  %s9490_s8 = scalar_lea.hbm %s9567_s4, %s6283_s11 }
 0x2f6   : > { %s9494_s21 = scalar_lea.sflag [#allocation10], %s5722_s10  ;;  %s7296_s23 = scalar_lea.vmem %s9484_s26, 16 }
 0x2f7   : > { %v5450_v44 = vrot.slane %v5449_v56, 2  ;;  %v5551_v24 = vadd.f32 %v5550_v6, %v5549_v51  ;;  %p7297_p10 = scmp.ne.s32.totalorder %s9484_s26, %s7296_s23  ;;  %s7410_s28 = smov [#allocation9]  }
 0x2f8   : > { %s7300_s29 = sshll.u32 %s7410_s28, 4  ;;  %s7301_s29 = int_to_ptr.vmem [resolvable:$false] %s7300_s29 }
 0x2f9   : > { %v5451_v22 = vadd.f32 %v5450_v44, %v5449_v56  ;;  %v5552_v36 = vrot.slane %v5551_v24, 2  ;;  %p7298_p13 = pnand %p7297_p10, %p7530_p12  ;;  %s7302_s12 = scalar_lea.vmem %s7301_s29, 32 }
 0x2fa   : > { %p7303_p7 = scmp.lt.s32.totalorder %s9484_s26, %s7301_s29  ;;  %p7304_p9 = scmp.lt.s32.totalorder %s7302_s12, %s7296_s23 }
 0x2fb   : > { %v5553_v29 = vadd.f32 %v5552_v36, %v5551_v24  ;;  %v5452_v63 = vrot.slane %v5451_v22, 1  ;;  %p7299_p3 = pneg %p7298_p13 }
 0x2fc   : > { %p7305_p2 = por %p7304_p9, %p7303_p7 }
 0x2fd   : > { %v5554_v33 = vrot.slane %v5553_v29, 1  ;;  %v5453_v50 = vadd.f32 %v5452_v63, %v5451_v22 }
 0x2fe   : > { %p7306_p0 = pnand %p7305_p2, %p7299_p3 }
 0x2ff   : > { %5454 = vst.msk [vmem:[%s240_s6] sm:$0x1] %vm283_vm1, %v5453_v50  ;;  %v5555_v41 = vadd.f32 %v5554_v33, %v5553_v29 }
 0x300   : > { %7309 = shalt.err (!%p7306_p0)
}
 0x301   : > { %s7310_s10 = scalar_lea.hbm %s9482_s24, 16  ;;  %s7314_s13 = scalar_lea.hbm %s9566_s3, 32 }
 0x302   : > { %p7311_p5 = scmp.ne.s32.totalorder %s9482_s24, %s7310_s10  ;;  %p7315_p4 = scmp.lt.u32.totalorder %s9482_s24, %s9566_s3 }
 0x303   : > { %p7316_p6 = scmp.lt.u32.totalorder %s7314_s13, %s7310_s10  ;;  %p7318_p10 = scmp.lt.u32.totalorder %s7310_s10, %s9482_s24 }
 0x304   : > { %p7312_p11 = pnand %p7311_p5, %p7530_p12 }
 0x305   : > { %p7317_p8 = por %p7316_p6, %p7315_p4 }
 0x306   : > { %p7313_p1 = pneg %p7312_p11 }
 0x307   : > { %p7319_p13 = por %p7318_p10, %p7317_p8 }
 0x309   : > { %p7320_p3 = pnand %p7319_p13, %p7313_p1 }
 0x30b   : > { %7323 = shalt.err (!%p7320_p3)
}
 0x30c   : > { %7055 = dma.vmem_to_hbm [thread:$0]  (%p7530_p12), %s9484_s26, 16, %s9482_s24, %s9494_s21   ;;  %5556 = vst.msk [vmem:[%s246_s9] sm:$0x1] %vm283_vm1, %v5555_v41 }
 0x30d   : > { %s7324_s23 = scalar_lea.vmem %s9492_s25, 16  ;;  %s7411_s28 = smov [#allocation11]  }
 0x30e   : > { %p7325_p7 = scmp.ne.s32.totalorder %s9492_s25, %s7324_s23  ;;  %s7328_s29 = sshll.u32 %s7411_s28, 4  ;;  %s7329_s29 = int_to_ptr.vmem [resolvable:$false] %s7328_s29 }
 0x30f   : > { %s7330_s12 = scalar_lea.vmem %s7329_s29, 32  ;;  %p7331_p0 = scmp.lt.s32.totalorder %s9492_s25, %s7329_s29 }
 0x310   : > { %p7326_p9 = pnand %p7325_p7, %p7530_p12  ;;  %p7332_p5 = scmp.lt.s32.totalorder %s7330_s12, %s7324_s23 }
 0x312   : > { %p7327_p2 = pneg %p7326_p9  ;;  %p7333_p11 = por %p7332_p5, %p7331_p0 }
 0x314   : > { %p7334_p1 = pnand %p7333_p11, %p7327_p2 }
 0x316   : > { %7337 = shalt.err (!%p7334_p1)
}
 0x317   : > { %s7338_s14 = scalar_lea.hbm %s9490_s8, 16  ;;  %s7342_s24 = scalar_lea.hbm %s9567_s4, 32 }
 0x318   : > { %p7339_p4 = scmp.ne.s32.totalorder %s9490_s8, %s7338_s14  ;;  %p7343_p10 = scmp.lt.u32.totalorder %s9490_s8, %s9567_s4 }
 0x319   : > { %p7344_p13 = scmp.lt.u32.totalorder %s7342_s24, %s7338_s14  ;;  %p7346_p7 = scmp.lt.u32.totalorder %s7338_s14, %s9490_s8 }
 0x31a   : > { %p7340_p6 = pnand %p7339_p4, %p7530_p12 }
 0x31b   : > { %p7345_p3 = por %p7344_p13, %p7343_p10 }
 0x31c   : > { %p7341_p8 = pneg %p7340_p6 }
 0x31d   : > { %p7347_p9 = por %p7346_p7, %p7345_p3 }
 0x31f   : > { %p7348_p2 = pnand %p7347_p9, %p7341_p8 }
 0x321   : > { %7351 = shalt.err (!%p7348_p2)
}
 0x322   : > { %7056 = dma.vmem_to_hbm [thread:$0]  (%p7530_p12), %s9492_s25, 16, %s9490_s8, %s9494_s21  }
 0x323 PF: > { %s5780_s6 = sand.u32 1, %s7386_s15   ;;  %p9684_p0 = scmp.ne.s32.totalorder %s9593_s22, 0 }
 0x324   : > { %p9685_p5 = scmp.ge.s32.totalorder %s7398_s18, 2  ;;  %s5781_s13 = scalar_lea.sflag [#allocation5], %s5780_s6 }
 0x326   : > { %p7069_p11 = pnand %p9685_p5, %p9684_p0 }
 0x328   : > { %7377 = dma.done.wait (!%p7069_p11), %s5781_s13, 2048  }
 0x329   : > { %7379 = vsyncadd (!%p7069_p11), %s5781_s13, 4294965248  ;;  %s5789_s19 = sand.u32 1, %s5901_s20  }
 0x32a   : > { %s5790_s7 = scalar_lea.sflag [#allocation10], %s5789_s19 }
 0x32b   : > { %7381 = dma.done.wait (!%p7069_p11), %s5790_s7, 32  }
 0x32c   : > { %7383 = vsyncadd (!%p7069_p11), %s5790_s7, 4294967264  ;;  %p22_p12 = scmp.ge.s32.totalorder %s7495_s27, 4   ;;  %s9686_s15 = smov %s7390_s16 }
 0x32d   : > { %s9687_s16 = smov %s7394_s17  ;;  %s9688_s17 = smov %s7526_s30 }
 0x32e   : > { %s9689_s18 = smov %s7495_s27  ;;  %24 = sbr.rel (!%p22_p12) target bundleno = 8 (0x8), region = 120 }
 0x335   :  { %5802 = vsyncpa [#allocation4], 1 }
 0x336   :  { %5804 = vsyncpa [#allocation4 + $0x1], 1 }
 0x337   :  { %5805 = vsyncpa [#allocation7], 1 }
 0x338   :  { %5806 = vsyncpa [#allocation5], 1 }
 0x339   :  { %5808 = vsyncpa [#allocation5 + $0x1], 1 }
 0x33a   :  { %5809 = vsyncpa [#allocation10], 1 }
 0x33b   :  { %5811 = vsyncpa [#allocation10 + $0x1], 1 }

// kernel: basic_block_forward.4
= control target key start
LH: loop header
LB: loop body
LE: loop exit
PB: predicated region body
PF: predicated region fallthrough
CT: control target
= control target key end

     0   :  { %12 = vsyncpa [#allocation4], 0  ;;  %s10328_s0 = inlined_call_operand.hbm [shape: bf16[2,16,16,4], index: 0, kind: input, shape index: {}]   ;;  %s10329_s1 = inlined_call_operand.hbm [shape: f32[1,4], index: 1, kind: input, shape index: {}]   ;;  %s10330_s2 = inlined_call_operand.hbm [shape: f32[1,4], index: 2, kind: input, shape index: {}]   ;;  %s10331_s3 = inlined_call_operand.hbm [shape: bf16[9,4,4], index: 3, kind: input, shape index: {}]   ;;  %s10332_s4 = inlined_call_operand.hbm [shape: bf16[2,16,16,4], index: 4, kind: output, shape index: {0}]   ;;  %s10333_s5 = inlined_call_operand.hbm [shape: f32[2,1,4], index: 5, kind: output, shape index: {1}]   ;;  %s10334_s6 = inlined_call_operand.hbm [shape: f32[2,1,4], index: 6, kind: output, shape index: {2}]  }
   0x1   :  { %14 = vsyncpa [#allocation4 + $0x1], 0 }
   0x2   :  { %15 = vsyncpa [#allocation7], 0 }
   0x3   :  { %16 = vsyncpa [#allocation10], 0 }
   0x4   :  { %17 = vsyncpa [#allocation5], 0 }
   0x5   :  { %19 = vsyncpa [#allocation5 + $0x1], 0 }
   0x6   :  { %20 = vsyncpa [#allocation13], 0 }
   0x7   :  { %22 = vsyncpa [#allocation13 + $0x1], 0  ;;  %s8021_s21 = smov 0   ;;  %s8023_s22 = smov 0  }
   0x8   :  { %s8025_s23 = smov 0   ;;  %s8027_s24 = smov 0  }
   0x9 LB: > { %s8042_s25 = sadd.s32 4294967295, %s7970_s24   ;;  %s10352_s26 = sadd.s32 4294967294, %s7970_s24   ;;  %s7970_s24 = sphi %s8027_s24, %s10442_s24   ;;  %s7966_s23 = sphi %s8025_s23, %s10441_s23   ;;  %s7962_s22 = sphi %s8023_s22, %s10440_s22   ;;  %s7958_s21 = sphi %s8021_s21, %s10439_s21  }
   0xa   : > { %p48_p0 = scmp.ne.s32.totalorder %s7962_s22, %s7958_s21  ;;  %p10335_p1 = scmp.eq.s32.totalorder %s8042_s25, 0 }
   0xb   : > { %p141_p3 = scmp.eq.s32.totalorder %s10352_s26, 1  ;;  %p6238_p5 = scmp.ge.s32.totalorder %s7970_s24, 1 }
   0xc   : > { %p8053_p4 = por %p10335_p1, %p48_p0  ;;  %p200_p7 = scmp.lt.s32.totalorder %s7970_s24, 3 }
   0xd   : > { %p8058_p6 = por %p141_p3, %p48_p0  ;;  %s7972_s30 = smov [#allocation6]  }
   0xe   : > { %s10353_s27 = scalar_select %p8053_p4, 1, 0 }
   0xf   : > { %s10354_s28 = scalar_select %p8058_p6, 1, 0 }
  0x10   : > { %p8063_p8 = pnand %p6238_p5, %p200_p7  ;;  %s213_s7 = sshll.u32 %s7972_s30, 4  ;;  %s214_s7 = int_to_ptr.vmem [resolvable:$true] %s213_s7 }
  0x11   : > { %s7973_s8 = smov [#allocation8]   ;;  %s7974_s11 = smov [#allocation9]  }
  0x12   : > { %s10355_s29 = scalar_select %p8063_p8, 1, 0 }
  0x13   : > { %p7553_p10 = pneg %p8063_p8  ;;  %s224_s9 = sshll.u32 %s7973_s8, 4  ;;  %s8076_s9 = int_to_ptr.vmem [resolvable:$true] %s224_s9 }
  0x14   : > { %s234_s12 = sshll.u32 %s7974_s11, 4  ;;  %s7722_s15 = scalar_lea.hbm %s10329_s1, 16  ;;  %s8078_s12 = int_to_ptr.vmem [resolvable:$true] %s234_s12 }
  0x15   : > { %p8072_p11 = pnand %p7553_p10, %p10335_p1  ;;  %p7723_p12 = scmp.ne.s32.totalorder %s10329_s1, %s7722_s15 }
  0x16   : > { %p7729_p5 = scmp.lt.u32.totalorder %s7722_s15, %s10329_s1 }
  0x17   : > { %p8088_p13 = pneg %p8072_p11 }
  0x19   : > { %p7725_p0 = pnand %p8088_p13, %p7723_p12 }
  0x1b   : > { %p7726_p3 = pneg %p7725_p0 }
  0x1d   : > { %p7731_p7 = pnand %p7729_p5, %p7726_p3 }
  0x1f   : > { %7734 = shalt.err (!%p7731_p7)
}
  0x20   : > { %s7735_s30 = scalar_lea.vmem %s214_s7, 16  ;;  %s7742_s8 = scalar_lea.vmem %s214_s7, 32 }
  0x21   : > { %p7736_p10 = scmp.ne.s32.totalorder %s214_s7, %s7735_s30  ;;  %p7743_p2 = scmp.lt.s32.totalorder %s214_s7, %s214_s7 }
  0x22   : > { %p7744_p6 = scmp.lt.s32.totalorder %s7742_s8, %s7735_s30 }
  0x23   : > { %p7738_p9 = pnand %p7736_p10, %p8088_p13 }
  0x24   : > { %p7745_p4 = por %p7744_p6, %p7743_p2 }
  0x25   : > { %p7739_p1 = pneg %p7738_p9 }
  0x27   : > { %p7746_p8 = pnand %p7745_p4, %p7739_p1 }
  0x29   : > { %7749 = shalt.err (!%p7746_p8)
}
  0x2a   : > { %7556 = dma.hbm_to_vmem [thread:$0]  (!%p8072_p11), %s10329_s1, 16, %s214_s7, [#allocation7]  }
  0x2b   : > { %s7750_s16 = scalar_lea.hbm %s10330_s2, 16 }
  0x2c   : > { %p7751_p9 = scmp.ne.s32.totalorder %s10330_s2, %s7750_s16  ;;  %p7757_p1 = scmp.lt.u32.totalorder %s7750_s16, %s10330_s2 }
  0x2e   : > { %p7753_p12 = pnand %p7751_p9, %p8088_p13 }
  0x30   : > { %p7754_p2 = pneg %p7753_p12 }
  0x32   : > { %p7759_p4 = pnand %p7757_p1, %p7754_p2 }
  0x34   : > { %7762 = shalt.err (!%p7759_p4)
}
  0x35   : > { %s7763_s7 = scalar_lea.vmem %s8076_s9, 16  ;;  %s7770_s8 = scalar_lea.vmem %s8076_s9, 32 }
  0x36   : > { %p7764_p6 = scmp.ne.s32.totalorder %s8076_s9, %s7763_s7  ;;  %p7771_p3 = scmp.lt.s32.totalorder %s8076_s9, %s8076_s9 }
  0x37   : > { %p7772_p5 = scmp.lt.s32.totalorder %s7770_s8, %s7763_s7 }
  0x38   : > { %p7766_p8 = pnand %p7764_p6, %p8088_p13 }
  0x39   : > { %p7773_p7 = por %p7772_p5, %p7771_p3 }
  0x3a   : > { %p7767_p0 = pneg %p7766_p8 }
  0x3c   : > { %p7774_p10 = pnand %p7773_p7, %p7767_p0 }
  0x3e   : > { %7777 = shalt.err (!%p7774_p10)
}
  0x3f   : > { %7559 = dma.hbm_to_vmem [thread:$0]  (!%p8072_p11), %s10330_s2, 16, %s8076_s9, [#allocation7]  }
  0x40   : > { %s7778_s16 = scalar_lea.hbm %s10331_s3, 288 }
  0x41   : > { %p7779_p9 = scmp.ne.s32.totalorder %s10331_s3, %s7778_s16  ;;  %p7785_p1 = scmp.lt.u32.totalorder %s7778_s16, %s10331_s3 }
  0x43   : > { %p7781_p12 = pnand %p7779_p9, %p8088_p13 }
  0x45   : > { %p7782_p2 = pneg %p7781_p12 }
  0x47   : > { %p7787_p4 = pnand %p7785_p1, %p7782_p2 }
  0x49   : > { %7790 = shalt.err (!%p7787_p4)
}
  0x4a   : > { %s7791_s9 = scalar_lea.vmem %s8078_s12, 288  ;;  %p7799_p3 = scmp.lt.s32.totalorder %s8078_s12, %s8078_s12 }
  0x4b   : > { %p7792_p6 = scmp.ne.s32.totalorder %s8078_s12, %s7791_s9  ;;  %p7800_p5 = scmp.lt.s32.totalorder %s7791_s9, %s7791_s9 }
  0x4d   : > { %p7794_p8 = pnand %p7792_p6, %p8088_p13  ;;  %p7801_p7 = por %p7800_p5, %p7799_p3 }
  0x4f   : > { %p7795_p0 = pneg %p7794_p8 }
  0x51   : > { %p7802_p10 = pnand %p7801_p7, %p7795_p0 }
  0x53   : > { %7805 = shalt.err (!%p7802_p10)
}
  0x54   : > { %s7975_s7 = smov 32   ;;  %s7976_s18 = smov 2  }
  0x55   : > { %7562 = dma.hbm_to_vmem [thread:$0]  (!%p8072_p11), %s10331_s3, 288, %s8078_s12, [#allocation10], %s7975_s7, %s7975_s7, %s7976_s18  }
  0x56   : > { %s8152_s13 = sadd.s32 1, %s7970_s24   ;;  %s35_s15 = sadd.s32 1, %s7966_s23 }
  0x57   : > { %s32_s14 = ssub.s32 %s7970_s24, %s8152_s13  ;;  %p42_p9 = scmp.ne.s32.totalorder %s7966_s23, %s7962_s22 }
  0x58   : > { %p33_p13 = scmp.eq.s32.totalorder %s32_s14, 0  ;;  %p43_p12 = scmp.eq.s32.totalorder %s7970_s24, 0 }
  0x59   : > { %p7580_p2 = scmp.lt.s32.totalorder %s7970_s24, 2  ;;  %p10358_p4 = scmp.eq.s32.totalorder %s8042_s25, 1 }
  0x5a   : > { %s8162_s16 = scalar_select %p33_p13, %s7966_s23, %s35_s15  }
  0x5b   : > { %p44_p1 = por %p43_p12, %p42_p9  ;;  %p8166_p6 = por %p10358_p4, %p42_p9 }
  0x5c   : > { %s248_s10 = sand.u32 1, %s7966_s23   ;;  %s6661_s19 = sshll.u32 %s7970_s24, 11 }
  0x5d   : > { %s6243_s12 = sshll.u32 %s248_s10, 7  ;;  %s8175_s9 = scalar_lea.hbm %s10328_s0, %s6661_s19 }
  0x5e   : > { %s252_s7 = scalar_lea.vmem [#allocation3], %s6243_s12  ;;  %p8177_p11 = pnand %p7580_p2, %p44_p1 }
  0x5f   : > { %s259_s18 = sshll.u32 %s252_s7, 4  ;;  %s8183_s11 = scalar_lea.sflag [#allocation4], %s248_s10  ;;  %s8181_s18 = int_to_ptr.vmem [resolvable:$true] %s259_s18 }
  0x60   : > { %s7806_s14 = scalar_lea.hbm %s8175_s9, 2048  ;;  %p7808_p0 = pneg %p8177_p11 }
  0x61   : > { %p7807_p8 = scmp.ne.s32.totalorder %s8175_s9, %s7806_s14  ;;  %s7811_s12 = scalar_lea.hbm %s10328_s0, 4096 }
  0x62   : > { %p7812_p7 = scmp.lt.u32.totalorder %s8175_s9, %s10328_s0  ;;  %p7813_p10 = scmp.lt.u32.totalorder %s7811_s12, %s7806_s14 }
  0x63   : > { %p7809_p3 = pnand %p7808_p0, %p7807_p8  ;;  %p7815_p9 = scmp.lt.u32.totalorder %s7806_s14, %s8175_s9 }
  0x64   : > { %p7814_p13 = por %p7813_p10, %p7812_p7 }
  0x65   : > { %p7810_p5 = pneg %p7809_p3 }
  0x66   : > { %p7816_p12 = por %p7815_p9, %p7814_p13 }
  0x68   : > { %p7817_p2 = pnand %p7816_p12, %p7810_p5 }
  0x6a   : > { %7820 = shalt.err (!%p7817_p2)
}
  0x6b   : > { %s7821_s10 = scalar_lea.vmem %s8181_s18, 2048  ;;  %s7977_s7 = smov [#allocation3]  }
  0x6c   : > { %p7822_p1 = scmp.ne.s32.totalorder %s8181_s18, %s7821_s10  ;;  %s7826_s15 = sshll.u32 %s7977_s7, 4  ;;  %s7827_s15 = int_to_ptr.vmem [resolvable:$false] %s7826_s15 }
  0x6d   : > { %s7828_s19 = scalar_lea.vmem %s7827_s15, 4096  ;;  %p7829_p3 = scmp.lt.s32.totalorder %s8181_s18, %s7827_s15 }
  0x6e   : > { %p7824_p4 = pnand %p7822_p1, %p7808_p0  ;;  %p7830_p7 = scmp.lt.s32.totalorder %s7828_s19, %s7821_s10 }
  0x70   : > { %p7825_p8 = pneg %p7824_p4  ;;  %p7831_p10 = por %p7830_p7, %p7829_p3 }
  0x72   : > { %p7832_p13 = pnand %p7831_p10, %p7825_p8 }
  0x74   : > { %7835 = shalt.err (!%p7832_p13)
}
  0x75   : > { %s7978_s14 = smov 64   ;;  %s7979_s12 = smov 4  }
  0x76   : > { %7566 = dma.hbm_to_vmem [thread:$0]  (!%p8177_p11), %s8175_s9, 2048, %s8181_s18, %s8183_s11, %s7978_s14, %s7978_s14, %s7979_s12  }
  0x77   : > { %p10361_p0 = scmp.ne.s32.totalorder %s10355_s29, 0 }
  0x79   : > { %271 = sbr.rel (%p10361_p0) target bundleno = 882 (0x372), region = 36 }
  0x80   : > { %s8214_s20 = sand.u32 1, %s7962_s22   ;;  %p10362_p5 = scmp.ne.s32.totalorder %s10353_s27, 0 }
  0x81   : > { %s6247_s30 = sshll.u32 %s8214_s20, 7  ;;  %s274_s10 = scalar_lea.sflag [#allocation4], %s8214_s20 }
  0x82   : > { %s8220_s7 = scalar_lea.vmem [#allocation3], %s6247_s30 }
  0x83   : > { %7937 = dma.done.wait (%p10362_p5), %s274_s10, 2048  }
  0x84   : > { %7939 = vsyncadd (%p10362_p5), %s274_s10, 4294965248  ;;  %p10363_p11 = scmp.eq.s32.totalorder %s8042_s25, 0 }
  0x86   : > { %7941 = dma.done.wait (%p10363_p11), [#allocation7], 32   ;;  %p10364_p9 = pmov %p10363_p11 }
  0x88   : > { %7943 = vsyncadd (%p10364_p9), [#allocation7], 4294967264  ;;  %p10365_p12 = pmov %p10364_p9 }
  0x89   : > { %p10366_p2 = pmov %p10364_p9 }
  0x8a   : > { %7945 = dma.done.wait (%p10365_p12), [#allocation10], 288  }
  0x8b   : > { %7947 = vsyncadd (%p10366_p2), [#allocation10], 4294967008  ;;  %vm517_vm0 = vcmask 27648   ;;  %vm520_vm1 = vcmask 24576   ;;  %v7980_v0 = vmov 0   ;;  %vm1679_vm2 = vcmask 1041408  }
  0x8c   : > { %518 = vst.msk [vmem:[#allocation2] sm:$0xf] %vm517_vm0, %v7980_v0  ;;  %519 = vst.msk [vmem:[#allocation2 + $0x4] sm:$0xf] %vm517_vm0, %v7980_v0  ;;  %vm528_vm3 = vsmask.f32 256 }
  0x8d   : > { %521 = vst.msk [vmem:[#allocation2 + $0x8] sm:$0x1] %vm520_vm1, %v7980_v0  ;;  %525 = vst.msk [vmem:[#allocation2 + $0xd4] sm:$0x1] %vm520_vm1, %v7980_v0  ;;  %vm578_vm4 = vsmask.f32 7938 }
  0x8e   : > { %523 = vst.msk [vmem:[#allocation2 + $0xcc] sm:$0xf] %vm517_vm0, %v7980_v0  ;;  %524 = vst.msk [vmem:[#allocation2 + $0xd0] sm:$0xf] %vm517_vm0, %v7980_v0  ;;  %vm1193_vm5 = vsmask.f32 3328 }
  0x8f   : > { %vm1194_vm6 = vsmask.f32 7440  ;;  %v1581_v1 = vld [vmem:[#allocation9 + $0x2] sm:$0x3]  ;;  %v3384_v2 = vld [vmem:[#allocation9 + $0x8] sm:$0x3]  ;;  %vm8250_vm7 = vmand %vm520_vm1, %vm528_vm3 }
  0x90   : > { %v6728_v3 = vld [vmem:[%s8220_s7] sm:$0xff]   ;;  %7523 = vmatprep.subr.msk.bf16.mxu1 %vm1679_vm2, %v1581_v1  ;;  %7527 = vmatprep.subr.msk.bf16.mxu0 %vm1679_vm2, %v3384_v2  ;;  %v1681_v4 = vsel %vm1679_vm2, %v1581_v1, 0  ;;  %v8245_v5 = vsel %vm1679_vm2, %v3384_v2, 0  ;;  %vm8256_vm8 = vmand %vm520_vm1, %vm578_vm4  ;;  %v530_v24 = vld [vmem:[#allocation2 + $0xc] sm:$0x1]  ;;  %vm1630_vm9 = vcmask 31744  }
  0x91   : > { %10367 = vst [vmem:[#allocation20_spill] sm:$0xff] %v8245_v5  ;;  %v6729_v8 = vunpack.c.l.bf16 %v6728_v3  ;;  %v6730_v9 = vunpack.c.h.bf16 %v6728_v3  ;;  %6960 = vmatpush3.bf16.msra.mxu1 %v1681_v4  ;;  %7096 = vmatpush3.bf16.msra.mxu0 %v8245_v5  ;;  %v8260_v18 = vld [vmem:[#allocation6] ss:$0 sm:$0xff]  ;;  %v8262_v19 = vld [vmem:[#allocation8] ss:$0 sm:$0xff]  ;;  %v531_v27 = vsel %vm8250_vm7, 0, %v530_v24  ;;  %vm8272_vm10 = vmor %vm1193_vm5, %vm1194_vm6 }
  0x92   : > { %v580_v28 = vld [vmem:[#allocation2 + $0x14] sm:$0x1]  ;;  %v8268_v29 = vld [vmem:[#allocation9] sm:$0x3]  ;;  %532 = vst [vmem:[#allocation2 + $0xc] sm:$0x1] %v531_v27  ;;  %vm8311_vm12 = vmand %vm517_vm0, %vm578_vm4 }
  0x93   : > { %v1144_v6 = vld [vmem:[#allocation2] sm:$0xf]  ;;  %v1145_v7 = vld [vmem:[#allocation2 + $0x4] sm:$0xf]  ;;  %v398_v25 = vmul.f32 %v6729_v8, %v8260_v18  ;;  %v399_v26 = vmul.f32 %v6730_v9, %v8260_v18  ;;  %v581_v34 = vsel %vm8256_vm8, 0, %v580_v28  ;;  %7524 = vmatprep.subr.msk.bf16.mxu1 %vm1679_vm2, %v8268_v29  ;;  %v6792_v43 = vld [vmem:[%s8220_s7 + $0x10] sm:$0xff]  }
  0x94   : > { %v1177_v11 = vld [vmem:[#allocation2 + $0x8] sm:$0x1]  ;;  %v1197_v12 = vshrl.u32 %v1144_v6, 16  ;;  %v1200_v13 = vshll.u32 %v1144_v6, 16  ;;  %v1206_v14 = vshll.u32 %v1145_v7, 16  ;;  %v1210_v15 = vshrl.u32 %v1145_v7, 16 }
  0x95   : > { %v1216_v17 = vshll.u32 %v1177_v11, 16  ;;  %v8280_v35 = vld [vmem:[#allocation9 + $0xa] sm:$0x3]  ;;  %v437_v37 = vadd.f32 %v8262_v19, %v398_v25  ;;  %v438_v38 = vadd.f32 %v8262_v19, %v399_v26  ;;  %582 = vst [vmem:[#allocation2 + $0x14] sm:$0x1] %v581_v34  ;;  %v6737_v55 = vunpack.c.l.bf16 %v6792_v43  ;;  %v8304_v1 = vld [vmem:[%s8220_s7 + $0x18] sm:$0xff]  }
  0x96   : > { %v1199_v20 = vrot.slane %v1197_v12, 4  ;;  %v1202_v21 = vrot.slane %v1200_v13, 5  ;;  %v1208_v22 = vrot.slane %v1206_v14, 5  ;;  %v1212_v23 = vrot.slane %v1210_v15, 4  ;;  %v6791_v36 = vld [vmem:[%s8220_s7 + $0x8] sm:$0xff]   ;;  %7529 = vmatprep.subr.msk.bf16.mxu0 %vm1679_vm2, %v8280_v35  ;;  %s10067_s27 = scalar_lea.vmem [#allocation11], %s6247_s30 }
  0x97   : > { %v1218_v33 = vrot.slane %v1216_v17, 5  ;;  %v6733_v39 = vunpack.c.l.bf16 %v6791_v36  ;;  %v6734_v40 = vunpack.c.h.bf16 %v6791_v36  ;;  %v533_v41 = vld [vmem:[#allocation2 + $0x18] sm:$0x1]  ;;  %v583_v42 = vld [vmem:[#allocation2 + $0x20] sm:$0x1]  ;;  %v469_v48 = vmax.f32 %v437_v37, 0.0 }
  0x98   : > { %v1203_v31 = vor.u32 %v1202_v21, %v1199_v20  ;;  %v1213_v32 = vor.u32 %v1212_v23, %v1208_v22  ;;  %v534_v46 = vsel %vm8250_vm7, 0, %v533_v41  ;;  %v584_v47 = vsel %vm8256_vm8, 0, %v583_v42  ;;  %v536_v52 = vld [vmem:[#allocation2 + $0x24] sm:$0x1]  ;;  %v586_v0 = vld [vmem:[#allocation2 + $0x2c] sm:$0x1] }
  0x99   : > { %v470_v49 = vmax.f32 %v438_v38, 0.0  ;;  %v400_v50 = vmul.f32 %v6733_v39, %v8260_v18  ;;  %v401_v51 = vmul.f32 %v6734_v40, %v8260_v18  ;;  %535 = vst [vmem:[#allocation2 + $0x18] sm:$0x1] %v534_v46  ;;  %585 = vst [vmem:[#allocation2 + $0x20] sm:$0x1] %v584_v47  ;;  %v6662_v57 = vpack.c.bf16 %v469_v48, %v469_v48  ;;  %s6726_s29 = sshll.u32 %s8042_s25, 11 }
  0x9a   : > { %v1204_v44 = vrot.slane %v1203_v31, 4  ;;  %v1214_v45 = vrot.slane %v1213_v32, 4  ;;  %vm708_vm11 = vsmask.f32 4368  ;;  %v6738_v61 = vunpack.c.h.bf16 %v6792_v43  ;;  %v1032_v21 = vld [vmem:[#allocation2 + $0xc] sm:$0xf]  ;;  %s10200_s11 = scalar_lea.hbm %s10332_s4, %s6726_s29 }
  0x9b   : > { %v6663_v58 = vpack.c.bf16 %v470_v49, %v470_v49  ;;  %v439_v59 = vadd.f32 %v8262_v19, %v400_v50  ;;  %v440_v60 = vadd.f32 %v8262_v19, %v401_v51  ;;  %v402_v62 = vmul.f32 %v6737_v55, %v8260_v18  ;;  %vm8320_vm13 = vmor %vm528_vm3, %vm708_vm11  ;;  %v589_v39 = vld [vmem:[#allocation2 + $0x38] sm:$0x1]  ;;  %s6056_s9 = sshll.u32 %s10067_s27, 4  ;;  %s6035_s15 = scalar_lea.sflag [#allocation5], %s8214_s20  ;;  %s10202_s9 = int_to_ptr.vmem [resolvable:$true] %s6056_s9 }
  0x9c   : > { %v1209_v53 = vsel %vm8272_vm10, %v1204_v44, %v1208_v22  ;;  %v1219_v54 = vsel %vm8272_vm10, %v1214_v45, %v1218_v33  ;;  %v537_v63 = vsel %vm8250_vm7, 0, %v536_v52  ;;  %v711_v2 = vshrl.u32 %v6662_v57, 16  ;;  %v1036_v22 = vld [vmem:[#allocation2 + $0x14] sm:$0x1]  ;;  %v539_v33 = vld [vmem:[#allocation2 + $0x30] sm:$0x1] }
  0x9d   : > { %v6286_v56 = vcombine.low %v1209_v53, %v1219_v54  ;;  %v714_v3 = vshll.u32 %v6662_v57, 16  ;;  %v719_v4 = vshrl.u32 %v6663_v58, 16  ;;  %v722_v6 = vshll.u32 %v6663_v58, 16  ;;  %538 = vst [vmem:[#allocation2 + $0x24] sm:$0x1] %v537_v63  ;;  %v8339_v58 = vld [vmem:[%s8220_s7 + $0x20] sm:$0xff]  }
  0x9e   : > { %v471_v7 = vmax.f32 %v439_v59, 0.0  ;;  %v472_v8 = vmax.f32 %v440_v60, 0.0  ;;  %v403_v9 = vmul.f32 %v6738_v61, %v8260_v18  ;;  %v441_v11 = vadd.f32 %v8262_v19, %v402_v62  ;;  %v542_v59 = vld [vmem:[#allocation2 + $0x3c] sm:$0x1]  ;;  %s7836_s19 = scalar_lea.vmem %s10202_s9, 2048  ;;  %s7981_s14 = smov [#allocation11]  }
  0x9f   : > { %6961 = vmatprep.mubr.msk.bf16.mxu1 %vm1630_vm9, %v6286_v56  ;;  %v713_v13 = vrot.slane %v711_v2, 7  ;;  %v721_v14 = vrot.slane %v719_v4, 7  ;;  %v587_v15 = vsel %vm8256_vm8, 0, %v586_v0  ;;  %v6741_v17 = vunpack.c.l.bf16 %v8304_v1  ;;  %v592_v0 = vld [vmem:[#allocation2 + $0x44] sm:$0x1]  ;;  %p7837_p1 = scmp.ne.s32.totalorder %s10202_s9, %s7836_s19  ;;  %s7840_s12 = sshll.u32 %s7981_s14, 4  ;;  %s7841_s12 = int_to_ptr.vmem [resolvable:$false] %s7840_s12 }
  0xa0   : > { %v6664_v23 = vpack.c.bf16 %v471_v7, %v471_v7  ;;  %v6665_v24 = vpack.c.bf16 %v472_v8, %v472_v8  ;;  %v442_v25 = vadd.f32 %v8262_v19, %v403_v9  ;;  %v473_v26 = vmax.f32 %v441_v11, 0.0  ;;  %588 = vst [vmem:[#allocation2 + $0x2c] sm:$0x1] %v587_v15  ;;  %v1039_v46 = vld [vmem:[#allocation2 + $0x18] sm:$0xf]  ;;  %v8370_v15 = vld [vmem:[%s8220_s7 + $0x28] sm:$0xff]   ;;  %p7843_p3 = scmp.lt.s32.totalorder %s10202_s9, %s7841_s12 }
  0xa1   : > { %v716_v27 = vor.u32 %v714_v3, %v713_v13  ;;  %v717_v28 = vrot.slane %v713_v13, 4  ;;  %v724_v31 = vor.u32 %v722_v6, %v721_v14  ;;  %v726_v32 = vrot.slane %v721_v14, 4  ;;  %v1043_v47 = vld [vmem:[#allocation2 + $0x20] sm:$0x1]  ;;  %p7838_p4 = pnand %p7837_p1, %p8166_p6  ;;  %s7842_s30 = scalar_lea.vmem %s7841_s12, 4096 }
  0xa2   : > { %v728_v34 = vshrl.u32 %v6664_v23, 16  ;;  %v731_v36 = vshll.u32 %v6664_v23, 16  ;;  %v736_v37 = vshrl.u32 %v6665_v24, 16  ;;  %v739_v38 = vshll.u32 %v6665_v24, 16  ;;  %p7844_p7 = scmp.lt.s32.totalorder %s7842_s30, %s7836_s19 }
  0xa3   : > { %v725_v40 = vsel %vm8320_vm13, %v717_v28, %v724_v31  ;;  %v1033_v41 = vsel %vm8311_vm12, %v716_v27, %v1032_v21  ;;  %v1037_v42 = vsel %vm8250_vm7, %v726_v32, %v1036_v22  ;;  %v474_v43 = vmax.f32 %v442_v25, 0.0  ;;  %p7839_p8 = pneg %p7838_p4 }
  0xa4   : > { %1034 = vst [vmem:[#allocation2 + $0xc] sm:$0xf] %v1033_v41  ;;  %1035 = vst.msk [vmem:[#allocation2 + $0x10] sm:$0xf] %vm517_vm0, %v725_v40  ;;  %v730_v44 = vrot.slane %v728_v34, 7  ;;  %v738_v45 = vrot.slane %v736_v37, 7  ;;  %v6666_v48 = vpack.c.bf16 %v473_v26, %v473_v26  ;;  %v6742_v49 = vunpack.c.h.bf16 %v8304_v1  ;;  %p7845_p10 = por %p7844_p7, %p7843_p3 }
  0xa5   : > { %1038 = vst [vmem:[#allocation2 + $0x14] sm:$0x1] %v1037_v42  ;;  %v6667_v50 = vpack.c.bf16 %v474_v43, %v474_v43  ;;  %v404_v51 = vmul.f32 %v6741_v17, %v8260_v18  ;;  %v540_v52 = vsel %vm8250_vm7, 0, %v539_v33  ;;  %v590_v53 = vsel %vm8256_vm8, 0, %v589_v39 }
  0xa6   : > { %v733_v54 = vor.u32 %v731_v36, %v730_v44  ;;  %v734_v55 = vrot.slane %v730_v44, 4  ;;  %v741_v56 = vor.u32 %v739_v38, %v738_v45  ;;  %v743_v57 = vrot.slane %v738_v45, 4  ;;  %541 = vst [vmem:[#allocation2 + $0x30] sm:$0x1] %v540_v52  ;;  %591 = vst [vmem:[#allocation2 + $0x38] sm:$0x1] %v590_v53  ;;  %p7846_p13 = pnand %p7845_p10, %p7839_p8 }
  0xa7   : > { %v745_v60 = vshrl.u32 %v6666_v48, 16  ;;  %v748_v61 = vshll.u32 %v6666_v48, 16  ;;  %v753_v62 = vshrl.u32 %v6667_v50, 16  ;;  %v756_v63 = vshll.u32 %v6667_v50, 16 }
  0xa8   : > { %v742_v1 = vsel %vm8320_vm13, %v734_v55, %v741_v56  ;;  %v1040_v2 = vsel %vm8311_vm12, %v733_v54, %v1039_v46  ;;  %v1044_v3 = vsel %vm8250_vm7, %v743_v57, %v1043_v47  ;;  %v405_v4 = vmul.f32 %v6742_v49, %v8260_v18 }
  0xa9   : > { %v8350_v6 = vsel %vm1679_vm2, %v8268_v29, 0  ;;  %1041 = vst [vmem:[#allocation2 + $0x18] sm:$0xf] %v1040_v2  ;;  %1042 = vst.msk [vmem:[#allocation2 + $0x1c] sm:$0xf] %vm517_vm0, %v742_v1  ;;  %v8353_v7 = vrot.slane %v745_v60, 7  ;;  %v6745_v9 = vunpack.c.l.bf16 %v8339_v58  ;;  %v8363_v13 = vadd.f32 %v8262_v19, %v404_v51 }
  0xaa   : > { %1045 = vst [vmem:[#allocation2 + $0x20] sm:$0x1] %v1044_v3  ;;  %v8355_v8 = vrot.slane %v753_v62, 7  ;;  %v8360_v11 = vsel %vm1679_vm2, %v8280_v35, 0  ;;  %v543_v29 = vsel %vm8250_vm7, 0, %v542_v59  ;;  %v593_v14 = vsel %vm8256_vm8, 0, %v592_v0 }
  0xab   : > { %v1146_v17 = vld [vmem:[#allocation2 + $0xc] sm:$0xf]  ;;  %v1147_v21 = vld [vmem:[#allocation2 + $0x10] sm:$0xf]  ;;  %v8373_v23 = vor.u32 %v748_v61, %v8353_v7  ;;  %v8379_v24 = vadd.f32 %v8262_v19, %v405_v4  ;;  %v6746_v25 = vunpack.c.h.bf16 %v8339_v58  ;;  %544 = vst [vmem:[#allocation2 + $0x3c] sm:$0x1] %v543_v29  ;;  %v8385_v37 = vmul.f32 %v6745_v9, %v8260_v18 }
  0xac   : > { %v1178_v22 = vld [vmem:[#allocation2 + $0x14] sm:$0x1]  ;;  %v8376_v35 = vor.u32 %v756_v63, %v8355_v8  ;;  %594 = vst [vmem:[#allocation2 + $0x44] sm:$0x1] %v593_v14  ;;  %v1221_v26 = vshrl.u32 %v1146_v17, 16  ;;  %v1224_v27 = vshll.u32 %v1146_v17, 16  ;;  %v6749_v38 = vunpack.c.l.bf16 %v8370_v15 }
  0xad   : > { %v1230_v28 = vshll.u32 %v1147_v21, 16  ;;  %v1234_v31 = vshrl.u32 %v1147_v21, 16  ;;  %v2951_v32 = vld [vmem:[#allocation2 + $0xc] sm:$0xf]  ;;  %v1240_v33 = vshll.u32 %v1178_v22, 16  ;;  %vm2184_vm14 = vcmask 1042432  }
  0xae   : > { %v8382_v34 = vld [vmem:[#allocation2 + $0x10] sm:$0xf]  ;;  %v3000_v36 = vshrl.u32 %v2951_v32, 16  ;;  %v1223_v39 = vrot.slane %v1221_v26, 4  ;;  %v1226_v40 = vrot.slane %v1224_v27, 5  ;;  %v3003_v46 = vshll.u32 %v2951_v32, 16 }
  0xaf   : > { %v1232_v41 = vrot.slane %v1230_v28, 5  ;;  %v1236_v42 = vrot.slane %v1234_v31, 4  ;;  %v8388_v43 = vld [vmem:[#allocation2 + $0x14] sm:$0x1]  ;;  %v1242_v44 = vrot.slane %v1240_v33, 5  ;;  %v3009_v47 = vshll.u32 %v8382_v34, 16 }
  0xb0   : > { %v3002_v45 = vrot.slane %v3000_v36, 4  ;;  %v1227_v48 = vor.u32 %v1226_v40, %v1223_v39  ;;  %v3013_v50 = vshrl.u32 %v8382_v34, 16  ;;  %v3019_v51 = vshll.u32 %v8388_v43, 16  ;;  %v2954_v52 = vld [vmem:[#allocation2 + $0x18] sm:$0xf] }
  0xb1   : > { %v1237_v49 = vor.u32 %v1236_v42, %v1232_v41  ;;  %v8393_v53 = vld [vmem:[#allocation2 + $0x1c] sm:$0xf]  ;;  %v3005_v54 = vrot.slane %v3003_v46, 5  ;;  %v3011_v55 = vrot.slane %v3009_v47, 5  ;;  %v3743_v56 = vrot.slane %v8382_v34, 5 }
  0xb2   : > { %v3746_v57 = vrot.slane %v8388_v43, 5  ;;  %v1228_v59 = vrot.slane %v1227_v48, 4  ;;  %v3015_v61 = vrot.slane %v3013_v50, 4  ;;  %v3021_v62 = vrot.slane %v3019_v51, 5  ;;  %v8397_v0 = vld [vmem:[#allocation2 + $0x20] sm:$0x1] }
  0xb3   : > { %v1238_v60 = vrot.slane %v1237_v49, 4  ;;  %v3006_v63 = vor.u32 %v3005_v54, %v3002_v45  ;;  %v3024_v1 = vshrl.u32 %v2954_v52, 16  ;;  %v3027_v2 = vshll.u32 %v2954_v52, 16  ;;  %v1148_v27 = vld [vmem:[#allocation2 + $0x18] sm:$0xf] }
  0xb4   : > { %v3033_v3 = vshll.u32 %v8393_v53, 16  ;;  %v1233_v4 = vsel %vm8272_vm10, %v1228_v59, %v1232_v41  ;;  %v3016_v29 = vor.u32 %v3015_v61, %v3011_v55  ;;  %v3037_v14 = vshrl.u32 %v8393_v53, 16  ;;  %v1149_v42 = vld [vmem:[#allocation2 + $0x1c] sm:$0xf]  ;;  %v1179_v47 = vld [vmem:[#allocation2 + $0x20] sm:$0x1] }
  0xb5   : > { %v1243_v9 = vsel %vm8272_vm10, %v1238_v60, %v1242_v44  ;;  %v3007_v21 = vrot.slane %v3006_v63, 4  ;;  %v3026_v22 = vrot.slane %v3024_v1, 4  ;;  %v3029_v26 = vrot.slane %v3027_v2, 5  ;;  %v1046_v54 = vld [vmem:[#allocation2 + $0x24] sm:$0xf] }
  0xb6   : > { %v6287_v17 = vcombine.low %v1233_v4, %v1243_v9  ;;  %v3017_v28 = vrot.slane %v3016_v29, 4  ;;  %v3035_v31 = vrot.slane %v3033_v3, 5  ;;  %v3039_v32 = vrot.slane %v3037_v14, 4  ;;  %v1050_v2 = vld [vmem:[#allocation2 + $0x2c] sm:$0x1] }
  0xb7   : > { %v3043_v33 = vshll.u32 %v8397_v0, 16  ;;  %v3012_v36 = vsel %vm8272_vm10, %v3007_v21, %v3011_v55  ;;  %v3030_v39 = vor.u32 %v3029_v26, %v3026_v22  ;;  %v3750_v40 = vrot.slane %v8393_v53, 5  ;;  %v8425_v14 = vld [vmem:[#allocation9 + $0xc] sm:$0x3] }
  0xb8   : > { %6962 = vmatmul.mubr.msk.bf16.vlgmr.msra.gmra.mrb[0].mxu1 %vm1630_vm9, %v6287_v17  ;;  %v3753_v41 = vrot.slane %v8397_v0, 5  ;;  %v3022_v44 = vsel %vm8272_vm10, %v3017_v28, %v3021_v62  ;;  %v3040_v45 = vor.u32 %v3039_v32, %v3035_v31  ;;  %v1245_v48 = vshrl.u32 %v1148_v27, 16 }
  0xb9   : > { %6994 = vmatpush3.bf16.msra.mxu1 %v8350_v6  ;;  %v3045_v46 = vrot.slane %v3043_v33, 5  ;;  %v6430_v49 = vcombine.low %v3012_v36, %v3022_v44  ;;  %v3031_v50 = vrot.slane %v3030_v39, 4  ;;  %v8416_v51 = vrot.slane %v3750_v40, 4 }
  0xba   : > { %v1248_v52 = vshll.u32 %v1148_v27, 16  ;;  %v3041_v55 = vrot.slane %v3040_v45, 4  ;;  %v1247_v59 = vrot.slane %v1245_v48, 4  ;;  %v1254_v60 = vshll.u32 %v1149_v42, 16 }
  0xbb   : > { %v1258_v61 = vshrl.u32 %v1149_v42, 16  ;;  %7097 = vmatprep.mubr.msk.bf16.mxu0 %vm1630_vm9, %v6430_v49  ;;  %v3036_v6 = vsel %vm8272_vm10, %v3031_v50, %v3035_v31  ;;  %v1264_v63 = vshll.u32 %v1179_v47, 16  ;;  %v751_v1 = vrot.slane %v8353_v7, 4 }
  0xbc   : > { %v1250_v62 = vrot.slane %v1248_v52, 5  ;;  %v3046_v3 = vsel %vm8272_vm10, %v3041_v55, %v3045_v46  ;;  %v1256_v4 = vrot.slane %v1254_v60, 5  ;;  %v760_v29 = vrot.slane %v8355_v8, 4  ;;  %v545_v46 = vld [vmem:[#allocation2 + $0x48] sm:$0x1] }
  0xbd   : > { %v1260_v9 = vrot.slane %v1258_v61, 4  ;;  %v6431_v17 = vcombine.low %v3036_v6, %v3046_v3  ;;  %v1266_v22 = vrot.slane %v1264_v63, 5  ;;  %v759_v26 = vsel %vm8320_vm13, %v751_v1, %v8376_v35 }
  0xbe   : > { %v1251_v21 = vor.u32 %v1250_v62, %v1247_v59  ;;  %v1047_v7 = vsel %vm8311_vm12, %v8373_v23, %v1046_v54  ;;  %1049 = vst.msk [vmem:[#allocation2 + $0x28] sm:$0xf] %vm517_vm0, %v759_v26  ;;  %v1051_v28 = vsel %vm8250_vm7, %v760_v29, %v1050_v2  ;;  %v475_v8 = vmax.f32 %v8363_v13, 0.0 }
  0xbf   : > { %v1261_v27 = vor.u32 %v1260_v9, %v1256_v4  ;;  %7098 = vmatmul.mubr.msk.bf16.vlgmr.msra.gmra.mrb[0].mxu0 %vm1630_vm9, %v6431_v17  ;;  %1048 = vst [vmem:[#allocation2 + $0x24] sm:$0xf] %v1047_v7  ;;  %1052 = vst [vmem:[#allocation2 + $0x2c] sm:$0x1] %v1051_v28  ;;  %v476_v32 = vmax.f32 %v8379_v24, 0.0  ;;  %v407_v35 = vmul.f32 %v6746_v25, %v8260_v18  ;;  %v6750_v13 = vunpack.c.h.bf16 %v8370_v15  ;;  %v8458_v15 = vld [vmem:[%s8220_s7 + $0x30] sm:$0xff]  }
  0xc0   : > { %v1252_v31 = vrot.slane %v1251_v21, 4  ;;  %v445_v23 = vadd.f32 %v8262_v19, %v8385_v37  ;;  %7130 = vmatpush3.bf16.msra.mxu0 %v8360_v11  ;;  %v6668_v36 = vpack.c.bf16 %v475_v8, %v475_v8  ;;  %v408_v39 = vmul.f32 %v6749_v38, %v8260_v18 }
  0xc1   : > { %v1262_v33 = vrot.slane %v1261_v27, 4  ;;  %v6669_v42 = vpack.c.bf16 %v476_v32, %v476_v32  ;;  %v446_v58 = vadd.f32 %v8262_v19, %v407_v35  ;;  %7530 = vmatprep.subr.msk.bf16.mxu0 %vm1679_vm2, %v8425_v14  ;;  %v409_v45 = vmul.f32 %v6750_v13, %v8260_v18  ;;  %v1053_v13 = vld [vmem:[#allocation2 + $0x30] sm:$0xf] }
  0xc2   : > { %v1257_v24 = vsel %vm8272_vm10, %v1252_v31, %v1256_v4  ;;  %v477_v25 = vmax.f32 %v445_v23, 0.0  ;;  %v762_v37 = vshrl.u32 %v6668_v36, 16  ;;  %v765_v44 = vshll.u32 %v6668_v36, 16 }
  0xc3   : > { %v1267_v11 = vsel %vm8272_vm10, %v1262_v33, %v1266_v22  ;;  %v770_v47 = vshrl.u32 %v6669_v42, 16  ;;  %v773_v48 = vshll.u32 %v6669_v42, 16  ;;  %v478_v49 = vmax.f32 %v446_v58, 0.0 }
  0xc4   : > { %v6288_v38 = vcombine.low %v1257_v24, %v1267_v11  ;;  %v764_v50 = vrot.slane %v762_v37, 7  ;;  %v8460_v52 = vpack.c.bf16 %v477_v25, %v477_v25  ;;  %v8463_v54 = vadd.f32 %v8262_v19, %v408_v39  ;;  %v1057_v25 = vld [vmem:[#allocation2 + $0x38] sm:$0x1] }
  0xc5   : > { %v8466_v55 = vadd.f32 %v8262_v19, %v409_v45  ;;  %v1151_v59 = vld [vmem:[#allocation2 + $0x28] sm:$0xf]  ;;  %v772_v61 = vrot.slane %v770_v47, 7  ;;  %v8471_v6 = vpack.c.bf16 %v478_v49, %v478_v49  ;;  %v546_v62 = vsel %vm8250_vm7, 0, %v545_v46 }
  0xc6   : > { %6965 = vmatprep.mubr.msk.bf16.mxu1 %vm1630_vm9, %v6288_v38  ;;  %v8469_v60 = vld [vmem:[#allocation2 + $0x28] sm:$0xf]  ;;  %v6753_v63 = vunpack.c.l.bf16 %v8458_v15  ;;  %v1150_v1 = vld [vmem:[#allocation2 + $0x24] sm:$0xf]  ;;  %v1180_v2 = vld [vmem:[#allocation2 + $0x2c] sm:$0x1]  ;;  %v767_v9 = vor.u32 %v765_v44, %v764_v50  ;;  %v6754_v29 = vunpack.c.h.bf16 %v8458_v15 }
  0xc7   : > { %v1278_v3 = vshll.u32 %v1151_v59, 16  ;;  %v1282_v4 = vshrl.u32 %v1151_v59, 16  ;;  %547 = vst [vmem:[#allocation2 + $0x48] sm:$0x1] %v546_v62  ;;  %v1269_v17 = vshrl.u32 %v1150_v1, 16  ;;  %v1272_v21 = vshll.u32 %v1150_v1, 16 }
  0xc8   : > { %v1288_v22 = vshll.u32 %v1180_v2, 16  ;;  %v2957_v26 = vld [vmem:[#allocation2 + $0x24] sm:$0xf]  ;;  %v3057_v27 = vshll.u32 %v8469_v60, 16  ;;  %v8478_v8 = vld [vmem:[#allocation2 + $0x2c] sm:$0x1]  ;;  %v775_v45 = vor.u32 %v773_v48, %v772_v61  ;;  %v1054_v2 = vsel %vm8311_vm12, %v767_v9, %v1053_v13 }
  0xc9   : > { %v1280_v7 = vrot.slane %v1278_v3, 5  ;;  %v1284_v28 = vrot.slane %v1282_v4, 4  ;;  %v3048_v31 = vshrl.u32 %v2957_v26, 16  ;;  %v3051_v32 = vshll.u32 %v2957_v26, 16  ;;  %1055 = vst [vmem:[#allocation2 + $0x30] sm:$0xf] %v1054_v2 }
  0xca   : > { %v1271_v35 = vrot.slane %v1269_v17, 4  ;;  %v1274_v23 = vrot.slane %v1272_v21, 5  ;;  %v1290_v33 = vrot.slane %v1288_v22, 5  ;;  %v3059_v36 = vrot.slane %v3057_v27, 5  ;;  %v595_v22 = vld [vmem:[#allocation2 + $0x50] sm:$0x1] }
  0xcb   : > { %v1285_v39 = vor.u32 %v1284_v28, %v1280_v7  ;;  %v3050_v24 = vrot.slane %v3048_v31, 4  ;;  %v3053_v42 = vrot.slane %v3051_v32, 5  ;;  %v3061_v58 = vshrl.u32 %v8469_v60, 16 }
  0xcc   : > { %v1275_v11 = vor.u32 %v1274_v23, %v1271_v35  ;;  %v3067_v37 = vshll.u32 %v8478_v8, 16  ;;  %v768_v44 = vrot.slane %v764_v50, 4  ;;  %v777_v49 = vrot.slane %v772_v61, 4 }
  0xcd   : > { %v1286_v46 = vrot.slane %v1285_v39, 4  ;;  %v3054_v38 = vor.u32 %v3053_v42, %v3050_v24  ;;  %v3063_v47 = vrot.slane %v3061_v58, 4  ;;  %v779_v61 = vshrl.u32 %v8460_v52, 16  ;;  %v6797_v39 = vld [vmem:[%s8220_s7 + $0x38] sm:$0xff]  }
  0xce   : > { %v1276_v59 = vrot.slane %v1275_v11, 4  ;;  %v3069_v62 = vrot.slane %v3067_v37, 5  ;;  %v776_v1 = vsel %vm8320_vm13, %v768_v44, %v775_v45  ;;  %v1058_v48 = vsel %vm8250_vm7, %v777_v49, %v1057_v25  ;;  %v1064_v25 = vld [vmem:[#allocation2 + $0x44] sm:$0x1] }
  0xcf   : > { %v1291_v3 = vsel %vm8272_vm10, %v1286_v46, %v1290_v33  ;;  %v3055_v4 = vrot.slane %v3054_v38, 4  ;;  %v3064_v17 = vor.u32 %v3063_v47, %v3059_v36  ;;  %1056 = vst.msk [vmem:[#allocation2 + $0x34] sm:$0xf] %vm517_vm0, %v776_v1  ;;  %1059 = vst [vmem:[#allocation2 + $0x38] sm:$0x1] %v1058_v48  ;;  %v782_v21 = vshll.u32 %v8460_v52, 16 }
  0xd0   : > { %v1281_v50 = vsel %vm8272_vm10, %v1276_v59, %v1280_v7  ;;  %v787_v9 = vshrl.u32 %v8471_v6, 16  ;;  %v790_v31 = vshll.u32 %v8471_v6, 16  ;;  %v781_v32 = vrot.slane %v779_v61, 7  ;;  %v1060_v33 = vld [vmem:[#allocation2 + $0x3c] sm:$0xf] }
  0xd1   : > { %v6289_v26 = vcombine.low %v1281_v50, %v1291_v3  ;;  %v3060_v27 = vsel %vm8272_vm10, %v3055_v4, %v3059_v36  ;;  %v3065_v28 = vrot.slane %v3064_v17, 4  ;;  %v479_v7 = vmax.f32 %v8463_v54, 0.0  ;;  %v2960_v15 = vld [vmem:[#allocation2 + $0x30] sm:$0xf] }
  0xd2   : > { %v789_v35 = vrot.slane %v787_v9, 7  ;;  %v480_v23 = vmax.f32 %v8466_v55, 0.0  ;;  %v596_v13 = vsel %vm8256_vm8, 0, %v595_v22  ;;  %v410_v36 = vmul.f32 %v6753_v63, %v8260_v18 }
  0xd3   : > { %6966 = vmatmul.mubr.msk.bf16.gmra.mrb[4].mxu1 %vm1630_vm9, %v6289_v26  ;;  %v3070_v52 = vsel %vm8272_vm10, %v3065_v28, %v3069_v62  ;;  %v411_v6 = vmul.f32 %v6754_v29, %v8260_v18  ;;  %v784_v54 = vor.u32 %v782_v21, %v781_v32  ;;  %v785_v42 = vrot.slane %v781_v32, 4  ;;  %597 = vst [vmem:[#allocation2 + $0x50] sm:$0x1] %v596_v13  ;;  %v1152_v29 = vld [vmem:[#allocation2 + $0x30] sm:$0xf] }
  0xd4   : > { %v6432_v24 = vcombine.low %v3060_v27, %v3070_v52  ;;  %v792_v55 = vor.u32 %v790_v31, %v789_v35  ;;  %v794_v58 = vrot.slane %v789_v35, 4  ;;  %v8511_v11 = vpack.c.bf16 %v479_v7, %v479_v7 }
  0xd5   : > { %v8513_v37 = vpack.c.bf16 %v480_v23, %v480_v23  ;;  %v8516_v44 = vadd.f32 %v8262_v19, %v410_v36  ;;  %v1061_v46 = vsel %vm8311_vm12, %v784_v54, %v1060_v33  ;;  %v8526_v38 = vadd.f32 %v8262_v19, %v411_v6  ;;  %v8537_v33 = vld [vmem:[%s8220_s7 + $0x40] sm:$0xff]  }
  0xd6   : > { %7101 = vmatprep.mubr.msk.bf16.mxu0 %vm1630_vm9, %v6432_v24  ;;  %v8519_v63 = vld [vmem:[#allocation2 + $0x34] sm:$0xf]  ;;  %v793_v45 = vsel %vm8320_vm13, %v785_v42, %v792_v55  ;;  %v6757_v47 = vunpack.c.l.bf16 %v6797_v39  ;;  %v8528_v49 = vld [vmem:[#allocation2 + $0x38] sm:$0x1]  ;;  %v3072_v59 = vshrl.u32 %v2960_v15, 16  ;;  %v3075_v62 = vshll.u32 %v2960_v15, 16 }
  0xd7   : > { %v3081_v1 = vshll.u32 %v8519_v63, 16  ;;  %v3085_v2 = vshrl.u32 %v8519_v63, 16  ;;  %1062 = vst [vmem:[#allocation2 + $0x3c] sm:$0xf] %v1061_v46  ;;  %1063 = vst.msk [vmem:[#allocation2 + $0x40] sm:$0xf] %vm517_vm0, %v793_v45  ;;  %v1065_v50 = vsel %vm8250_vm7, %v794_v58, %v1064_v25  ;;  %v6758_v61 = vunpack.c.h.bf16 %v6797_v39 }
  0xd8   : > { %v3091_v3 = vshll.u32 %v8528_v49, 16  ;;  %v1153_v4 = vld [vmem:[#allocation2 + $0x34] sm:$0xf]  ;;  %v1181_v17 = vld [vmem:[#allocation2 + $0x38] sm:$0x1]  ;;  %v1293_v48 = vshrl.u32 %v1152_v29, 16  ;;  %v6761_v46 = vunpack.c.l.bf16 %v8537_v33 }
  0xd9   : > { %v3074_v21 = vrot.slane %v3072_v59, 4  ;;  %v3077_v9 = vrot.slane %v3075_v62, 5  ;;  %v3083_v22 = vrot.slane %v3081_v1, 5  ;;  %v3087_v26 = vrot.slane %v3085_v2, 4  ;;  %1066 = vst [vmem:[#allocation2 + $0x44] sm:$0x1] %v1065_v50 }
  0xda   : > { %v3093_v27 = vrot.slane %v3091_v3, 5  ;;  %v1295_v28 = vrot.slane %v1293_v48, 4  ;;  %v1296_v31 = vshll.u32 %v1152_v29, 16  ;;  %v1302_v32 = vshll.u32 %v1153_v4, 16 }
  0xdb   : > { %v3078_v35 = vor.u32 %v3077_v9, %v3074_v21  ;;  %v3088_v7 = vor.u32 %v3087_v26, %v3083_v22  ;;  %v1306_v23 = vshrl.u32 %v1153_v4, 16  ;;  %v1312_v52 = vshll.u32 %v1181_v17, 16 }
  0xdc   : > { %v1298_v13 = vrot.slane %v1296_v31, 5  ;;  %v1304_v36 = vrot.slane %v1302_v32, 5  ;;  %v796_v6 = vshrl.u32 %v8511_v11, 16  ;;  %v799_v39 = vshll.u32 %v8511_v11, 16 }
  0xdd   : > { %v3079_v24 = vrot.slane %v3078_v35, 4  ;;  %v3089_v54 = vrot.slane %v3088_v7, 4  ;;  %v1308_v42 = vrot.slane %v1306_v23, 4  ;;  %v1314_v55 = vrot.slane %v1312_v52, 5 }
  0xde   : > { %v1299_v58 = vor.u32 %v1298_v13, %v1295_v28  ;;  %v1154_v25 = vld [vmem:[#allocation2 + $0x3c] sm:$0xf]  ;;  %v1155_v15 = vld [vmem:[#allocation2 + $0x40] sm:$0xf]  ;;  %v8542_v29 = vmul.f32 %v6757_v47, %v8260_v18  ;;  %v8545_v45 = vmul.f32 %v6758_v61, %v8260_v18  ;;  %vm2185_vm15 = vcmask 1046532  }
  0xdf   : > { %v3084_v59 = vsel %vm8272_vm10, %v3079_v24, %v3083_v22  ;;  %v3094_v11 = vsel %vm8272_vm10, %v3089_v54, %v3093_v27  ;;  %v1309_v62 = vor.u32 %v1308_v42, %v1304_v36  ;;  %v1317_v1 = vshrl.u32 %v1154_v25, 16  ;;  %v2963_v2 = vld [vmem:[#allocation2 + $0x3c] sm:$0xf]  ;;  %v8552_v3 = vld [vmem:[#allocation2 + $0x40] sm:$0xf]  ;;  %vm8671_vm3 = vmor %vm2184_vm14, %vm2185_vm15 }
  0xe0   : > { %v6433_v4 = vcombine.low %v3084_v59, %v3094_v11  ;;  %v1300_v17 = vrot.slane %v1299_v58, 4  ;;  %v1182_v47 = vld [vmem:[#allocation2 + $0x44] sm:$0x1]  ;;  %v1320_v48 = vshll.u32 %v1154_v25, 16  ;;  %v1326_v50 = vshll.u32 %v1155_v15, 16 }
  0xe1   : > { %v1310_v18 = vrot.slane %v1309_v62, 4  ;;  %v1319_v61 = vrot.slane %v1317_v1, 4  ;;  %v1330_v21 = vshrl.u32 %v1155_v15, 16  ;;  %v1336_v9 = vshll.u32 %v1182_v47, 16  ;;  %v8554_v26 = vld [vmem:[#allocation2 + $0x44] sm:$0x1] }
  0xe2   : > { %7102 = vmatmul.mubr.msk.bf16.gmra.mrb[4].mxu0 %vm1630_vm9, %v6433_v4  ;;  %v1305_v22 = vsel %vm8272_vm10, %v1300_v17, %v1304_v36  ;;  %v1322_v27 = vrot.slane %v1320_v48, 5  ;;  %v1328_v28 = vrot.slane %v1326_v50, 5  ;;  %v3096_v31 = vshrl.u32 %v2963_v2, 16  ;;  %v1067_v17 = vld [vmem:[#allocation2 + $0x48] sm:$0xf] }
  0xe3   : > { %v1315_v32 = vsel %vm8272_vm10, %v1310_v18, %v1314_v55  ;;  %v1332_v35 = vrot.slane %v1330_v21, 4  ;;  %v1338_v7 = vrot.slane %v1336_v9, 5  ;;  %v3099_v23 = vshll.u32 %v2963_v2, 16 }
  0xe4   : > { %v6290_v52 = vcombine.low %v1305_v22, %v1315_v32  ;;  %v1323_v13 = vor.u32 %v1322_v27, %v1319_v61  ;;  %v3098_v24 = vrot.slane %v3096_v31, 4  ;;  %v3105_v54 = vshll.u32 %v8552_v3, 16  ;;  %v548_v61 = vld [vmem:[#allocation2 + $0x54] sm:$0x1]  ;;  %v1071_v27 = vld [vmem:[#allocation2 + $0x50] sm:$0x1] }
  0xe5   : > { %v1333_v42 = vor.u32 %v1332_v35, %v1328_v28  ;;  %v3101_v58 = vrot.slane %v3099_v23, 5  ;;  %v3109_v25 = vshrl.u32 %v8552_v3, 16  ;;  %v3115_v36 = vshll.u32 %v8554_v26, 16  ;;  %v598_v31 = vld [vmem:[#allocation2 + $0x5c] sm:$0x1] }
  0xe6   : > { %6969 = vmatprep.mubr.msk.bf16.mxu1 %vm1630_vm9, %v6290_v52  ;;  %v1324_v15 = vrot.slane %v1323_v13, 4  ;;  %v3107_v59 = vrot.slane %v3105_v54, 5  ;;  %v798_v11 = vrot.slane %v796_v6, 7  ;;  %v804_v55 = vshrl.u32 %v8513_v37, 16 }
  0xe7   : > { %v1334_v62 = vrot.slane %v1333_v42, 4  ;;  %v3102_v1 = vor.u32 %v3101_v58, %v3098_v24  ;;  %v3111_v2 = vrot.slane %v3109_v25, 4  ;;  %v3117_v4 = vrot.slane %v3115_v36, 5  ;;  %v551_v42 = vld [vmem:[#allocation2 + $0x60] sm:$0x1] }
  0xe8   : > { %v1329_v47 = vsel %vm8272_vm10, %v1324_v15, %v1328_v28  ;;  %v801_v48 = vor.u32 %v799_v39, %v798_v11  ;;  %v802_v50 = vrot.slane %v798_v11, 4  ;;  %v806_v18 = vrot.slane %v804_v55, 7  ;;  %v601_v15 = vld [vmem:[#allocation2 + $0x68] sm:$0x1] }
  0xe9   : > { %v1339_v21 = vsel %vm8272_vm10, %v1334_v62, %v1338_v7  ;;  %v3103_v9 = vrot.slane %v3102_v1, 4  ;;  %v3112_v22 = vor.u32 %v3111_v2, %v3107_v59  ;;  %v807_v6 = vshll.u32 %v8513_v37, 16  ;;  %v554_v1 = vld [vmem:[#allocation2 + $0x6c] sm:$0x1] }
  0xea   : > { %v6291_v32 = vcombine.low %v1329_v47, %v1339_v21  ;;  %v811_v35 = vrot.slane %v806_v18, 4  ;;  %v1068_v23 = vsel %vm8311_vm12, %v801_v48, %v1067_v17  ;;  %v481_v28 = vmax.f32 %v8516_v44, 0.0 }
  0xeb   : > { %v3108_v39 = vsel %vm8272_vm10, %v3103_v9, %v3107_v59  ;;  %v3113_v52 = vrot.slane %v3112_v22, 4  ;;  %v809_v13 = vor.u32 %v807_v6, %v806_v18  ;;  %1069 = vst [vmem:[#allocation2 + $0x48] sm:$0xf] %v1068_v23  ;;  %v482_v7 = vmax.f32 %v8526_v38, 0.0 }
  0xec   : > { %6970 = vmatmul.mubr.msk.bf16.gmra.mrb[8].mxu1 %vm1630_vm9, %v6291_v32  ;;  %v1072_v37 = vsel %vm8250_vm7, %v811_v35, %v1071_v27  ;;  %v549_v24 = vsel %vm8250_vm7, 0, %v548_v61  ;;  %v599_v54 = vsel %vm8256_vm8, 0, %v598_v31  ;;  %v6674_v44 = vpack.c.bf16 %v481_v28, %v481_v28 }
  0xed   : > { %v3118_v58 = vsel %vm8272_vm10, %v3113_v52, %v3117_v4  ;;  %v810_v25 = vsel %vm8320_vm13, %v802_v50, %v809_v13  ;;  %1073 = vst [vmem:[#allocation2 + $0x50] sm:$0x1] %v1072_v37  ;;  %550 = vst [vmem:[#allocation2 + $0x54] sm:$0x1] %v549_v24  ;;  %v6675_v38 = vpack.c.bf16 %v482_v7, %v482_v7  ;;  %v552_v47 = vsel %vm8250_vm7, 0, %v551_v42 }
  0xee   : > { %600 = vst [vmem:[#allocation2 + $0x5c] sm:$0x1] %v599_v54  ;;  %v451_v36 = vadd.f32 %v8262_v19, %v8542_v29  ;;  %v6434_v59 = vcombine.low %v3108_v39, %v3118_v58  ;;  %1070 = vst.msk [vmem:[#allocation2 + $0x4c] sm:$0xf] %vm517_vm0, %v810_v25  ;;  %v813_v11 = vshrl.u32 %v6674_v44, 16  ;;  %v816_v55 = vshll.u32 %v6674_v44, 16 }
  0xef   : > { %v452_v62 = vadd.f32 %v8262_v19, %v8545_v45  ;;  %v821_v2 = vshrl.u32 %v6675_v38, 16  ;;  %v824_v4 = vshll.u32 %v6675_v38, 16  ;;  %553 = vst [vmem:[#allocation2 + $0x60] sm:$0x1] %v552_v47  ;;  %v602_v50 = vsel %vm8256_vm8, 0, %v601_v15 }
  0xf0   : > { %v483_v17 = vmax.f32 %v451_v36, 0.0  ;;  %7105 = vmatprep.mubr.msk.bf16.mxu0 %vm1630_vm9, %v6434_v59  ;;  %v815_v48 = vrot.slane %v813_v11, 7  ;;  %v6762_v18 = vunpack.c.h.bf16 %v8537_v33  ;;  %603 = vst [vmem:[#allocation2 + $0x68] sm:$0x1] %v602_v50  ;;  %v8601_v45 = vld [vmem:[#allocation6] ss:$0 sm:$0xff] }
  0xf1   : > { %v484_v29 = vmax.f32 %v452_v62, 0.0  ;;  %v823_v61 = vrot.slane %v821_v2, 7  ;;  %v414_v21 = vmul.f32 %v8601_v45, %v6761_v46  ;;  %v555_v9 = vsel %vm8250_vm7, 0, %v554_v1  ;;  %v8614_v24 = vld [vmem:[#allocation8] ss:$0 sm:$0xff] }
  0xf2   : > { %v8599_v19 = vpack.c.bf16 %v483_v17, %v483_v17  ;;  %v2966_v22 = vld [vmem:[#allocation2 + $0x48] sm:$0xf]  ;;  %v818_v27 = vor.u32 %v816_v55, %v815_v48  ;;  %v819_v31 = vrot.slane %v815_v48, 4  ;;  %v415_v35 = vmul.f32 %v8601_v45, %v6762_v18  ;;  %556 = vst [vmem:[#allocation2 + $0x6c] sm:$0x1] %v555_v9 }
  0xf3   : > { %v1156_v6 = vld [vmem:[#allocation2 + $0x48] sm:$0xf]  ;;  %v8608_v32 = vpack.c.bf16 %v484_v29, %v484_v29  ;;  %v3120_v23 = vshrl.u32 %v2966_v22, 16  ;;  %v3123_v28 = vshll.u32 %v2966_v22, 16  ;;  %v826_v46 = vor.u32 %v824_v4, %v823_v61 }
  0xf4   : > { %v1341_v39 = vshrl.u32 %v1156_v6, 16  ;;  %v1344_v52 = vshll.u32 %v1156_v6, 16  ;;  %v8611_v13 = vld [vmem:[#allocation2 + $0x50] sm:$0x1]  ;;  %v828_v7 = vrot.slane %v823_v61, 4  ;;  %v830_v37 = vshrl.u32 %v8599_v19, 16 }
  0xf5   : > { %v1183_v33 = vld [vmem:[#allocation2 + $0x50] sm:$0x1]  ;;  %v8617_v54 = vadd.f32 %v8614_v24, %v414_v21  ;;  %v8619_v44 = vld [vmem:[#allocation2 + $0x4c] sm:$0xf]  ;;  %v3122_v42 = vrot.slane %v3120_v23, 4  ;;  %v3125_v58 = vrot.slane %v3123_v28, 5  ;;  %v827_v22 = vsel %vm8320_vm13, %v819_v31, %v826_v46 }
  0xf6   : > { %v3139_v25 = vshll.u32 %v8611_v13, 16  ;;  %v1343_v38 = vrot.slane %v1341_v39, 4  ;;  %v3129_v36 = vshll.u32 %v8619_v44, 16  ;;  %v3133_v15 = vshrl.u32 %v8619_v44, 16  ;;  %v1157_v59 = vld [vmem:[#allocation2 + $0x4c] sm:$0xf] }
  0xf7   : > { %v1346_v11 = vrot.slane %v1344_v52, 5  ;;  %v1360_v55 = vshll.u32 %v1183_v33, 16  ;;  %v3126_v62 = vor.u32 %v3125_v58, %v3122_v42  ;;  %v1350_v2 = vshll.u32 %v1157_v59, 16  ;;  %v1074_v17 = vld [vmem:[#allocation2 + $0x54] sm:$0xf] }
  0xf8   : > { %v3141_v1 = vrot.slane %v3139_v25, 5  ;;  %v1354_v4 = vshrl.u32 %v1157_v59, 16  ;;  %v3131_v47 = vrot.slane %v3129_v36, 5  ;;  %v3135_v48 = vrot.slane %v3133_v15, 4  ;;  %v1078_v18 = vld [vmem:[#allocation2 + $0x5c] sm:$0x1] }
  0xf9   : > { %v1347_v29 = vor.u32 %v1346_v11, %v1343_v38  ;;  %v1362_v50 = vrot.slane %v1360_v55, 5  ;;  %v3127_v61 = vrot.slane %v3126_v62, 4  ;;  %v1352_v21 = vrot.slane %v1350_v2, 5  ;;  %1077 = vst.msk [vmem:[#allocation2 + $0x58] sm:$0xf] %vm517_vm0, %v827_v22 }
  0xfa   : > { %v1356_v9 = vrot.slane %v1354_v4, 4  ;;  %v3136_v6 = vor.u32 %v3135_v48, %v3131_v47  ;;  %v1075_v28 = vsel %vm8311_vm12, %v818_v27, %v1074_v17  ;;  %v1079_v39 = vsel %vm8250_vm7, %v828_v7, %v1078_v18  ;;  %v1081_v52 = vld [vmem:[#allocation2 + $0x60] sm:$0xf]  ;;  %v604_v33 = vld [vmem:[#allocation2 + $0x74] sm:$0x1] }
  0xfb   : > { %v1348_v23 = vrot.slane %v1347_v29, 4  ;;  %v3132_v42 = vsel %vm8272_vm10, %v3127_v61, %v3131_v47  ;;  %1076 = vst [vmem:[#allocation2 + $0x54] sm:$0xf] %v1075_v28  ;;  %1080 = vst [vmem:[#allocation2 + $0x5c] sm:$0x1] %v1079_v39  ;;  %v832_v25 = vrot.slane %v830_v37, 7  ;;  %v454_v55 = vadd.f32 %v8614_v24, %v415_v35 }
  0xfc   : > { %v1357_v58 = vor.u32 %v1356_v9, %v1352_v21  ;;  %v833_v31 = vshll.u32 %v8599_v19, 16  ;;  %v2300_v46 = vld [vmem:[#allocation9 + $0x4] sm:$0x3]  ;;  %v3137_v38 = vrot.slane %v3136_v6, 4  ;;  %v838_v36 = vshrl.u32 %v8608_v32, 16 }
  0xfd   : > { %v1353_v27 = vsel %vm8272_vm10, %v1348_v23, %v1352_v21  ;;  %v841_v7 = vshll.u32 %v8608_v32, 16  ;;  %7525 = vmatprep.subr.msk.bf16.mxu1 %vm1679_vm2, %v2300_v46  ;;  %v836_v11 = vrot.slane %v832_v25, 4  ;;  %v485_v62 = vmax.f32 %v8617_v54, 0.0  ;;  %v8646_v4 = vld [vmem:[%s8220_s7 + $0x48] sm:$0xff]   ;;  %v1085_v48 = vld [vmem:[#allocation2 + $0x68] sm:$0x1] }
  0xfe   : > { %v1358_v15 = vrot.slane %v1357_v58, 4  ;;  %v835_v59 = vor.u32 %v833_v31, %v832_v25  ;;  %v3142_v37 = vsel %vm8272_vm10, %v3137_v38, %v3141_v1  ;;  %v840_v19 = vrot.slane %v838_v36, 7 }
  0xff   : > { %v605_v2 = vsel %vm8256_vm8, 0, %v604_v33  ;;  %v6435_v17 = vcombine.low %v3132_v42, %v3142_v37  ;;  %v486_v35 = vmax.f32 %v454_v55, 0.0  ;;  %v8652_v54 = vpack.c.bf16 %v485_v62, %v485_v62 }
 0x100   : > { %v1363_v32 = vsel %vm8272_vm10, %v1358_v15, %v1362_v50  ;;  %v1082_v47 = vsel %vm8311_vm12, %v835_v59, %v1081_v52  ;;  %606 = vst [vmem:[#allocation2 + $0x74] sm:$0x1] %v605_v2  ;;  %v843_v1 = vor.u32 %v841_v7, %v840_v19  ;;  %v845_v18 = vrot.slane %v840_v19, 4  ;;  %v1159_v61 = vld [vmem:[#allocation2 + $0x58] sm:$0xf] }
 0x101   : > { %v6292_v29 = vcombine.low %v1353_v27, %v1363_v32  ;;  %1083 = vst [vmem:[#allocation2 + $0x60] sm:$0xf] %v1082_v47  ;;  %7106 = vmatmul.mubr.msk.bf16.gmra.mrb[8].mxu0 %vm1630_vm9, %v6435_v17  ;;  %v8655_v21 = vld [vmem:[#allocation2 + $0x58] sm:$0xf]  ;;  %v8657_v9 = vpack.c.bf16 %v486_v35, %v486_v35  ;;  %v6765_v50 = vunpack.c.l.bf16 %v8646_v4  ;;  %v1374_v23 = vshll.u32 %v1159_v61, 16 }
 0x102   : > { %v1158_v22 = vld [vmem:[#allocation2 + $0x54] sm:$0xf]  ;;  %v1184_v6 = vld [vmem:[#allocation2 + $0x5c] sm:$0x1]  ;;  %v1378_v28 = vshrl.u32 %v1159_v61, 16  ;;  %v844_v39 = vsel %vm8320_vm13, %v836_v11, %v843_v1  ;;  %v1086_v52 = vsel %vm8250_vm7, %v845_v18, %v1085_v48  ;;  %v3153_v31 = vshll.u32 %v8655_v21, 16 }
 0x103   : > { %6973 = vmatprep.mubr.msk.bf16.mxu1 %vm1630_vm9, %v6292_v29  ;;  %v1365_v33 = vshrl.u32 %v1158_v22, 16  ;;  %v1368_v42 = vshll.u32 %v1158_v22, 16  ;;  %v1384_v58 = vshll.u32 %v1184_v6, 16  ;;  %v2969_v25 = vld [vmem:[#allocation2 + $0x54] sm:$0xf]  ;;  %v1376_v46 = vrot.slane %v1374_v23, 5 }
 0x104   : > { %1084 = vst.msk [vmem:[#allocation2 + $0x64] sm:$0xf] %vm517_vm0, %v844_v39  ;;  %1087 = vst [vmem:[#allocation2 + $0x68] sm:$0x1] %v1086_v52  ;;  %v1380_v38 = vrot.slane %v1378_v28, 4  ;;  %v3144_v36 = vshrl.u32 %v2969_v25, 16  ;;  %v8683_v1 = vsel %vm8671_vm3, %v8416_v51, %v3753_v41 }
 0x105   : > { %v8667_v27 = vld [vmem:[#allocation2 + $0x5c] sm:$0x1]  ;;  %v3147_v7 = vshll.u32 %v2969_v25, 16  ;;  %v1367_v59 = vrot.slane %v1365_v33, 4  ;;  %v1370_v11 = vrot.slane %v1368_v42, 5  ;;  %v1386_v55 = vrot.slane %v1384_v58, 5 }
 0x106   : > { %v3155_v37 = vrot.slane %v3153_v31, 5  ;;  %v1381_v19 = vor.u32 %v1380_v38, %v1376_v46  ;;  %v3146_v62 = vrot.slane %v3144_v36, 4  ;;  %v3157_v17 = vshrl.u32 %v8655_v21, 16 }
 0x107   : > { %v3149_v2 = vrot.slane %v3147_v7, 5  ;;  %v1371_v32 = vor.u32 %v1370_v11, %v1367_v59  ;;  %v3163_v47 = vshll.u32 %v8667_v27, 16  ;;  %v847_v29 = vshrl.u32 %v8652_v54, 16 }
 0x108   : > { %v2972_v48 = vld [vmem:[#allocation2 + $0x60] sm:$0xf]  ;;  %v1382_v18 = vrot.slane %v1381_v19, 4  ;;  %v3159_v22 = vrot.slane %v3157_v17, 4  ;;  %v4311_v34 = vsel %vm1679_vm2, %v8425_v14, 0  ;;  %v416_v14 = vmul.f32 %v8601_v45, %v6765_v50 }
 0x109   : > { %v1160_v35 = vld [vmem:[#allocation2 + $0x60] sm:$0xf]  ;;  %v3150_v61 = vor.u32 %v3149_v2, %v3146_v62  ;;  %v3168_v6 = vshrl.u32 %v2972_v48, 16  ;;  %v1372_v23 = vrot.slane %v1371_v32, 4  ;;  %v3165_v28 = vrot.slane %v3163_v47, 5 }
 0x10a   : > { %v3171_v39 = vshll.u32 %v2972_v48, 16  ;;  %v1389_v52 = vshrl.u32 %v1160_v35, 16  ;;  %v1387_v33 = vsel %vm8272_vm10, %v1382_v18, %v1386_v55  ;;  %v3160_v58 = vor.u32 %v3159_v22, %v3155_v37 }
 0x10b   : > { %v3151_v42 = vrot.slane %v3150_v61, 4  ;;  %v8687_v25 = vld [vmem:[#allocation2 + $0x64] sm:$0xf]  ;;  %v8689_v0 = vld [vmem:[#allocation2 + $0x68] sm:$0x1]  ;;  %v3170_v31 = vrot.slane %v3168_v6, 4  ;;  %v1377_v41 = vsel %vm8272_vm10, %v1372_v23, %v1376_v46  ;;  %v455_v50 = vadd.f32 %v8614_v24, %v416_v14 }
 0x10c   : > { %v3173_v51 = vrot.slane %v3171_v39, 5  ;;  %v3177_v38 = vshll.u32 %v8687_v25, 16  ;;  %v3181_v36 = vshrl.u32 %v8687_v25, 16  ;;  %v1161_v7 = vld [vmem:[#allocation2 + $0x64] sm:$0xf]  ;;  %v6293_v59 = vcombine.low %v1377_v41, %v1387_v33 }
 0x10d   : > { %v3156_v11 = vsel %vm8272_vm10, %v3151_v42, %v3155_v37  ;;  %v3161_v55 = vrot.slane %v3160_v58, 4  ;;  %v3187_v19 = vshll.u32 %v8689_v0, 16  ;;  %v1185_v62 = vld [vmem:[#allocation2 + $0x68] sm:$0x1]  ;;  %v1391_v47 = vrot.slane %v1389_v52, 4 }
 0x10e   : > { %v3174_v2 = vor.u32 %v3173_v51, %v3170_v31  ;;  %v3179_v17 = vrot.slane %v3177_v38, 5  ;;  %v3183_v32 = vrot.slane %v3181_v36, 4  ;;  %6974 = vmatmul.mubr.msk.bf16.gmra.mrb[12].mxu1 %vm1630_vm9, %v6293_v59  ;;  %v1392_v18 = vshll.u32 %v1160_v35, 16  ;;  %v3677_v39 = vld [vmem:[#allocation2 + $0xc] sm:$0xe] }
 0x10f   : > { %v3166_v46 = vsel %vm8272_vm10, %v3161_v55, %v3165_v28  ;;  %v3189_v48 = vrot.slane %v3187_v19, 5  ;;  %v1398_v61 = vshll.u32 %v1161_v7, 16  ;;  %v1402_v37 = vshrl.u32 %v1161_v7, 16  ;;  %v3678_v41 = vld [vmem:[#allocation2 + $0x18] sm:$0xe] }
 0x110   : > { %v6436_v22 = vcombine.low %v3156_v11, %v3166_v46  ;;  %v3175_v6 = vrot.slane %v3174_v2, 4  ;;  %v3184_v23 = vor.u32 %v3183_v32, %v3179_v17  ;;  %v1394_v33 = vrot.slane %v1392_v18, 5  ;;  %v1088_v11 = vld [vmem:[#allocation2 + $0x6c] sm:$0xf] }
 0x111   : > { %v1400_v42 = vrot.slane %v1398_v61, 5  ;;  %v1408_v58 = vshll.u32 %v1185_v62, 16  ;;  %v849_v31 = vrot.slane %v847_v29, 7  ;;  %v1404_v28 = vrot.slane %v1402_v37, 4  ;;  %v557_v37 = vld [vmem:[#allocation2 + $0x78] sm:$0x1] }
 0x112   : > { %7109 = vmatprep.mubr.msk.bf16.mxu0 %vm1630_vm9, %v6436_v22  ;;  %v3180_v52 = vsel %vm8272_vm10, %v3175_v6, %v3179_v17  ;;  %v3185_v51 = vrot.slane %v3184_v23, 4  ;;  %v850_v35 = vshll.u32 %v8652_v54, 16  ;;  %v1395_v38 = vor.u32 %v1394_v33, %v1391_v47  ;;  %v1092_v47 = vld [vmem:[#allocation2 + $0x74] sm:$0x1] }
 0x113   : > { %v1410_v36 = vrot.slane %v1408_v58, 5  ;;  %v853_v59 = vrot.slane %v849_v31, 4  ;;  %v855_v7 = vshrl.u32 %v8657_v9, 16  ;;  %v1405_v29 = vor.u32 %v1404_v28, %v1400_v42  ;;  %v607_v58 = vld [vmem:[#allocation2 + $0x80] sm:$0x1] }
 0x114   : > { %v3190_v55 = vsel %vm8272_vm10, %v3185_v51, %v3189_v48  ;;  %v852_v19 = vor.u32 %v850_v35, %v849_v31  ;;  %v858_v62 = vshll.u32 %v8657_v9, 16  ;;  %v1396_v32 = vrot.slane %v1395_v38, 4  ;;  %v6800_v31 = vld [vmem:[%s8220_s7 + $0x50] sm:$0xff]   ;;  %v3679_v28 = vld [vmem:[#allocation2 + $0x24] sm:$0xe] }
 0x115   : > { %v6437_v2 = vcombine.low %v3180_v52, %v3190_v55  ;;  %v857_v17 = vrot.slane %v855_v7, 7  ;;  %v6462_v46 = vrot.slane %v3677_v39, 9  ;;  %v1406_v18 = vrot.slane %v1405_v29, 4  ;;  %v3680_v7 = vld [vmem:[#allocation2 + $0x30] sm:$0xe] }
 0x116   : > { %v1089_v54 = vsel %vm8311_vm12, %v852_v19, %v1088_v11  ;;  %v3745_v61 = vrot.slane %v3743_v56, 4  ;;  %v6463_v22 = vrot.slane %v3678_v41, 9  ;;  %v1401_v48 = vsel %vm8272_vm10, %v1396_v32, %v1400_v42  ;;  %v4939_v32 = vld [vmem:[#allocation9 + $0xe] sm:$0x3] }
 0x117   : > { %7110 = vmatmul.mubr.msk.bf16.gmra.mrb[12].mxu0 %vm1630_vm9, %v6437_v2  ;;  %v860_v9 = vor.u32 %v858_v62, %v857_v17  ;;  %v862_v6 = vrot.slane %v857_v17, 4  ;;  %1090 = vst [vmem:[#allocation2 + $0x6c] sm:$0xf] %v1089_v54  ;;  %v3744_v23 = vsel %vm8671_vm3, %v6462_v46, %v3743_v56  ;;  %v1411_v39 = vsel %vm8272_vm10, %v1406_v18, %v1410_v36  ;;  %v560_v56 = vld [vmem:[#allocation2 + $0x84] sm:$0x1] }
 0x118   : > { %v3747_v33 = vsel %vm8671_vm3, %v3745_v61, %v3746_v57  ;;  %v3751_v42 = vsel %vm8671_vm3, %v6463_v22, %v3750_v40  ;;  %v6294_v41 = vcombine.low %v1401_v48, %v1411_v39  ;;  %v610_v57 = vld [vmem:[#allocation2 + $0x8c] sm:$0x1]  ;;  %v6766_v40 = vunpack.c.h.bf16 %v8646_v4  ;;  %v8762_v61 = vld [vmem:[%s8220_s7 + $0x58] sm:$0xff]  }
 0x119   : > { %v861_v52 = vsel %vm8320_vm13, %v853_v59, %v860_v9  ;;  %v1093_v43 = vsel %vm8250_vm7, %v862_v6, %v1092_v47  ;;  %v6478_v51 = vcombine.low %v3744_v23, %v3747_v33  ;;  %v6479_v53 = vcombine.low %v3751_v42, %v8683_v1 }
 0x11a   : > { %1091 = vst.msk [vmem:[#allocation2 + $0x70] sm:$0xf] %vm517_vm0, %v861_v52  ;;  %1094 = vst [vmem:[#allocation2 + $0x74] sm:$0x1] %v1093_v43  ;;  %v558_v35 = vsel %vm8250_vm7, 0, %v557_v37  ;;  %6977 = vmatprep.mubr.msk.bf16.mxu1 %vm1630_vm9, %v6294_v41  ;;  %v608_v38 = vsel %vm8256_vm8, 0, %v607_v58  ;;  %v6769_v36 = vunpack.c.l.bf16 %v6800_v31  ;;  %v6770_v59 = vunpack.c.h.bf16 %v6800_v31 }
 0x11b   : > { %7131 = vmatprep.mubr.msk.bf16.mxu0 %vm1630_vm9, %v6478_v51  ;;  %559 = vst [vmem:[#allocation2 + $0x78] sm:$0x1] %v558_v35  ;;  %v561_v1 = vsel %vm8250_vm7, 0, %v560_v56  ;;  %v417_v4 = vmul.f32 %v8601_v45, %v6766_v40  ;;  %609 = vst [vmem:[#allocation2 + $0x80] sm:$0x1] %v608_v38  ;;  %v611_v11 = vsel %vm8256_vm8, 0, %v610_v57  ;;  %v6773_v56 = vunpack.c.l.bf16 %v8762_v61 }
 0x11c   : > { %562 = vst [vmem:[#allocation2 + $0x84] sm:$0x1] %v561_v1  ;;  %v6464_v55 = vrot.slane %v3679_v28, 9  ;;  %v418_v29 = vmul.f32 %v8601_v45, %v6769_v36  ;;  %v419_v19 = vmul.f32 %v8601_v45, %v6770_v59  ;;  %612 = vst [vmem:[#allocation2 + $0x8c] sm:$0x1] %v611_v11  ;;  %v3757_v62 = vrot.slane %v8469_v60, 5 }
 0x11d   : > { %v3760_v2 = vrot.slane %v8478_v8, 5  ;;  %v456_v46 = vadd.f32 %v8614_v24, %v417_v4  ;;  %v487_v18 = vmax.f32 %v455_v50, 0.0  ;;  %v6465_v54 = vrot.slane %v3680_v7, 9 }
 0x11e   : > { %v1162_v17 = vld [vmem:[#allocation2 + $0x6c] sm:$0xf]  ;;  %v3764_v47 = vrot.slane %v8519_v63, 5  ;;  %v457_v9 = vadd.f32 %v8614_v24, %v418_v29  ;;  %v458_v60 = vadd.f32 %v8614_v24, %v419_v19  ;;  %v8769_v23 = vsel %vm8671_vm3, %v6464_v55, %v3757_v62 }
 0x11f   : > { %v1413_v22 = vshrl.u32 %v1162_v17, 16  ;;  %v1416_v48 = vshll.u32 %v1162_v17, 16  ;;  %7132 = vmatmul.mubr.msk.bf16.vlgmr.msra.gmra.mrb[0].mxu0 %vm1630_vm9, %v6479_v53  ;;  %v488_v8 = vmax.f32 %v456_v46, 0.0  ;;  %v6680_v6 = vpack.c.bf16 %v487_v18, %v487_v18 }
 0x120   : > { %7164 = vmatpush3.bf16.msra.mxu0 %v4311_v34  ;;  %v3759_v37 = vrot.slane %v3757_v62, 4  ;;  %v8775_v31 = vsel %vm8671_vm3, %v6465_v54, %v3764_v47  ;;  %v489_v53 = vmax.f32 %v457_v9, 0.0  ;;  %v490_v7 = vmax.f32 %v458_v60, 0.0 }
 0x121   : > { %v1163_v39 = vld [vmem:[#allocation2 + $0x70] sm:$0xf]  ;;  %v1186_v33 = vld [vmem:[#allocation2 + $0x74] sm:$0x1]  ;;  %v1415_v42 = vrot.slane %v1413_v22, 4  ;;  %v1418_v58 = vrot.slane %v1416_v48, 5  ;;  %7531 = vmatprep.subr.msk.bf16.mxu0 %vm1679_vm2, %v4939_v32  ;;  %v6681_v43 = vpack.c.bf16 %v488_v8, %v488_v8 }
 0x122   : > { %v1422_v34 = vshll.u32 %v1163_v39, 16  ;;  %v1426_v41 = vshrl.u32 %v1163_v39, 16  ;;  %v1432_v52 = vshll.u32 %v1186_v33, 16  ;;  %v864_v57 = vshrl.u32 %v6680_v6, 16  ;;  %v1095_v11 = vld [vmem:[#allocation2 + $0x78] sm:$0xf] }
 0x123   : > { %v1419_v51 = vor.u32 %v1418_v58, %v1415_v42  ;;  %v867_v28 = vshll.u32 %v6680_v6, 16  ;;  %v872_v38 = vshrl.u32 %v6681_v43, 16  ;;  %v875_v1 = vshll.u32 %v6681_v43, 16  ;;  %v1099_v55 = vld [vmem:[#allocation2 + $0x80] sm:$0x1] }
 0x124   : > { %v1424_v40 = vrot.slane %v1422_v34, 5  ;;  %v1428_v14 = vrot.slane %v1426_v41, 4  ;;  %v1434_v35 = vrot.slane %v1432_v52, 5  ;;  %v866_v59 = vrot.slane %v864_v57, 7  ;;  %v563_v42 = vld [vmem:[#allocation2 + $0x90] sm:$0x1] }
 0x125   : > { %v1420_v36 = vrot.slane %v1419_v51, 4  ;;  %v874_v50 = vrot.slane %v872_v38, 7  ;;  %v6682_v29 = vpack.c.bf16 %v489_v53, %v489_v53  ;;  %v3761_v19 = vsel %vm8671_vm3, %v3759_v37, %v3760_v2  ;;  %v1102_v41 = vld [vmem:[#allocation2 + $0x84] sm:$0xf]  ;;  %v613_v51 = vld [vmem:[#allocation2 + $0x98] sm:$0x1] }
 0x126   : > { %v1429_v4 = vor.u32 %v1428_v14, %v1424_v40  ;;  %v869_v32 = vor.u32 %v867_v28, %v866_v59  ;;  %v870_v17 = vrot.slane %v866_v59, 4  ;;  %v6683_v46 = vpack.c.bf16 %v490_v7, %v490_v7  ;;  %v1106_v53 = vld [vmem:[#allocation2 + $0x8c] sm:$0x1]  ;;  %v616_v7 = vld [vmem:[#allocation2 + $0xa4] sm:$0x1] }
 0x127   : > { %v1425_v62 = vsel %vm8272_vm10, %v1420_v36, %v1424_v40  ;;  %v877_v54 = vor.u32 %v875_v1, %v874_v50  ;;  %v879_v22 = vrot.slane %v874_v50, 4  ;;  %v881_v48 = vshrl.u32 %v6682_v29, 16 }
 0x128   : > { %v1430_v18 = vrot.slane %v1429_v4, 4  ;;  %v1096_v9 = vsel %vm8311_vm12, %v869_v32, %v1095_v11  ;;  %v884_v60 = vshll.u32 %v6682_v29, 16  ;;  %v889_v8 = vshrl.u32 %v6683_v46, 16  ;;  %v3681_v4 = vld [vmem:[#allocation2 + $0x3c] sm:$0xe] }
 0x129   : > { %v892_v6 = vshll.u32 %v6683_v46, 16  ;;  %v878_v2 = vsel %vm8320_vm13, %v870_v17, %v877_v54  ;;  %1097 = vst [vmem:[#allocation2 + $0x78] sm:$0xf] %v1096_v9  ;;  %v1100_v37 = vsel %vm8250_vm7, %v879_v22, %v1099_v55  ;;  %v883_v33 = vrot.slane %v881_v48, 7 }
 0x12a   : > { %v1435_v39 = vsel %vm8272_vm10, %v1430_v18, %v1434_v35  ;;  %1098 = vst.msk [vmem:[#allocation2 + $0x7c] sm:$0xf] %vm517_vm0, %v878_v2  ;;  %1101 = vst [vmem:[#allocation2 + $0x80] sm:$0x1] %v1100_v37  ;;  %v891_v34 = vrot.slane %v889_v8, 7  ;;  %v6480_v52 = vcombine.low %v8769_v23, %v3761_v19  ;;  %v3766_v43 = vrot.slane %v3764_v47, 4 }
 0x12b   : > { %v6295_v58 = vcombine.low %v1425_v62, %v1435_v39  ;;  %v886_v57 = vor.u32 %v884_v60, %v883_v33  ;;  %v887_v28 = vrot.slane %v883_v33, 4  ;;  %v3767_v40 = vrot.slane %v8528_v49, 5  ;;  %v6802_v47 = vld [vmem:[%s8220_s7 + $0x60] sm:$0xff]  }
 0x12c   : > { %v6774_v14 = vunpack.c.h.bf16 %v8762_v61  ;;  %v894_v35 = vor.u32 %v892_v6, %v891_v34  ;;  %v896_v38 = vrot.slane %v891_v34, 4  ;;  %7135 = vmatprep.mubr.msk.bf16.mxu0 %vm1630_vm9, %v6480_v52  ;;  %v420_v36 = vmul.f32 %v8601_v45, %v6773_v56  ;;  %v566_v23 = vld [vmem:[#allocation2 + $0x9c] sm:$0x1] }
 0x12d   : > { %6978 = vmatmul.mubr.msk.bf16.gmra.mrb[16].mxu1 %vm1630_vm9, %v6295_v58  ;;  %v564_v63 = vsel %vm8250_vm7, 0, %v563_v42  ;;  %v1103_v59 = vsel %vm8311_vm12, %v886_v57, %v1102_v41  ;;  %v3768_v49 = vsel %vm8671_vm3, %v3766_v43, %v3767_v40  ;;  %v614_v1 = vsel %vm8256_vm8, 0, %v613_v51 }
 0x12e   : > { %v421_v61 = vmul.f32 %v8601_v45, %v6774_v14  ;;  %565 = vst [vmem:[#allocation2 + $0x90] sm:$0x1] %v564_v63  ;;  %v895_v56 = vsel %vm8320_vm13, %v887_v28, %v894_v35  ;;  %1104 = vst [vmem:[#allocation2 + $0x84] sm:$0xf] %v1103_v59  ;;  %v1107_v50 = vsel %vm8250_vm7, %v896_v38, %v1106_v53  ;;  %v6777_v19 = vunpack.c.l.bf16 %v6802_v47 }
 0x12f   : > { %v6481_v11 = vcombine.low %v8775_v31, %v3768_v49  ;;  %v459_v55 = vadd.f32 %v8614_v24, %v420_v36  ;;  %615 = vst [vmem:[#allocation2 + $0x98] sm:$0x1] %v614_v1  ;;  %1105 = vst.msk [vmem:[#allocation2 + $0x88] sm:$0xf] %vm517_vm0, %v895_v56  ;;  %v6778_v62 = vunpack.c.h.bf16 %v6802_v47  ;;  %v567_v32 = vsel %vm8250_vm7, 0, %v566_v23 }
 0x130   : > { %1108 = vst [vmem:[#allocation2 + $0x8c] sm:$0x1] %v1107_v50  ;;  %v460_v29 = vadd.f32 %v8614_v24, %v421_v61  ;;  %v8820_v17 = vld [vmem:[#allocation2 + $0x78] sm:$0xf]  ;;  %568 = vst [vmem:[#allocation2 + $0x9c] sm:$0x1] %v567_v32  ;;  %v422_v8 = vmul.f32 %v8601_v45, %v6777_v19 }
 0x131   : > { %7136 = vmatmul.mubr.msk.bf16.gmra.mrb[4].mxu0 %vm1630_vm9, %v6481_v11  ;;  %v491_v46 = vmax.f32 %v459_v55, 0.0  ;;  %v617_v31 = vsel %vm8256_vm8, 0, %v616_v7  ;;  %v6466_v18 = vrot.slane %v3681_v4, 9  ;;  %v3771_v54 = vrot.slane %v8552_v3, 5  ;;  %v8826_v22 = vld [vmem:[#allocation2 + $0x7c] sm:$0xf] }
 0x132   : > { %v1187_v48 = vld [vmem:[#allocation2 + $0x80] sm:$0x1]  ;;  %v1437_v9 = vshrl.u32 %v8820_v17, 16  ;;  %v1440_v60 = vshll.u32 %v8820_v17, 16  ;;  %v423_v6 = vmul.f32 %v8601_v45, %v6778_v62  ;;  %618 = vst [vmem:[#allocation2 + $0xa4] sm:$0x1] %v617_v31  ;;  %v461_v34 = vadd.f32 %v8614_v24, %v422_v8 }
 0x133   : > { %v1446_v39 = vshll.u32 %v8826_v22, 16  ;;  %v1450_v2 = vshrl.u32 %v8826_v22, 16  ;;  %v1456_v37 = vshll.u32 %v1187_v48, 16  ;;  %v492_v33 = vmax.f32 %v460_v29, 0.0 }
 0x134   : > { %v1439_v42 = vrot.slane %v1437_v9, 4  ;;  %v1442_v3 = vrot.slane %v1440_v60, 5  ;;  %v6684_v58 = vpack.c.bf16 %v491_v46, %v491_v46  ;;  %v462_v14 = vadd.f32 %v8614_v24, %v423_v6  ;;  %v3682_v6 = vld [vmem:[#allocation2 + $0x48] sm:$0xe] }
 0x135   : > { %v1448_v41 = vrot.slane %v1446_v39, 5  ;;  %v1452_v52 = vrot.slane %v1450_v2, 4  ;;  %v1458_v43 = vrot.slane %v1456_v37, 5  ;;  %v6685_v51 = vpack.c.bf16 %v492_v33, %v492_v33  ;;  %v8835_v28 = vld [vmem:[#allocation2 + $0x84] sm:$0xf] }
 0x136   : > { %v1443_v57 = vor.u32 %v1442_v3, %v1439_v42  ;;  %v898_v53 = vshrl.u32 %v6684_v58, 16  ;;  %v901_v40 = vshll.u32 %v6684_v58, 16  ;;  %v8838_v38 = vld [vmem:[#allocation2 + $0x88] sm:$0xf]  ;;  %v1461_v63 = vshrl.u32 %v8835_v28, 16 }
 0x137   : > { %v1453_v35 = vor.u32 %v1452_v52, %v1448_v41  ;;  %v1188_v36 = vld [vmem:[#allocation2 + $0x8c] sm:$0x1]  ;;  %v1464_v47 = vshll.u32 %v8835_v28, 16  ;;  %v8844_v23 = vsel %vm8671_vm3, %v6466_v18, %v3771_v54  ;;  %v1470_v49 = vshll.u32 %v8838_v38, 16  ;;  %v1109_v62 = vld [vmem:[#allocation2 + $0x90] sm:$0xf] }
 0x138   : > { %v1444_v59 = vrot.slane %v1443_v57, 4  ;;  %v1474_v61 = vshrl.u32 %v8838_v38, 16  ;;  %v1480_v1 = vshll.u32 %v1188_v36, 16  ;;  %v1463_v4 = vrot.slane %v1461_v63, 4  ;;  %v1113_v37 = vld [vmem:[#allocation2 + $0x98] sm:$0x1] }
 0x139   : > { %v1454_v7 = vrot.slane %v1453_v35, 4  ;;  %v1466_v56 = vrot.slane %v1464_v47, 5  ;;  %v900_v50 = vrot.slane %v898_v53, 7  ;;  %v1472_v55 = vrot.slane %v1470_v49, 5  ;;  %v569_v36 = vld [vmem:[#allocation2 + $0xa8] sm:$0x1] }
 0x13a   : > { %v1449_v11 = vsel %vm8272_vm10, %v1444_v59, %v1448_v41  ;;  %v1476_v29 = vrot.slane %v1474_v61, 4  ;;  %v1482_v19 = vrot.slane %v1480_v1, 5  ;;  %v906_v60 = vshrl.u32 %v6685_v51, 16  ;;  %v619_v49 = vld [vmem:[#allocation2 + $0xb0] sm:$0x1] }
 0x13b   : > { %v1459_v32 = vsel %vm8272_vm10, %v1454_v7, %v1458_v43  ;;  %v1467_v46 = vor.u32 %v1466_v56, %v1463_v4  ;;  %v903_v31 = vor.u32 %v901_v40, %v900_v50  ;;  %v904_v18 = vrot.slane %v900_v50, 4  ;;  %v1116_v4 = vld [vmem:[#allocation2 + $0x9c] sm:$0xf]  ;;  %v7710_v15 = vld [vmem:[#allocation2 + $0x88] sm:$0xf] }
 0x13c   : > { %v6296_v48 = vcombine.low %v1449_v11, %v1459_v32  ;;  %v1477_v9 = vor.u32 %v1476_v29, %v1472_v55  ;;  %v909_v8 = vshll.u32 %v6685_v51, 16  ;;  %v493_v33 = vmax.f32 %v461_v34, 0.0 }
 0x13d   : > { %v1468_v39 = vrot.slane %v1467_v46, 4  ;;  %v1110_v2 = vsel %vm8311_vm12, %v903_v31, %v1109_v62  ;;  %v494_v42 = vmax.f32 %v462_v14, 0.0  ;;  %v908_v58 = vrot.slane %v906_v60, 7 }
 0x13e   : > { %6981 = vmatprep.mubr.msk.bf16.mxu1 %vm1630_vm9, %v6296_v48  ;;  %v1478_v3 = vrot.slane %v1477_v9, 4  ;;  %1111 = vst [vmem:[#allocation2 + $0x90] sm:$0xf] %v1110_v2  ;;  %v3773_v41 = vrot.slane %v3771_v54, 4  ;;  %v3774_v52 = vrot.slane %v8554_v26, 5  ;;  %v6686_v51 = vpack.c.bf16 %v493_v33, %v493_v33  ;;  %v6803_v26 = vld [vmem:[%s8220_s7 + $0x68] sm:$0xff]  }
 0x13f   : > { %v1473_v43 = vsel %vm8272_vm10, %v1468_v39, %v1472_v55  ;;  %v6687_v57 = vpack.c.bf16 %v494_v42, %v494_v42  ;;  %v6467_v53 = vrot.slane %v3682_v6, 9  ;;  %v911_v34 = vor.u32 %v909_v8, %v908_v58  ;;  %v6804_v39 = vld [vmem:[%s8220_s7 + $0x70] sm:$0xff]  }
 0x140   : > { %v1483_v40 = vsel %vm8272_vm10, %v1478_v3, %v1482_v19  ;;  %v913_v14 = vrot.slane %v908_v58, 4  ;;  %v3775_v35 = vsel %vm8671_vm3, %v3773_v41, %v3774_v52  ;;  %v915_v47 = vshrl.u32 %v6686_v51, 16  ;;  %v1120_v19 = vld [vmem:[#allocation2 + $0xa4] sm:$0x1]  ;;  %v572_v3 = vld [vmem:[#allocation2 + $0xb4] sm:$0x1] }
 0x141   : > { %v6297_v63 = vcombine.low %v1473_v43, %v1483_v40  ;;  %v918_v54 = vshll.u32 %v6686_v51, 16  ;;  %v923_v59 = vshrl.u32 %v6687_v57, 16  ;;  %v912_v61 = vsel %vm8320_vm13, %v904_v18, %v911_v34  ;;  %v622_v58 = vld [vmem:[#allocation2 + $0xbc] sm:$0x1] }
 0x142   : > { %v1114_v1 = vsel %vm8250_vm7, %v913_v14, %v1113_v37  ;;  %v926_v7 = vshll.u32 %v6687_v57, 16  ;;  %v6482_v56 = vcombine.low %v8844_v23, %v3775_v35  ;;  %1112 = vst.msk [vmem:[#allocation2 + $0x94] sm:$0xf] %vm517_vm0, %v912_v61  ;;  %v917_v50 = vrot.slane %v915_v47, 7  ;;  %v3683_v61 = vld [vmem:[#allocation2 + $0x54] sm:$0xe] }
 0x143   : > { %6982 = vmatmul.mubr.msk.bf16.gmra.mrb[20].mxu1 %vm1630_vm9, %v6297_v63  ;;  %1115 = vst [vmem:[#allocation2 + $0x98] sm:$0x1] %v1114_v1  ;;  %v925_v11 = vrot.slane %v923_v59, 7  ;;  %v3778_v55 = vrot.slane %v8619_v44, 5  ;;  %v3781_v29 = vrot.slane %v8611_v13, 5  ;;  %v6781_v62 = vunpack.c.l.bf16 %v6803_v26 }
 0x144   : > { %7139 = vmatprep.mubr.msk.bf16.mxu0 %vm1630_vm9, %v6482_v56  ;;  %v6782_v32 = vunpack.c.h.bf16 %v6803_v26  ;;  %v570_v23 = vsel %vm8250_vm7, 0, %v569_v36  ;;  %v620_v46 = vsel %vm8256_vm8, 0, %v619_v49  ;;  %v920_v18 = vor.u32 %v918_v54, %v917_v50 }
 0x145   : > { %v8877_v31 = vld [vmem:[#allocation2 + $0x90] sm:$0xf]  ;;  %v921_v48 = vrot.slane %v917_v50, 4  ;;  %v928_v9 = vor.u32 %v926_v7, %v925_v11  ;;  %v930_v44 = vrot.slane %v925_v11, 4  ;;  %571 = vst [vmem:[#allocation2 + $0xa8] sm:$0x1] %v570_v23  ;;  %v3779_v8 = vsel %vm8671_vm3, %v6467_v53, %v3778_v55 }
 0x146   : > { %621 = vst [vmem:[#allocation2 + $0xb0] sm:$0x1] %v620_v46  ;;  %v1485_v13 = vshrl.u32 %v8877_v31, 16  ;;  %v1488_v60 = vshll.u32 %v8877_v31, 16  ;;  %v3780_v6 = vrot.slane %v3778_v55, 4  ;;  %v1117_v37 = vsel %vm8311_vm12, %v920_v18, %v1116_v4 }
 0x147   : > { %v929_v2 = vsel %vm8320_vm13, %v921_v48, %v928_v9  ;;  %v1121_v33 = vsel %vm8250_vm7, %v930_v44, %v1120_v19  ;;  %v424_v42 = vmul.f32 %v8601_v45, %v6781_v62  ;;  %1118 = vst [vmem:[#allocation2 + $0x9c] sm:$0xf] %v1117_v37  ;;  %v425_v51 = vmul.f32 %v8601_v45, %v6782_v32  ;;  %v8906_v4 = vld [vmem:[#allocation6] ss:$0 sm:$0xff] }
 0x148   : > { %v1487_v41 = vrot.slane %v1485_v13, 4  ;;  %v1490_v52 = vrot.slane %v1488_v60, 5  ;;  %1119 = vst.msk [vmem:[#allocation2 + $0xa0] sm:$0xf] %vm517_vm0, %v929_v2  ;;  %1122 = vst [vmem:[#allocation2 + $0xa4] sm:$0x1] %v1121_v33  ;;  %v3782_v43 = vsel %vm8671_vm3, %v3780_v6, %v3781_v29  ;;  %v6785_v40 = vunpack.c.l.bf16 %v6804_v39 }
 0x149   : > { %v6483_v57 = vcombine.low %v3779_v8, %v3782_v43  ;;  %v463_v53 = vadd.f32 %v8614_v24, %v424_v42  ;;  %v6786_v34 = vunpack.c.h.bf16 %v6804_v39  ;;  %v8896_v14 = vld [vmem:[#allocation2 + $0x94] sm:$0xf]  ;;  %v464_v63 = vadd.f32 %v8614_v24, %v425_v51 }
 0x14a   : > { %v1189_v35 = vld [vmem:[#allocation2 + $0x98] sm:$0x1]  ;;  %v1491_v36 = vor.u32 %v1490_v52, %v1487_v41  ;;  %v573_v47 = vsel %vm8250_vm7, 0, %v572_v3  ;;  %v623_v54 = vsel %vm8256_vm8, 0, %v622_v58  ;;  %v1494_v59 = vshll.u32 %v8896_v14, 16 }
 0x14b   : > { %v1498_v45 = vshrl.u32 %v8896_v14, 16  ;;  %v1504_v26 = vshll.u32 %v1189_v35, 16  ;;  %7140 = vmatmul.mubr.msk.bf16.gmra.mrb[8].mxu0 %vm1630_vm9, %v6483_v57  ;;  %v495_v49 = vmax.f32 %v463_v53, 0.0  ;;  %574 = vst [vmem:[#allocation2 + $0xb4] sm:$0x1] %v573_v47  ;;  %v496_v7 = vmax.f32 %v464_v63, 0.0 }
 0x14c   : > { %624 = vst [vmem:[#allocation2 + $0xbc] sm:$0x1] %v623_v54  ;;  %v1492_v1 = vrot.slane %v1491_v36, 4  ;;  %v426_v56 = vmul.f32 %v8906_v4, %v6785_v40  ;;  %v427_v50 = vmul.f32 %v8906_v4, %v6786_v34  ;;  %v1496_v11 = vrot.slane %v1494_v59, 5  ;;  %v1123_v36 = vld [vmem:[#allocation2 + $0xa8] sm:$0xf] }
 0x14d   : > { %v1500_v55 = vrot.slane %v1498_v45, 4  ;;  %v6688_v29 = vpack.c.bf16 %v495_v49, %v495_v49  ;;  %v1506_v19 = vrot.slane %v1504_v26, 5  ;;  %v6689_v62 = vpack.c.bf16 %v496_v7, %v496_v7  ;;  %v1127_v49 = vld [vmem:[#allocation2 + $0xb0] sm:$0x1] }
 0x14e   : > { %v6468_v32 = vrot.slane %v3683_v61, 9  ;;  %v1497_v23 = vsel %vm8272_vm10, %v1492_v1, %v1496_v11  ;;  %v8912_v18 = vld [vmem:[#allocation2 + $0x9c] sm:$0xf]  ;;  %v465_v44 = vadd.f32 %v8614_v24, %v426_v56  ;;  %v466_v13 = vadd.f32 %v8614_v24, %v427_v50 }
 0x14f   : > { %v1501_v46 = vor.u32 %v1500_v55, %v1496_v11  ;;  %v8914_v48 = vld [vmem:[#allocation2 + $0xa0] sm:$0xf]  ;;  %v1190_v9 = vld [vmem:[#allocation2 + $0xa4] sm:$0x1]  ;;  %v1509_v60 = vshrl.u32 %v8912_v18, 16  ;;  %v1512_v8 = vshll.u32 %v8912_v18, 16 }
 0x150   : > { %v1518_v6 = vshll.u32 %v8914_v48, 16  ;;  %v1522_v39 = vshrl.u32 %v8914_v48, 16  ;;  %v1528_v37 = vshll.u32 %v1190_v9, 16  ;;  %v932_v33 = vshrl.u32 %v6688_v29, 16 }
 0x151   : > { %v1502_v2 = vrot.slane %v1501_v46, 4  ;;  %v935_v42 = vshll.u32 %v6688_v29, 16  ;;  %v1511_v3 = vrot.slane %v1509_v60, 4  ;;  %v1514_v58 = vrot.slane %v1512_v8, 5  ;;  %v3685_v60 = vld [vmem:[#allocation2 + $0x6c] sm:$0xe] }
 0x152   : > { %v1520_v41 = vrot.slane %v1518_v6, 5  ;;  %v1524_v52 = vrot.slane %v1522_v39, 4  ;;  %v1530_v24 = vrot.slane %v1528_v37, 5  ;;  %v934_v51 = vrot.slane %v932_v33, 7 }
 0x153   : > { %v1507_v43 = vsel %vm8272_vm10, %v1502_v2, %v1506_v19  ;;  %v940_v57 = vshrl.u32 %v6689_v62, 16  ;;  %v1515_v40 = vor.u32 %v1514_v58, %v1511_v3  ;;  %v943_v35 = vshll.u32 %v6689_v62, 16  ;;  %v2977_v3 = vld [vmem:[#allocation2 + $0x74] sm:$0x1] }
 0x154   : > { %v6298_v53 = vcombine.low %v1497_v23, %v1507_v43  ;;  %v1525_v34 = vor.u32 %v1524_v52, %v1520_v41  ;;  %v937_v63 = vor.u32 %v935_v42, %v934_v51  ;;  %v938_v47 = vrot.slane %v934_v51, 4  ;;  %v3684_v23 = vld [vmem:[#allocation2 + $0x60] sm:$0xe] }
 0x155   : > { %v942_v54 = vrot.slane %v940_v57, 7  ;;  %v497_v59 = vmax.f32 %v465_v44, 0.0  ;;  %v1516_v45 = vrot.slane %v1515_v40, 4  ;;  %v498_v61 = vmax.f32 %v466_v13, 0.0  ;;  %v2976_v13 = vld [vmem:[#allocation2 + $0x70] sm:$0xf] }
 0x156   : > { %6985 = vmatprep.mubr.msk.bf16.mxu1 %vm1630_vm9, %v6298_v53  ;;  %v1526_v26 = vrot.slane %v1525_v34, 4  ;;  %v3785_v1 = vrot.slane %v8655_v21, 5  ;;  %v1124_v50 = vsel %vm8311_vm12, %v937_v63, %v1123_v36  ;;  %v3788_v37 = vrot.slane %v8667_v27, 5  ;;  %v1134_v53 = vld [vmem:[#allocation2 + $0xbc] sm:$0x1] }
 0x157   : > { %v945_v7 = vor.u32 %v943_v35, %v942_v54  ;;  %v947_v56 = vrot.slane %v942_v54, 4  ;;  %v6690_v11 = vpack.c.bf16 %v497_v59, %v497_v59  ;;  %v1521_v55 = vsel %vm8272_vm10, %v1516_v45, %v1520_v41  ;;  %1125 = vst [vmem:[#allocation2 + $0xa8] sm:$0xf] %v1124_v50  ;;  %v1130_v41 = vld [vmem:[#allocation2 + $0xb4] sm:$0xf] }
 0x158   : > { %v1531_v29 = vsel %vm8272_vm10, %v1526_v26, %v1530_v24  ;;  %v6691_v19 = vpack.c.bf16 %v498_v61, %v498_v61  ;;  %v3786_v62 = vsel %vm8671_vm3, %v6468_v32, %v3785_v1  ;;  %v3787_v2 = vrot.slane %v3785_v1, 4 }
 0x159   : > { %v6299_v46 = vcombine.low %v1521_v55, %v1531_v29  ;;  %v946_v21 = vsel %vm8320_vm13, %v938_v47, %v945_v7  ;;  %v1128_v9 = vsel %vm8250_vm7, %v947_v56, %v1127_v49  ;;  %v949_v44 = vshrl.u32 %v6690_v11, 16 }
 0x15a   : > { %1126 = vst.msk [vmem:[#allocation2 + $0xac] sm:$0xf] %vm517_vm0, %v946_v21  ;;  %1129 = vst [vmem:[#allocation2 + $0xb0] sm:$0x1] %v1128_v9  ;;  %v952_v8 = vshll.u32 %v6690_v11, 16  ;;  %v957_v6 = vshrl.u32 %v6691_v19, 16  ;;  %v3789_v40 = vsel %vm8671_vm3, %v3787_v2, %v3788_v37 }
 0x15b   : > { %v960_v39 = vshll.u32 %v6691_v19, 16  ;;  %6986 = vmatmul.mubr.msk.bf16.gmra.mrb[24].mxu1 %vm1630_vm9, %v6299_v46  ;;  %v951_v32 = vrot.slane %v949_v44, 7  ;;  %v6469_v33 = vrot.slane %v3684_v23, 9  ;;  %v3792_v42 = vrot.slane %v8687_v25, 5  ;;  %v8969_v11 = vld [vmem:[#allocation2 + $0x7c] sm:$0xf] }
 0x15c   : > { %v959_v58 = vrot.slane %v957_v6, 7  ;;  %v3795_v52 = vrot.slane %v8689_v0, 5  ;;  %v6470_v43 = vrot.slane %v3685_v60, 9  ;;  %v3799_v24 = vrot.slane %v2976_v13, 5  ;;  %v3686_v23 = vld [vmem:[#allocation2 + $0x78] sm:$0xe] }
 0x15d   : > { %v954_v51 = vor.u32 %v952_v8, %v951_v32  ;;  %v955_v57 = vrot.slane %v951_v32, 4  ;;  %v3793_v34 = vsel %vm8671_vm3, %v6469_v33, %v3792_v42  ;;  %v6484_v36 = vcombine.low %v3786_v62, %v3789_v40  ;;  %v8974_v44 = vld [vmem:[#allocation2 + $0x80] sm:$0x1]  ;;  %v2983_v40 = vld [vmem:[#allocation2 + $0x8c] sm:$0x1] }
 0x15e   : > { %v962_v27 = vor.u32 %v960_v39, %v959_v58  ;;  %v964_v35 = vrot.slane %v959_v58, 4  ;;  %v3794_v25 = vrot.slane %v3792_v42, 4  ;;  %v8947_v63 = vld [vmem:[#allocation2 + $0xa8] sm:$0xf]  ;;  %v3800_v47 = vsel %vm8671_vm3, %v6470_v43, %v3799_v24  ;;  %v3687_v58 = vld [vmem:[#allocation2 + $0x84] sm:$0xe] }
 0x15f   : > { %v1131_v0 = vsel %vm8311_vm12, %v954_v51, %v1130_v41  ;;  %v3801_v54 = vrot.slane %v3799_v24, 4  ;;  %v3802_v59 = vrot.slane %v2977_v3, 5  ;;  %v1533_v45 = vshrl.u32 %v8947_v63, 16  ;;  %7143 = vmatprep.mubr.msk.bf16.mxu0 %vm1630_vm9, %v6484_v36 }
 0x160   : > { %v1536_v26 = vshll.u32 %v8947_v63, 16  ;;  %v963_v49 = vsel %vm8320_vm13, %v955_v57, %v962_v27  ;;  %1132 = vst [vmem:[#allocation2 + $0xb4] sm:$0xf] %v1131_v0  ;;  %v1135_v61 = vsel %vm8250_vm7, %v964_v35, %v1134_v53  ;;  %v3796_v56 = vsel %vm8671_vm3, %v3794_v25, %v3795_v52  ;;  %v2982_v53 = vld [vmem:[#allocation2 + $0x88] sm:$0xf] }
 0x161   : > { %v8960_v1 = vld [vmem:[#allocation2 + $0xac] sm:$0xf]  ;;  %v8962_v7 = vld [vmem:[#allocation2 + $0xb0] sm:$0x1]  ;;  %1133 = vst.msk [vmem:[#allocation2 + $0xb8] sm:$0xf] %vm517_vm0, %v963_v49  ;;  %v3803_v50 = vsel %vm8671_vm3, %v3801_v54, %v3802_v59  ;;  %v6485_v21 = vcombine.low %v3793_v34, %v3796_v56 }
 0x162   : > { %1136 = vst [vmem:[#allocation2 + $0xbc] sm:$0x1] %v1135_v61  ;;  %v1535_v55 = vrot.slane %v1533_v45, 4  ;;  %v1538_v29 = vrot.slane %v1536_v26, 5  ;;  %v1542_v19 = vshll.u32 %v8960_v1, 16  ;;  %v1546_v62 = vshrl.u32 %v8960_v1, 16 }
 0x163   : > { %v1552_v46 = vshll.u32 %v8962_v7, 16  ;;  %v6486_v9 = vcombine.low %v3800_v47, %v3803_v50  ;;  %7144 = vmatmul.mubr.msk.bf16.gmra.mrb[12].mxu0 %vm1630_vm9, %v6485_v21  ;;  %v6471_v6 = vrot.slane %v3686_v23, 9  ;;  %v3806_v39 = vrot.slane %v8969_v11, 5  ;;  %v2985_v25 = vld [vmem:[#allocation2 + $0x94] sm:$0xf] }
 0x164   : > { %v1539_v13 = vor.u32 %v1538_v29, %v1535_v55  ;;  %v1544_v60 = vrot.slane %v1542_v19, 5  ;;  %v1548_v8 = vrot.slane %v1546_v62, 4  ;;  %v3809_v33 = vrot.slane %v8974_v44, 5  ;;  %v3688_v0 = vld [vmem:[#allocation2 + $0x90] sm:$0xe] }
 0x165   : > { %v1554_v37 = vrot.slane %v1552_v46, 5  ;;  %7147 = vmatprep.mubr.msk.bf16.mxu0 %vm1630_vm9, %v6486_v9  ;;  %v3808_v3 = vrot.slane %v3806_v39, 4  ;;  %v3807_v57 = vsel %vm8671_vm3, %v6471_v6, %v3806_v39  ;;  %v2986_v45 = vld [vmem:[#allocation2 + $0x98] sm:$0x1]  ;;  %v6472_v29 = vrot.slane %v3687_v58, 9 }
 0x166   : > { %v1540_v2 = vrot.slane %v1539_v13, 4  ;;  %v1549_v32 = vor.u32 %v1548_v8, %v1544_v60  ;;  %v3813_v23 = vrot.slane %v2982_v53, 5  ;;  %v3816_v46 = vrot.slane %v2983_v40, 5  ;;  %v3689_v21 = vld [vmem:[#allocation2 + $0x9c] sm:$0xe] }
 0x167   : > { %v8980_v42 = vld [vmem:[#allocation2 + $0xb4] sm:$0xf]  ;;  %v3810_v59 = vsel %vm8671_vm3, %v3808_v3, %v3809_v33  ;;  %v6473_v9 = vrot.slane %v3688_v0, 9  ;;  %v3820_v13 = vrot.slane %v2985_v25, 5  ;;  %v2988_v8 = vld [vmem:[#allocation2 + $0xa0] sm:$0xf] }
 0x168   : > { %v1545_v41 = vsel %vm8272_vm10, %v1540_v2, %v1544_v60  ;;  %v1550_v52 = vrot.slane %v1549_v32, 4  ;;  %v8984_v43 = vld [vmem:[#allocation2 + $0xb8] sm:$0xf]  ;;  %v1557_v51 = vshrl.u32 %v8980_v42, 16  ;;  %v1560_v34 = vshll.u32 %v8980_v42, 16 }
 0x169   : > { %v8986_v24 = vld [vmem:[#allocation2 + $0xbc] sm:$0x1]  ;;  %v1566_v27 = vshll.u32 %v8984_v43, 16  ;;  %v1570_v35 = vshrl.u32 %v8984_v43, 16  ;;  %v6487_v55 = vcombine.low %v3807_v57, %v3810_v59  ;;  %v3823_v60 = vrot.slane %v2986_v45, 5 }
 0x16a   : > { %v1576_v36 = vshll.u32 %v8986_v24, 16  ;;  %v1555_v47 = vsel %vm8272_vm10, %v1550_v52, %v1554_v37  ;;  %v1559_v54 = vrot.slane %v1557_v51, 4  ;;  %v1562_v49 = vrot.slane %v1560_v34, 5  ;;  %v2989_v37 = vld [vmem:[#allocation2 + $0xa4] sm:$0x1] }
 0x16b   : > { %v6300_v26 = vcombine.low %v1545_v41, %v1555_v47  ;;  %v1568_v61 = vrot.slane %v1566_v27, 5  ;;  %v1572_v56 = vrot.slane %v1570_v35, 4  ;;  %7148 = vmatmul.mubr.msk.bf16.gmra.mrb[16].mxu0 %vm1630_vm9, %v6487_v55  ;;  %v3814_v2 = vsel %vm8671_vm3, %v6472_v29, %v3813_v23  ;;  %v7662_v33 = vld [vmem:[#allocation2] sm:$0xf]  ;;  %v9003_v3 = vld [vmem:[#allocation2 + $0x4] sm:$0xf] }
 0x16c   : > { %v1578_v50 = vrot.slane %v1576_v36, 5  ;;  %v1563_v19 = vor.u32 %v1562_v49, %v1559_v54  ;;  %v3815_v32 = vrot.slane %v3813_v23, 4  ;;  %v6318_v58 = vcombine.low %v7662_v33, %v9003_v3  ;;  %v2991_v57 = vld [vmem:[#allocation2 + $0xac] sm:$0xf]  ;;  %v3690_v53 = vld [vmem:[#allocation2 + $0xa8] sm:$0xe] }
 0x16d   : > { %6989 = vmatprep.mubr.msk.bf16.mxu1 %vm1630_vm9, %v6300_v26  ;;  %v1573_v62 = vor.u32 %v1572_v56, %v1568_v61  ;;  %v3821_v41 = vsel %vm8671_vm3, %v6473_v9, %v3820_v13  ;;  %v3822_v52 = vrot.slane %v3820_v13, 4  ;;  %v6474_v51 = vrot.slane %v3689_v21, 9  ;;  %v2992_v36 = vld [vmem:[#allocation2 + $0xb0] sm:$0x1]  ;;  %v3691_v25 = vld [vmem:[#allocation2 + $0xb4] sm:$0xe] }
 0x16e   : > { %v1564_v6 = vrot.slane %v1563_v19, 4  ;;  %v3817_v27 = vsel %vm8671_vm3, %v3815_v32, %v3816_v46  ;;  %v3827_v35 = vrot.slane %v2988_v8, 5  ;;  %v3830_v59 = vrot.slane %v2989_v37, 5  ;;  %v2994_v45 = vld [vmem:[#allocation2 + $0xb8] sm:$0xf]  ;;  %v6805_v55 = vld [vmem:[%s8220_s7 + $0x78] sm:$0xff]  }
 0x16f   : > { %v1574_v39 = vrot.slane %v1573_v62, 4  ;;  %v6488_v47 = vcombine.low %v3814_v2, %v3817_v27  ;;  %v3824_v54 = vsel %vm8671_vm3, %v3822_v52, %v3823_v60  ;;  %v2995_v26 = vld [vmem:[#allocation2 + $0xbc] sm:$0x1]  ;;  %v3834_v29 = vrot.slane %v2991_v57, 5  ;;  %v575_v62 = vld [vmem:[#allocation2 + $0xc0] sm:$0x1] }
 0x170   : > { %v1569_v40 = vsel %vm8272_vm10, %v1564_v6, %v1568_v61  ;;  %v6489_v49 = vcombine.low %v3821_v41, %v3824_v54  ;;  %v3828_v61 = vsel %vm8671_vm3, %v6474_v51, %v3827_v35  ;;  %v3829_v56 = vrot.slane %v3827_v35, 4  ;;  %v625_v13 = vld [vmem:[#allocation2 + $0xc8] sm:$0x1]  ;;  %v7664_v60 = vld [vmem:[#allocation2 + $0xc] sm:$0xf] }
 0x171   : > { %v1579_v34 = vsel %vm8272_vm10, %v1574_v39, %v1578_v50  ;;  %v6475_v50 = vrot.slane %v3690_v53, 9  ;;  %7151 = vmatprep.mubr.msk.bf16.mxu0 %vm1630_vm9, %v6488_v47  ;;  %v3837_v19 = vrot.slane %v2992_v36, 5  ;;  %v6476_v46 = vrot.slane %v3691_v25, 9  ;;  %v9024_v8 = vld [vmem:[#allocation2 + $0x10] sm:$0xf] }
 0x172   : > { %v6301_v0 = vcombine.low %v1569_v40, %v1579_v34  ;;  %v3831_v23 = vsel %vm8671_vm3, %v3829_v56, %v3830_v59  ;;  %v3841_v21 = vrot.slane %v2994_v45, 5  ;;  %v3844_v9 = vrot.slane %v2995_v26, 5  ;;  %v7666_v40 = vld [vmem:[#allocation2 + $0x18] sm:$0xf]  ;;  %v9040_v34 = vld [vmem:[#allocation2 + $0x1c] sm:$0xf] }
 0x173   : > { %v6319_v6 = vcombine.low %v7664_v60, %v9024_v8  ;;  %7152 = vmatmul.mubr.msk.bf16.gmra.mrb[20].mxu0 %vm1630_vm9, %v6489_v49  ;;  %v6490_v39 = vcombine.low %v3828_v61, %v3831_v23  ;;  %v3836_v2 = vrot.slane %v3834_v29, 4  ;;  %v6789_v32 = vunpack.c.l.bf16 %v6805_v55  ;;  %v7668_v25 = vld [vmem:[#allocation9 + $0x4] sm:$0x3]  ;;  %v7669_v54 = vld [vmem:[#allocation8] ss:$0 sm:$0xff] }
 0x174   : > { %6990 = vmatmul.mubr.msk.bf16.gmra.mrb[28].mxu1 %vm1630_vm9, %v6301_v0  ;;  %v3835_v37 = vsel %vm8671_vm3, %v6475_v50, %v3834_v29  ;;  %v3843_v33 = vrot.slane %v3841_v21, 4  ;;  %v576_v41 = vsel %vm8250_vm7, 0, %v575_v62  ;;  %v3842_v51 = vsel %vm8671_vm3, %v6476_v46, %v3841_v21  ;;  %v9047_v26 = vld [vmem:[#allocation9 + $0x6] sm:$0x3]  ;;  %v9055_v50 = vld [vmem:[#allocation2 + $0x28] sm:$0xf] }
 0x175   : > { %6995 = vmatprep.mubr.msk.bf16.mxu1 %vm1630_vm9, %v6318_v58  ;;  %v6790_v58 = vunpack.c.h.bf16 %v6805_v55  ;;  %7155 = vmatprep.mubr.msk.bf16.mxu0 %vm1630_vm9, %v6490_v39  ;;  %v3838_v52 = vsel %vm8671_vm3, %v3836_v2, %v3837_v19  ;;  %v428_v57 = vmul.f32 %v8906_v4, %v6789_v32  ;;  %577 = vst [vmem:[#allocation2 + $0xc0] sm:$0x1] %v576_v41  ;;  %v626_v53 = vsel %vm8256_vm8, 0, %v625_v13  ;;  %v7671_v55 = vld [vmem:[#allocation2 + $0x24] sm:$0xf] }
 0x176   : > { %v6320_v27 = vcombine.low %v7666_v40, %v9040_v34  ;;  %v3845_v35 = vsel %vm8671_vm3, %v3843_v33, %v3844_v9  ;;  %627 = vst [vmem:[#allocation2 + $0xc8] sm:$0x1] %v626_v53  ;;  %v2398_v0 = vsel %vm1679_vm2, %v7668_v25, 0  ;;  %v6491_v47 = vcombine.low %v3835_v37, %v3838_v52  ;;  %v7672_v23 = vld [vmem:[#allocation2 + $0x30] sm:$0xf] }
 0x177   : > { %v429_v36 = vmul.f32 %v8906_v4, %v6790_v58  ;;  %v467_v59 = vadd.f32 %v7669_v54, %v428_v57  ;;  %v6492_v45 = vcombine.low %v3842_v51, %v3845_v35  ;;  %v6321_v29 = vcombine.low %v7671_v55, %v9055_v50  ;;  %v9058_v46 = vld [vmem:[#allocation2 + $0x34] sm:$0xf]  ;;  %v7674_v57 = vld [vmem:[#allocation2 + $0x3c] sm:$0xf]  ;;  %v9069_v53 = vld [vmem:[#allocation2 + $0x40] sm:$0xf] }
 0x178   : > { %v6322_v21 = vcombine.low %v7672_v23, %v9058_v46  ;;  %v6323_v40 = vcombine.low %v7674_v57, %v9069_v53  ;;  %v9073_v35 = vld [vmem:[#allocation2 + $0x4c] sm:$0xf]  ;;  %v3225_v20 = vshll.u32 %v8969_v11, 16  ;;  %v3229_v10 = vshrl.u32 %v8969_v11, 16  ;;  %v9085_v55 = vld [vmem:[#allocation2 + $0x64] sm:$0xf] }
 0x179   : > { %v468_v16 = vadd.f32 %v7669_v54, %v429_v36  ;;  %v499_v49 = vmax.f32 %v467_v59, 0.0  ;;  %v9080_v54 = vld [vmem:[#allocation2 + $0x58] sm:$0xf]  ;;  %v7679_v59 = vld [vmem:[#allocation2 + $0x54] sm:$0xf]  ;;  %v3235_v23 = vshll.u32 %v8974_v44, 16 }
 0x17a   : > { %v7683_v44 = vld [vmem:[#allocation2 + $0x14] sm:$0x1]  ;;  %v9102_v57 = vld [vmem:[#allocation2 + $0x70] sm:$0xf] }
 0x17b   : > { %v500_v61 = vmax.f32 %v468_v16, 0.0  ;;  %7156 = vmatmul.mubr.msk.bf16.gmra.mrb[24].mxu0 %vm1630_vm9, %v6491_v47  ;;  %v6692_v4 = vpack.c.bf16 %v499_v49, %v499_v49 }
 0x17c   : > { %6996 = vmatmul.mubr.msk.bf16.vlgmr.msra.gmra.mrb[0].mxu1 %vm1630_vm9, %v6319_v6  ;;  %7159 = vmatprep.mubr.msk.bf16.mxu0 %vm1630_vm9, %v6492_v45  ;;  %v1137_v39 = vld [vmem:[#allocation2 + $0xc0] sm:$0xf]  ;;  %v6325_v45 = vcombine.low %v7679_v59, %v9080_v54 }
 0x17d   : > { %7028 = vmatpush3.bf16.msra.mxu1 %v2398_v0  ;;  %6999 = vmatprep.mubr.msk.bf16.mxu1 %vm1630_vm9, %v6320_v27  ;;  %v6693_v56 = vpack.c.bf16 %v500_v61, %v500_v61  ;;  %v966_v19 = vshrl.u32 %v6692_v4, 16  ;;  %v969_v62 = vshll.u32 %v6692_v4, 16  ;;  %v1141_v37 = vld [vmem:[#allocation2 + $0xc8] sm:$0x1]  ;;  %v9083_v61 = vrot.slane %v3225_v20, 5 }
 0x17e   : > { %7526 = vmatprep.subr.msk.bf16.mxu1 %vm1679_vm2, %v9047_v26  ;;  %v7676_v27 = vld [vmem:[#allocation2 + $0x48] sm:$0xf]  ;;  %v3231_v4 = vrot.slane %v3229_v10, 4  ;;  %v2139_v10 = vld [vmem:[#allocation2 + $0x24] sm:$0xe] }
 0x17f   : > { %v974_v9 = vshrl.u32 %v6693_v56, 16  ;;  %v977_v13 = vshll.u32 %v6693_v56, 16  ;;  %v968_v60 = vrot.slane %v966_v19, 7  ;;  %v6324_v12 = vcombine.low %v7676_v27, %v9073_v35  ;;  %10380 = vst [vmem:[#allocation21_spill] sm:$0xff] %v9083_v61  ;;  %v7680_v56 = vld [vmem:[#allocation2 + $0x60] sm:$0xf] }
 0x180   : > { %v6326_v11 = vcombine.low %v7680_v56, %v9085_v55  ;;  %v7686_v59 = vld [vmem:[#allocation2 + $0x20] sm:$0x1] }
 0x181   : > { %v976_v6 = vrot.slane %v974_v9, 7  ;;  %v971_v2 = vor.u32 %v969_v62, %v968_v60  ;;  %v972_v32 = vrot.slane %v968_v60, 4  ;;  %v2196_v62 = vrot.slane %v9024_v8, 5  ;;  %v7627_v9 = vld [vmem:[#allocation2 + $0x18] sm:$0xff]   ;;  %v7682_v8 = vld [vmem:[#allocation2 + $0x8] sm:$0x1] }
 0x182   : > { %v3232_v60 = vor.u32 %v3231_v4, %v9083_v61  ;;  %v7687_v4 = vld [vmem:[#allocation9 + $0xe] sm:$0x3] }
 0x183   : > { %v979_v33 = vor.u32 %v977_v13, %v976_v6  ;;  %v981_v58 = vrot.slane %v976_v6, 4  ;;  %v1138_v41 = vsel %vm8311_vm12, %v971_v2, %v1137_v39  ;;  %v2137_v13 = vld [vmem:[#allocation2 + $0xc] sm:$0xe]  ;;  %v2136_v39 = vld [vmem:[#allocation2] sm:$0xe]  ;;  %v2189_v2 = vrot.slane %v9003_v3, 5 }
 0x184   : > { %7000 = vmatmul.mubr.msk.bf16.gmra.mrb[4].mxu1 %vm1630_vm9, %v6321_v29  ;;  %1139 = vst [vmem:[#allocation2 + $0xc0] sm:$0xf] %v1138_v41  ;;  %v2138_v41 = vld [vmem:[#allocation2 + $0x18] sm:$0xe]  ;;  %v2198_v3 = vrot.slane %v2196_v62, 4  ;;  %v9107_v27 = vrot.slane %v3232_v60, 4 }
 0x185   : > { %7003 = vmatprep.mubr.msk.bf16.mxu1 %vm1630_vm9, %v6322_v21  ;;  %v980_v52 = vsel %vm8320_vm13, %v972_v32, %v979_v33  ;;  %v1142_v51 = vsel %vm8250_vm7, %v981_v58, %v1141_v37  ;;  %v2203_v32 = vrot.slane %v9040_v34, 5  ;;  %v2192_v37 = vrot.slane %v7682_v8, 5  ;;  %v9145_v8 = vld [vmem:[#allocation9 + $0x10] sm:$0x3] }
 0x186   : > { %1140 = vst.msk [vmem:[#allocation2 + $0xc4] sm:$0xf] %vm517_vm0, %v980_v52  ;;  %1143 = vst [vmem:[#allocation2 + $0xc8] sm:$0x1] %v1142_v51  ;;  %v2199_v33 = vrot.slane %v7683_v44, 5  ;;  %v6351_v58 = vrot.slane %v2137_v13, 9 }
 0x187   : > { %v9100_v52 = vrot.slane %v3235_v23, 5  ;;  %v7684_v51 = vld [vmem:[#allocation2 + $0x6c] sm:$0xf]  ;;  %v2210_v34 = vrot.slane %v9055_v50, 5  ;;  %10382 = vst [vmem:[#allocation23_spill] sm:$0xff] %v9107_v27  ;;  %v6350_v20 = vrot.slane %v2136_v39, 9  ;;  %v6329_v50 = vcombine.low %v8835_v28, %v8838_v38 }
 0x188   : > { %v5037_v56 = vsel %vm1679_vm2, %v7687_v4, 0  ;;  %v7688_v23 = vld [vmem:[#allocation2 + $0x2c] sm:$0x1]  ;;  %v2231_v4 = vrot.slane %v9073_v35, 5  ;;  %v4508_v35 = vld [vmem:[#allocation2 + $0x20] sm:$0x1] }
 0x189   : > { %10381 = vst [vmem:[#allocation22_spill] sm:$0xff] %v9100_v52  ;;  %v9131_v13 = vsel %vm8671_vm3, %v6350_v20, %v2189_v2  ;;  %v7694_v44 = vld [vmem:[#allocation2 + $0x74] sm:$0x1]  ;;  %v4574_v5 = vshll.u32 %v4508_v35, 16  ;;  %v10383_v35 = vcombine.low %v8912_v18, %v8914_v48  ;;  %v7638_v27 = vld [vmem:[#allocation2 + $0x9c] sm:$0xff]  }
 0x18b   : > { %v3692_v36 = vld [vmem:[#allocation2 + $0xc0] sm:$0xe] }
 0x18c   : > { %7004 = vmatmul.mubr.msk.bf16.gmra.mrb[8].mxu1 %vm1630_vm9, %v6323_v40  ;;  %v6477_v47 = vrot.slane %v3692_v36, 9  ;;  %v6327_v40 = vcombine.low %v7684_v51, %v9102_v57  ;;  %v2217_v36 = vrot.slane %v9058_v46, 5  ;;  %v7629_v46 = vld [vmem:[#allocation2 + $0x30] sm:$0xff]  }
 0x18d   : > { %7007 = vmatprep.mubr.msk.bf16.mxu1 %vm1630_vm9, %v6324_v12  ;;  %v2997_v25 = vld [vmem:[#allocation2 + $0xc4] sm:$0xf]  ;;  %v2998_v0 = vld [vmem:[#allocation2 + $0xc8] sm:$0x1]  ;;  %v6328_v12 = vcombine.low %v8820_v17, %v8826_v22  ;;  %v6330_v17 = vcombine.low %v8877_v31, %v8896_v14  ;;  %v9119_v22 = vsel %vm8671_vm3, %v6351_v58, %v2196_v62  ;;  %v7689_v14 = vld [vmem:[#allocation2 + $0x38] sm:$0x1] }
 0x18e   : > { %v3848_v16 = vrot.slane %v2997_v25, 5  ;;  %v3851_v49 = vrot.slane %v2998_v0, 5  ;;  %v2191_v25 = vrot.slane %v2189_v2, 4  ;;  %v6352_v0 = vrot.slane %v2138_v41, 9  ;;  %v4507_v58 = vld [vmem:[#allocation2 + $0x1c] sm:$0xf] }
 0x18f   : > { %v2219_v31 = vrot.slane %v2217_v36, 4  ;;  %v2220_v62 = vrot.slane %v7689_v14, 5  ;;  %v2145_v14 = vld [vmem:[#allocation2 + $0x6c] sm:$0xe]  ;;  %v2255_v2 = vrot.slane %v7694_v44, 5 }
 0x190   : > { %v3849_v29 = vsel %vm8671_vm3, %v6477_v47, %v3848_v16  ;;  %v3850_v19 = vrot.slane %v3848_v16, 4  ;;  %v2205_v47 = vrot.slane %v2203_v32, 4  ;;  %v2140_v16 = vld [vmem:[#allocation2 + $0x30] sm:$0xe]  ;;  %v9135_v60 = vsel %vm8671_vm3, %v2191_v25, %v2192_v37  ;;  %v2143_v25 = vld [vmem:[#allocation2 + $0x54] sm:$0xe] }
 0x191   : > { %v6354_v38 = vrot.slane %v2140_v16, 9 }
 0x192   : > { %v3852_v21 = vsel %vm8671_vm3, %v3850_v19, %v3851_v49  ;;  %v7628_v49 = vld [vmem:[#allocation2 + $0x24] sm:$0xff]   ;;  %v2212_v19 = vrot.slane %v2210_v34, 4 }
 0x193   : > { %v6493_v6 = vcombine.low %v3849_v29, %v3852_v21  ;;  %v6353_v29 = vrot.slane %v2139_v10, 9  ;;  %v2213_v21 = vrot.slane %v7688_v23, 5  ;;  %v9174_v20 = vsel %vm8671_vm3, %v6354_v38, %v2217_v36  ;;  %v2142_v10 = vld [vmem:[#allocation2 + $0x48] sm:$0xe]  ;;  %v7691_v38 = vld [vmem:[#allocation2 + $0x50] sm:$0x1] }
 0x194   : > { %7008 = vmatmul.mubr.msk.bf16.gmra.mrb[12].mxu1 %vm1630_vm9, %v6325_v45  ;;  %v2206_v45 = vrot.slane %v7686_v59, 5  ;;  %v4568_v59 = vshrl.u32 %v4507_v58, 16 }
 0x195   : > { %7011 = vmatprep.mubr.msk.bf16.mxu1 %vm1630_vm9, %v6326_v11  ;;  %7160 = vmatmul.mubr.msk.bf16.gmra.mrb[28].mxu0 %vm1630_vm9, %v6493_v6  ;;  %v9124_v11 = vsel %vm8671_vm3, %v2198_v3, %v2199_v33  ;;  %v9139_v6 = vsel %vm8671_vm3, %v6352_v0, %v2203_v32  ;;  %v9156_v32 = vsel %vm1679_vm2, %v9047_v26, 0  ;;  %v4506_v33 = vld [vmem:[#allocation2 + $0x18] sm:$0xf]  ;;  %v9161_v41 = vsel %vm8671_vm3, %v6353_v29, %v2210_v34  ;;  %v7631_v29 = vld [vmem:[#allocation2 + $0x48] sm:$0xff]  }
 0x196   : > { %7165 = vmatprep.mubr.msk.bf16.mxu0 %vm1630_vm9, %v7627_v9  ;;  %v2141_v9 = vld [vmem:[#allocation2 + $0x3c] sm:$0xe]  ;;  %v9143_v39 = vsel %vm8671_vm3, %v2205_v47, %v2206_v45  ;;  %v9165_v51 = vsel %vm8671_vm3, %v2212_v19, %v2213_v21  ;;  %v2224_v3 = vrot.slane %v9069_v53, 5  ;;  %v9178_v34 = vsel %vm8671_vm3, %v2219_v31, %v2220_v62 }
 0x197   : > { %v4555_v53 = vshrl.u32 %v4506_v33, 16  ;;  %v4558_v0 = vshll.u32 %v4506_v33, 16  ;;  %v4564_v47 = vshll.u32 %v4507_v58, 16  ;;  %v7630_v45 = vld [vmem:[#allocation2 + $0x3c] sm:$0xff]   ;;  %v6356_v21 = vrot.slane %v2142_v10, 9 }
 0x198   : > { %v2226_v23 = vrot.slane %v2224_v3, 4  ;;  %v2234_v31 = vrot.slane %v7691_v38, 5  ;;  %v6357_v62 = vrot.slane %v2143_v25, 9  ;;  %v4510_v10 = vld [vmem:[#allocation2 + $0x28] sm:$0xf] }
 0x199   : > { %v4557_v33 = vrot.slane %v4555_v53, 4  ;;  %v4560_v58 = vrot.slane %v4558_v0, 5  ;;  %v4588_v26 = vshll.u32 %v4510_v10, 16 }
 0x19c   : > { %7012 = vmatmul.mubr.msk.bf16.gmra.mrb[16].mxu1 %vm1630_vm9, %v6327_v40  ;;  %v6355_v40 = vrot.slane %v2141_v9, 9  ;;  %v4509_v9 = vld [vmem:[#allocation2 + $0x24] sm:$0xf] }
 0x19d   : > { %7015 = vmatprep.mubr.msk.bf16.mxu1 %vm1630_vm9, %v6328_v12  ;;  %7166 = vmatmul.mubr.msk.bf16.vlgmr.msra.gmra.mrb[0].mxu0 %vm1630_vm9, %v7628_v49  ;;  %v7690_v49 = vld [vmem:[#allocation2 + $0x44] sm:$0x1]  ;;  %v4579_v37 = vshrl.u32 %v4509_v9, 16  ;;  %v4582_v53 = vshll.u32 %v4509_v9, 16 }
 0x19e   : > { %7198 = vmatpush3.bf16.msra.mxu0 %v5037_v56  ;;  %7169 = vmatprep.mubr.msk.bf16.mxu0 %vm1630_vm9, %v7629_v46  ;;  %v2227_v36 = vrot.slane %v7690_v49, 5  ;;  %v2238_v56 = vrot.slane %v9080_v54, 5  ;;  %v2144_v46 = vld [vmem:[#allocation2 + $0x60] sm:$0xe]  ;;  %v9189_v19 = vsel %vm8671_vm3, %v6355_v40, %v2224_v3  ;;  %v2245_v54 = vrot.slane %v9085_v55, 5 }
 0x19f   : > { %7532 = vmatprep.subr.msk.bf16.mxu0 %vm1679_vm2, %v9145_v8  ;;  %v9196_v40 = vrot.slane %v4564_v47, 5  ;;  %v4570_v3 = vrot.slane %v4568_v59, 4  ;;  %v2233_v49 = vrot.slane %v2231_v4, 4  ;;  %v6358_v12 = vrot.slane %v2144_v46, 9  ;;  %v7693_v55 = vld [vmem:[#allocation2 + $0x68] sm:$0x1] }
 0x1a0   : > { %v2240_v38 = vrot.slane %v2238_v56, 4  ;;  %v2248_v25 = vrot.slane %v7693_v55, 5  ;;  %v2247_v0 = vrot.slane %v2245_v54, 4  ;;  %v4592_v59 = vshrl.u32 %v4510_v10, 16  ;;  %v7633_v9 = vld [vmem:[#allocation2 + $0x60] sm:$0xff]  }
 0x1a1   : > { %v4571_v28 = vor.u32 %v4570_v3, %v9196_v40  ;;  %v9203_v46 = vsel %vm8671_vm3, %v2226_v23, %v2227_v36  ;;  %v9215_v44 = vsel %vm8671_vm3, %v6357_v62, %v2238_v56  ;;  %v4511_v23 = vld [vmem:[#allocation2 + $0x2c] sm:$0x1]  ;;  %v10384_v56 = vcombine.low %v8947_v63, %v8960_v1  ;;  %v2146_v62 = vld [vmem:[#allocation2 + $0x78] sm:$0xe] }
 0x1a2   : > { %v9235_v18 = vsel %vm8671_vm3, %v2247_v0, %v2248_v25  ;;  %v4598_v10 = vshll.u32 %v4511_v23, 16  ;;  %v9257_v25 = vld [vmem:[#allocation2 + $0x34] sm:$0xf] }
 0x1a3   : > { %v4572_v63 = vrot.slane %v4571_v28, 4  ;;  %10385 = vst [vmem:[#allocation24_spill] sm:$0xff] %v9257_v25 }
 0x1a4   : > { %7016 = vmatmul.mubr.msk.bf16.gmra.mrb[20].mxu1 %vm1630_vm9, %v6329_v50  ;;  %v2252_v50 = vrot.slane %v9102_v57, 5  ;;  %v6359_v57 = vrot.slane %v2145_v14, 9  ;;  %v9211_v14 = vsel %vm8671_vm3, %v2233_v49, %v2234_v31  ;;  %v4584_v31 = vrot.slane %v4582_v53, 5  ;;  %v4512_v49 = vld [vmem:[#allocation2 + $0x30] sm:$0xf] }
 0x1a5   : > { %7019 = vmatprep.mubr.msk.bf16.mxu1 %vm1630_vm9, %v6330_v17  ;;  %7170 = vmatmul.mubr.msk.bf16.gmra.mrb[4].mxu0 %vm1630_vm9, %v7630_v45  ;;  %v7692_v17 = vld [vmem:[#allocation2 + $0x5c] sm:$0x1]  ;;  %v4561_v45 = vor.u32 %v4560_v58, %v4557_v33  ;;  %v4576_v33 = vrot.slane %v4574_v5, 5  ;;  %v2147_v58 = vld [vmem:[#allocation2 + $0x84] sm:$0xe]  ;;  %v4606_v23 = vshll.u32 %v4512_v49, 16 }
 0x1a6   : > { %v2241_v16 = vrot.slane %v7692_v17, 5  ;;  %7173 = vmatprep.mubr.msk.bf16.mxu0 %vm1630_vm9, %v7631_v29  ;;  %v2254_v47 = vrot.slane %v2252_v50, 4  ;;  %v7632_v17 = vld [vmem:[#allocation2 + $0x54] sm:$0xff]   ;;  %v9207_v29 = vsel %vm8671_vm3, %v6356_v21, %v2231_v4  ;;  %v9227_v4 = vsel %vm8671_vm3, %v6358_v12, %v2245_v54 }
 0x1a7   : > { %v4581_v21 = vrot.slane %v4579_v37, 4  ;;  %v9239_v48 = vsel %vm8671_vm3, %v6359_v57, %v2252_v50  ;;  %v4594_v12 = vrot.slane %v4592_v59, 4  ;;  %v4562_v54 = vrot.slane %v4561_v45, 4  ;;  %v7634_v45 = vld [vmem:[#allocation2 + $0x6c] sm:$0xff]  }
 0x1a8   : > { %v9223_v36 = vsel %vm8671_vm3, %v2240_v38, %v2241_v16  ;;  %v9241_v16 = vrot.slane %v4588_v26, 5  ;;  %v9245_v37 = vsel %vm8671_vm3, %v2254_v47, %v2255_v2  ;;  %v6360_v2 = vrot.slane %v2146_v62, 9  ;;  %v7695_v38 = vld [vmem:[#allocation2 + $0x7c] sm:$0xf]  ;;  %v7696_v47 = vld [vmem:[#allocation2 + $0x88] sm:$0xf] }
 0x1a9   : > { %v4585_v5 = vor.u32 %v4584_v31, %v4581_v21  ;;  %v2259_v55 = vrot.slane %v7695_v38, 5  ;;  %v6361_v0 = vrot.slane %v2147_v58, 9  ;;  %v2266_v59 = vrot.slane %v7696_v47, 5  ;;  %v4515_v62 = vld [vmem:[#allocation2 + $0x3c] sm:$0xf] }
 0x1aa   : > { %v4595_v53 = vor.u32 %v4594_v12, %v9241_v16  ;;  %v4600_v21 = vrot.slane %v4598_v10, 5  ;;  %v9269_v31 = vsel %vm1679_vm2, %v9145_v8, 0  ;;  %v4616_v12 = vshrl.u32 %v9257_v25, 16  ;;  %v7697_v10 = vld [vmem:[#allocation2 + $0x80] sm:$0x1] }
 0x1ab   : > { %v10386_v58 = vcombine.low %v8980_v42, %v8984_v43  ;;  %v2262_v8 = vrot.slane %v7697_v10, 5  ;;  %v10388_v38 = vcombine.low %v9131_v13, %v9135_v60  ;;  %v4627_v28 = vshrl.u32 %v4515_v62, 16  ;;  %v9293_v26 = vld [vmem:[#allocation2 + $0x4c] sm:$0xf]  ;;  %v9296_v13 = vld [vmem:[#allocation2 + $0x38] sm:$0x1] }
 0x1ac   : > { %7020 = vmatmul.mubr.msk.bf16.gmra.mrb[24].mxu1 %vm1630_vm9, %v10383_v35  ;;  %v4577_v35 = vsel %vm8272_vm10, %v4572_v63, %v4576_v33  ;;  %v9279_v63 = vsel %vm8671_vm3, %v6360_v2, %v2259_v55  ;;  %v2261_v33 = vrot.slane %v2259_v55, 4  ;;  %v4596_v42 = vrot.slane %v4595_v53, 4  ;;  %v4518_v2 = vld [vmem:[#allocation2 + $0x48] sm:$0xf]  ;;  %10389 = vst [vmem:[#allocation26_spill] sm:$0xff] %v9296_v13 }
 0x1ad   : > { %7023 = vmatprep.mubr.msk.bf16.mxu1 %vm1630_vm9, %v10384_v56  ;;  %7174 = vmatmul.mubr.msk.bf16.gmra.mrb[8].mxu0 %vm1630_vm9, %v7632_v17  ;;  %v4567_v17 = vsel %vm8272_vm10, %v4562_v54, %v9196_v40  ;;  %v4612_v56 = vshll.u32 %v9257_v25, 16  ;;  %v7635_v40 = vld [vmem:[#allocation2 + $0x78] sm:$0xff]   ;;  %v4586_v54 = vrot.slane %v4585_v5, 4  ;;  %v9291_v5 = vsel %vm8671_vm3, %v6361_v0, %v2266_v59 }
 0x1ae   : > { %7177 = vmatprep.mubr.msk.bf16.mxu0 %vm1630_vm9, %v7633_v9  ;;  %v4603_v9 = vshrl.u32 %v4512_v49, 16  ;;  %v9281_v49 = vld [vmem:[#allocation2 + $0x40] sm:$0xf]  ;;  %v9287_v47 = vcombine.low %v4567_v17, %v4577_v35  ;;  %v4608_v55 = vrot.slane %v4606_v23, 5  ;;  %v4630_v10 = vshll.u32 %v4515_v62, 16 }
 0x1af   : > { %10387 = vst [vmem:[#allocation25_spill] sm:$0xff] %v9281_v49  ;;  %v9298_v60 = vrot.slane %v4612_v56, 5  ;;  %v4618_v17 = vrot.slane %v4616_v12, 4  ;;  %v4636_v53 = vshll.u32 %v9281_v49, 16  ;;  %v4640_v0 = vshrl.u32 %v9281_v49, 16 }
 0x1b0   : > { %v4605_v57 = vrot.slane %v4603_v9, 4  ;;  %v9308_v35 = vsel %vm8671_vm3, %v2261_v33, %v2262_v8  ;;  %v4651_v9 = vshrl.u32 %v4518_v2, 16  ;;  %v4654_v23 = vshll.u32 %v4518_v2, 16  ;;  %v7698_v12 = vld [vmem:[#allocation2 + $0x8c] sm:$0x1]  ;;  %v7636_v8 = vld [vmem:[#allocation2 + $0x84] sm:$0xff]  }
 0x1b1   : > { %v4601_v56 = vsel %vm8272_vm10, %v4596_v42, %v4600_v21  ;;  %v2269_v62 = vrot.slane %v7698_v12, 5  ;;  %v4632_v3 = vrot.slane %v4630_v10, 5  ;;  %v4521_v33 = vld [vmem:[#allocation2 + $0x54] sm:$0xf]  ;;  %v4619_v49 = vor.u32 %v4618_v17, %v9298_v60 }
 0x1b2   : > { %v4609_v50 = vor.u32 %v4608_v55, %v4605_v57  ;;  %v9318_v25 = vrot.slane %v4636_v53, 5  ;;  %v4642_v2 = vrot.slane %v4640_v0, 4  ;;  %v10391_v42 = vcombine.low %v9119_v22, %v9124_v11  ;;  %v7637_v12 = vld [vmem:[#allocation2 + $0x90] sm:$0xff]   ;;  %v9338_v0 = vld [vmem:[#allocation2 + $0x58] sm:$0xf] }
 0x1b3   : > { %v9329_v55 = vld [vmem:[#allocation2 + $0x50] sm:$0x1]  ;;  %v4653_v10 = vrot.slane %v4651_v9, 4  ;;  %v4656_v17 = vrot.slane %v4654_v23, 5  ;;  %v10393_v53 = vcombine.low %v9139_v6, %v9143_v39  ;;  %10394 = vst [vmem:[#allocation29_spill] sm:$0xff] %v9338_v0  ;;  %v4620_v39 = vrot.slane %v4619_v49, 4 }
 0x1b4   : > { %7024 = vmatmul.mubr.msk.bf16.gmra.mrb[28].mxu1 %vm1630_vm9, %v10386_v58  ;;  %v2268_v58 = vrot.slane %v2266_v59, 4  ;;  %v4591_v59 = vsel %vm8272_vm10, %v4586_v54, %v9241_v16  ;;  %v4622_v16 = vshll.u32 %v9296_v13, 16  ;;  %v4629_v54 = vrot.slane %v4627_v28, 4  ;;  %10392 = vst [vmem:[#allocation28_spill] sm:$0xff] %v9329_v55  ;;  %v2148_v28 = vld [vmem:[#allocation2 + $0x90] sm:$0xe] }
 0x1b5   : > { %7029 = vmatprep.mubr.msk.bf16.mxu1 %vm1630_vm9, %v10388_v38  ;;  %7178 = vmatmul.mubr.msk.bf16.gmra.mrb[12].mxu0 %vm1630_vm9, %v7634_v45  ;;  %v9310_v45 = vld [vmem:[#allocation2 + $0x44] sm:$0x1]  ;;  %v4660_v38 = vshll.u32 %v9293_v26, 16  ;;  %v9325_v57 = vcombine.low %v4591_v59, %v4601_v56  ;;  %v4675_v59 = vshrl.u32 %v4521_v33, 16  ;;  %v4678_v56 = vshll.u32 %v4521_v33, 16 }
 0x1b6   : > { %7181 = vmatprep.mubr.msk.bf16.mxu0 %vm1630_vm9, %v7635_v40  ;;  %10390 = vst [vmem:[#allocation27_spill] sm:$0xff] %v9310_v45  ;;  %v4664_v40 = vshrl.u32 %v9293_v26, 16  ;;  %v4646_v21 = vshll.u32 %v9310_v45, 16  ;;  %v9344_v9 = vrot.slane %v4609_v50, 4  ;;  %v9346_v23 = vrot.slane %v4622_v16, 5 }
 0x1b7   : > { %v9336_v22 = vrot.slane %v4660_v38, 5  ;;  %v7699_v6 = vld [vmem:[#allocation9 + $0x8] sm:$0x3]  ;;  %v4643_v38 = vor.u32 %v4642_v2, %v9318_v25  ;;  %v7700_v33 = vld [vmem:[#allocation2 + $0x94] sm:$0xf]  ;;  %v4684_v16 = vshll.u32 %v9338_v0, 16 }
 0x1b8   : > { %v4666_v11 = vrot.slane %v4664_v40, 4  ;;  %v9351_v40 = vrot.slane %v4646_v21, 5  ;;  %v7701_v50 = vld [vmem:[#allocation2 + $0xa0] sm:$0xf]  ;;  %v4680_v2 = vrot.slane %v4678_v56, 5  ;;  %v6362_v45 = vrot.slane %v2148_v28, 9 }
 0x1b9   : > { %v7702_v13 = vld [vmem:[#allocation2 + $0x98] sm:$0x1]  ;;  %v10395_v28 = vcombine.low %v9161_v41, %v9165_v51  ;;  %v7703_v56 = vld [vmem:[#allocation2 + $0xa4] sm:$0x1] }
 0x1ba   : > { %v4667_v49 = vor.u32 %v4666_v11, %v9336_v22 }
 0x1bc   : > { %7030 = vmatmul.mubr.msk.bf16.vlgmr.msra.gmra.mrb[0].mxu1 %vm1630_vm9, %v10391_v42  ;;  %v9342_v42 = vsel %vm8671_vm3, %v2268_v58, %v2269_v62  ;;  %v2149_v58 = vld [vmem:[#allocation2 + $0x9c] sm:$0xe]  ;;  %v2280_v62 = vrot.slane %v7701_v50, 5  ;;  %v4615_v50 = vsel %vm8272_vm10, %v9344_v9, %v9298_v60  ;;  %v2150_v60 = vld [vmem:[#allocation2 + $0xa8] sm:$0xe]  ;;  %v10396_v9 = vcombine.low %v9174_v20, %v9178_v34 }
 0x1bd   : > { %7062 = vmatpush3.bf16.msra.mxu1 %v9156_v32  ;;  %7033 = vmatprep.mubr.msk.bf16.mxu1 %vm1630_vm9, %v10393_v53  ;;  %v4633_v32 = vor.u32 %v4632_v3, %v4629_v54  ;;  %v2273_v53 = vrot.slane %v7700_v33, 5  ;;  %v4670_v3 = vshll.u32 %v9329_v55, 16  ;;  %v4688_v54 = vshrl.u32 %v9338_v0, 16  ;;  %v2151_v55 = vld [vmem:[#allocation2 + $0xb4] sm:$0xe] }
 0x1be   : > { %7528 = vmatprep.subr.msk.bf16.mxu1 %vm1679_vm2, %v7699_v6  ;;  %7182 = vmatmul.mubr.msk.bf16.gmra.mrb[16].mxu0 %vm1630_vm9, %v7636_v8  ;;  %v4657_v6 = vor.u32 %v4656_v17, %v4653_v10  ;;  %v4677_v8 = vrot.slane %v4675_v59, 4  ;;  %v2276_v33 = vrot.slane %v7702_v13, 5  ;;  %v6363_v61 = vrot.slane %v2149_v58, 9  ;;  %v9365_v59 = vld [vmem:[#allocation2 + $0x5c] sm:$0x1] }
 0x1bf   : > { %7185 = vmatprep.mubr.msk.bf16.mxu0 %vm1630_vm9, %v7637_v12  ;;  %v4634_v21 = vrot.slane %v4633_v32, 4  ;;  %v7639_v12 = vld [vmem:[#allocation2 + $0xa8] sm:$0xff]   ;;  %v4625_v10 = vsel %vm8272_vm10, %v4620_v39, %v9346_v23  ;;  %v4644_v17 = vrot.slane %v4643_v38, 4  ;;  %v2275_v11 = vrot.slane %v2273_v53, 4 }
 0x1c0   : > { %v2282_v13 = vrot.slane %v2280_v62, 4  ;;  %v2283_v32 = vrot.slane %v7703_v56, 5  ;;  %v9371_v58 = vrot.slane %v4684_v16, 5  ;;  %v4690_v52 = vrot.slane %v4688_v54, 4 }
 0x1c1   : > { %v4658_v23 = vrot.slane %v4657_v6, 4  ;;  %v4668_v39 = vrot.slane %v4667_v49, 4  ;;  %v4672_v38 = vrot.slane %v4670_v3, 5  ;;  %v4681_v0 = vor.u32 %v4680_v2, %v4677_v8  ;;  %v4524_v8 = vld [vmem:[#allocation2 + $0x60] sm:$0xf] }
 0x1c2   : > { %v4639_v41 = vsel %vm8272_vm10, %v4634_v21, %v9318_v25  ;;  %v9382_v51 = vsel %vm8671_vm3, %v6362_v45, %v2273_v53  ;;  %v9386_v16 = vsel %vm8671_vm3, %v6363_v61, %v2280_v62  ;;  %v2287_v20 = vrot.slane %v8960_v1, 5  ;;  %v9419_v2 = vld [vmem:[#allocation2 + $0x64] sm:$0xf]  ;;  %v7640_v21 = vld [vmem:[#allocation2 + $0xb4] sm:$0xff]  }
 0x1c3   : > { %v4649_v34 = vsel %vm8272_vm10, %v4644_v17, %v9351_v40  ;;  %v9395_v3 = vsel %vm8671_vm3, %v2275_v11, %v2276_v33  ;;  %v4694_v25 = vshll.u32 %v9365_v59, 16  ;;  %v6364_v45 = vrot.slane %v2150_v60, 9  ;;  %v7641_v17 = vld [vmem:[#allocation2 + $0xc0] sm:$0xff]  }
 0x1c4   : > { %7034 = vmatmul.mubr.msk.bf16.gmra.mrb[4].mxu1 %vm1630_vm9, %v10395_v28  ;;  %v9401_v61 = vsel %vm8671_vm3, %v2282_v13, %v2283_v32  ;;  %v4691_v1 = vor.u32 %v4690_v52, %v9371_v58  ;;  %v2294_v53 = vrot.slane %v8984_v43, 5  ;;  %v4663_v62 = vsel %vm8272_vm10, %v4658_v23, %v9336_v22  ;;  %v4530_v32 = vld [vmem:[#allocation2 + $0x78] sm:$0xf]  ;;  %v9481_v52 = vld [vmem:[#allocation2 + $0x88] sm:$0xf] }
 0x1c5   : > { %7037 = vmatprep.mubr.msk.bf16.mxu1 %vm1630_vm9, %v10396_v9  ;;  %v4673_v54 = vsel %vm8272_vm10, %v4668_v39, %v4672_v38  ;;  %v9412_v6 = vrot.slane %v4681_v0, 4  ;;  %v9414_v49 = vcombine.low %v4615_v50, %v4625_v10  ;;  %v2290_v43 = vrot.slane %v8962_v7, 5  ;;  %v4527_v50 = vld [vmem:[#allocation2 + $0x6c] sm:$0xf]  ;;  %v9431_v10 = vld [vmem:[#allocation2 + $0x70] sm:$0xf] }
 0x1c6   : > { %7186 = vmatmul.mubr.msk.bf16.gmra.mrb[20].mxu0 %vm1630_vm9, %v7638_v27  ;;  %v6365_v27 = vrot.slane %v2151_v55, 9  ;;  %v2289_v55 = vrot.slane %v2287_v20, 4  ;;  %v9421_v33 = vcombine.low %v4639_v41, %v4649_v34  ;;  %v9429_v0 = vsel %vm8671_vm3, %v6364_v45, %v2287_v20  ;;  %10397 = vst [vmem:[#allocation30_spill] sm:$0xff] %v9431_v10  ;;  %v9454_v39 = vld [vmem:[#allocation2 + $0x7c] sm:$0xf]  ;;  %10403 = vst [vmem:[#allocation34_spill] sm:$0xff] %v9481_v52 }
 0x1c7   : > { %7189 = vmatprep.mubr.msk.bf16.mxu0 %vm1630_vm9, %v7639_v12  ;;  %v9425_v12 = vrot.slane %v4694_v25, 5  ;;  %v10398_v7 = vcombine.low %v9189_v19, %v9203_v46  ;;  %v9437_v11 = vcombine.low %v4663_v62, %v4673_v54  ;;  %v9439_v28 = vrot.slane %v4691_v1, 4  ;;  %10400 = vst [vmem:[#allocation31_spill] sm:$0xff] %v9454_v39  ;;  %v9462_v20 = vld [vmem:[#allocation2 + $0x68] sm:$0x1] }
 0x1c8   : > { %v9443_v13 = vsel %vm8671_vm3, %v6365_v27, %v2294_v53  ;;  %v2296_v56 = vrot.slane %v2294_v53, 4  ;;  %v10399_v60 = vcombine.low %v9207_v29, %v9211_v14  ;;  %v4699_v46 = vshrl.u32 %v4524_v8, 16  ;;  %v9472_v62 = vld [vmem:[#allocation2 + $0x74] sm:$0x1] }
 0x1c9   : > { %v4702_v9 = vshll.u32 %v4524_v8, 16  ;;  %v4708_v23 = vshll.u32 %v9419_v2, 16  ;;  %v9458_v38 = vsel %vm8671_vm3, %v2289_v55, %v2290_v43  ;;  %v4712_v41 = vshrl.u32 %v9419_v2, 16  ;;  %10402 = vst [vmem:[#allocation33_spill] sm:$0xff] %v9472_v62  ;;  %v7642_v43 = vld [vmem:[#allocation2 + $0xcc] sm:$0xff]  }
 0x1ca   : > { %10401 = vst [vmem:[#allocation32_spill] sm:$0xff] %v9458_v38  ;;  %v4723_v29 = vshrl.u32 %v4527_v50, 16  ;;  %v4726_v14 = vshll.u32 %v4527_v50, 16  ;;  %v4732_v34 = vshll.u32 %v9431_v10, 16  ;;  %v4736_v25 = vshrl.u32 %v9431_v10, 16 }
 0x1cb   : > { %v4747_v45 = vshrl.u32 %v4530_v32, 16  ;;  %v4750_v1 = vshll.u32 %v4530_v32, 16  ;;  %v2297_v53 = vrot.slane %v8986_v24, 5  ;;  %v4756_v54 = vshll.u32 %v9454_v39, 16  ;;  %v4536_v10 = vld [vmem:[#allocation2 + $0x90] sm:$0xf] }
 0x1cc   : > { %7038 = vmatmul.mubr.msk.bf16.gmra.mrb[8].mxu1 %vm1630_vm9, %v10398_v7  ;;  %v4760_v55 = vshrl.u32 %v9454_v39, 16  ;;  %v4704_v50 = vrot.slane %v4702_v9, 5  ;;  %v9478_v7 = vrot.slane %v4708_v23, 5  ;;  %v4714_v32 = vrot.slane %v4712_v41, 4  ;;  %v9489_v9 = vld [vmem:[#allocation2 + $0x80] sm:$0x1] }
 0x1cd   : > { %7041 = vmatprep.mubr.msk.bf16.mxu1 %vm1630_vm9, %v10399_v60  ;;  %v4718_v60 = vshll.u32 %v9462_v20, 16  ;;  %v4725_v22 = vrot.slane %v4723_v29, 4  ;;  %v4728_v24 = vrot.slane %v4726_v14, 5  ;;  %v9483_v40 = vrot.slane %v4732_v34, 5  ;;  %10405 = vst [vmem:[#allocation35_spill] sm:$0xff] %v9489_v9 }
 0x1ce   : > { %7190 = vmatmul.mubr.msk.bf16.gmra.mrb[24].mxu0 %vm1630_vm9, %v7640_v21  ;;  %v4701_v21 = vrot.slane %v4699_v46, 4  ;;  %v4738_v19 = vrot.slane %v4736_v25, 4  ;;  %v4749_v27 = vrot.slane %v4747_v45, 4  ;;  %v4752_v39 = vrot.slane %v4750_v1, 5 }
 0x1cf   : > { %7193 = vmatprep.mubr.msk.bf16.mxu0 %vm1630_vm9, %v7641_v17  ;;  %v4533_v17 = vld [vmem:[#allocation2 + $0x84] sm:$0xf]  ;;  %v10404_v46 = vcombine.low %v9215_v44, %v9223_v36  ;;  %v9491_v23 = vrot.slane %v4756_v54, 5  ;;  %v4762_v41 = vrot.slane %v4760_v55, 4  ;;  %v10406_v34 = vcombine.low %v9227_v4, %v9235_v18 }
 0x1d0   : > { %v4771_v29 = vshrl.u32 %v4533_v17, 16  ;;  %v4774_v14 = vshll.u32 %v4533_v17, 16  ;;  %v4705_v25 = vor.u32 %v4704_v50, %v4701_v21  ;;  %v4742_v45 = vshll.u32 %v9472_v62, 16 }
 0x1d1   : > { %v4780_v1 = vshll.u32 %v9481_v52, 16  ;;  %v4784_v44 = vshrl.u32 %v9481_v52, 16  ;;  %v9502_v36 = vsel %vm8671_vm3, %v2296_v56, %v2297_v53  ;;  %v9504_v54 = vrot.slane %v4718_v60, 5  ;;  %v9515_v60 = vld [vmem:[#allocation2 + $0x8c] sm:$0x1] }
 0x1d2   : > { %v4795_v55 = vshrl.u32 %v4536_v10, 16  ;;  %v4798_v17 = vshll.u32 %v4536_v10, 16  ;;  %v4715_v4 = vor.u32 %v4714_v32, %v9478_v7  ;;  %v4729_v18 = vor.u32 %v4728_v24, %v4725_v22 }
 0x1d3   : > { %v4739_v21 = vor.u32 %v4738_v19, %v9483_v40  ;;  %v4766_v50 = vshll.u32 %v9489_v9, 16  ;;  %v4753_v56 = vor.u32 %v4752_v39, %v4749_v27  ;;  %v4763_v53 = vor.u32 %v4762_v41, %v9491_v23  ;;  %v4539_v19 = vld [vmem:[#allocation2 + $0x9c] sm:$0xf] }
 0x1d4   : > { %7042 = vmatmul.mubr.msk.bf16.gmra.mrb[12].mxu1 %vm1630_vm9, %v10404_v46  ;;  %v9510_v46 = vld [vmem:[#allocation2 + $0x94] sm:$0xf]  ;;  %v4773_v10 = vrot.slane %v4771_v29, 4  ;;  %v4744_v8 = vrot.slane %v4742_v45, 5  ;;  %v9517_v32 = vrot.slane %v4780_v1, 5  ;;  %v4786_v22 = vrot.slane %v4784_v44, 4 }
 0x1d5   : > { %7045 = vmatprep.mubr.msk.bf16.mxu1 %vm1630_vm9, %v10406_v34  ;;  %v4776_v34 = vrot.slane %v4774_v14, 5  ;;  %v4797_v24 = vrot.slane %v4795_v55, 4  ;;  %v4800_v52 = vrot.slane %v4798_v17, 5  ;;  %v4804_v9 = vshll.u32 %v9510_v46, 16  ;;  %v9532_v55 = vld [vmem:[#allocation2 + $0x98] sm:$0x1] }
 0x1d6   : > { %7194 = vmatmul.mubr.msk.bf16.gmra.mrb[28].mxu0 %vm1630_vm9, %v7642_v43  ;;  %v4706_v43 = vrot.slane %v4705_v25, 4  ;;  %v4808_v62 = vshrl.u32 %v9510_v46, 16  ;;  %v4716_v39 = vrot.slane %v4715_v4, 4  ;;  %v4730_v27 = vrot.slane %v4729_v18, 4 }
 0x1d7   : > { %7199 = vmatprep.mubr.msk.bf16.mxu0 %vm1630_vm9, %v9287_v47  ;;  %v9521_v47 = vld [vmem:[#allocation2 + $0xa0] sm:$0xf]  ;;  %v4740_v41 = vrot.slane %v4739_v21, 4  ;;  %v4768_v38 = vrot.slane %v4766_v50, 5  ;;  %v10407_v29 = vcombine.low %v9239_v48, %v9245_v37  ;;  %v4754_v14 = vrot.slane %v4753_v56, 4 }
 0x1d8   : > { %v4764_v25 = vrot.slane %v4763_v53, 4  ;;  %v4777_v45 = vor.u32 %v4776_v34, %v4773_v10  ;;  %v4790_v1 = vshll.u32 %v9515_v60, 16  ;;  %v10408_v44 = vcombine.low %v9279_v63, %v9308_v35 }
 0x1d9   : > { %v4819_v17 = vshrl.u32 %v4539_v19, 16  ;;  %v4822_v4 = vshll.u32 %v4539_v19, 16  ;;  %v4828_v18 = vshll.u32 %v9521_v47, 16  ;;  %v4832_v48 = vshrl.u32 %v9521_v47, 16 }
 0x1da   : > { %v4787_v37 = vor.u32 %v4786_v22, %v9517_v32  ;;  %v4801_v21 = vor.u32 %v4800_v52, %v4797_v24  ;;  %v9537_v50 = vrot.slane %v4804_v9, 5  ;;  %v4810_v56 = vrot.slane %v4808_v62, 4 }
 0x1db   : > { %v4711_v63 = vsel %vm8272_vm10, %v4706_v43, %v9478_v7  ;;  %v4721_v35 = vsel %vm8272_vm10, %v4716_v39, %v9504_v54  ;;  %v4735_v53 = vsel %vm8272_vm10, %v4730_v27, %v9483_v40  ;;  %v4745_v52 = vsel %vm8272_vm10, %v4740_v41, %v4744_v8  ;;  %v9563_v40 = vld [vmem:[#allocation2 + $0xa4] sm:$0x1]  ;;  %v4542_v54 = vld [vmem:[#allocation2 + $0xa8] sm:$0xf]  ;;  %v9585_v27 = vld [vmem:[#allocation2 + $0xac] sm:$0xf] }
 0x1dc   : > { %7046 = vmatmul.mubr.msk.bf16.gmra.mrb[16].mxu1 %vm1630_vm9, %v10407_v29  ;;  %v4769_v62 = vsel %vm8272_vm10, %v4764_v25, %v4768_v38  ;;  %v9560_v7 = vrot.slane %v4777_v45, 4  ;;  %v4814_v9 = vshll.u32 %v9532_v55, 16  ;;  %v4821_v8 = vrot.slane %v4819_v17, 4  ;;  %v5237_v17 = vld [vmem:[#allocation2 + $0x54] sm:$0xe] }
 0x1dd   : > { %7049 = vmatprep.mubr.msk.bf16.mxu1 %vm1630_vm9, %v10408_v44  ;;  %v4824_v10 = vrot.slane %v4822_v4, 5  ;;  %v4834_v34 = vrot.slane %v4832_v48, 4  ;;  %v9569_v43 = vrot.slane %v4790_v1, 5  ;;  %v4811_v38 = vor.u32 %v4810_v56, %v9537_v50  ;;  %v5236_v44 = vld [vmem:[#allocation2 + $0x48] sm:$0xe] }
 0x1de   : > { %7200 = vmatmul.mubr.msk.bf16.vlgmr.msra.gmra.mrb[0].mxu0 %vm1630_vm9, %v9325_v57  ;;  %v4759_v57 = vsel %vm8272_vm10, %v4754_v14, %v9491_v23  ;;  %v9571_v23 = vrot.slane %v4801_v21, 4  ;;  %v10409_v22 = vsel %vm8272_vm10, %v9439_v28, %v9425_v12  ;;  %v10410_v19 = vsel %vm8272_vm10, %v9412_v6, %v9371_v58 }
 0x1df   : > { %7232 = vmatpush3.bf16.msra.mxu0 %v9269_v31  ;;  %7203 = vmatprep.mubr.msk.bf16.mxu0 %vm1630_vm9, %v9414_v49  ;;  %v9565_v31 = vrot.slane %v4828_v18, 5  ;;  %v9567_v49 = vrot.slane %v4787_v37, 4  ;;  %v6547_v24 = vcombine.low %v10410_v19, %v10409_v22  ;;  %v4838_v39 = vshll.u32 %v9563_v40, 16  ;;  %v9618_v18 = vld [vmem:[#allocation2 + $0xb0] sm:$0x1] }
 0x1e0   : > { %v4843_v41 = vshrl.u32 %v4542_v54, 16  ;;  %v4846_v29 = vshll.u32 %v4542_v54, 16  ;;  %v10411_v14 = vcombine.low %v9291_v5, %v9342_v42  ;;  %v6381_v12 = vcombine.low %v9443_v13, %v9502_v36  ;;  %v5239_v19 = vld [vmem:[#allocation2 + $0x6c] sm:$0xe] }
 0x1e1   : > { %v6548_v28 = vcombine.low %v4711_v63, %v4721_v35  ;;  %v9593_v25 = vcombine.low %v4735_v53, %v4745_v52  ;;  %v9595_v45 = vcombine.low %v4759_v57, %v4769_v62  ;;  %v10412_v58 = vcombine.low %v9382_v51, %v9395_v3  ;;  %v10413_v52 = vld [vmem:[#allocation28_spill] sm:$0xff]  ;;  %v9732_v51 = vld [vmem:[#allocation2 + $0xc4] sm:$0xf] }
 0x1e2   : > { %v4783_v5 = vsel %vm8272_vm10, %v9560_v7, %v9517_v32  ;;  %v9605_v42 = vrot.slane %v4814_v9, 5  ;;  %v4825_v6 = vor.u32 %v4824_v10, %v4821_v8  ;;  %v4835_v1 = vor.u32 %v4834_v34, %v9565_v31  ;;  %v5238_v9 = vld [vmem:[#allocation2 + $0x60] sm:$0xe] }
 0x1e3   : > { %v4793_v4 = vsel %vm8272_vm10, %v9567_v49, %v9569_v43  ;;  %v9616_v3 = vrot.slane %v4811_v38, 4  ;;  %v4852_v48 = vshll.u32 %v9585_v27, 16  ;;  %v9623_v37 = vrot.slane %v4838_v39, 5  ;;  %v10414_v10 = vld [vmem:[#allocation29_spill] sm:$0xff]  ;;  %v4551_v43 = vld [vmem:[#allocation2 + $0xcc] sm:$0xf] }
 0x1e4   : > { %7050 = vmatmul.mubr.msk.bf16.gmra.mrb[20].mxu1 %vm1630_vm9, %v10411_v14  ;;  %v4845_v21 = vrot.slane %v4843_v41, 4  ;;  %v4848_v56 = vrot.slane %v4846_v29, 5  ;;  %v4856_v63 = vshrl.u32 %v9585_v27, 16  ;;  %v6578_v35 = vrot.slane %v5236_v44, 9 }
 0x1e5   : > { %7053 = vmatprep.mubr.msk.bf16.mxu1 %vm1630_vm9, %v10412_v58  ;;  %v5326_v53 = vrot.slane %v9293_v26, 5  ;;  %v5329_v57 = vrot.slane %v10413_v52, 5  ;;  %v6579_v62 = vrot.slane %v5237_v17, 9  ;;  %v9630_v54 = vrot.slane %v4825_v6, 4  ;;  %v10419_v52 = vld [vmem:[#allocation33_spill] sm:$0xff] }
 0x1e6   : > { %7204 = vmatmul.mubr.msk.bf16.gmra.mrb[4].mxu0 %vm1630_vm9, %v9421_v33  ;;  %v9632_v8 = vrot.slane %v4835_v1, 4  ;;  %v4862_v33 = vshll.u32 %v9618_v18, 16  ;;  %v5333_v34 = vrot.slane %v10414_v10, 5  ;;  %v9636_v38 = vrot.slane %v4852_v48, 5  ;;  %v4545_v1 = vld [vmem:[#allocation2 + $0xb4] sm:$0xf] }
 0x1e7   : > { %7207 = vmatprep.mubr.msk.bf16.mxu0 %vm1630_vm9, %v9437_v11  ;;  %v9640_v11 = vsel %vm8671_vm3, %v6578_v35, %v5326_v53  ;;  %v5328_v22 = vrot.slane %v5326_v53, 4  ;;  %v5336_v26 = vrot.slane %v9365_v59, 5  ;;  %v4849_v39 = vor.u32 %v4848_v56, %v4845_v21  ;;  %v10416_v48 = vld [vmem:[#allocation32_spill] sm:$0xff] }
 0x1e8   : > { %v9645_v41 = vsel %vm8671_vm3, %v6579_v62, %v5333_v34  ;;  %v5335_v29 = vrot.slane %v5333_v34, 4  ;;  %v6580_v14 = vrot.slane %v5238_v9, 9  ;;  %v10415_v58 = vcombine.low %v9386_v16, %v9401_v61  ;;  %v9670_v53 = vld [vmem:[#allocation2 + $0xb8] sm:$0xf] }
 0x1e9   : > { %v9651_v6 = vrot.slane %v4856_v63, 4  ;;  %v9655_v44 = vsel %vm8671_vm3, %v5328_v22, %v5329_v57  ;;  %v5340_v59 = vrot.slane %v9419_v2, 5  ;;  %v5343_v17 = vrot.slane %v9462_v20, 5  ;;  %v10418_v63 = vld [vmem:[#allocation30_spill] sm:$0xff] }
 0x1ea   : > { %v10417_v21 = vcombine.low %v9429_v0, %v10416_v48  ;;  %v9667_v61 = vsel %vm8671_vm3, %v5335_v29, %v5336_v26  ;;  %v6581_v56 = vrot.slane %v5239_v19, 9  ;;  %v5347_v35 = vrot.slane %v10418_v63, 5  ;;  %v2978_v29 = vld [vmem:[#allocation2 + $0x78] sm:$0xf]  ;;  %v4548_v48 = vld [vmem:[#allocation2 + $0xc0] sm:$0xf] }
 0x1eb   : > { %v9676_v0 = vsel %vm8671_vm3, %v6580_v14, %v5340_v59  ;;  %v5342_v20 = vrot.slane %v5340_v59, 4  ;;  %v5350_v57 = vrot.slane %v10419_v52, 5  ;;  %v4817_v62 = vsel %vm8272_vm10, %v9616_v3, %v9605_v42  ;;  %v7643_v14 = vld [vmem:[#allocation2 + $0xc] sm:$0xff]  }
 0x1ec   : > { %7054 = vmatmul.mubr.msk.bf16.gmra.mrb[24].mxu1 %vm1630_vm9, %v10415_v58  ;;  %v4867_v9 = vshrl.u32 %v4545_v1, 16  ;;  %v9686_v10 = vsel %vm8671_vm3, %v6581_v56, %v5347_v35  ;;  %v5349_v34 = vrot.slane %v5347_v35, 4  ;;  %v4831_v22 = vsel %vm8272_vm10, %v9630_v54, %v9565_v31  ;;  %v5240_v54 = vld [vmem:[#allocation2 + $0x78] sm:$0xe]  ;;  %v10420_v35 = vld [vmem:[#allocation22_spill] sm:$0xff] }
 0x1ed   : > { %7057 = vmatprep.mubr.msk.bf16.mxu1 %vm1630_vm9, %v10417_v21  ;;  %v9693_v26 = vrot.slane %v4862_v33, 5  ;;  %v9697_v19 = vsel %vm8671_vm3, %v5342_v20, %v5343_v17  ;;  %v4841_v58 = vsel %vm8272_vm10, %v9632_v8, %v9623_v37  ;;  %v9710_v33 = vrot.slane %v4849_v39, 4  ;;  %v5241_v8 = vld [vmem:[#allocation2 + $0x84] sm:$0xe]  ;;  %v10421_v20 = vld [vmem:[#allocation23_spill] sm:$0xff] }
 0x1ee   : > { %7208 = vmatmul.mubr.msk.bf16.gmra.mrb[8].mxu0 %vm1630_vm9, %v6547_v24  ;;  %v4870_v24 = vshll.u32 %v4545_v1, 16  ;;  %v9708_v31 = vsel %vm8671_vm3, %v5349_v34, %v5350_v57  ;;  %v4859_v1 = vor.u32 %v9651_v6, %v9636_v38  ;;  %v4880_v17 = vshrl.u32 %v9670_v53, 16  ;;  %v10422_v57 = vld [vmem:[#allocation31_spill] sm:$0xff] }
 0x1ef   : > { %7211 = vmatprep.mubr.msk.bf16.mxu0 %vm1630_vm9, %v6548_v28  ;;  %v4876_v28 = vshll.u32 %v9670_v53, 16  ;;  %v9717_v21 = vrot.slane %v4867_v9, 4  ;;  %v3216_v56 = vshrl.u32 %v2978_v29, 16  ;;  %v3219_v63 = vshll.u32 %v2978_v29, 16  ;;  %v10423_v37 = vld [vmem:[#allocation35_spill] sm:$0xff] }
 0x1f0   : > { %v3238_v39 = vsel %vm8272_vm10, %v10421_v20, %v10420_v35  ;;  %v9727_v6 = vrot.slane %v4870_v24, 5  ;;  %v6582_v52 = vrot.slane %v5240_v54, 9  ;;  %v5354_v34 = vrot.slane %v10422_v57, 5  ;;  %v9741_v54 = vld [vmem:[#allocation2 + $0xbc] sm:$0x1] }
 0x1f1   : > { %v5357_v9 = vrot.slane %v10423_v37, 5  ;;  %v4891_v29 = vshrl.u32 %v4548_v48, 16  ;;  %v3218_v59 = vrot.slane %v3216_v56, 4  ;;  %v3221_v2 = vrot.slane %v3219_v63, 5  ;;  %v7644_v63 = vld [vmem:[#allocation2 + $0x18] sm:$0xff]  }
 0x1f2   : > { %v6583_v16 = vrot.slane %v5241_v8, 9  ;;  %v4894_v35 = vshll.u32 %v4548_v48, 16  ;;  %v9736_v13 = vsel %vm8671_vm3, %v6582_v52, %v5354_v34  ;;  %v5356_v36 = vrot.slane %v5354_v34, 4 }
 0x1f3   : > { %v4882_v37 = vrot.slane %v4880_v17, 4  ;;  %v3222_v56 = vor.u32 %v3221_v2, %v3218_v59  ;;  %v5364_v8 = vrot.slane %v9515_v60, 5  ;;  %v4860_v48 = vrot.slane %v4859_v1, 4 }
 0x1f4   : > { %7058 = vmatmul.mubr.msk.bf16.gmra.mrb[28].mxu1 %vm1630_vm9, %v6381_v12  ;;  %v10424_v12 = vld [vmem:[#allocation34_spill] sm:$0xff]  ;;  %v9750_v20 = vsel %vm8671_vm3, %v5356_v36, %v5357_v9  ;;  %v4900_v17 = vshll.u32 %v9732_v51, 16  ;;  %v4904_v2 = vshrl.u32 %v9732_v51, 16  ;;  %v4893_v1 = vrot.slane %v4891_v29, 4  ;;  %v10425_v9 = vld [vmem:[#allocation21_spill] sm:$0xff]  ;;  %v10427_v36 = vld [vmem:[#allocation20_spill] sm:$0xff] }
 0x1f5   : > { %7063 = vmatprep.mubr.msk.bf16.mxu1 %vm1630_vm9, %v7643_v14  ;;  %v5361_v24 = vrot.slane %v10424_v12, 5  ;;  %v9743_v14 = vrot.slane %v4876_v28, 5  ;;  %v7645_v28 = vld [vmem:[#allocation2 + $0x24] sm:$0xff]   ;;  %v3223_v60 = vrot.slane %v3222_v56, 4  ;;  %v6598_v59 = vcombine.low %v9736_v13, %v9750_v20  ;;  %v7718_v13 = vld [vmem:[#allocation2 + $0xb0] sm:$0x1] }
 0x1f6   : > { %7212 = vmatmul.mubr.msk.bf16.gmra.mrb[12].mxu0 %vm1630_vm9, %v9593_v25  ;;  %v4896_v57 = vrot.slane %v4894_v35, 5  ;;  %v10426_v32 = vsel %vm8272_vm10, %v9571_v23, %v9537_v50  ;;  %v6553_v49 = vcombine.low %v4831_v22, %v4841_v58  ;;  %v4855_v42 = vsel %vm8272_vm10, %v9710_v33, %v9636_v38  ;;  %v9802_v50 = vld [vmem:[#allocation2 + $0xc8] sm:$0x1]  ;;  %v9806_v22 = vld [vmem:[#allocation2 + $0xd0] sm:$0xf] }
 0x1f7   : > { %7215 = vmatprep.mubr.msk.bf16.mxu0 %vm1630_vm9, %v9595_v45  ;;  %v9754_v25 = vsel %vm8671_vm3, %v6583_v16, %v5361_v24  ;;  %v5363_v52 = vrot.slane %v5361_v24, 4  ;;  %v4886_v45 = vshll.u32 %v9741_v54, 16  ;;  %v6551_v16 = vcombine.low %v4783_v5, %v4793_v4  ;;  %v5242_v4 = vld [vmem:[#allocation2 + $0x90] sm:$0xe] }
 0x1f8   : > { %v3228_v29 = vsel %vm8272_vm10, %v3223_v60, %v10425_v9  ;;  %v6552_v7 = vcombine.low %v10426_v32, %v4817_v62  ;;  %v4865_v3 = vsel %vm8272_vm10, %v4860_v48, %v9693_v26  ;;  %v9804_v23 = vrot.slane %v4900_v17, 5 }
 0x1f9   : > { %v9763_v34 = vsel %vm8671_vm3, %v5363_v52, %v5364_v8  ;;  %v9791_v5 = vcombine.low %v3228_v29, %v3238_v39  ;;  %v4906_v62 = vrot.slane %v4904_v2, 4  ;;  %v4873_v58 = vor.u32 %v9727_v6, %v9717_v21  ;;  %v5243_v8 = vld [vmem:[#allocation2 + $0x9c] sm:$0xe] }
 0x1fa   : > { %v6599_v35 = vcombine.low %v9754_v25, %v9763_v34  ;;  %v4883_v39 = vor.u32 %v4882_v37, %v9743_v14  ;;  %v4888_v12 = vrot.slane %v4886_v45, 5  ;;  %v4897_v24 = vor.u32 %v4896_v57, %v4893_v1  ;;  %v7647_v37 = vld [vmem:[#allocation2 + $0x3c] sm:$0xff]  }
 0x1fb   : > { %v4915_v38 = vshrl.u32 %v4551_v43, 16  ;;  %v4918_v33 = vshll.u32 %v4551_v43, 16  ;;  %v6584_v56 = vrot.slane %v5242_v4, 9  ;;  %v5368_v26 = vrot.slane %v9510_v46, 5 }
 0x1fc   : > { %7064 = vmatmul.mubr.msk.bf16.vlgmr.msra.gmra.mrb[0].mxu1 %vm1630_vm9, %v7644_v63  ;;  %v7646_v63 = vld [vmem:[#allocation2 + $0x30] sm:$0xff]   ;;  %v6554_v48 = vcombine.low %v4855_v42, %v4865_v3  ;;  %v4910_v52 = vshll.u32 %v9802_v50, 16  ;;  %v4924_v21 = vshll.u32 %v9806_v22, 16  ;;  %v4928_v6 = vshrl.u32 %v9806_v22, 16 }
 0x1fd   : > { %7266 = vmatpush3.bf16.msra.mxu1 %v10427_v36  ;;  %7067 = vmatprep.mubr.msk.bf16.mxu1 %vm1630_vm9, %v7645_v28  ;;  %v4907_v28 = vor.u32 %v4906_v62, %v9804_v23  ;;  %v9820_v17 = vsel %vm8671_vm3, %v6584_v56, %v5368_v26  ;;  %v5370_v2 = vrot.slane %v5368_v26, 4  ;;  %v5371_v46 = vrot.slane %v9532_v55, 5 }
 0x1fe   : > { %7216 = vmatmul.mubr.msk.bf16.gmra.mrb[16].mxu0 %vm1630_vm9, %v6551_v16  ;;  %v4874_v60 = vrot.slane %v4873_v58, 4  ;;  %v4884_v45 = vrot.slane %v4883_v39, 4  ;;  %v4898_v1 = vrot.slane %v4897_v24, 4  ;;  %v6585_v57 = vrot.slane %v5243_v8, 9  ;;  %v7648_v24 = vld [vmem:[#allocation2 + $0x48] sm:$0xff]   ;;  %v7649_v8 = vld [vmem:[#allocation2 + $0x54] sm:$0xff]  }
 0x1ff   : > { %7219 = vmatprep.mubr.msk.bf16.mxu0 %vm1630_vm9, %v6552_v7  ;;  %v4917_v16 = vrot.slane %v4915_v38, 4  ;;  %v4920_v9 = vrot.slane %v4918_v33, 5  ;;  %v9825_v29 = vsel %vm8671_vm3, %v5370_v2, %v5371_v46  ;;  %v5375_v32 = vrot.slane %v9521_v47, 5  ;;  %v9829_v7 = vld [vmem:[#allocation2 + $0xd4] sm:$0x1] }
 0x200   : > { %v9831_v43 = vrot.slane %v4924_v21, 5  ;;  %v4930_v4 = vrot.slane %v4928_v6, 4  ;;  %v6600_v55 = vcombine.low %v9820_v17, %v9825_v29  ;;  %v5378_v36 = vrot.slane %v9563_v40, 5  ;;  %v5245_v6 = vld [vmem:[#allocation2 + $0xb4] sm:$0xe] }
 0x201   : > { %v4908_v42 = vrot.slane %v4907_v28, 4  ;;  %v4912_v3 = vrot.slane %v4910_v52, 5  ;;  %v9839_v62 = vsel %vm8671_vm3, %v6585_v57, %v5375_v32  ;;  %v5377_v47 = vrot.slane %v5375_v32, 4  ;;  %v7721_v29 = vld [vmem:[#allocation2 + $0xc8] sm:$0x1] }
 0x202   : > { %v4879_v58 = vsel %vm8272_vm10, %v4874_v60, %v9743_v14  ;;  %v4934_v39 = vshll.u32 %v9829_v7, 16  ;;  %v4889_v38 = vsel %vm8272_vm10, %v4884_v45, %v4888_v12  ;;  %v4921_v33 = vor.u32 %v4920_v9, %v4917_v16  ;;  %v5244_v14 = vld [vmem:[#allocation2 + $0xa8] sm:$0xe] }
 0x203   : > { %v9848_v40 = vsel %vm8671_vm3, %v5377_v47, %v5378_v36  ;;  %v4931_v56 = vor.u32 %v4930_v4, %v9831_v43  ;;  %v4913_v52 = vsel %vm8272_vm10, %v4908_v42, %v4912_v3  ;;  %v6555_v12 = vcombine.low %v4879_v58, %v4889_v38  ;;  %v7706_v3 = vld [vmem:[#allocation2 + $0x28] sm:$0xf]  ;;  %v5233_v38 = vld [vmem:[#allocation2 + $0x24] sm:$0xe] }
 0x204   : > { %7068 = vmatmul.mubr.msk.bf16.gmra.mrb[4].mxu1 %vm1630_vm9, %v7646_v63  ;;  %v6601_v26 = vcombine.low %v9839_v62, %v9848_v40  ;;  %v4903_v63 = vsel %vm8272_vm10, %v4898_v1, %v9804_v23  ;;  %v6586_v2 = vrot.slane %v5244_v14, 9  ;;  %v4922_v60 = vrot.slane %v4921_v33, 4  ;;  %v7705_v1 = vld [vmem:[#allocation2 + $0x20] sm:$0x1]  ;;  %v10428_v33 = vld [vmem:[#allocation24_spill] sm:$0xff] }
 0x205   : > { %7071 = vmatprep.mubr.msk.bf16.mxu1 %vm1630_vm9, %v7647_v37  ;;  %v4936_v37 = vrot.slane %v4934_v39, 5  ;;  %v6556_v46 = vcombine.low %v4903_v63, %v4913_v52  ;;  %v4932_v45 = vrot.slane %v4931_v56, 4  ;;  %v5382_v57 = vrot.slane %v9585_v27, 5  ;;  %v7650_v39 = vld [vmem:[#allocation2 + $0x60] sm:$0xff]   ;;  %v5234_v14 = vld [vmem:[#allocation2 + $0x30] sm:$0xe] }
 0x206   : > { %7220 = vmatmul.mubr.msk.bf16.gmra.mrb[20].mxu0 %vm1630_vm9, %v6553_v49  ;;  %v5232_v49 = vld [vmem:[#allocation2 + $0x18] sm:$0xe]  ;;  %v5301_v16 = vrot.slane %v7705_v1, 5  ;;  %v5385_v9 = vrot.slane %v9618_v18, 5  ;;  %v6587_v32 = vrot.slane %v5245_v6, 9  ;;  %v5305_v27 = vrot.slane %v7706_v3, 5 }
 0x207   : > { %7223 = vmatprep.mubr.msk.bf16.mxu0 %vm1630_vm9, %v6554_v48  ;;  %v7704_v48 = vld [vmem:[#allocation2 + $0x1c] sm:$0xf]  ;;  %v6574_v28 = vrot.slane %v5232_v49, 9  ;;  %v9867_v4 = vsel %vm8671_vm3, %v6586_v2, %v5382_v57  ;;  %v5384_v36 = vrot.slane %v5382_v57, 4  ;;  %v5389_v47 = vrot.slane %v9670_v53, 5  ;;  %v7651_v53 = vld [vmem:[#allocation2 + $0x6c] sm:$0xff]  }
 0x208   : > { %v5298_v21 = vrot.slane %v7704_v48, 5  ;;  %v5392_v58 = vrot.slane %v9741_v54, 5  ;;  %v4927_v18 = vsel %vm8272_vm10, %v4922_v60, %v9831_v43  ;;  %v5312_v56 = vrot.slane %v10428_v33, 5  ;;  %v5246_v60 = vld [vmem:[#allocation2 + $0xc0] sm:$0xe] }
 0x209   : > { %v9883_v49 = vsel %vm8671_vm3, %v5384_v36, %v5385_v9  ;;  %v9891_v43 = vsel %vm8671_vm3, %v6587_v32, %v5389_v47  ;;  %v5391_v63 = vrot.slane %v5389_v47, 4  ;;  %v6575_v48 = vrot.slane %v5233_v38, 9  ;;  %v10429_v57 = vld [vmem:[#allocation26_spill] sm:$0xff]  ;;  %v5235_v1 = vld [vmem:[#allocation2 + $0x3c] sm:$0xe] }
 0x20a   : > { %v5300_v23 = vrot.slane %v5298_v21, 4  ;;  %v5299_v42 = vsel %vm8671_vm3, %v6574_v28, %v5298_v21  ;;  %v5307_v21 = vrot.slane %v5305_v27, 4  ;;  %v6576_v2 = vrot.slane %v5234_v14, 9  ;;  %v5247_v9 = vld [vmem:[#allocation2 + $0xcc] sm:$0xe]  ;;  %v10430_v36 = vld [vmem:[#allocation25_spill] sm:$0xff] }
 0x20b   : > { %v9895_v6 = vsel %vm8671_vm3, %v5391_v63, %v5392_v58  ;;  %v5306_v32 = vsel %vm8671_vm3, %v6575_v48, %v5305_v27  ;;  %v6588_v3 = vrot.slane %v5246_v60, 9  ;;  %v7652_v47 = vld [vmem:[#allocation2 + $0x78] sm:$0xff]   ;;  %v7653_v38 = vld [vmem:[#allocation2 + $0x84] sm:$0xff]   ;;  %v5403_v48 = vrot.slane %v9806_v22, 5 }
 0x20c   : > { %7072 = vmatmul.mubr.msk.bf16.gmra.mrb[8].mxu1 %vm1630_vm9, %v7648_v24  ;;  %v4937_v24 = vsel %vm8272_vm10, %v4932_v45, %v4936_v37  ;;  %v5302_v54 = vsel %vm8671_vm3, %v5300_v23, %v5301_v16  ;;  %v7707_v37 = vld [vmem:[#allocation2 + $0x2c] sm:$0x1]  ;;  %v5314_v45 = vrot.slane %v5312_v56, 4  ;;  %v5315_v23 = vrot.slane %v10429_v57, 5 }
 0x20d   : > { %7075 = vmatprep.mubr.msk.bf16.mxu1 %vm1630_vm9, %v7649_v8  ;;  %v6602_v8 = vcombine.low %v9867_v4, %v9883_v49  ;;  %v6557_v52 = vcombine.low %v4927_v18, %v4937_v24  ;;  %v5308_v28 = vrot.slane %v7707_v37, 5  ;;  %v2975_v16 = vld [vmem:[#allocation2 + $0x6c] sm:$0xf]  ;;  %v6577_v18 = vrot.slane %v5235_v1, 9 }
 0x20e   : > { %7224 = vmatmul.mubr.msk.bf16.gmra.mrb[24].mxu0 %vm1630_vm9, %v6555_v12  ;;  %v6590_v12 = vcombine.low %v5299_v42, %v5302_v54  ;;  %v5319_v42 = vrot.slane %v10430_v36, 5  ;;  %v5396_v24 = vrot.slane %v9732_v51, 5  ;;  %v5316_v33 = vsel %vm8671_vm3, %v5314_v45, %v5315_v23 }
 0x20f   : > { %7227 = vmatprep.mubr.msk.bf16.mxu0 %vm1630_vm9, %v6556_v46  ;;  %v6603_v46 = vcombine.low %v9891_v43, %v9895_v6  ;;  %v5309_v58 = vsel %vm8671_vm3, %v5307_v21, %v5308_v28  ;;  %v3192_v27 = vshrl.u32 %v2975_v16, 16  ;;  %v6589_v54 = vrot.slane %v5247_v9, 9 }
 0x210   : > { %v3195_v14 = vshll.u32 %v2975_v16, 16  ;;  %v9917_v63 = vsel %vm8671_vm3, %v6588_v3, %v5396_v24  ;;  %v5321_v21 = vrot.slane %v5319_v42, 4  ;;  %v5406_v37 = vrot.slane %v9829_v7, 5 }
 0x211   : > { %v9932_v57 = vsel %vm8671_vm3, %v6589_v54, %v5403_v48  ;;  %v5405_v7 = vrot.slane %v5403_v48, 4  ;;  %v3194_v23 = vrot.slane %v3192_v27, 4  ;;  %v5320_v16 = vsel %vm8671_vm3, %v6577_v18, %v5319_v42  ;;  %v7709_v18 = vld [vmem:[#allocation2 + $0x74] sm:$0x1]  ;;  %v2984_v48 = vld [vmem:[#allocation2 + $0x90] sm:$0xf] }
 0x212   : > { %v3197_v1 = vrot.slane %v3195_v14, 5  ;;  %v3211_v27 = vshll.u32 %v7709_v18, 16  ;;  %v3249_v14 = vshll.u32 %v7710_v15, 16  ;;  %v3331_v20 = vshll.u32 %v7718_v13, 16 }
 0x213   : > { %v9939_v9 = vsel %vm8671_vm3, %v5405_v7, %v5406_v37 }
 0x214   : > { %7076 = vmatmul.mubr.msk.bf16.gmra.mrb[12].mxu1 %vm1630_vm9, %v7650_v39  ;;  %v5313_v39 = vsel %vm8671_vm3, %v6576_v2, %v5312_v56  ;;  %v6591_v56 = vcombine.low %v5306_v32, %v5309_v58  ;;  %v7708_v2 = vld [vmem:[#allocation2 + $0x70] sm:$0xf]  ;;  %v6605_v58 = vcombine.low %v9932_v57, %v9939_v9  ;;  %v3213_v37 = vrot.slane %v3211_v27, 5 }
 0x215   : > { %7079 = vmatprep.mubr.msk.bf16.mxu1 %vm1630_vm9, %v7651_v53  ;;  %v5399_v53 = vrot.slane %v9802_v50, 5  ;;  %v6592_v28 = vcombine.low %v5313_v39, %v5316_v33  ;;  %v3201_v50 = vshll.u32 %v7708_v2, 16  ;;  %v3205_v60 = vshrl.u32 %v7708_v2, 16  ;;  %v7654_v32 = vld [vmem:[#allocation2 + $0x90] sm:$0xff]   ;;  %v7655_v39 = vld [vmem:[#allocation2 + $0x9c] sm:$0xff]  }
 0x216   : > { %7228 = vmatmul.mubr.msk.bf16.gmra.mrb[28].mxu0 %vm1630_vm9, %v6557_v52  ;;  %v5398_v52 = vrot.slane %v5396_v24, 4  ;;  %v2981_v24 = vld [vmem:[#allocation2 + $0x84] sm:$0xf]  ;;  %v3264_v2 = vshrl.u32 %v2984_v48, 16 }
 0x217   : > { %7233 = vmatprep.mubr.msk.bf16.mxu0 %vm1630_vm9, %v6590_v12  ;;  %v10431_v12 = vld [vmem:[#allocation27_spill] sm:$0xff]  ;;  %v3203_v3 = vrot.slane %v3201_v50, 5  ;;  %v3243_v54 = vshll.u32 %v2981_v24, 16  ;;  %v2987_v50 = vld [vmem:[#allocation2 + $0x9c] sm:$0xf] }
 0x218   : > { %v5322_v51 = vrot.slane %v10431_v12, 5  ;;  %v9925_v45 = vsel %vm8671_vm3, %v5398_v52, %v5399_v53  ;;  %v3240_v53 = vshrl.u32 %v2981_v24, 16  ;;  %v3253_v52 = vshrl.u32 %v7710_v15, 16 }
 0x219   : > { %v6604_v22 = vcombine.low %v9917_v63, %v9925_v45  ;;  %v10432_v12 = vcombine.low %v9640_v11, %v9655_v44  ;;  %v3245_v7 = vrot.slane %v3243_v54, 5  ;;  %v3288_v11 = vshrl.u32 %v2987_v50, 16 }
 0x21a   : > { %v5323_v36 = vsel %vm8671_vm3, %v5321_v21, %v5322_v51  ;;  %v7656_v21 = vld [vmem:[#allocation2 + $0xa8] sm:$0xff]   ;;  %v3291_v44 = vshll.u32 %v2987_v50, 16  ;;  %v3266_v54 = vrot.slane %v3264_v2, 4 }
 0x21b   : > { %v6593_v33 = vcombine.low %v5320_v16, %v5323_v36  ;;  %v3267_v16 = vshll.u32 %v2984_v48, 16  ;;  %v7711_v36 = vld [vmem:[#allocation2 + $0x94] sm:$0xf] }
 0x21c   : > { %7080 = vmatmul.mubr.msk.bf16.gmra.mrb[16].mxu1 %vm1630_vm9, %v7652_v47  ;;  %v3207_v47 = vrot.slane %v3205_v60, 4  ;;  %v7657_v60 = vld [vmem:[#allocation2 + $0xb4] sm:$0xff]  }
 0x21d   : > { %7083 = vmatprep.mubr.msk.bf16.mxu1 %vm1630_vm9, %v7653_v38  ;;  %v3198_v38 = vor.u32 %v3197_v1, %v3194_v23  ;;  %v9953_v23 = vrot.slane %v3249_v14, 5  ;;  %v3255_v1 = vrot.slane %v3253_v52, 4  ;;  %v3269_v15 = vrot.slane %v3267_v16, 5 }
 0x21e   : > { %7234 = vmatmul.mubr.msk.bf16.vlgmr.msra.gmra.mrb[0].mxu0 %vm1630_vm9, %v6591_v56  ;;  %v3208_v42 = vor.u32 %v3207_v47, %v3203_v3  ;;  %v3273_v47 = vshll.u32 %v7711_v36, 16  ;;  %v10433_v14 = vcombine.low %v9645_v41, %v9667_v61 }
 0x21f   : > { %7237 = vmatprep.mubr.msk.bf16.mxu0 %vm1630_vm9, %v6592_v28  ;;  %v3199_v56 = vrot.slane %v3198_v38, 4  ;;  %v3242_v28 = vrot.slane %v3240_v53, 4  ;;  %v7712_v38 = vld [vmem:[#allocation2 + $0x8c] sm:$0x1] }
 0x220   : > { %v3209_v51 = vrot.slane %v3208_v42, 4  ;;  %v7713_v42 = vld [vmem:[#allocation2 + $0xa0] sm:$0xf]  ;;  %v9966_v52 = vrot.slane %v3273_v47, 5 }
 0x221   : > { %v3297_v18 = vshll.u32 %v7713_v42, 16  ;;  %v3301_v27 = vshrl.u32 %v7713_v42, 16  ;;  %v3246_v53 = vor.u32 %v3245_v7, %v3242_v28  ;;  %v3270_v7 = vor.u32 %v3269_v15, %v3266_v54  ;;  %v7717_v15 = vld [vmem:[#allocation2 + $0xb8] sm:$0xf] }
 0x222   : > { %v3214_v24 = vsel %vm8272_vm10, %v3209_v51, %v3213_v37  ;;  %v10434_v51 = vcombine.low %v9676_v0, %v9697_v19  ;;  %v2993_v0 = vld [vmem:[#allocation2 + $0xb4] sm:$0xf] }
 0x223   : > { %v9972_v2 = vrot.slane %v3297_v18, 5  ;;  %v3303_v50 = vrot.slane %v3301_v27, 4  ;;  %v3247_v41 = vrot.slane %v3246_v53, 4  ;;  %v3271_v27 = vrot.slane %v3270_v7, 4 }
 0x224   : > { %7084 = vmatmul.mubr.msk.bf16.gmra.mrb[20].mxu1 %vm1630_vm9, %v7654_v32  ;;  %v3204_v32 = vsel %vm8272_vm10, %v3199_v56, %v3203_v3  ;;  %v3256_v3 = vor.u32 %v3255_v1, %v9953_v23  ;;  %v3290_v56 = vrot.slane %v3288_v11, 4  ;;  %v7714_v1 = vld [vmem:[#allocation2 + $0x98] sm:$0x1]  ;;  %v3339_v54 = vshll.u32 %v2993_v0, 16 }
 0x225   : > { %7087 = vmatprep.mubr.msk.bf16.mxu1 %vm1630_vm9, %v7655_v39  ;;  %v3277_v39 = vshrl.u32 %v7711_v36, 16  ;;  %v6438_v37 = vcombine.low %v3204_v32, %v3214_v24  ;;  %v3283_v16 = vshll.u32 %v7714_v1, 16  ;;  %v3304_v19 = vor.u32 %v3303_v50, %v9972_v2  ;;  %v7716_v24 = vld [vmem:[#allocation2 + $0xac] sm:$0xf] }
 0x226   : > { %7238 = vmatmul.mubr.msk.bf16.gmra.mrb[4].mxu0 %vm1630_vm9, %v6593_v33  ;;  %v3259_v33 = vshll.u32 %v7712_v38, 16  ;;  %v3257_v61 = vrot.slane %v3256_v3, 4  ;;  %v3321_v38 = vshll.u32 %v7716_v24, 16  ;;  %v3252_v42 = vsel %vm8272_vm10, %v3247_v41, %v9953_v23 }
 0x227   : > { %7241 = vmatprep.mubr.msk.bf16.mxu0 %vm1630_vm9, %v10432_v12  ;;  %v3279_v48 = vrot.slane %v3277_v39, 4  ;;  %v7658_v12 = vld [vmem:[#allocation2 + $0xc0] sm:$0xff]   ;;  %v3285_v53 = vrot.slane %v3283_v16, 5  ;;  %v3336_v3 = vshrl.u32 %v2993_v0, 16  ;;  %v3305_v23 = vrot.slane %v3304_v19, 4 }
 0x228   : > { %v3261_v28 = vrot.slane %v3259_v33, 5  ;;  %v7715_v39 = vld [vmem:[#allocation2 + $0xa4] sm:$0x1]  ;;  %v3325_v33 = vshrl.u32 %v7716_v24, 16  ;;  %v3323_v50 = vrot.slane %v3321_v38, 5  ;;  %v3341_v7 = vrot.slane %v3339_v54, 5 }
 0x229   : > { %v3280_v36 = vor.u32 %v3279_v48, %v9966_v52  ;;  %v3307_v11 = vshll.u32 %v7715_v39, 16  ;;  %v3349_v48 = vshrl.u32 %v7717_v15, 16  ;;  %v3276_v16 = vsel %vm8272_vm10, %v3271_v27, %v9966_v52  ;;  %v7719_v0 = vld [vmem:[#allocation2 + $0xc4] sm:$0xf] }
 0x22a   : > { %v3262_v18 = vsel %vm8272_vm10, %v3257_v61, %v3261_v28  ;;  %v3338_v61 = vrot.slane %v3336_v3, 4  ;;  %v3369_v19 = vshll.u32 %v7719_v0, 16 }
 0x22b   : > { %v6440_v41 = vcombine.low %v3252_v42, %v3262_v18 }
 0x22c   : > { %7088 = vmatmul.mubr.msk.bf16.gmra.mrb[24].mxu1 %vm1630_vm9, %v7656_v21  ;;  %v3293_v21 = vrot.slane %v3291_v44, 5  ;;  %v3342_v24 = vor.u32 %v3341_v7, %v3338_v61 }
 0x22d   : > { %7091 = vmatprep.mubr.msk.bf16.mxu1 %vm1630_vm9, %v7657_v60  ;;  %v2990_v60 = vld [vmem:[#allocation2 + $0xa8] sm:$0xf] }
 0x22e   : > { %7242 = vmatmul.mubr.msk.bf16.gmra.mrb[8].mxu0 %vm1630_vm9, %v10433_v14  ;;  %v3294_v47 = vor.u32 %v3293_v21, %v3290_v56  ;;  %v3312_v44 = vshrl.u32 %v2990_v60, 16  ;;  %v3315_v32 = vshll.u32 %v2990_v60, 16  ;;  %v3345_v14 = vshll.u32 %v7717_v15, 16 }
 0x22f   : > { %7245 = vmatprep.mubr.msk.bf16.mxu0 %vm1630_vm9, %v10434_v51  ;;  %v10435_v56 = vcombine.low %v9686_v10, %v9708_v31  ;;  %v3281_v21 = vrot.slane %v3280_v36, 4  ;;  %v3309_v51 = vrot.slane %v3307_v11, 5  ;;  %v3327_v60 = vrot.slane %v3325_v33, 4  ;;  %v2996_v31 = vld [vmem:[#allocation2 + $0xc0] sm:$0xf] }
 0x230   : > { %v3317_v28 = vrot.slane %v3315_v32, 5  ;;  %v3347_v1 = vrot.slane %v3345_v14, 5  ;;  %v3351_v10 = vrot.slane %v3349_v48, 4  ;;  %v3360_v52 = vshrl.u32 %v2996_v31, 16  ;;  %v7720_v33 = vld [vmem:[#allocation2 + $0xbc] sm:$0x1] }
 0x231   : > { %v3286_v36 = vsel %vm8272_vm10, %v3281_v21, %v3285_v53  ;;  %v3328_v11 = vor.u32 %v3327_v60, %v3323_v50  ;;  %v3373_v32 = vshrl.u32 %v7719_v0, 16  ;;  %v3333_v53 = vrot.slane %v3331_v20, 5 }
 0x232   : > { %v3352_v38 = vor.u32 %v3351_v10, %v3347_v1  ;;  %v3362_v3 = vrot.slane %v3360_v52, 4  ;;  %v3371_v15 = vrot.slane %v3369_v19, 5  ;;  %v3343_v48 = vrot.slane %v3342_v24, 4 }
 0x233   : > { %v3329_v27 = vrot.slane %v3328_v11, 4  ;;  %v3375_v14 = vrot.slane %v3373_v32, 4 }
 0x234   : > { %7092 = vmatmul.mubr.msk.bf16.gmra.mrb[28].mxu1 %vm1630_vm9, %v7658_v12  ;;  %v3295_v12 = vrot.slane %v3294_v47, 4  ;;  %v3310_v47 = vsel %vm8272_vm10, %v3305_v23, %v3309_v51 }
 0x235   : > { %7113 = vmatprep.mubr.msk.bf16.mxu1 %vm1630_vm9, %v6438_v37  ;;  %v3314_v37 = vrot.slane %v3312_v44, 4  ;;  %v3363_v44 = vshll.u32 %v2996_v31, 16  ;;  %v3334_v34 = vsel %vm8272_vm10, %v3329_v27, %v3333_v53  ;;  %v3376_v17 = vor.u32 %v3375_v14, %v3371_v15 }
 0x236   : > { %7246 = vmatmul.mubr.msk.bf16.gmra.mrb[12].mxu0 %vm1630_vm9, %v10435_v56  ;;  %v3353_v56 = vrot.slane %v3352_v38, 4 }
 0x237   : > { %7249 = vmatprep.mubr.msk.bf16.mxu0 %vm1630_vm9, %v6598_v59  ;;  %v3300_v59 = vsel %vm8272_vm10, %v3295_v12, %v9972_v2  ;;  %v3318_v39 = vor.u32 %v3317_v28, %v3314_v37  ;;  %v6441_v2 = vcombine.low %v3276_v16, %v3286_v36  ;;  %v3365_v54 = vrot.slane %v3363_v44, 5 }
 0x238   : > { %v6442_v42 = vcombine.low %v3300_v59, %v3310_v47  ;;  %v3348_v12 = vsel %vm8272_vm10, %v3343_v48, %v3347_v1 }
 0x239   : > { %v3319_v18 = vrot.slane %v3318_v39, 4 }
 0x23b   : > { %v3324_v25 = vsel %vm8272_vm10, %v3319_v18, %v3323_v50  ;;  %v3377_v50 = vrot.slane %v3376_v17, 4 }
 0x23c   : > { %7114 = vmatmul.mubr.msk.bf16.vlgmr.msra.gmra.mrb[16].mxu1 %vm1630_vm9, %v9791_v5  ;;  %v3355_v5 = vshll.u32 %v7720_v33, 16  ;;  %v6443_v37 = vcombine.low %v3324_v25, %v3334_v34 }
 0x23d   : > { %7117 = vmatprep.mubr.msk.bf16.mxu1 %vm1630_vm9, %v6440_v41 }
 0x23e   : > { %7250 = vmatmul.mubr.msk.bf16.gmra.mrb[16].mxu0 %vm1630_vm9, %v6599_v35  ;;  %v3357_v21 = vrot.slane %v3355_v5, 5  ;;  %v3366_v35 = vor.u32 %v3365_v54, %v3362_v3 }
 0x23f   : > { %7253 = vmatprep.mubr.msk.bf16.mxu0 %vm1630_vm9, %v6600_v55  ;;  %v3379_v55 = vshll.u32 %v7721_v29, 16 }
 0x240   : > { %v3358_v51 = vsel %vm8272_vm10, %v3353_v56, %v3357_v21  ;;  %v3367_v28 = vrot.slane %v3366_v35, 4 }
 0x241   : > { %v6444_v23 = vcombine.low %v3348_v12, %v3358_v51  ;;  %v3381_v60 = vrot.slane %v3379_v55, 5 }
 0x242   : > { %v3372_v41 = vsel %vm8272_vm10, %v3367_v28, %v3371_v15 }
 0x243   : > { %v3382_v62 = vsel %vm8272_vm10, %v3377_v50, %v3381_v60 }
 0x244   : > { %7118 = vmatmul.mubr.msk.bf16.gmra.mrb[20].mxu1 %vm1630_vm9, %v6441_v2  ;;  %v6445_v40 = vcombine.low %v3372_v41, %v3382_v62 }
 0x245   : > { %7121 = vmatprep.mubr.msk.bf16.mxu1 %vm1630_vm9, %v6442_v42 }
 0x246   : > { %7254 = vmatmul.mubr.msk.bf16.gmra.mrb[20].mxu0 %vm1630_vm9, %v6601_v26 }
 0x247   : > { %7257 = vmatprep.mubr.msk.bf16.mxu0 %vm1630_vm9, %v6602_v8 }
 0x24c   : > { %7122 = vmatmul.mubr.msk.bf16.gmra.mrb[24].mxu1 %vm1630_vm9, %v6443_v37 }
 0x24d   : > { %7125 = vmatprep.mubr.msk.bf16.mxu1 %vm1630_vm9, %v6444_v23 }
 0x24e   : > { %7258 = vmatmul.mubr.msk.bf16.gmra.mrb[24].mxu0 %vm1630_vm9, %v6603_v46 }
 0x24f   : > { %7261 = vmatprep.mubr.msk.bf16.mxu0 %vm1630_vm9, %v6604_v22 }
 0x254   : > { %7126 = vmatmul.mubr.msk.bf16.gmra.mrb[28].mxu1 %vm1630_vm9, %v6445_v40 }
 0x256   : > { %7262 = vmatmul.mubr.msk.bf16.gmra.mrb[28].mxu0 %vm1630_vm9, %v6605_v58 }
 0x2cf   : > { %v7065_v30 = vpop.f32.mrb[0].mxu1 }
 0x2d0   : > { %v2792_v26 = vpop.f32.mrb[1].mxu1 }
 0x2d1   : > { %v7066_v4 = vpop.f32.mrb[2].mxu1 }
 0x2d2   : > { %v2795_v49 = vpop.f32.mrb[3].mxu1 }
 0x2d7   : > { %v7069_v8 = vpop.f32.mrb[4].mxu1 }
 0x2d8   : > { %v2808_v43 = vpop.f32.mrb[5].mxu1 }
 0x2d9   : > { %v7070_v6 = vpop.f32.mrb[6].mxu1 }
 0x2da   : > { %v2811_v46 = vpop.f32.mrb[7].mxu1 }
 0x2df   : > { %v10049_v61 = vpop.f32.mrb[8].mxu1 }
 0x2e0   : > { %v10051_v63 = vpop.f32.mrb[9].mxu1 }
 0x2e1   : > { %v10053_v45 = vpop.f32.mrb[10].mxu1 }
 0x2e2   : > { %v10055_v22 = vpop.f32.mrb[11].mxu1 }
 0x2e7   : > { %v10057_v7 = vpop.f32.mrb[12].mxu1 }
 0x2e8   : > { %v10059_v57 = vpop.f32.mrb[13].mxu1 }
 0x2e9   : > { %v10061_v9 = vpop.f32.mrb[14].mxu1 }
 0x2ea   : > { %v10063_v58 = vpop.f32.mrb[15].mxu1 }
 0x2f1   : > { %v7235_v1 = vpop.f32.mrb[0].mxu0 }
 0x2f2   : > { %v7267_v10 = vadd.f32 %v7235_v1, %v7065_v30  ;;  %v5543_v31 = vpop.f32.mrb[1].mxu0 }
 0x2f3   : > { %v7268_v16 = vadd.f32 %v5543_v31, %v2792_v26  ;;  %v7236_v36 = vpop.f32.mrb[2].mxu0 }
 0x2f4   : > { %v6696_v13 = vpack.c.bf16 %v7267_v10, %v7267_v10  ;;  %v7269_v20 = vadd.f32 %v7236_v36, %v7066_v4  ;;  %v5546_v59 = vpop.f32.mrb[3].mxu0  ;;  %v5774_v52 = vmul.f32 %v7267_v10, %v7267_v10  ;;  %v5705_v5 = vsel %vm1630_vm9, %v7267_v10, 0.0 }
 0x2f5   : > { %v5772_v47 = vmul.f32 %v7268_v16, %v7268_v16  ;;  %v6694_v39 = vpack.c.bf16 %v7268_v16, %v7268_v16  ;;  %v7270_v11 = vadd.f32 %v5546_v59, %v2795_v49  ;;  %v5702_v0 = vsel %vm1630_vm9, %v7268_v16, 0.0 }
 0x2f6   : > { %6004 = vst.msk [vmem:[%s10067_s27 + $0x8] sm:$0xf] %vm517_vm0, %v6696_v13  ;;  %v6697_v44 = vpack.c.bf16 %v7269_v20, %v7269_v20  ;;  %v5775_v38 = vmul.f32 %v7269_v20, %v7269_v20  ;;  %v5807_v15 = vsel %vm1630_vm9, %v5774_v52, 0.0  ;;  %v5707_v56 = vsel %vm1630_vm9, %v7269_v20, 0.0 }
 0x2f7   : > { %6002 = vst.msk [vmem:[%s10067_s27] sm:$0xf] %vm517_vm0, %v6694_v39  ;;  %v5703_v19 = vsel %vm1630_vm9, %v7270_v11, 0.0  ;;  %v5773_v32 = vmul.f32 %v7270_v11, %v7270_v11  ;;  %v6695_v24 = vpack.c.bf16 %v7270_v11, %v7270_v11  ;;  %v5804_v2 = vsel %vm1630_vm9, %v5772_v47, 0.0 }
 0x2f8   : > { %6005 = vst.msk [vmem:[%s10067_s27 + $0xc] sm:$0xf] %vm517_vm0, %v6697_v44  ;;  %v5704_v33 = vadd.f32 %v5703_v19, %v5702_v0  ;;  %v5809_v21 = vsel %vm1630_vm9, %v5775_v38, 0.0 }
 0x2f9   : > { %v5805_v42 = vsel %vm1630_vm9, %v5773_v32, 0.0  ;;  %6003 = vst.msk [vmem:[%s10067_s27 + $0x4] sm:$0xf] %vm517_vm0, %v6695_v24  ;;  %v7239_v18 = vpop.f32.mrb[4].mxu0 }
 0x2fa   : > { %v5706_v27 = vadd.f32 %v5705_v5, %v5704_v33  ;;  %v5806_v53 = vadd.f32 %v5805_v42, %v5804_v2  ;;  %v7271_v3 = vadd.f32 %v7239_v18, %v7069_v8  ;;  %v5559_v54 = vpop.f32.mrb[5].mxu0 }
 0x2fb   : > { %v7272_v14 = vadd.f32 %v5559_v54, %v2808_v43  ;;  %v7240_v48 = vpop.f32.mrb[6].mxu0 }
 0x2fc   : > { %v5808_v25 = vadd.f32 %v5807_v15, %v5806_v53  ;;  %v6700_v34 = vpack.c.bf16 %v7271_v3, %v7271_v3  ;;  %v5562_v35 = vpop.f32.mrb[7].mxu0  ;;  %v5708_v17 = vadd.f32 %v5707_v56, %v5706_v27  ;;  %v7273_v37 = vadd.f32 %v7240_v48, %v7070_v6 }
 0x2fd   : > { %v5709_v29 = vsel %vm1630_vm9, %v7272_v14, 0.0  ;;  %v5776_v55 = vmul.f32 %v7272_v14, %v7272_v14  ;;  %v6698_v12 = vpack.c.bf16 %v7272_v14, %v7272_v14  ;;  %v7274_v23 = vadd.f32 %v5562_v35, %v2811_v46 }
 0x2fe   : > { %6008 = vst.msk [vmem:[%s10067_s27 + $0x18] sm:$0xf] %vm517_vm0, %v6700_v34  ;;  %v5810_v51 = vadd.f32 %v5809_v21, %v5808_v25  ;;  %v5710_v28 = vadd.f32 %v5709_v29, %v5708_v17  ;;  %v5778_v60 = vmul.f32 %v7271_v3, %v7271_v3  ;;  %v6701_v62 = vpack.c.bf16 %v7273_v37, %v7273_v37 }
 0x2ff   : > { %v5811_v50 = vsel %vm1630_vm9, %v5776_v55, 0.0  ;;  %6006 = vst.msk [vmem:[%s10067_s27 + $0x10] sm:$0xf] %vm517_vm0, %v6698_v12  ;;  %v5711_v40 = vsel %vm1630_vm9, %v7274_v23, 0.0  ;;  %v5777_v30 = vmul.f32 %v7274_v23, %v7274_v23  ;;  %v6699_v26 = vpack.c.bf16 %v7274_v23, %v7274_v23 }
 0x300   : > { %v5812_v41 = vadd.f32 %v5811_v50, %v5810_v51  ;;  %6009 = vst.msk [vmem:[%s10067_s27 + $0x1c] sm:$0xf] %vm517_vm0, %v6701_v62  ;;  %v5712_v49 = vadd.f32 %v5711_v40, %v5710_v28  ;;  %v5713_v6 = vsel %vm1630_vm9, %v7271_v3, 0.0  ;;  %v5779_v46 = vmul.f32 %v7273_v37, %v7273_v37 }
 0x301   : > { %v7243_v4 = vpop.f32.mrb[8].mxu0  ;;  %v5813_v1 = vsel %vm1630_vm9, %v5777_v30, 0.0  ;;  %6007 = vst.msk [vmem:[%s10067_s27 + $0x14] sm:$0xf] %vm517_vm0, %v6699_v26  ;;  %v5815_v16 = vsel %vm1630_vm9, %v5778_v60, 0.0  ;;  %v5715_v36 = vsel %vm1630_vm9, %v7273_v37, 0.0 }
 0x302   : > { %v7275_v8 = vadd.f32 %v7243_v4, %v10049_v61  ;;  %v5575_v43 = vpop.f32.mrb[9].mxu0  ;;  %v5714_v13 = vadd.f32 %v5713_v6, %v5712_v49  ;;  %v5814_v20 = vadd.f32 %v5813_v1, %v5812_v41 }
 0x303   : > { %v7276_v10 = vadd.f32 %v5575_v43, %v10051_v63  ;;  %v7244_v31 = vpop.f32.mrb[10].mxu0  ;;  %v5817_v63 = vsel %vm1630_vm9, %v5779_v46, 0.0 }
 0x304   : > { %v5578_v61 = vpop.f32.mrb[11].mxu0  ;;  %v6704_v59 = vpack.c.bf16 %v7275_v8, %v7275_v8  ;;  %v5816_v52 = vadd.f32 %v5815_v16, %v5814_v20  ;;  %v5716_v44 = vadd.f32 %v5715_v36, %v5714_v13  ;;  %v7277_v0 = vadd.f32 %v7244_v31, %v10053_v45 }
 0x305   : > { %v5717_v47 = vsel %vm1630_vm9, %v7276_v10, 0.0  ;;  %v5780_v39 = vmul.f32 %v7276_v10, %v7276_v10  ;;  %v6702_v11 = vpack.c.bf16 %v7276_v10, %v7276_v10  ;;  %v7278_v32 = vadd.f32 %v5578_v61, %v10055_v22 }
 0x306   : > { %6012 = vst.msk [vmem:[%s10067_s27 + $0x28] sm:$0xf] %vm517_vm0, %v6704_v59  ;;  %v5782_v24 = vmul.f32 %v7275_v8, %v7275_v8  ;;  %v5718_v38 = vadd.f32 %v5717_v47, %v5716_v44  ;;  %v5818_v33 = vadd.f32 %v5817_v63, %v5816_v52  ;;  %v6705_v5 = vpack.c.bf16 %v7277_v0, %v7277_v0 }
 0x307   : > { %v5819_v19 = vsel %vm1630_vm9, %v5780_v39, 0.0  ;;  %6010 = vst.msk [vmem:[%s10067_s27 + $0x20] sm:$0xf] %vm517_vm0, %v6702_v11  ;;  %v5719_v2 = vsel %vm1630_vm9, %v7278_v32, 0.0  ;;  %v5781_v42 = vmul.f32 %v7278_v32, %v7278_v32  ;;  %v6703_v45 = vpack.c.bf16 %v7278_v32, %v7278_v32 }
 0x308   : > { %v5820_v27 = vadd.f32 %v5819_v19, %v5818_v33  ;;  %v5720_v53 = vadd.f32 %v5719_v2, %v5718_v38  ;;  %v5721_v15 = vsel %vm1630_vm9, %v7275_v8, 0.0  ;;  %v5783_v14 = vmul.f32 %v7277_v0, %v7277_v0  ;;  %6013 = vst.msk [vmem:[%s10067_s27 + $0x2c] sm:$0xf] %vm517_vm0, %v6705_v5 }
 0x309   : > { %v7247_v18 = vpop.f32.mrb[12].mxu0  ;;  %v5821_v22 = vsel %vm1630_vm9, %v5781_v42, 0.0  ;;  %6011 = vst.msk [vmem:[%s10067_s27 + $0x24] sm:$0xf] %vm517_vm0, %v6703_v45  ;;  %v5823_v21 = vsel %vm1630_vm9, %v5782_v24, 0.0  ;;  %v5723_v25 = vsel %vm1630_vm9, %v7277_v0, 0.0 }
 0x30a   : > { %v7279_v3 = vadd.f32 %v7247_v18, %v10057_v7  ;;  %v5591_v54 = vpop.f32.mrb[13].mxu0  ;;  %v5722_v7 = vadd.f32 %v5721_v15, %v5720_v53  ;;  %v5822_v34 = vadd.f32 %v5821_v22, %v5820_v27  ;;  %v5825_v28 = vsel %vm1630_vm9, %v5783_v14, 0.0 }
 0x30b   : > { %v7280_v48 = vadd.f32 %v5591_v54, %v10059_v57  ;;  %v7248_v56 = vpop.f32.mrb[14].mxu0 }
 0x30c   : > { %v5594_v35 = vpop.f32.mrb[15].mxu0  ;;  %v6708_v17 = vpack.c.bf16 %v7279_v3, %v7279_v3  ;;  %v5824_v51 = vadd.f32 %v5823_v21, %v5822_v34  ;;  %v5724_v37 = vadd.f32 %v5723_v25, %v5722_v7  ;;  %v7281_v23 = vadd.f32 %v7248_v56, %v10061_v9 }
 0x30d   : > { %v5725_v29 = vsel %vm1630_vm9, %v7280_v48, 0.0  ;;  %v5784_v55 = vmul.f32 %v7280_v48, %v7280_v48  ;;  %v6706_v12 = vpack.c.bf16 %v7280_v48, %v7280_v48  ;;  %v7282_v60 = vadd.f32 %v5594_v35, %v10063_v58 }
 0x30e   : > { %6016 = vst.msk [vmem:[%s10067_s27 + $0x38] sm:$0xf] %vm517_vm0, %v6708_v17  ;;  %v5786_v62 = vmul.f32 %v7279_v3, %v7279_v3  ;;  %v5726_v40 = vadd.f32 %v5725_v29, %v5724_v37  ;;  %v5826_v30 = vadd.f32 %v5825_v28, %v5824_v51  ;;  %v6709_v4 = vpack.c.bf16 %v7281_v23, %v7281_v23 }
 0x30f   : > { %v7115_v57 = vpop.f32.mrb[16].mxu1  ;;  %v5827_v50 = vsel %vm1630_vm9, %v5784_v55, 0.0  ;;  %6014 = vst.msk [vmem:[%s10067_s27 + $0x30] sm:$0xf] %vm517_vm0, %v6706_v12  ;;  %v5727_v9 = vsel %vm1630_vm9, %v7282_v60, 0.0  ;;  %v5785_v49 = vmul.f32 %v7282_v60, %v7282_v60  ;;  %v6707_v8 = vpack.c.bf16 %v7282_v60, %v7282_v60 }
 0x310   : > { %v3582_v41 = vpop.f32.mrb[17].mxu1  ;;  %v5828_v46 = vadd.f32 %v5827_v50, %v5826_v30  ;;  %v5728_v1 = vadd.f32 %v5727_v9, %v5726_v40  ;;  %v5729_v58 = vsel %vm1630_vm9, %v7279_v3, 0.0  ;;  %v5787_v16 = vmul.f32 %v7281_v23, %v7281_v23  ;;  %6017 = vst.msk [vmem:[%s10067_s27 + $0x3c] sm:$0xf] %vm517_vm0, %v6709_v4 }
 0x311   : > { %v7116_v26 = vpop.f32.mrb[18].mxu1  ;;  %v7251_v43 = vpop.f32.mrb[16].mxu0  ;;  %v5829_v36 = vsel %vm1630_vm9, %v5785_v49, 0.0  ;;  %6015 = vst.msk [vmem:[%s10067_s27 + $0x34] sm:$0xf] %vm517_vm0, %v6707_v8  ;;  %v5831_v61 = vsel %vm1630_vm9, %v5786_v62, 0.0 }
 0x312   : > { %v3585_v6 = vpop.f32.mrb[19].mxu1  ;;  %v7283_v10 = vadd.f32 %v7251_v43, %v7115_v57  ;;  %v5607_v31 = vpop.f32.mrb[17].mxu0  ;;  %v5731_v59 = vsel %vm1630_vm9, %v7281_v23, 0.0  ;;  %v5730_v47 = vadd.f32 %v5729_v58, %v5728_v1  ;;  %v5830_v39 = vadd.f32 %v5829_v36, %v5828_v46 }
 0x313   : > { %v7284_v13 = vadd.f32 %v5607_v31, %v3582_v41  ;;  %v7252_v20 = vpop.f32.mrb[18].mxu0  ;;  %v5833_v33 = vsel %vm1630_vm9, %v5787_v16, 0.0 }
 0x314   : > { %v5610_v11 = vpop.f32.mrb[19].mxu0  ;;  %v6712_v52 = vpack.c.bf16 %v7283_v10, %v7283_v10  ;;  %v5832_v19 = vadd.f32 %v5831_v61, %v5830_v39  ;;  %v5732_v32 = vadd.f32 %v5731_v59, %v5730_v47  ;;  %v7285_v24 = vadd.f32 %v7252_v20, %v7116_v26 }
 0x315   : > { %v5733_v44 = vsel %vm1630_vm9, %v7284_v13, 0.0  ;;  %v5788_v0 = vmul.f32 %v7284_v13, %v7284_v13  ;;  %v6710_v63 = vpack.c.bf16 %v7284_v13, %v7284_v13  ;;  %v7286_v2 = vadd.f32 %v5610_v11, %v3585_v6 }
 0x316   : > { %6020 = vst.msk [vmem:[%s10067_s27 + $0x48] sm:$0xf] %vm517_vm0, %v6712_v52  ;;  %v5790_v45 = vmul.f32 %v7283_v10, %v7283_v10  ;;  %v5734_v18 = vadd.f32 %v5733_v44, %v5732_v32  ;;  %v5834_v27 = vadd.f32 %v5833_v33, %v5832_v19  ;;  %v6713_v3 = vpack.c.bf16 %v7285_v24, %v7285_v24 }
 0x317   : > { %v7119_v38 = vpop.f32.mrb[20].mxu1  ;;  %v5835_v5 = vsel %vm1630_vm9, %v5788_v0, 0.0  ;;  %6018 = vst.msk [vmem:[%s10067_s27 + $0x40] sm:$0xf] %vm517_vm0, %v6710_v63  ;;  %v5735_v54 = vsel %vm1630_vm9, %v7286_v2, 0.0  ;;  %v5789_v15 = vmul.f32 %v7286_v2, %v7286_v2  ;;  %v6711_v14 = vpack.c.bf16 %v7286_v2, %v7286_v2 }
 0x318   : > { %v3598_v42 = vpop.f32.mrb[21].mxu1  ;;  %v5836_v56 = vadd.f32 %v5835_v5, %v5834_v27  ;;  %v5736_v21 = vadd.f32 %v5735_v54, %v5734_v18  ;;  %v5737_v34 = vsel %vm1630_vm9, %v7283_v10, 0.0  ;;  %v5791_v35 = vmul.f32 %v7285_v24, %v7285_v24  ;;  %6021 = vst.msk [vmem:[%s10067_s27 + $0x4c] sm:$0xf] %vm517_vm0, %v6713_v3 }
 0x319   : > { %v7120_v53 = vpop.f32.mrb[22].mxu1  ;;  %v7255_v22 = vpop.f32.mrb[20].mxu0  ;;  %v5837_v17 = vsel %vm1630_vm9, %v5789_v15, 0.0  ;;  %6019 = vst.msk [vmem:[%s10067_s27 + $0x44] sm:$0xf] %vm517_vm0, %v6711_v14  ;;  %v5839_v12 = vsel %vm1630_vm9, %v5790_v45, 0.0 }
 0x31a   : > { %v3601_v48 = vpop.f32.mrb[23].mxu1  ;;  %v7287_v25 = vadd.f32 %v7255_v22, %v7119_v38  ;;  %v5623_v7 = vpop.f32.mrb[21].mxu0  ;;  %v5739_v51 = vsel %vm1630_vm9, %v7285_v24, 0.0  ;;  %v5738_v37 = vadd.f32 %v5737_v34, %v5736_v21  ;;  %v5838_v23 = vadd.f32 %v5837_v17, %v5836_v56 }
 0x31b   : > { %v7288_v29 = vadd.f32 %v5623_v7, %v3598_v42  ;;  %v7256_v55 = vpop.f32.mrb[22].mxu0  ;;  %v5841_v4 = vsel %vm1630_vm9, %v5791_v35, 0.0 }
 0x31c   : > { %v5626_v57 = vpop.f32.mrb[23].mxu0  ;;  %v6716_v28 = vpack.c.bf16 %v7287_v25, %v7287_v25  ;;  %v5840_v62 = vadd.f32 %v5839_v12, %v5838_v23  ;;  %v5740_v40 = vadd.f32 %v5739_v51, %v5738_v37  ;;  %v7289_v30 = vadd.f32 %v7256_v55, %v7120_v53 }
 0x31d   : > { %v5741_v50 = vsel %vm1630_vm9, %v7288_v29, 0.0  ;;  %v5792_v60 = vmul.f32 %v7288_v29, %v7288_v29  ;;  %v6714_v41 = vpack.c.bf16 %v7288_v29, %v7288_v29  ;;  %v7290_v49 = vadd.f32 %v5626_v57, %v3601_v48 }
 0x31e   : > { %6024 = vst.msk [vmem:[%s10067_s27 + $0x58] sm:$0xf] %vm517_vm0, %v6716_v28  ;;  %v5794_v43 = vmul.f32 %v7287_v25, %v7287_v25  ;;  %v5742_v6 = vadd.f32 %v5741_v50, %v5740_v40  ;;  %v5842_v46 = vadd.f32 %v5841_v4, %v5840_v62  ;;  %v6717_v10 = vpack.c.bf16 %v7289_v30, %v7289_v30 }
 0x31f   : > { %v7123_v26 = vpop.f32.mrb[24].mxu1  ;;  %v5843_v9 = vsel %vm1630_vm9, %v5792_v60, 0.0  ;;  %6022 = vst.msk [vmem:[%s10067_s27 + $0x50] sm:$0xf] %vm517_vm0, %v6714_v41  ;;  %v5743_v31 = vsel %vm1630_vm9, %v7290_v49, 0.0  ;;  %v5793_v58 = vmul.f32 %v7290_v49, %v7290_v49  ;;  %v6715_v16 = vpack.c.bf16 %v7290_v49, %v7290_v49 }
 0x320   : > { %v3614_v8 = vpop.f32.mrb[25].mxu1  ;;  %v5844_v20 = vadd.f32 %v5843_v9, %v5842_v46  ;;  %v5744_v61 = vadd.f32 %v5743_v31, %v5742_v6  ;;  %v5745_v39 = vsel %vm1630_vm9, %v7287_v25, 0.0  ;;  %v5795_v11 = vmul.f32 %v7289_v30, %v7289_v30  ;;  %6025 = vst.msk [vmem:[%s10067_s27 + $0x5c] sm:$0xf] %vm517_vm0, %v6717_v10 }
 0x321   : > { %v7124_v1 = vpop.f32.mrb[26].mxu1  ;;  %v7259_v36 = vpop.f32.mrb[24].mxu0  ;;  %v5845_v52 = vsel %vm1630_vm9, %v5793_v58, 0.0  ;;  %6023 = vst.msk [vmem:[%s10067_s27 + $0x54] sm:$0xf] %vm517_vm0, %v6715_v16  ;;  %v5847_v63 = vsel %vm1630_vm9, %v5794_v43, 0.0 }
 0x322   : > { %v3617_v13 = vpop.f32.mrb[27].mxu1  ;;  %v7291_v59 = vadd.f32 %v7259_v36, %v7123_v26  ;;  %v5639_v47 = vpop.f32.mrb[25].mxu0  ;;  %v5747_v19 = vsel %vm1630_vm9, %v7289_v30, 0.0  ;;  %v5746_v32 = vadd.f32 %v5745_v39, %v5744_v61  ;;  %v5846_v24 = vadd.f32 %v5845_v52, %v5844_v20 }
 0x323   : > { %v7292_v44 = vadd.f32 %v5639_v47, %v3614_v8  ;;  %v7260_v0 = vpop.f32.mrb[26].mxu0  ;;  %v5849_v3 = vsel %vm1630_vm9, %v5795_v11, 0.0 }
 0x324   : > { %v5642_v38 = vpop.f32.mrb[27].mxu0  ;;  %v6720_v33 = vpack.c.bf16 %v7291_v59, %v7291_v59  ;;  %v5848_v45 = vadd.f32 %v5847_v63, %v5846_v24  ;;  %v5748_v18 = vadd.f32 %v5747_v19, %v5746_v32  ;;  %v7293_v27 = vadd.f32 %v7260_v0, %v7124_v1 }
 0x325   : > { %v5749_v5 = vsel %vm1630_vm9, %v7292_v44, 0.0  ;;  %v5796_v2 = vmul.f32 %v7292_v44, %v7292_v44  ;;  %v6718_v42 = vpack.c.bf16 %v7292_v44, %v7292_v44  ;;  %v7294_v15 = vadd.f32 %v5642_v38, %v3617_v13 }
 0x326   : > { %6028 = vst.msk [vmem:[%s10067_s27 + $0x68] sm:$0xf] %vm517_vm0, %v6720_v33  ;;  %v5798_v22 = vmul.f32 %v7291_v59, %v7291_v59  ;;  %v5750_v48 = vadd.f32 %v5749_v5, %v5748_v18  ;;  %v5850_v56 = vadd.f32 %v5849_v3, %v5848_v45  ;;  %v6721_v25 = vpack.c.bf16 %v7293_v27, %v7293_v27 }
 0x327   : > { %v7127_v53 = vpop.f32.mrb[28].mxu1  ;;  %v5851_v54 = vsel %vm1630_vm9, %v5796_v2, 0.0  ;;  %6026 = vst.msk [vmem:[%s10067_s27 + $0x60] sm:$0xf] %vm517_vm0, %v6718_v42  ;;  %v5751_v7 = vsel %vm1630_vm9, %v7294_v15, 0.0  ;;  %v5797_v34 = vmul.f32 %v7294_v15, %v7294_v15  ;;  %v6719_v35 = vpack.c.bf16 %v7294_v15, %v7294_v15 }
 0x328   : > { %v3630_v14 = vpop.f32.mrb[29].mxu1  ;;  %v5852_v55 = vadd.f32 %v5851_v54, %v5850_v56  ;;  %v5752_v12 = vadd.f32 %v5751_v7, %v5750_v48  ;;  %v5753_v23 = vsel %vm1630_vm9, %v7291_v59, 0.0  ;;  %v5799_v57 = vmul.f32 %v7293_v27, %v7293_v27  ;;  %6029 = vst.msk [vmem:[%s10067_s27 + $0x6c] sm:$0xf] %vm517_vm0, %v6721_v25 }
 0x329   : > { %v7128_v21 = vpop.f32.mrb[30].mxu1  ;;  %v7263_v17 = vpop.f32.mrb[28].mxu0  ;;  %v5853_v28 = vsel %vm1630_vm9, %v5797_v34, 0.0  ;;  %6027 = vst.msk [vmem:[%s10067_s27 + $0x64] sm:$0xf] %vm517_vm0, %v6719_v35  ;;  %v5855_v41 = vsel %vm1630_vm9, %v5798_v22, 0.0 }
 0x32a   : > { %v3633_v29 = vpop.f32.mrb[31].mxu1  ;;  %v7295_v51 = vadd.f32 %v7263_v17, %v7127_v53  ;;  %v5655_v37 = vpop.f32.mrb[29].mxu0  ;;  %v5755_v62 = vsel %vm1630_vm9, %v7293_v27, 0.0  ;;  %v5754_v40 = vadd.f32 %v5753_v23, %v5752_v12  ;;  %v5854_v30 = vadd.f32 %v5853_v28, %v5852_v55 }
 0x32b   : > { %v7296_v50 = vadd.f32 %v5655_v37, %v3630_v14  ;;  %v7264_v60 = vpop.f32.mrb[30].mxu0  ;;  %v5857_v1 = vsel %vm1630_vm9, %v5799_v57, 0.0 }
 0x32c   : > { %v5658_v26 = vpop.f32.mrb[31].mxu0  ;;  %v6724_v4 = vpack.c.bf16 %v7295_v51, %v7295_v51  ;;  %v5856_v43 = vadd.f32 %v5855_v41, %v5854_v30  ;;  %v5756_v6 = vadd.f32 %v5755_v62, %v5754_v40  ;;  %v7297_v46 = vadd.f32 %v7264_v60, %v7128_v21 }
 0x32d   : > { %v5757_v9 = vsel %vm1630_vm9, %v7296_v50, 0.0  ;;  %v5800_v49 = vmul.f32 %v7296_v50, %v7296_v50  ;;  %v6722_v8 = vpack.c.bf16 %v7296_v50, %v7296_v50  ;;  %v7298_v31 = vadd.f32 %v5658_v26, %v3633_v29 }
 0x32e   : > { %6032 = vst.msk [vmem:[%s10067_s27 + $0x78] sm:$0xf] %vm517_vm0, %v6724_v4  ;;  %v5802_v58 = vmul.f32 %v7295_v51, %v7295_v51  ;;  %v5758_v16 = vadd.f32 %v5757_v9, %v5756_v6  ;;  %v5858_v36 = vadd.f32 %v5857_v1, %v5856_v43  ;;  %v6725_v13 = vpack.c.bf16 %v7297_v46, %v7297_v46 }
 0x32f   : > { %v5859_v10 = vsel %vm1630_vm9, %v5800_v49, 0.0  ;;  %6030 = vst.msk [vmem:[%s10067_s27 + $0x70] sm:$0xf] %vm517_vm0, %v6722_v8  ;;  %v5759_v20 = vsel %vm1630_vm9, %v7298_v31, 0.0  ;;  %v5801_v61 = vmul.f32 %v7298_v31, %v7298_v31  ;;  %v6723_v59 = vpack.c.bf16 %v7298_v31, %v7298_v31 }
 0x330   : > { %v5860_v47 = vadd.f32 %v5859_v10, %v5858_v36  ;;  %v5760_v39 = vadd.f32 %v5759_v20, %v5758_v16  ;;  %v5761_v11 = vsel %vm1630_vm9, %v7295_v51, 0.0  ;;  %v5803_v52 = vmul.f32 %v7297_v46, %v7297_v46  ;;  %6033 = vst.msk [vmem:[%s10067_s27 + $0x7c] sm:$0xf] %vm517_vm0, %v6725_v13 }
 0x331   : > { %v5861_v44 = vsel %vm1630_vm9, %v5801_v61, 0.0  ;;  %6031 = vst.msk [vmem:[%s10067_s27 + $0x74] sm:$0xf] %vm517_vm0, %v6723_v59 }
 0x332   : > { %v5762_v0 = vadd.f32 %v5761_v11, %v5760_v39  ;;  %v5862_v63 = vadd.f32 %v5861_v44, %v5860_v47 }
 0x333   : > { %7849 = shalt.err (!%p7846_p13)
}
 0x334   : > { %s7850_s10 = scalar_lea.hbm %s10200_s11, 2048  ;;  %s7854_s29 = scalar_lea.hbm %s10332_s4, 4096 }
 0x335   : > { %p7851_p0 = scmp.ne.s32.totalorder %s10200_s11, %s7850_s10  ;;  %p7855_p9 = scmp.lt.u32.totalorder %s10200_s11, %s10332_s4 }
 0x336   : > { %p7856_p12 = scmp.lt.u32.totalorder %s7854_s29, %s7850_s10  ;;  %p7858_p1 = scmp.lt.u32.totalorder %s7850_s10, %s10200_s11 }
 0x337   : > { %p7852_p5 = pnand %p7851_p0, %p8166_p6 }
 0x338   : > { %p7857_p2 = por %p7856_p12, %p7855_p9 }
 0x339   : > { %p7853_p11 = pneg %p7852_p5 }
 0x33a   : > { %p7859_p4 = por %p7858_p1, %p7857_p2 }
 0x33c   : > { %p7860_p8 = pnand %p7859_p4, %p7853_p11 }
 0x33e   : > { %7863 = shalt.err (!%p7860_p8)
}
 0x33f   : > { %s7982_s19 = smov 64   ;;  %s7983_s14 = smov 4   ;;  %v5863_v19 = vsel %vm1630_vm9, %v5802_v58, 0.0  ;;  %v5763_v32 = vsel %vm1630_vm9, %v7297_v46, 0.0  ;;  %v5865_v33 = vsel %vm1630_vm9, %v5803_v52, 0.0 }
 0x340   : > { %7547 = dma.vmem_to_hbm [thread:$0]  (%p8166_p6), %s10202_s9, 2048, %s10200_s11, %s6035_s15, %s7982_s19, %s7982_s19, %s7983_s14   ;;  %v5764_v24 = vadd.f32 %v5763_v32, %v5762_v0  ;;  %v5864_v38 = vadd.f32 %v5863_v19, %v5862_v63 }
 0x341   : > { %s6039_s9 = sand.u32 1, %s8042_s25   ;;  %s6657_s11 = sshll.u32 %s8042_s25, 4 }
 0x342   : > { %v5765_v5 = vrot.slane %v5764_v24, 4  ;;  %v5866_v2 = vadd.f32 %v5865_v33, %v5864_v38  ;;  %s319_s15 = scalar_lea.vmem [#allocation12], %s8214_s20  ;;  %s325_s30 = scalar_lea.vmem [#allocation14], %s8214_s20 }
 0x343   : > { %s6072_s12 = sshll.u32 %s319_s15, 4  ;;  %s6085_s10 = sshll.u32 %s325_s30, 4  ;;  %s10249_s12 = int_to_ptr.vmem [resolvable:$true] %s6072_s12  ;;  %s10257_s10 = int_to_ptr.vmem [resolvable:$true] %s6085_s10 }
 0x344   : > { %v5766_v42 = vadd.f32 %v5765_v5, %v5764_v24  ;;  %v5867_v45 = vrot.slane %v5866_v2, 4  ;;  %s10247_s29 = scalar_lea.hbm %s10333_s5, %s6657_s11  ;;  %s10255_s8 = scalar_lea.hbm %s10334_s6, %s6657_s11 }
 0x345   : > { %s10259_s19 = scalar_lea.sflag [#allocation13], %s6039_s9  ;;  %s7864_s14 = scalar_lea.vmem %s10249_s12, 16 }
 0x346   : > { %v5767_v18 = vrot.slane %v5766_v42, 2  ;;  %v5868_v27 = vadd.f32 %v5867_v45, %v5866_v2  ;;  %p7865_p3 = scmp.ne.s32.totalorder %s10249_s12, %s7864_s14  ;;  %s7984_s7 = smov [#allocation12]  }
 0x347   : > { %s7868_s27 = sshll.u32 %s7984_s7, 4  ;;  %s7869_s27 = int_to_ptr.vmem [resolvable:$false] %s7868_s27 }
 0x348   : > { %v5768_v53 = vadd.f32 %v5767_v18, %v5766_v42  ;;  %v5869_v3 = vrot.slane %v5868_v27, 2  ;;  %p7866_p7 = pnand %p7865_p3, %p8166_p6  ;;  %s7870_s26 = scalar_lea.vmem %s7869_s27, 32 }
 0x349   : > { %p7871_p13 = scmp.lt.s32.totalorder %s10249_s12, %s7869_s27  ;;  %p7872_p0 = scmp.lt.s32.totalorder %s7870_s26, %s7864_s14 }
 0x34a   : > { %v5870_v54 = vadd.f32 %v5869_v3, %v5868_v27  ;;  %v5769_v15 = vrot.slane %v5768_v53, 1  ;;  %p7867_p10 = pneg %p7866_p7 }
 0x34b   : > { %p7873_p5 = por %p7872_p0, %p7871_p13 }
 0x34c   : > { %v5871_v14 = vrot.slane %v5870_v54, 1  ;;  %v5770_v22 = vadd.f32 %v5769_v15, %v5768_v53 }
 0x34d   : > { %p7874_p11 = pnand %p7873_p5, %p7867_p10 }
 0x34e   : > { %5771 = vst.msk [vmem:[%s319_s15] sm:$0x1] %vm520_vm1, %v5770_v22  ;;  %v5872_v48 = vadd.f32 %v5871_v14, %v5870_v54 }
 0x34f   : > { %7877 = shalt.err (!%p7874_p11)
}
 0x350   : > { %s7878_s9 = scalar_lea.hbm %s10247_s29, 16  ;;  %s7882_s25 = scalar_lea.hbm %s10333_s5, 32 }
 0x351   : > { %p7879_p9 = scmp.ne.s32.totalorder %s10247_s29, %s7878_s9  ;;  %p7883_p1 = scmp.lt.u32.totalorder %s10247_s29, %s10333_s5 }
 0x352   : > { %p7884_p4 = scmp.lt.u32.totalorder %s7882_s25, %s7878_s9  ;;  %p7886_p3 = scmp.lt.u32.totalorder %s7878_s9, %s10247_s29 }
 0x353   : > { %p7880_p12 = pnand %p7879_p9, %p8166_p6 }
 0x354   : > { %p7885_p8 = por %p7884_p4, %p7883_p1 }
 0x355   : > { %p7881_p2 = pneg %p7880_p12 }
 0x356   : > { %p7887_p7 = por %p7886_p3, %p7885_p8 }
 0x358   : > { %p7888_p10 = pnand %p7887_p7, %p7881_p2 }
 0x35a   : > { %7891 = shalt.err (!%p7888_p10)
}
 0x35b   : > { %7548 = dma.vmem_to_hbm [thread:$0]  (%p8166_p6), %s10249_s12, 16, %s10247_s29, %s10259_s19   ;;  %5873 = vst.msk [vmem:[%s325_s30] sm:$0x1] %vm520_vm1, %v5872_v48 }
 0x35c   : > { %s7892_s26 = scalar_lea.vmem %s10257_s10, 16  ;;  %s7985_s14 = smov [#allocation14]  }
 0x35d   : > { %p7893_p13 = scmp.ne.s32.totalorder %s10257_s10, %s7892_s26  ;;  %s7896_s27 = sshll.u32 %s7985_s14, 4  ;;  %s7897_s27 = int_to_ptr.vmem [resolvable:$false] %s7896_s27 }
 0x35e   : > { %s7898_s9 = scalar_lea.vmem %s7897_s27, 32  ;;  %p7899_p11 = scmp.lt.s32.totalorder %s10257_s10, %s7897_s27 }
 0x35f   : > { %p7894_p0 = pnand %p7893_p13, %p8166_p6  ;;  %p7900_p9 = scmp.lt.s32.totalorder %s7898_s9, %s7892_s26 }
 0x361   : > { %p7895_p5 = pneg %p7894_p0  ;;  %p7901_p12 = por %p7900_p9, %p7899_p11 }
 0x363   : > { %p7902_p2 = pnand %p7901_p12, %p7895_p5 }
 0x365   : > { %7905 = shalt.err (!%p7902_p2)
}
 0x366   : > { %s7906_s20 = scalar_lea.hbm %s10255_s8, 16  ;;  %s7910_s29 = scalar_lea.hbm %s10334_s6, 32 }
 0x367   : > { %p7907_p1 = scmp.ne.s32.totalorder %s10255_s8, %s7906_s20  ;;  %p7911_p3 = scmp.lt.u32.totalorder %s10255_s8, %s10334_s6 }
 0x368   : > { %p7912_p7 = scmp.lt.u32.totalorder %s7910_s29, %s7906_s20  ;;  %p7914_p13 = scmp.lt.u32.totalorder %s7906_s20, %s10255_s8 }
 0x369   : > { %p7908_p4 = pnand %p7907_p1, %p8166_p6 }
 0x36a   : > { %p7913_p10 = por %p7912_p7, %p7911_p3 }
 0x36b   : > { %p7909_p8 = pneg %p7908_p4 }
 0x36c   : > { %p7915_p0 = por %p7914_p13, %p7913_p10 }
 0x36e   : > { %p7916_p5 = pnand %p7915_p0, %p7909_p8 }
 0x370   : > { %7919 = shalt.err (!%p7916_p5)
}
 0x371   : > { %7549 = dma.vmem_to_hbm [thread:$0]  (%p8166_p6), %s10257_s10, 16, %s10255_s8, %s10259_s19  }
 0x372 PF: > { %s6097_s25 = sand.u32 1, %s7958_s21   ;;  %p10436_p11 = scmp.ne.s32.totalorder %s10354_s28, 0 }
 0x373   : > { %p10437_p9 = scmp.ge.s32.totalorder %s7970_s24, 2  ;;  %s6098_s18 = scalar_lea.sflag [#allocation5], %s6097_s25 }
 0x375   : > { %p7568_p12 = pnand %p10437_p9, %p10436_p11 }
 0x377   : > { %7949 = dma.done.wait (!%p7568_p12), %s6098_s18, 2048  }
 0x378   : > { %7951 = vsyncadd (!%p7568_p12), %s6098_s18, 4294965248  ;;  %s10438_s7 = sadd.s32 4294967294, %s7970_s24  }
 0x379   : > { %s6106_s26 = sand.u32 1, %s10438_s7  }
 0x37a   : > { %s6107_s14 = scalar_lea.sflag [#allocation13], %s6106_s26 }
 0x37b   : > { %7953 = dma.done.wait (!%p7568_p12), %s6107_s14, 32  }
 0x37c   : > { %7955 = vsyncadd (!%p7568_p12), %s6107_s14, 4294967264  ;;  %p25_p6 = scmp.ge.s32.totalorder %s8152_s13, 4   ;;  %s10439_s21 = smov %s7962_s22 }
 0x37d   : > { %s10440_s22 = smov %s7966_s23  ;;  %s10441_s23 = smov %s8162_s16 }
 0x37e   : > { %s10442_s24 = smov %s8152_s13  ;;  %27 = sbr.rel (!%p25_p6) target bundleno = 9 (0x9), region = 136 }
 0x385   :  { %6119 = vsyncpa [#allocation4], 1 }
 0x386   :  { %6121 = vsyncpa [#allocation4 + $0x1], 1 }
 0x387   :  { %6122 = vsyncpa [#allocation7], 1 }
 0x388   :  { %6123 = vsyncpa [#allocation10], 1 }
 0x389   :  { %6124 = vsyncpa [#allocation5], 1 }
 0x38a   :  { %6126 = vsyncpa [#allocation5 + $0x1], 1 }
 0x38b   :  { %6127 = vsyncpa [#allocation13], 1 }
 0x38c   :  { %6129 = vsyncpa [#allocation13 + $0x1], 1 }

</bundles_post_ra>
